<compile_context>
chip_gen: v6e
topology: v6e:2x2x1
jax: 0.10.0
libtpu: 0.0.40
codegen_flags: <defaults>
</compile_context>

<pallas_src>
import numpy as np

import jax
import jax.numpy as jnp
from jax.experimental import pallas as pl
from jax.experimental.pallas import tpu as pltpu

LATENT_DIM = 32          # original: 256
IMG_HW = 16              # original: 256
BATCH = 2

C1, C2 = 32, 64                               # encoder channel counts
OH1, OH2 = IMG_HW // 2, IMG_HW // 4           # 8, 4 (spatial after conv1/conv2)
NPOS = OH2 * OH2                              # 16 spatial positions after encoder
R1 = 9 * NPOS * BATCH                         # 288 fused conv1/conv2 patch rows
FLAT = C2 * NPOS                              # 1024 (Flatten width)

# decoder canvas geometry (HWBC row layout: row = (y*W + x)*B + b)
G_W = OH2 + 1                                 # 5: padded width of the 4x4 grid
Q_LEN = 4 * G_W * BATCH                       # 40: rows per deconv1 parity class
G_ROWS = 56                                   # >= (G_W+1)*B + Q_LEN = 52
DEC_H = 2 * OH2 - 1                           # 7: spatial size after deconv1
H3_W = 8                                      # padded width of the 7x7 grid
R_LEN = DEC_H * H3_W * BATCH                  # 112: rows per deconv2 parity class
H3_ROWS = 136                                 # >= (H3_W+1)*B + R_LEN = 130
OUT_H = 2 * DEC_H - 1                         # 13: final reconstruction size


# ----------------------------------------------------------------------------
# The fused Pallas kernel
# ----------------------------------------------------------------------------
def _vae_kernel(p1_ref, vmask_ref, w1_ref, b1_ref, w2_ref, b2_ref,
                elw_ref, elb_ref, eps_ref, dlw_ref, dlb_ref,
                t1w_ref, t1b_ref, t2w_ref, t2b_ref,
                henc_ref, rec_ref, gp_ref, h3_ref):
    f32, bf16 = jnp.float32, jnp.bfloat16
    B = BATCH

    # ---- encoder conv1 (1->32): VPU 9-tap FMA ------------------------------
    # p1 rows are pre-gathered so that row block k (32 rows) is exactly the
    # zero-padded conv2 tap-view k of the conv1 feature map (HWBC order).
    p1 = p1_ref[...]                                       # (288, 9)  f32
    w1 = w1_ref[...]                                       # (9, 32)   f32
    acc1 = jnp.zeros((R1, C1), f32)
    for t in range(9):
        acc1 = acc1 + p1[:, t:t + 1] * w1[t:t + 1, :]
    h1v = jnp.maximum(acc1 + b1_ref[...], 0.0) * vmask_ref[...]   # (288, 32)

    # ---- encoder conv2 (32->64): 9 tap matmuls on the MXU (bf16 x bf16) ----
    acc2 = jnp.zeros((NPOS * B, C2), f32)
    for k in range(9):
        vk = h1v[k * NPOS * B:(k + 1) * NPOS * B, :].astype(bf16)  # (32, 32)
        acc2 = acc2 + jnp.dot(vk, w2_ref[k], preferred_element_type=f32)
    h2 = jnp.maximum(acc2 + b2_ref[...], 0.0)              # (32, 64), rows=(y,x,b)

    # ---- encoder Linear(1024 -> 2L): per-position matmuls ------------------
    # (weights pre-reordered so no runtime transpose / flatten is needed)
    acc3 = jnp.zeros((B, 2 * LATENT_DIM), f32)
    for p in range(NPOS):
        hp = h2[p * B:(p + 1) * B, :].astype(bf16)         # (2, 64)
        acc3 = acc3 + jnp.dot(hp, elw_ref[p], preferred_element_type=f32)
    henc = acc3 + elb_ref[...]                             # (2, 2L)
    henc_ref[...] = henc

    # ---- reparameterize: z = mu + eps * exp(0.5*logvar) (fused, EUP exp) ---
    # (torch.randn_like -> eps is generated host-side and passed in)
    mu = henc[:, :LATENT_DIM]
    logvar = henc[:, LATENT_DIM:]
    z = mu + eps_ref[...] * jnp.exp(0.5 * logvar)          # (2, 32)

    # ---- decoder Linear(L -> 1024): single lane-dense MXU matmul -----------
    d = jnp.dot(z.astype(bf16), dlw_ref[...], preferred_element_type=f32)
    d = jnp.maximum(d + dlb_ref[...], 0.0)                 # (2, 1024), cols=(pos, c)

    # scatter the NHWC-ordered features into the padded 4x4 canvas (HWBC rows)
    gp_ref[...] = jnp.zeros((G_ROWS, C2), f32)
    for p in range(NPOS):
        y, x = divmod(p, OH2)
        r0 = (y * G_W + x) * B
        gp_ref[r0:r0 + B, :] = d[:, p * C2:(p + 1) * C2]

    # ---- deconv1 (64->32, k3 s2 p1): sub-pixel decomposition ---------------
    # Output parity class (dy,dx) is a small stride-1 conv of the 4x4 grid;
    # shifted views are contiguous flat slices of the padded canvas.
    def gview(dy, dx):
        off = (dy * G_W + dx) * B
        return gp_ref[off:off + Q_LEN, :].astype(bf16)     # (40, 64)

    def mm1(dy, dx, k):                                    # k = ky*3 + kx
        return jnp.dot(gview(dy, dx), t1w_ref[k], preferred_element_type=f32)

    t1b = t1b_ref[...]
    q00 = jnp.maximum(mm1(0, 0, 4) + t1b, 0.0)
    q01 = jnp.maximum(mm1(0, 1, 3) + mm1(0, 0, 5) + t1b, 0.0)
    q10 = jnp.maximum(mm1(1, 0, 1) + mm1(0, 0, 7) + t1b, 0.0)
    q11 = jnp.maximum(mm1(1, 1, 0) + mm1(1, 0, 2)
                      + mm1(0, 1, 6) + mm1(0, 0, 8) + t1b, 0.0)   # (40, 32) each

    # interleave the 4 parity outputs into the padded 7x7 canvas
    h3_ref[...] = jnp.zeros((H3_ROWS, C1), f32)
    for dy, dx, qv in ((0, 0, q00), (0, 1, q01), (1, 0, q10), (1, 1, q11)):
        ny = OH2 if dy == 0 else OH2 - 1
        nx = OH2 if dx == 0 else OH2 - 1
        for i in range(ny):
            for j in range(nx):
                src = (i * G_W + j) * B
                dst = ((2 * i + dy) * H3_W + (2 * j + dx)) * B
                h3_ref[dst:dst + B, :] = qv[src:src + B, :]

    # ---- deconv2 (32->1, k3 s2 p1): sub-pixel, Cout=1 on the VPU -----------
    def hview(dy, dx):
        off = (dy * H3_W + dx) * B
        return h3_ref[off:off + R_LEN, :]                  # (112, 32) f32

    t2w = t2w_ref[...]                                     # (9, 32)
    t2b = t2b_ref[...]                                     # (1, 1)
    taps = (((0, 0, 4),),
            ((0, 1, 3), (0, 0, 5)),
            ((1, 0, 1), (0, 0, 7)),
            ((1, 1, 0), (1, 0, 2), (0, 1, 6), (0, 0, 8)))
    for cls, tap_list in enumerate(taps):
        acc = jnp.zeros((R_LEN, C1), f32)
        for (dy, dx, k) in tap_list:
            acc = acc + hview(dy, dx) * t2w[k:k + 1, :]
        logit = jnp.sum(acc, axis=1, keepdims=True) + t2b  # (112, 1)
        rec_ref[cls * R_LEN:(cls + 1) * R_LEN, :] = pl.reciprocal(
            1.0 + jnp.exp(-logit), approx=True)            # sigmoid via EUP


def _spec(shape):
    zeros = (0,) * len(shape)
    return pl.BlockSpec(shape, lambda i, _z=zeros: _z)


def _vae_pallas(p1, vmask, w1, b1, w2, b2, elw, elb, eps, dlw, dlb,
                t1w, t1b, t2w, t2b):
    args = (p1, vmask, w1, b1, w2, b2, elw, elb, eps, dlw, dlb,
            t1w, t1b, t2w, t2b)
    return pl.pallas_call(
        _vae_kernel,
        grid=(1,),
        in_specs=[_spec(a.shape) for a in args],
        out_specs=(_spec((BATCH, 2 * LATENT_DIM)), _spec((4 * R_LEN, 1))),
        out_shape=(jax.ShapeDtypeStruct((BATCH, 2 * LATENT_DIM), jnp.float32),
                   jax.ShapeDtypeStruct((4 * R_LEN, 1), jnp.float32)),
        scratch_shapes=[pltpu.VMEM((G_ROWS, C2), jnp.float32),
                        pltpu.VMEM((H3_ROWS, C1), jnp.float32)],
        compiler_params=pltpu.CompilerParams(
            dimension_semantics=("arbitrary",)),
    )(*args)


# ----------------------------------------------------------------------------
# One-time parameter re-layout + gather-table construction (init time)
# ----------------------------------------------------------------------------
def _build_encoder_gather():
    """Index/mask tables so a single host gather of the input image produces,
    per conv2 tap k, the 32 (zero-padded) conv1 patches conv2 needs."""
    B, H = BATCH, IMG_HW
    gidx = np.zeros((R1, 9), np.int32)
    emask = np.zeros((R1, 9), np.float32)
    vmask = np.zeros((R1, 1), np.float32)
    for k2 in range(9):
        ky2, kx2 = divmod(k2, 3)
        for i in range(OH2):
            for j in range(OH2):
                for b in range(B):
                    r = k2 * (NPOS * B) + (i * OH2 + j) * B + b
                    yh = 2 * i - 1 + ky2            # conv1-output row needed
                    xh = 2 * j - 1 + kx2
                    if not (0 <= yh < OH1 and 0 <= xh < OH1):
                        continue                    # conv2 zero padding
                    vmask[r, 0] = 1.0
                    for t in range(9):
                        ky1, kx1 = divmod(t, 3)
                        yy = 2 * yh - 1 + ky1       # input pixel
                        xx = 2 * xh - 1 + kx1
                        if 0 <= yy < H and 0 <= xx < H:
                            gidx[r, t] = b * H * H + yy * H + xx
                            emask[r, t] = 1.0
    return jnp.asarray(gidx), jnp.asarray(emask), jnp.asarray(vmask)


def prepare_params(params):
    """Re-layout PyTorch-style parameters into kernel form ONCE (never in the
    hot path): per-tap matrices, NHWC-flatten ordering, bf16 MXU operands."""
    f32, bf16 = jnp.float32, jnp.bfloat16
    L = LATENT_DIM
    prep = {}
    # conv1 (1->32): per-tap rows, VPU path (f32).
    prep["w1"] = params["ec1_w"].reshape(C1, 9).T.astype(f32)            # (9, 32)
    prep["b1"] = params["ec1_b"].reshape(1, C1).astype(f32)
    # conv2 (32->64): one (Cin, Cout) matrix per tap.
    prep["w2"] = params["ec2_w"].transpose(2, 3, 1, 0).reshape(9, C1, C2).astype(bf16)
    prep["b2"] = params["ec2_b"].reshape(1, C2).astype(f32)
    # encoder Linear: NCHW-flatten reordered to per-spatial-position blocks.
    prep["elw"] = params["el_w"].reshape(2 * L, C2, NPOS).transpose(2, 1, 0).astype(bf16)
    prep["elb"] = params["el_b"].reshape(1, 2 * L).astype(f32)
    # decoder Linear: (L, flat) with columns ordered (position, channel).
    dlw = params["dl_w"].reshape(C2, NPOS, L).transpose(1, 0, 2).reshape(FLAT, L).T
    prep["dlw"] = dlw.astype(bf16)                                        # (32, 1024)
    prep["dlb"] = params["dl_b"].reshape(C2, NPOS).T.reshape(1, FLAT).astype(f32)
    # deconv1 (64->32): per-tap (Cin, Cout) matrices (sub-pixel decomposition).
    prep["t1w"] = params["dt1_w"].transpose(2, 3, 0, 1).reshape(9, C2, C1).astype(bf16)
    prep["t1b"] = params["dt1_b"].reshape(1, C1).astype(f32)
    # deconv2 (32->1): per-tap rows, VPU path (f32).
    prep["t2w"] = params["dt2_w"].reshape(C1, 9).T.astype(f32)            # (9, 32)
    prep["t2b"] = params["dt2_b"].reshape(1, 1).astype(f32)
    # fused conv1/conv2 first-layer patch gather.
    prep["gidx"], prep["emask"], prep["vmask"] = _build_encoder_gather()
    return prep


# ----------------------------------------------------------------------------
# Forward pass (wrapper does only tiny layout plumbing around the one kernel)
# ----------------------------------------------------------------------------
def vae_forward(prep, x, eps):
    B = x.shape[0]
    x_flat = x.reshape(B * IMG_HW * IMG_HW)                # Cin == 1
    p1 = x_flat[prep["gidx"]] * prep["emask"]              # (288, 9) patches
    henc, rec = _vae_pallas(
        p1, prep["vmask"], prep["w1"], prep["b1"], prep["w2"], prep["b2"],
        prep["elw"], prep["elb"], eps, prep["dlw"], prep["dlb"],
        prep["t1w"], prep["t1b"], prep["t2w"], prep["t2b"])
    mu = henc[:, :LATENT_DIM]
    logvar = henc[:, LATENT_DIM:]
    # interleave the 4 sub-pixel parity planes into the (13, 13) reconstruction
    parts = []
    for cls in range(4):
        blk = rec[cls * R_LEN:(cls + 1) * R_LEN, 0].reshape(DEC_H, H3_W, B)
        parts.append(jnp.transpose(blk[:, :DEC_H, :], (2, 0, 1)))    # (B, 7, 7)
    even = jnp.stack([parts[0], parts[1]], axis=-1)                  # dy = 0
    odd = jnp.stack([parts[2], parts[3]], axis=-1)                   # dy = 1
    full = jnp.stack([even, odd], axis=2)                            # (B,7,2,7,2)
    recon = full.reshape(B, 2 * DEC_H, 2 * DEC_H)[:, :OUT_H, :OUT_H]
    return recon.reshape(B, 1, OUT_H, OUT_H), mu, logvar


# ----------------------------------------------------------------------------
# Parameters (PyTorch layout) and pure-JAX reference for validation
# ----------------------------------------------------------------------------
def init_params(key, latent_dim, img_hw):
    hq = img_hw // 4
    flat = 64 * hq * hq
    ks = jax.random.split(key, 12)
    s = 0.05
    return {
        "ec1_w": jax.random.normal(ks[0], (32, 1, 3, 3), jnp.float32) * s,
        "ec1_b": jax.random.normal(ks[1], (32,), jnp.float32) * s,
        "ec2_w": jax.random.normal(ks[2], (64, 32, 3, 3), jnp.float32) * s,
        "ec2_b": jax.random.normal(ks[3], (64,), jnp.float32) * s,
        "el_w": jax.random.normal(ks[4], (2 * latent_dim, flat), jnp.float32) * s,
        "el_b": jax.random.normal(ks[5], (2 * latent_dim,), jnp.float32) * s,
        "dl_w": jax.random.normal(ks[6], (flat, latent_dim), jnp.float32) * s,
        "dl_b": jax.random.normal(ks[7], (flat,), jnp.float32) * s,
        "dt1_w": jax.random.normal(ks[8], (64, 32, 3, 3), jnp.float32) * s,
        "dt1_b": jax.random.normal(ks[9], (32,), jnp.float32) * s,
        "dt2_w": jax.random.normal(ks[10], (32, 1, 3, 3), jnp.float32) * s,
        "dt2_b": jax.random.normal(ks[11], (1,), jnp.float32) * s,
    }


def vae_reference(params, x, eps):
    """Pure-JAX (XLA) reference matching the PyTorch module semantics."""
    def conv(x, w, b, stride, pad):
        out = jax.lax.conv_general_dilated(
            x, w, window_strides=(stride, stride),
            padding=[(pad, pad), (pad, pad)],
            dimension_numbers=("NCHW", "OIHW", "NCHW"))
        return out + b.reshape(1, -1, 1, 1)

    def convT(x, w, b, stride, pad):
        wk = jnp.flip(w, axis=(2, 3)).transpose(1, 0, 2, 3)
        K = w.shape[2]
        out = jax.lax.conv_general_dilated(
            x, wk, window_strides=(1, 1),
            padding=[(K - 1 - pad, K - 1 - pad)] * 2,
            lhs_dilation=(stride, stride),
            dimension_numbers=("NCHW", "OIHW", "NCHW"))
        return out + b.reshape(1, -1, 1, 1)

    B = x.shape[0]
    h = jax.nn.relu(conv(x, params["ec1_w"], params["ec1_b"], 2, 1))
    h = jax.nn.relu(conv(h, params["ec2_w"], params["ec2_b"], 2, 1))
    henc = h.reshape(B, -1) @ params["el_w"].T + params["el_b"]
    mu, logvar = henc[:, :LATENT_DIM], henc[:, LATENT_DIM:]
    z = mu + eps * jnp.exp(0.5 * logvar)
    d = jax.nn.relu(z @ params["dl_w"].T + params["dl_b"])
    d = d.reshape(B, 64, OH2, OH2)
    d = jax.nn.relu(convT(d, params["dt1_w"], params["dt1_b"], 2, 1))
    recon = jax.nn.sigmoid(convT(d, params["dt2_w"], params["dt2_b"], 2, 1))
    return recon, mu, logvar


if __name__ == "__main__":
    root = jax.random.PRNGKey(0)
    k_params, k_x, k_eps = jax.random.split(root, 3)

    params = init_params(k_params, LATENT_DIM, IMG_HW)
    prep = prepare_params(params)
    x = jax.random.normal(k_x, (BATCH, 1, IMG_HW, IMG_HW), jnp.float32)
    eps = jax.random.normal(k_eps, (BATCH, LATENT_DIM), jnp.float32)

    recon, mu, logvar = jax.jit(vae_forward)(prep, x, eps)
    jax.block_until_ready((recon, mu, logvar))

    # shape / range sanity: ConvTranspose(k=3,s=2,p=1) twice on 4x4 -> 7 -> 13
    assert recon.shape == (BATCH, 1, OUT_H, OUT_H)
    assert mu.shape == (BATCH, LATENT_DIM) and logvar.shape == (BATCH, LATENT_DIM)
    assert bool(jnp.all((recon >= 0.0) & (recon <= 1.0)))

    # numerical check against the pure-JAX reference (bf16 MXU tolerance)
    recon_r, mu_r, logvar_r = jax.jit(vae_reference)(params, x, eps)
    assert float(jnp.max(jnp.abs(recon - recon_r))) < 2e-2
    assert float(jnp.max(jnp.abs(mu - mu_r))) < 2e-2
    assert float(jnp.max(jnp.abs(logvar - logvar_r))) < 2e-2

    print("KERNEL_OK")
</pallas_src>

<mosaic_0001>
module attributes {stable_mosaic.version = 11 : i64} {
  func.func @_vae_kernel(%arg0: i32, %arg1: memref<288x9xf32, #tpu.memory_space<vmem>>, %arg2: memref<288x1xf32, #tpu.memory_space<vmem>>, %arg3: memref<9x32xf32, #tpu.memory_space<vmem>>, %arg4: memref<1x32xf32, #tpu.memory_space<vmem>>, %arg5: memref<9x32x64xbf16, #tpu.memory_space<vmem>>, %arg6: memref<1x64xf32, #tpu.memory_space<vmem>>, %arg7: memref<16x64x64xbf16, #tpu.memory_space<vmem>>, %arg8: memref<1x64xf32, #tpu.memory_space<vmem>>, %arg9: memref<2x32xf32, #tpu.memory_space<vmem>>, %arg10: memref<32x1024xbf16, #tpu.memory_space<vmem>>, %arg11: memref<1x1024xf32, #tpu.memory_space<vmem>>, %arg12: memref<9x64x32xbf16, #tpu.memory_space<vmem>>, %arg13: memref<1x32xf32, #tpu.memory_space<vmem>>, %arg14: memref<9x32xf32, #tpu.memory_space<vmem>>, %arg15: memref<1x1xf32, #tpu.memory_space<vmem>>, %arg16: memref<2x64xf32, #tpu.memory_space<vmem>>, %arg17: memref<448x1xf32, #tpu.memory_space<vmem>>, %arg18: memref<56x64xf32, #tpu.memory_space<vmem>>, %arg19: memref<136x32xf32, #tpu.memory_space<vmem>>) attributes {dimension_semantics = [#tpu.dimension_semantics<arbitrary>], iteration_bounds = array<i64: 1>, scalar_prefetch = 0 : i64, scratch_operands = 2 : i64, tpu.core_type = #tpu.core_type<tc>, window_params = [{pipeline_mode = #tpu.pipeline_mode<synchronous>, transform_indices = @transform_0, window_bounds = array<i64: 288, 9>}, {pipeline_mode = #tpu.pipeline_mode<synchronous>, transform_indices = @transform_1, window_bounds = array<i64: 288, 1>}, {pipeline_mode = #tpu.pipeline_mode<synchronous>, transform_indices = @transform_2, window_bounds = array<i64: 9, 32>}, {pipeline_mode = #tpu.pipeline_mode<synchronous>, transform_indices = @transform_3, window_bounds = array<i64: 1, 32>}, {pipeline_mode = #tpu.pipeline_mode<synchronous>, transform_indices = @transform_4, window_bounds = array<i64: 9, 32, 64>}, {pipeline_mode = #tpu.pipeline_mode<synchronous>, transform_indices = @transform_5, window_bounds = array<i64: 1, 64>}, {pipeline_mode = #tpu.pipeline_mode<synchronous>, transform_indices = @transform_6, window_bounds = array<i64: 16, 64, 64>}, {pipeline_mode = #tpu.pipeline_mode<synchronous>, transform_indices = @transform_7, window_bounds = array<i64: 1, 64>}, {pipeline_mode = #tpu.pipeline_mode<synchronous>, transform_indices = @transform_8, window_bounds = array<i64: 2, 32>}, {pipeline_mode = #tpu.pipeline_mode<synchronous>, transform_indices = @transform_9, window_bounds = array<i64: 32, 1024>}, {pipeline_mode = #tpu.pipeline_mode<synchronous>, transform_indices = @transform_10, window_bounds = array<i64: 1, 1024>}, {pipeline_mode = #tpu.pipeline_mode<synchronous>, transform_indices = @transform_11, window_bounds = array<i64: 9, 64, 32>}, {pipeline_mode = #tpu.pipeline_mode<synchronous>, transform_indices = @transform_12, window_bounds = array<i64: 1, 32>}, {pipeline_mode = #tpu.pipeline_mode<synchronous>, transform_indices = @transform_13, window_bounds = array<i64: 9, 32>}, {pipeline_mode = #tpu.pipeline_mode<synchronous>, transform_indices = @transform_14, window_bounds = array<i64: 1, 1>}, {pipeline_mode = #tpu.pipeline_mode<synchronous>, transform_indices = @transform_15, window_bounds = array<i64: 2, 64>}, {pipeline_mode = #tpu.pipeline_mode<synchronous>, transform_indices = @transform_16, window_bounds = array<i64: 448, 1>}]} {
    %c0 = arith.constant 0 : index
    %c0_0 = arith.constant 0 : index
    %0 = vector.load %arg1[%c0, %c0_0] : memref<288x9xf32, #tpu.memory_space<vmem>>, vector<288x9xf32>
    %c0_1 = arith.constant 0 : index
    %c0_2 = arith.constant 0 : index
    %1 = vector.load %arg3[%c0_1, %c0_2] : memref<9x32xf32, #tpu.memory_space<vmem>>, vector<9x32xf32>
    %cst = arith.constant 0.000000e+00 : f32
    %2 = vector.broadcast %cst : f32 to vector<288x32xf32>
    %3 = vector.extract_strided_slice %0 {offsets = [0, 0], sizes = [288, 1], strides = [1, 1]} : vector<288x9xf32> to vector<288x1xf32>
    %4 = vector.extract_strided_slice %1 {offsets = [0, 0], sizes = [1, 32], strides = [1, 1]} : vector<9x32xf32> to vector<1x32xf32>
    %5 = vector.broadcast %3 : vector<288x1xf32> to vector<288x32xf32>
    %6 = vector.broadcast %4 : vector<1x32xf32> to vector<288x32xf32>
    %7 = arith.mulf %5, %6 : vector<288x32xf32>
    %8 = arith.addf %2, %7 : vector<288x32xf32>
    %9 = vector.extract_strided_slice %0 {offsets = [0, 1], sizes = [288, 1], strides = [1, 1]} : vector<288x9xf32> to vector<288x1xf32>
    %10 = vector.extract_strided_slice %1 {offsets = [1, 0], sizes = [1, 32], strides = [1, 1]} : vector<9x32xf32> to vector<1x32xf32>
    %11 = vector.broadcast %9 : vector<288x1xf32> to vector<288x32xf32>
    %12 = vector.broadcast %10 : vector<1x32xf32> to vector<288x32xf32>
    %13 = arith.mulf %11, %12 : vector<288x32xf32>
    %14 = arith.addf %8, %13 : vector<288x32xf32>
    %15 = vector.extract_strided_slice %0 {offsets = [0, 2], sizes = [288, 1], strides = [1, 1]} : vector<288x9xf32> to vector<288x1xf32>
    %16 = vector.extract_strided_slice %1 {offsets = [2, 0], sizes = [1, 32], strides = [1, 1]} : vector<9x32xf32> to vector<1x32xf32>
    %17 = vector.broadcast %15 : vector<288x1xf32> to vector<288x32xf32>
    %18 = vector.broadcast %16 : vector<1x32xf32> to vector<288x32xf32>
    %19 = arith.mulf %17, %18 : vector<288x32xf32>
    %20 = arith.addf %14, %19 : vector<288x32xf32>
    %21 = vector.extract_strided_slice %0 {offsets = [0, 3], sizes = [288, 1], strides = [1, 1]} : vector<288x9xf32> to vector<288x1xf32>
    %22 = vector.extract_strided_slice %1 {offsets = [3, 0], sizes = [1, 32], strides = [1, 1]} : vector<9x32xf32> to vector<1x32xf32>
    %23 = vector.broadcast %21 : vector<288x1xf32> to vector<288x32xf32>
    %24 = vector.broadcast %22 : vector<1x32xf32> to vector<288x32xf32>
    %25 = arith.mulf %23, %24 : vector<288x32xf32>
    %26 = arith.addf %20, %25 : vector<288x32xf32>
    %27 = vector.extract_strided_slice %0 {offsets = [0, 4], sizes = [288, 1], strides = [1, 1]} : vector<288x9xf32> to vector<288x1xf32>
    %28 = vector.extract_strided_slice %1 {offsets = [4, 0], sizes = [1, 32], strides = [1, 1]} : vector<9x32xf32> to vector<1x32xf32>
    %29 = vector.broadcast %27 : vector<288x1xf32> to vector<288x32xf32>
    %30 = vector.broadcast %28 : vector<1x32xf32> to vector<288x32xf32>
    %31 = arith.mulf %29, %30 : vector<288x32xf32>
    %32 = arith.addf %26, %31 : vector<288x32xf32>
    %33 = vector.extract_strided_slice %0 {offsets = [0, 5], sizes = [288, 1], strides = [1, 1]} : vector<288x9xf32> to vector<288x1xf32>
    %34 = vector.extract_strided_slice %1 {offsets = [5, 0], sizes = [1, 32], strides = [1, 1]} : vector<9x32xf32> to vector<1x32xf32>
    %35 = vector.broadcast %33 : vector<288x1xf32> to vector<288x32xf32>
    %36 = vector.broadcast %34 : vector<1x32xf32> to vector<288x32xf32>
    %37 = arith.mulf %35, %36 : vector<288x32xf32>
    %38 = arith.addf %32, %37 : vector<288x32xf32>
    %39 = vector.extract_strided_slice %0 {offsets = [0, 6], sizes = [288, 1], strides = [1, 1]} : vector<288x9xf32> to vector<288x1xf32>
    %40 = vector.extract_strided_slice %1 {offsets = [6, 0], sizes = [1, 32], strides = [1, 1]} : vector<9x32xf32> to vector<1x32xf32>
    %41 = vector.broadcast %39 : vector<288x1xf32> to vector<288x32xf32>
    %42 = vector.broadcast %40 : vector<1x32xf32> to vector<288x32xf32>
    %43 = arith.mulf %41, %42 : vector<288x32xf32>
    %44 = arith.addf %38, %43 : vector<288x32xf32>
    %45 = vector.extract_strided_slice %0 {offsets = [0, 7], sizes = [288, 1], strides = [1, 1]} : vector<288x9xf32> to vector<288x1xf32>
    %46 = vector.extract_strided_slice %1 {offsets = [7, 0], sizes = [1, 32], strides = [1, 1]} : vector<9x32xf32> to vector<1x32xf32>
    %47 = vector.broadcast %45 : vector<288x1xf32> to vector<288x32xf32>
    %48 = vector.broadcast %46 : vector<1x32xf32> to vector<288x32xf32>
    %49 = arith.mulf %47, %48 : vector<288x32xf32>
    %50 = arith.addf %44, %49 : vector<288x32xf32>
    %51 = vector.extract_strided_slice %0 {offsets = [0, 8], sizes = [288, 1], strides = [1, 1]} : vector<288x9xf32> to vector<288x1xf32>
    %52 = vector.extract_strided_slice %1 {offsets = [8, 0], sizes = [1, 32], strides = [1, 1]} : vector<9x32xf32> to vector<1x32xf32>
    %53 = vector.broadcast %51 : vector<288x1xf32> to vector<288x32xf32>
    %54 = vector.broadcast %52 : vector<1x32xf32> to vector<288x32xf32>
    %55 = arith.mulf %53, %54 : vector<288x32xf32>
    %56 = arith.addf %50, %55 : vector<288x32xf32>
    %c0_3 = arith.constant 0 : index
    %c0_4 = arith.constant 0 : index
    %57 = vector.load %arg4[%c0_3, %c0_4] : memref<1x32xf32, #tpu.memory_space<vmem>>, vector<1x32xf32>
    %58 = vector.broadcast %57 : vector<1x32xf32> to vector<288x32xf32>
    %59 = arith.addf %56, %58 : vector<288x32xf32>
    %cst_5 = arith.constant 0.000000e+00 : f32
    %60 = vector.broadcast %cst_5 : f32 to vector<288x32xf32>
    %61 = arith.maximumf %59, %60 : vector<288x32xf32>
    %c0_6 = arith.constant 0 : index
    %c0_7 = arith.constant 0 : index
    %62 = vector.load %arg2[%c0_6, %c0_7] : memref<288x1xf32, #tpu.memory_space<vmem>>, vector<288x1xf32>
    %63 = vector.broadcast %62 : vector<288x1xf32> to vector<288x32xf32>
    %64 = arith.mulf %61, %63 : vector<288x32xf32>
    %cst_8 = arith.constant 0.000000e+00 : f32
    %65 = vector.broadcast %cst_8 : f32 to vector<32x64xf32>
    %66 = vector.extract_strided_slice %64 {offsets = [0, 0], sizes = [32, 32], strides = [1, 1]} : vector<288x32xf32> to vector<32x32xf32>
    %67 = arith.truncf %66 : vector<32x32xf32> to vector<32x32xbf16>
    %c0_9 = arith.constant 0 : index
    %c0_10 = arith.constant 0 : index
    %c0_11 = arith.constant 0 : index
    %68 = vector.load %arg5[%c0_9, %c0_10, %c0_11] : memref<9x32x64xbf16, #tpu.memory_space<vmem>>, vector<1x32x64xbf16>
    %69 = vector.shape_cast %68 : vector<1x32x64xbf16> to vector<32x64xbf16>
    %cst_12 = arith.constant dense<0.000000e+00> : vector<32x64xf32>
    %70 = tpu.matmul %67, %69, %cst_12 {dimension_numbers = #tpu.dot_dimension_numbers<[1], [0], [0], [1], [0, 0, 1, 1], [], []>} : vector<32x32xbf16>, vector<32x64xbf16>, vector<32x64xf32> -> vector<32x64xf32>
    %71 = arith.addf %65, %70 : vector<32x64xf32>
    %72 = vector.extract_strided_slice %64 {offsets = [32, 0], sizes = [32, 32], strides = [1, 1]} : vector<288x32xf32> to vector<32x32xf32>
    %73 = arith.truncf %72 : vector<32x32xf32> to vector<32x32xbf16>
    %c1 = arith.constant 1 : index
    %c0_13 = arith.constant 0 : index
    %c0_14 = arith.constant 0 : index
    %74 = vector.load %arg5[%c1, %c0_13, %c0_14] : memref<9x32x64xbf16, #tpu.memory_space<vmem>>, vector<1x32x64xbf16>
    %75 = vector.shape_cast %74 : vector<1x32x64xbf16> to vector<32x64xbf16>
    %cst_15 = arith.constant dense<0.000000e+00> : vector<32x64xf32>
    %76 = tpu.matmul %73, %75, %cst_15 {dimension_numbers = #tpu.dot_dimension_numbers<[1], [0], [0], [1], [0, 0, 1, 1], [], []>} : vector<32x32xbf16>, vector<32x64xbf16>, vector<32x64xf32> -> vector<32x64xf32>
    %77 = arith.addf %71, %76 : vector<32x64xf32>
    %78 = vector.extract_strided_slice %64 {offsets = [64, 0], sizes = [32, 32], strides = [1, 1]} : vector<288x32xf32> to vector<32x32xf32>
    %79 = arith.truncf %78 : vector<32x32xf32> to vector<32x32xbf16>
    %c2 = arith.constant 2 : index
    %c0_16 = arith.constant 0 : index
    %c0_17 = arith.constant 0 : index
    %80 = vector.load %arg5[%c2, %c0_16, %c0_17] : memref<9x32x64xbf16, #tpu.memory_space<vmem>>, vector<1x32x64xbf16>
    %81 = vector.shape_cast %80 : vector<1x32x64xbf16> to vector<32x64xbf16>
    %cst_18 = arith.constant dense<0.000000e+00> : vector<32x64xf32>
    %82 = tpu.matmul %79, %81, %cst_18 {dimension_numbers = #tpu.dot_dimension_numbers<[1], [0], [0], [1], [0, 0, 1, 1], [], []>} : vector<32x32xbf16>, vector<32x64xbf16>, vector<32x64xf32> -> vector<32x64xf32>
    %83 = arith.addf %77, %82 : vector<32x64xf32>
    %84 = vector.extract_strided_slice %64 {offsets = [96, 0], sizes = [32, 32], strides = [1, 1]} : vector<288x32xf32> to vector<32x32xf32>
    %85 = arith.truncf %84 : vector<32x32xf32> to vector<32x32xbf16>
    %c3 = arith.constant 3 : index
    %c0_19 = arith.constant 0 : index
    %c0_20 = arith.constant 0 : index
    %86 = vector.load %arg5[%c3, %c0_19, %c0_20] : memref<9x32x64xbf16, #tpu.memory_space<vmem>>, vector<1x32x64xbf16>
    %87 = vector.shape_cast %86 : vector<1x32x64xbf16> to vector<32x64xbf16>
    %cst_21 = arith.constant dense<0.000000e+00> : vector<32x64xf32>
    %88 = tpu.matmul %85, %87, %cst_21 {dimension_numbers = #tpu.dot_dimension_numbers<[1], [0], [0], [1], [0, 0, 1, 1], [], []>} : vector<32x32xbf16>, vector<32x64xbf16>, vector<32x64xf32> -> vector<32x64xf32>
    %89 = arith.addf %83, %88 : vector<32x64xf32>
    %90 = vector.extract_strided_slice %64 {offsets = [128, 0], sizes = [32, 32], strides = [1, 1]} : vector<288x32xf32> to vector<32x32xf32>
    %91 = arith.truncf %90 : vector<32x32xf32> to vector<32x32xbf16>
    %c4 = arith.constant 4 : index
    %c0_22 = arith.constant 0 : index
    %c0_23 = arith.constant 0 : index
    %92 = vector.load %arg5[%c4, %c0_22, %c0_23] : memref<9x32x64xbf16, #tpu.memory_space<vmem>>, vector<1x32x64xbf16>
    %93 = vector.shape_cast %92 : vector<1x32x64xbf16> to vector<32x64xbf16>
    %cst_24 = arith.constant dense<0.000000e+00> : vector<32x64xf32>
    %94 = tpu.matmul %91, %93, %cst_24 {dimension_numbers = #tpu.dot_dimension_numbers<[1], [0], [0], [1], [0, 0, 1, 1], [], []>} : vector<32x32xbf16>, vector<32x64xbf16>, vector<32x64xf32> -> vector<32x64xf32>
    %95 = arith.addf %89, %94 : vector<32x64xf32>
    %96 = vector.extract_strided_slice %64 {offsets = [160, 0], sizes = [32, 32], strides = [1, 1]} : vector<288x32xf32> to vector<32x32xf32>
    %97 = arith.truncf %96 : vector<32x32xf32> to vector<32x32xbf16>
    %c5 = arith.constant 5 : index
    %c0_25 = arith.constant 0 : index
    %c0_26 = arith.constant 0 : index
    %98 = vector.load %arg5[%c5, %c0_25, %c0_26] : memref<9x32x64xbf16, #tpu.memory_space<vmem>>, vector<1x32x64xbf16>
    %99 = vector.shape_cast %98 : vector<1x32x64xbf16> to vector<32x64xbf16>
    %cst_27 = arith.constant dense<0.000000e+00> : vector<32x64xf32>
    %100 = tpu.matmul %97, %99, %cst_27 {dimension_numbers = #tpu.dot_dimension_numbers<[1], [0], [0], [1], [0, 0, 1, 1], [], []>} : vector<32x32xbf16>, vector<32x64xbf16>, vector<32x64xf32> -> vector<32x64xf32>
    %101 = arith.addf %95, %100 : vector<32x64xf32>
    %102 = vector.extract_strided_slice %64 {offsets = [192, 0], sizes = [32, 32], strides = [1, 1]} : vector<288x32xf32> to vector<32x32xf32>
    %103 = arith.truncf %102 : vector<32x32xf32> to vector<32x32xbf16>
    %c6 = arith.constant 6 : index
    %c0_28 = arith.constant 0 : index
    %c0_29 = arith.constant 0 : index
    %104 = vector.load %arg5[%c6, %c0_28, %c0_29] : memref<9x32x64xbf16, #tpu.memory_space<vmem>>, vector<1x32x64xbf16>
    %105 = vector.shape_cast %104 : vector<1x32x64xbf16> to vector<32x64xbf16>
    %cst_30 = arith.constant dense<0.000000e+00> : vector<32x64xf32>
    %106 = tpu.matmul %103, %105, %cst_30 {dimension_numbers = #tpu.dot_dimension_numbers<[1], [0], [0], [1], [0, 0, 1, 1], [], []>} : vector<32x32xbf16>, vector<32x64xbf16>, vector<32x64xf32> -> vector<32x64xf32>
    %107 = arith.addf %101, %106 : vector<32x64xf32>
    %108 = vector.extract_strided_slice %64 {offsets = [224, 0], sizes = [32, 32], strides = [1, 1]} : vector<288x32xf32> to vector<32x32xf32>
    %109 = arith.truncf %108 : vector<32x32xf32> to vector<32x32xbf16>
    %c7 = arith.constant 7 : index
    %c0_31 = arith.constant 0 : index
    %c0_32 = arith.constant 0 : index
    %110 = vector.load %arg5[%c7, %c0_31, %c0_32] : memref<9x32x64xbf16, #tpu.memory_space<vmem>>, vector<1x32x64xbf16>
    %111 = vector.shape_cast %110 : vector<1x32x64xbf16> to vector<32x64xbf16>
    %cst_33 = arith.constant dense<0.000000e+00> : vector<32x64xf32>
    %112 = tpu.matmul %109, %111, %cst_33 {dimension_numbers = #tpu.dot_dimension_numbers<[1], [0], [0], [1], [0, 0, 1, 1], [], []>} : vector<32x32xbf16>, vector<32x64xbf16>, vector<32x64xf32> -> vector<32x64xf32>
    %113 = arith.addf %107, %112 : vector<32x64xf32>
    %114 = vector.extract_strided_slice %64 {offsets = [256, 0], sizes = [32, 32], strides = [1, 1]} : vector<288x32xf32> to vector<32x32xf32>
    %115 = arith.truncf %114 : vector<32x32xf32> to vector<32x32xbf16>
    %c8 = arith.constant 8 : index
    %c0_34 = arith.constant 0 : index
    %c0_35 = arith.constant 0 : index
    %116 = vector.load %arg5[%c8, %c0_34, %c0_35] : memref<9x32x64xbf16, #tpu.memory_space<vmem>>, vector<1x32x64xbf16>
    %117 = vector.shape_cast %116 : vector<1x32x64xbf16> to vector<32x64xbf16>
    %cst_36 = arith.constant dense<0.000000e+00> : vector<32x64xf32>
    %118 = tpu.matmul %115, %117, %cst_36 {dimension_numbers = #tpu.dot_dimension_numbers<[1], [0], [0], [1], [0, 0, 1, 1], [], []>} : vector<32x32xbf16>, vector<32x64xbf16>, vector<32x64xf32> -> vector<32x64xf32>
    %119 = arith.addf %113, %118 : vector<32x64xf32>
    %c0_37 = arith.constant 0 : index
    %c0_38 = arith.constant 0 : index
    %120 = vector.load %arg6[%c0_37, %c0_38] : memref<1x64xf32, #tpu.memory_space<vmem>>, vector<1x64xf32>
    %121 = vector.broadcast %120 : vector<1x64xf32> to vector<32x64xf32>
    %122 = arith.addf %119, %121 : vector<32x64xf32>
    %cst_39 = arith.constant 0.000000e+00 : f32
    %123 = vector.broadcast %cst_39 : f32 to vector<32x64xf32>
    %124 = arith.maximumf %122, %123 : vector<32x64xf32>
    %cst_40 = arith.constant 0.000000e+00 : f32
    %125 = vector.broadcast %cst_40 : f32 to vector<2x64xf32>
    %126 = vector.extract_strided_slice %124 {offsets = [0, 0], sizes = [2, 64], strides = [1, 1]} : vector<32x64xf32> to vector<2x64xf32>
    %127 = arith.truncf %126 : vector<2x64xf32> to vector<2x64xbf16>
    %c0_41 = arith.constant 0 : index
    %c0_42 = arith.constant 0 : index
    %c0_43 = arith.constant 0 : index
    %128 = vector.load %arg7[%c0_41, %c0_42, %c0_43] : memref<16x64x64xbf16, #tpu.memory_space<vmem>>, vector<1x64x64xbf16>
    %129 = vector.shape_cast %128 : vector<1x64x64xbf16> to vector<64x64xbf16>
    %cst_44 = arith.constant dense<0.000000e+00> : vector<2x64xf32>
    %130 = tpu.matmul %127, %129, %cst_44 {dimension_numbers = #tpu.dot_dimension_numbers<[1], [0], [0], [1], [0, 0, 1, 1], [], []>} : vector<2x64xbf16>, vector<64x64xbf16>, vector<2x64xf32> -> vector<2x64xf32>
    %131 = arith.addf %125, %130 : vector<2x64xf32>
    %132 = vector.extract_strided_slice %124 {offsets = [2, 0], sizes = [2, 64], strides = [1, 1]} : vector<32x64xf32> to vector<2x64xf32>
    %133 = arith.truncf %132 : vector<2x64xf32> to vector<2x64xbf16>
    %c1_45 = arith.constant 1 : index
    %c0_46 = arith.constant 0 : index
    %c0_47 = arith.constant 0 : index
    %134 = vector.load %arg7[%c1_45, %c0_46, %c0_47] : memref<16x64x64xbf16, #tpu.memory_space<vmem>>, vector<1x64x64xbf16>
    %135 = vector.shape_cast %134 : vector<1x64x64xbf16> to vector<64x64xbf16>
    %cst_48 = arith.constant dense<0.000000e+00> : vector<2x64xf32>
    %136 = tpu.matmul %133, %135, %cst_48 {dimension_numbers = #tpu.dot_dimension_numbers<[1], [0], [0], [1], [0, 0, 1, 1], [], []>} : vector<2x64xbf16>, vector<64x64xbf16>, vector<2x64xf32> -> vector<2x64xf32>
    %137 = arith.addf %131, %136 : vector<2x64xf32>
    %138 = vector.extract_strided_slice %124 {offsets = [4, 0], sizes = [2, 64], strides = [1, 1]} : vector<32x64xf32> to vector<2x64xf32>
    %139 = arith.truncf %138 : vector<2x64xf32> to vector<2x64xbf16>
    %c2_49 = arith.constant 2 : index
    %c0_50 = arith.constant 0 : index
    %c0_51 = arith.constant 0 : index
    %140 = vector.load %arg7[%c2_49, %c0_50, %c0_51] : memref<16x64x64xbf16, #tpu.memory_space<vmem>>, vector<1x64x64xbf16>
    %141 = vector.shape_cast %140 : vector<1x64x64xbf16> to vector<64x64xbf16>
    %cst_52 = arith.constant dense<0.000000e+00> : vector<2x64xf32>
    %142 = tpu.matmul %139, %141, %cst_52 {dimension_numbers = #tpu.dot_dimension_numbers<[1], [0], [0], [1], [0, 0, 1, 1], [], []>} : vector<2x64xbf16>, vector<64x64xbf16>, vector<2x64xf32> -> vector<2x64xf32>
    %143 = arith.addf %137, %142 : vector<2x64xf32>
    %144 = vector.extract_strided_slice %124 {offsets = [6, 0], sizes = [2, 64], strides = [1, 1]} : vector<32x64xf32> to vector<2x64xf32>
    %145 = arith.truncf %144 : vector<2x64xf32> to vector<2x64xbf16>
    %c3_53 = arith.constant 3 : index
    %c0_54 = arith.constant 0 : index
    %c0_55 = arith.constant 0 : index
    %146 = vector.load %arg7[%c3_53, %c0_54, %c0_55] : memref<16x64x64xbf16, #tpu.memory_space<vmem>>, vector<1x64x64xbf16>
    %147 = vector.shape_cast %146 : vector<1x64x64xbf16> to vector<64x64xbf16>
    %cst_56 = arith.constant dense<0.000000e+00> : vector<2x64xf32>
    %148 = tpu.matmul %145, %147, %cst_56 {dimension_numbers = #tpu.dot_dimension_numbers<[1], [0], [0], [1], [0, 0, 1, 1], [], []>} : vector<2x64xbf16>, vector<64x64xbf16>, vector<2x64xf32> -> vector<2x64xf32>
    %149 = arith.addf %143, %148 : vector<2x64xf32>
    %150 = vector.extract_strided_slice %124 {offsets = [8, 0], sizes = [2, 64], strides = [1, 1]} : vector<32x64xf32> to vector<2x64xf32>
    %151 = arith.truncf %150 : vector<2x64xf32> to vector<2x64xbf16>
    %c4_57 = arith.constant 4 : index
    %c0_58 = arith.constant 0 : index
    %c0_59 = arith.constant 0 : index
    %152 = vector.load %arg7[%c4_57, %c0_58, %c0_59] : memref<16x64x64xbf16, #tpu.memory_space<vmem>>, vector<1x64x64xbf16>
    %153 = vector.shape_cast %152 : vector<1x64x64xbf16> to vector<64x64xbf16>
    %cst_60 = arith.constant dense<0.000000e+00> : vector<2x64xf32>
    %154 = tpu.matmul %151, %153, %cst_60 {dimension_numbers = #tpu.dot_dimension_numbers<[1], [0], [0], [1], [0, 0, 1, 1], [], []>} : vector<2x64xbf16>, vector<64x64xbf16>, vector<2x64xf32> -> vector<2x64xf32>
    %155 = arith.addf %149, %154 : vector<2x64xf32>
    %156 = vector.extract_strided_slice %124 {offsets = [10, 0], sizes = [2, 64], strides = [1, 1]} : vector<32x64xf32> to vector<2x64xf32>
    %157 = arith.truncf %156 : vector<2x64xf32> to vector<2x64xbf16>
    %c5_61 = arith.constant 5 : index
    %c0_62 = arith.constant 0 : index
    %c0_63 = arith.constant 0 : index
    %158 = vector.load %arg7[%c5_61, %c0_62, %c0_63] : memref<16x64x64xbf16, #tpu.memory_space<vmem>>, vector<1x64x64xbf16>
    %159 = vector.shape_cast %158 : vector<1x64x64xbf16> to vector<64x64xbf16>
    %cst_64 = arith.constant dense<0.000000e+00> : vector<2x64xf32>
    %160 = tpu.matmul %157, %159, %cst_64 {dimension_numbers = #tpu.dot_dimension_numbers<[1], [0], [0], [1], [0, 0, 1, 1], [], []>} : vector<2x64xbf16>, vector<64x64xbf16>, vector<2x64xf32> -> vector<2x64xf32>
    %161 = arith.addf %155, %160 : vector<2x64xf32>
    %162 = vector.extract_strided_slice %124 {offsets = [12, 0], sizes = [2, 64], strides = [1, 1]} : vector<32x64xf32> to vector<2x64xf32>
    %163 = arith.truncf %162 : vector<2x64xf32> to vector<2x64xbf16>
    %c6_65 = arith.constant 6 : index
    %c0_66 = arith.constant 0 : index
    %c0_67 = arith.constant 0 : index
    %164 = vector.load %arg7[%c6_65, %c0_66, %c0_67] : memref<16x64x64xbf16, #tpu.memory_space<vmem>>, vector<1x64x64xbf16>
    %165 = vector.shape_cast %164 : vector<1x64x64xbf16> to vector<64x64xbf16>
    %cst_68 = arith.constant dense<0.000000e+00> : vector<2x64xf32>
    %166 = tpu.matmul %163, %165, %cst_68 {dimension_numbers = #tpu.dot_dimension_numbers<[1], [0], [0], [1], [0, 0, 1, 1], [], []>} : vector<2x64xbf16>, vector<64x64xbf16>, vector<2x64xf32> -> vector<2x64xf32>
    %167 = arith.addf %161, %166 : vector<2x64xf32>
    %168 = vector.extract_strided_slice %124 {offsets = [14, 0], sizes = [2, 64], strides = [1, 1]} : vector<32x64xf32> to vector<2x64xf32>
    %169 = arith.truncf %168 : vector<2x64xf32> to vector<2x64xbf16>
    %c7_69 = arith.constant 7 : index
    %c0_70 = arith.constant 0 : index
    %c0_71 = arith.constant 0 : index
    %170 = vector.load %arg7[%c7_69, %c0_70, %c0_71] : memref<16x64x64xbf16, #tpu.memory_space<vmem>>, vector<1x64x64xbf16>
    %171 = vector.shape_cast %170 : vector<1x64x64xbf16> to vector<64x64xbf16>
    %cst_72 = arith.constant dense<0.000000e+00> : vector<2x64xf32>
    %172 = tpu.matmul %169, %171, %cst_72 {dimension_numbers = #tpu.dot_dimension_numbers<[1], [0], [0], [1], [0, 0, 1, 1], [], []>} : vector<2x64xbf16>, vector<64x64xbf16>, vector<2x64xf32> -> vector<2x64xf32>
    %173 = arith.addf %167, %172 : vector<2x64xf32>
    %174 = vector.extract_strided_slice %124 {offsets = [16, 0], sizes = [2, 64], strides = [1, 1]} : vector<32x64xf32> to vector<2x64xf32>
    %175 = arith.truncf %174 : vector<2x64xf32> to vector<2x64xbf16>
    %c8_73 = arith.constant 8 : index
    %c0_74 = arith.constant 0 : index
    %c0_75 = arith.constant 0 : index
    %176 = vector.load %arg7[%c8_73, %c0_74, %c0_75] : memref<16x64x64xbf16, #tpu.memory_space<vmem>>, vector<1x64x64xbf16>
    %177 = vector.shape_cast %176 : vector<1x64x64xbf16> to vector<64x64xbf16>
    %cst_76 = arith.constant dense<0.000000e+00> : vector<2x64xf32>
    %178 = tpu.matmul %175, %177, %cst_76 {dimension_numbers = #tpu.dot_dimension_numbers<[1], [0], [0], [1], [0, 0, 1, 1], [], []>} : vector<2x64xbf16>, vector<64x64xbf16>, vector<2x64xf32> -> vector<2x64xf32>
    %179 = arith.addf %173, %178 : vector<2x64xf32>
    %180 = vector.extract_strided_slice %124 {offsets = [18, 0], sizes = [2, 64], strides = [1, 1]} : vector<32x64xf32> to vector<2x64xf32>
    %181 = arith.truncf %180 : vector<2x64xf32> to vector<2x64xbf16>
    %c9 = arith.constant 9 : index
    %c0_77 = arith.constant 0 : index
    %c0_78 = arith.constant 0 : index
    %182 = vector.load %arg7[%c9, %c0_77, %c0_78] : memref<16x64x64xbf16, #tpu.memory_space<vmem>>, vector<1x64x64xbf16>
    %183 = vector.shape_cast %182 : vector<1x64x64xbf16> to vector<64x64xbf16>
    %cst_79 = arith.constant dense<0.000000e+00> : vector<2x64xf32>
    %184 = tpu.matmul %181, %183, %cst_79 {dimension_numbers = #tpu.dot_dimension_numbers<[1], [0], [0], [1], [0, 0, 1, 1], [], []>} : vector<2x64xbf16>, vector<64x64xbf16>, vector<2x64xf32> -> vector<2x64xf32>
    %185 = arith.addf %179, %184 : vector<2x64xf32>
    %186 = vector.extract_strided_slice %124 {offsets = [20, 0], sizes = [2, 64], strides = [1, 1]} : vector<32x64xf32> to vector<2x64xf32>
    %187 = arith.truncf %186 : vector<2x64xf32> to vector<2x64xbf16>
    %c10 = arith.constant 10 : index
    %c0_80 = arith.constant 0 : index
    %c0_81 = arith.constant 0 : index
    %188 = vector.load %arg7[%c10, %c0_80, %c0_81] : memref<16x64x64xbf16, #tpu.memory_space<vmem>>, vector<1x64x64xbf16>
    %189 = vector.shape_cast %188 : vector<1x64x64xbf16> to vector<64x64xbf16>
    %cst_82 = arith.constant dense<0.000000e+00> : vector<2x64xf32>
    %190 = tpu.matmul %187, %189, %cst_82 {dimension_numbers = #tpu.dot_dimension_numbers<[1], [0], [0], [1], [0, 0, 1, 1], [], []>} : vector<2x64xbf16>, vector<64x64xbf16>, vector<2x64xf32> -> vector<2x64xf32>
    %191 = arith.addf %185, %190 : vector<2x64xf32>
    %192 = vector.extract_strided_slice %124 {offsets = [22, 0], sizes = [2, 64], strides = [1, 1]} : vector<32x64xf32> to vector<2x64xf32>
    %193 = arith.truncf %192 : vector<2x64xf32> to vector<2x64xbf16>
    %c11 = arith.constant 11 : index
    %c0_83 = arith.constant 0 : index
    %c0_84 = arith.constant 0 : index
    %194 = vector.load %arg7[%c11, %c0_83, %c0_84] : memref<16x64x64xbf16, #tpu.memory_space<vmem>>, vector<1x64x64xbf16>
    %195 = vector.shape_cast %194 : vector<1x64x64xbf16> to vector<64x64xbf16>
    %cst_85 = arith.constant dense<0.000000e+00> : vector<2x64xf32>
    %196 = tpu.matmul %193, %195, %cst_85 {dimension_numbers = #tpu.dot_dimension_numbers<[1], [0], [0], [1], [0, 0, 1, 1], [], []>} : vector<2x64xbf16>, vector<64x64xbf16>, vector<2x64xf32> -> vector<2x64xf32>
    %197 = arith.addf %191, %196 : vector<2x64xf32>
    %198 = vector.extract_strided_slice %124 {offsets = [24, 0], sizes = [2, 64], strides = [1, 1]} : vector<32x64xf32> to vector<2x64xf32>
    %199 = arith.truncf %198 : vector<2x64xf32> to vector<2x64xbf16>
    %c12 = arith.constant 12 : index
    %c0_86 = arith.constant 0 : index
    %c0_87 = arith.constant 0 : index
    %200 = vector.load %arg7[%c12, %c0_86, %c0_87] : memref<16x64x64xbf16, #tpu.memory_space<vmem>>, vector<1x64x64xbf16>
    %201 = vector.shape_cast %200 : vector<1x64x64xbf16> to vector<64x64xbf16>
    %cst_88 = arith.constant dense<0.000000e+00> : vector<2x64xf32>
    %202 = tpu.matmul %199, %201, %cst_88 {dimension_numbers = #tpu.dot_dimension_numbers<[1], [0], [0], [1], [0, 0, 1, 1], [], []>} : vector<2x64xbf16>, vector<64x64xbf16>, vector<2x64xf32> -> vector<2x64xf32>
    %203 = arith.addf %197, %202 : vector<2x64xf32>
    %204 = vector.extract_strided_slice %124 {offsets = [26, 0], sizes = [2, 64], strides = [1, 1]} : vector<32x64xf32> to vector<2x64xf32>
    %205 = arith.truncf %204 : vector<2x64xf32> to vector<2x64xbf16>
    %c13 = arith.constant 13 : index
    %c0_89 = arith.constant 0 : index
    %c0_90 = arith.constant 0 : index
    %206 = vector.load %arg7[%c13, %c0_89, %c0_90] : memref<16x64x64xbf16, #tpu.memory_space<vmem>>, vector<1x64x64xbf16>
    %207 = vector.shape_cast %206 : vector<1x64x64xbf16> to vector<64x64xbf16>
    %cst_91 = arith.constant dense<0.000000e+00> : vector<2x64xf32>
    %208 = tpu.matmul %205, %207, %cst_91 {dimension_numbers = #tpu.dot_dimension_numbers<[1], [0], [0], [1], [0, 0, 1, 1], [], []>} : vector<2x64xbf16>, vector<64x64xbf16>, vector<2x64xf32> -> vector<2x64xf32>
    %209 = arith.addf %203, %208 : vector<2x64xf32>
    %210 = vector.extract_strided_slice %124 {offsets = [28, 0], sizes = [2, 64], strides = [1, 1]} : vector<32x64xf32> to vector<2x64xf32>
    %211 = arith.truncf %210 : vector<2x64xf32> to vector<2x64xbf16>
    %c14 = arith.constant 14 : index
    %c0_92 = arith.constant 0 : index
    %c0_93 = arith.constant 0 : index
    %212 = vector.load %arg7[%c14, %c0_92, %c0_93] : memref<16x64x64xbf16, #tpu.memory_space<vmem>>, vector<1x64x64xbf16>
    %213 = vector.shape_cast %212 : vector<1x64x64xbf16> to vector<64x64xbf16>
    %cst_94 = arith.constant dense<0.000000e+00> : vector<2x64xf32>
    %214 = tpu.matmul %211, %213, %cst_94 {dimension_numbers = #tpu.dot_dimension_numbers<[1], [0], [0], [1], [0, 0, 1, 1], [], []>} : vector<2x64xbf16>, vector<64x64xbf16>, vector<2x64xf32> -> vector<2x64xf32>
    %215 = arith.addf %209, %214 : vector<2x64xf32>
    %216 = vector.extract_strided_slice %124 {offsets = [30, 0], sizes = [2, 64], strides = [1, 1]} : vector<32x64xf32> to vector<2x64xf32>
    %217 = arith.truncf %216 : vector<2x64xf32> to vector<2x64xbf16>
    %c15 = arith.constant 15 : index
    %c0_95 = arith.constant 0 : index
    %c0_96 = arith.constant 0 : index
    %218 = vector.load %arg7[%c15, %c0_95, %c0_96] : memref<16x64x64xbf16, #tpu.memory_space<vmem>>, vector<1x64x64xbf16>
    %219 = vector.shape_cast %218 : vector<1x64x64xbf16> to vector<64x64xbf16>
    %cst_97 = arith.constant dense<0.000000e+00> : vector<2x64xf32>
    %220 = tpu.matmul %217, %219, %cst_97 {dimension_numbers = #tpu.dot_dimension_numbers<[1], [0], [0], [1], [0, 0, 1, 1], [], []>} : vector<2x64xbf16>, vector<64x64xbf16>, vector<2x64xf32> -> vector<2x64xf32>
    %221 = arith.addf %215, %220 : vector<2x64xf32>
    %c0_98 = arith.constant 0 : index
    %c0_99 = arith.constant 0 : index
    %222 = vector.load %arg8[%c0_98, %c0_99] : memref<1x64xf32, #tpu.memory_space<vmem>>, vector<1x64xf32>
    %223 = vector.broadcast %222 : vector<1x64xf32> to vector<2x64xf32>
    %224 = arith.addf %221, %223 : vector<2x64xf32>
    %c0_100 = arith.constant 0 : index
    %c0_101 = arith.constant 0 : index
    %225 = vector.load %arg16[%c0_100, %c0_101] : memref<2x64xf32, #tpu.memory_space<vmem>>, vector<2x64xf32>
    tpu.vector_store %arg16[%c0_100, %c0_101], %224 {strides = array<i32>} : memref<2x64xf32, #tpu.memory_space<vmem>>, vector<2x64xf32>,
    %226 = vector.extract_strided_slice %224 {offsets = [0, 0], sizes = [2, 32], strides = [1, 1]} : vector<2x64xf32> to vector<2x32xf32>
    %227 = vector.extract_strided_slice %224 {offsets = [0, 32], sizes = [2, 32], strides = [1, 1]} : vector<2x64xf32> to vector<2x32xf32>
    %c0_102 = arith.constant 0 : index
    %c0_103 = arith.constant 0 : index
    %228 = vector.load %arg9[%c0_102, %c0_103] : memref<2x32xf32, #tpu.memory_space<vmem>>, vector<2x32xf32>
    %cst_104 = arith.constant 5.000000e-01 : f32
    %229 = vector.broadcast %cst_104 : f32 to vector<2x32xf32>
    %230 = arith.mulf %229, %227 : vector<2x32xf32>
    %231 = math.exp %230 : vector<2x32xf32>
    %232 = arith.mulf %228, %231 : vector<2x32xf32>
    %233 = arith.addf %226, %232 : vector<2x32xf32>
    %234 = arith.truncf %233 : vector<2x32xf32> to vector<2x32xbf16>
    %c0_105 = arith.constant 0 : index
    %c0_106 = arith.constant 0 : index
    %235 = vector.load %arg10[%c0_105, %c0_106] : memref<32x1024xbf16, #tpu.memory_space<vmem>>, vector<32x1024xbf16>
    %cst_107 = arith.constant dense<0.000000e+00> : vector<2x1024xf32>
    %236 = tpu.matmul %234, %235, %cst_107 {dimension_numbers = #tpu.dot_dimension_numbers<[1], [0], [0], [1], [0, 0, 1, 1], [], []>} : vector<2x32xbf16>, vector<32x1024xbf16>, vector<2x1024xf32> -> vector<2x1024xf32>
    %c0_108 = arith.constant 0 : index
    %c0_109 = arith.constant 0 : index
    %237 = vector.load %arg11[%c0_108, %c0_109] : memref<1x1024xf32, #tpu.memory_space<vmem>>, vector<1x1024xf32>
    %238 = vector.broadcast %237 : vector<1x1024xf32> to vector<2x1024xf32>
    %239 = arith.addf %236, %238 : vector<2x1024xf32>
    %cst_110 = arith.constant 0.000000e+00 : f32
    %240 = vector.broadcast %cst_110 : f32 to vector<2x1024xf32>
    %241 = arith.maximumf %239, %240 : vector<2x1024xf32>
    %cst_111 = arith.constant 0.000000e+00 : f32
    %242 = vector.broadcast %cst_111 : f32 to vector<56x64xf32>
    %c0_112 = arith.constant 0 : index
    %c0_113 = arith.constant 0 : index
    %243 = vector.load %arg18[%c0_112, %c0_113] : memref<56x64xf32, #tpu.memory_space<vmem>>, vector<56x64xf32>
    tpu.vector_store %arg18[%c0_112, %c0_113], %242 {strides = array<i32>} : memref<56x64xf32, #tpu.memory_space<vmem>>, vector<56x64xf32>,
    %244 = vector.extract_strided_slice %241 {offsets = [0, 0], sizes = [2, 64], strides = [1, 1]} : vector<2x1024xf32> to vector<2x64xf32>
    %c0_114 = arith.constant 0 : index
    %c0_115 = arith.constant 0 : index
    %245 = vector.load %arg18[%c0_114, %c0_115] : memref<56x64xf32, #tpu.memory_space<vmem>>, vector<2x64xf32>
    tpu.vector_store %arg18[%c0_114, %c0_115], %244 {strides = array<i32>} : memref<56x64xf32, #tpu.memory_space<vmem>>, vector<2x64xf32>,
    %246 = vector.extract_strided_slice %241 {offsets = [0, 64], sizes = [2, 64], strides = [1, 1]} : vector<2x1024xf32> to vector<2x64xf32>
    %c2_116 = arith.constant 2 : index
    %c0_117 = arith.constant 0 : index
    %247 = vector.load %arg18[%c2_116, %c0_117] : memref<56x64xf32, #tpu.memory_space<vmem>>, vector<2x64xf32>
    tpu.vector_store %arg18[%c2_116, %c0_117], %246 {strides = array<i32>} : memref<56x64xf32, #tpu.memory_space<vmem>>, vector<2x64xf32>,
    %248 = vector.extract_strided_slice %241 {offsets = [0, 128], sizes = [2, 64], strides = [1, 1]} : vector<2x1024xf32> to vector<2x64xf32>
    %c4_118 = arith.constant 4 : index
    %c0_119 = arith.constant 0 : index
    %249 = vector.load %arg18[%c4_118, %c0_119] : memref<56x64xf32, #tpu.memory_space<vmem>>, vector<2x64xf32>
    tpu.vector_store %arg18[%c4_118, %c0_119], %248 {strides = array<i32>} : memref<56x64xf32, #tpu.memory_space<vmem>>, vector<2x64xf32>,
    %250 = vector.extract_strided_slice %241 {offsets = [0, 192], sizes = [2, 64], strides = [1, 1]} : vector<2x1024xf32> to vector<2x64xf32>
    %c6_120 = arith.constant 6 : index
    %c0_121 = arith.constant 0 : index
    %251 = vector.load %arg18[%c6_120, %c0_121] : memref<56x64xf32, #tpu.memory_space<vmem>>, vector<2x64xf32>
    tpu.vector_store %arg18[%c6_120, %c0_121], %250 {strides = array<i32>} : memref<56x64xf32, #tpu.memory_space<vmem>>, vector<2x64xf32>,
    %252 = vector.extract_strided_slice %241 {offsets = [0, 256], sizes = [2, 64], strides = [1, 1]} : vector<2x1024xf32> to vector<2x64xf32>
    %c10_122 = arith.constant 10 : index
    %c0_123 = arith.constant 0 : index
    %253 = vector.load %arg18[%c10_122, %c0_123] : memref<56x64xf32, #tpu.memory_space<vmem>>, vector<2x64xf32>
    tpu.vector_store %arg18[%c10_122, %c0_123], %252 {strides = array<i32>} : memref<56x64xf32, #tpu.memory_space<vmem>>, vector<2x64xf32>,
    %254 = vector.extract_strided_slice %241 {offsets = [0, 320], sizes = [2, 64], strides = [1, 1]} : vector<2x1024xf32> to vector<2x64xf32>
    %c12_124 = arith.constant 12 : index
    %c0_125 = arith.constant 0 : index
    %255 = vector.load %arg18[%c12_124, %c0_125] : memref<56x64xf32, #tpu.memory_space<vmem>>, vector<2x64xf32>
    tpu.vector_store %arg18[%c12_124, %c0_125], %254 {strides = array<i32>} : memref<56x64xf32, #tpu.memory_space<vmem>>, vector<2x64xf32>,
    %256 = vector.extract_strided_slice %241 {offsets = [0, 384], sizes = [2, 64], strides = [1, 1]} : vector<2x1024xf32> to vector<2x64xf32>
    %c14_126 = arith.constant 14 : index
    %c0_127 = arith.constant 0 : index
    %257 = vector.load %arg18[%c14_126, %c0_127] : memref<56x64xf32, #tpu.memory_space<vmem>>, vector<2x64xf32>
    tpu.vector_store %arg18[%c14_126, %c0_127], %256 {strides = array<i32>} : memref<56x64xf32, #tpu.memory_space<vmem>>, vector<2x64xf32>,
    %258 = vector.extract_strided_slice %241 {offsets = [0, 448], sizes = [2, 64], strides = [1, 1]} : vector<2x1024xf32> to vector<2x64xf32>
    %c16 = arith.constant 16 : index
    %c0_128 = arith.constant 0 : index
    %259 = vector.load %arg18[%c16, %c0_128] : memref<56x64xf32, #tpu.memory_space<vmem>>, vector<2x64xf32>
    tpu.vector_store %arg18[%c16, %c0_128], %258 {strides = array<i32>} : memref<56x64xf32, #tpu.memory_space<vmem>>, vector<2x64xf32>,
    %260 = vector.extract_strided_slice %241 {offsets = [0, 512], sizes = [2, 64], strides = [1, 1]} : vector<2x1024xf32> to vector<2x64xf32>
    %c20 = arith.constant 20 : index
    %c0_129 = arith.constant 0 : index
    %261 = vector.load %arg18[%c20, %c0_129] : memref<56x64xf32, #tpu.memory_space<vmem>>, vector<2x64xf32>
    tpu.vector_store %arg18[%c20, %c0_129], %260 {strides = array<i32>} : memref<56x64xf32, #tpu.memory_space<vmem>>, vector<2x64xf32>,
    %262 = vector.extract_strided_slice %241 {offsets = [0, 576], sizes = [2, 64], strides = [1, 1]} : vector<2x1024xf32> to vector<2x64xf32>
    %c22 = arith.constant 22 : index
    %c0_130 = arith.constant 0 : index
    %263 = vector.load %arg18[%c22, %c0_130] : memref<56x64xf32, #tpu.memory_space<vmem>>, vector<2x64xf32>
    tpu.vector_store %arg18[%c22, %c0_130], %262 {strides = array<i32>} : memref<56x64xf32, #tpu.memory_space<vmem>>, vector<2x64xf32>,
    %264 = vector.extract_strided_slice %241 {offsets = [0, 640], sizes = [2, 64], strides = [1, 1]} : vector<2x1024xf32> to vector<2x64xf32>
    %c24 = arith.constant 24 : index
    %c0_131 = arith.constant 0 : index
    %265 = vector.load %arg18[%c24, %c0_131] : memref<56x64xf32, #tpu.memory_space<vmem>>, vector<2x64xf32>
    tpu.vector_store %arg18[%c24, %c0_131], %264 {strides = array<i32>} : memref<56x64xf32, #tpu.memory_space<vmem>>, vector<2x64xf32>,
    %266 = vector.extract_strided_slice %241 {offsets = [0, 704], sizes = [2, 64], strides = [1, 1]} : vector<2x1024xf32> to vector<2x64xf32>
    %c26 = arith.constant 26 : index
    %c0_132 = arith.constant 0 : index
    %267 = vector.load %arg18[%c26, %c0_132] : memref<56x64xf32, #tpu.memory_space<vmem>>, vector<2x64xf32>
    tpu.vector_store %arg18[%c26, %c0_132], %266 {strides = array<i32>} : memref<56x64xf32, #tpu.memory_space<vmem>>, vector<2x64xf32>,
    %268 = vector.extract_strided_slice %241 {offsets = [0, 768], sizes = [2, 64], strides = [1, 1]} : vector<2x1024xf32> to vector<2x64xf32>
    %c30 = arith.constant 30 : index
    %c0_133 = arith.constant 0 : index
    %269 = vector.load %arg18[%c30, %c0_133] : memref<56x64xf32, #tpu.memory_space<vmem>>, vector<2x64xf32>
    tpu.vector_store %arg18[%c30, %c0_133], %268 {strides = array<i32>} : memref<56x64xf32, #tpu.memory_space<vmem>>, vector<2x64xf32>,
    %270 = vector.extract_strided_slice %241 {offsets = [0, 832], sizes = [2, 64], strides = [1, 1]} : vector<2x1024xf32> to vector<2x64xf32>
    %c32 = arith.constant 32 : index
    %c0_134 = arith.constant 0 : index
    %271 = vector.load %arg18[%c32, %c0_134] : memref<56x64xf32, #tpu.memory_space<vmem>>, vector<2x64xf32>
    tpu.vector_store %arg18[%c32, %c0_134], %270 {strides = array<i32>} : memref<56x64xf32, #tpu.memory_space<vmem>>, vector<2x64xf32>,
    %272 = vector.extract_strided_slice %241 {offsets = [0, 896], sizes = [2, 64], strides = [1, 1]} : vector<2x1024xf32> to vector<2x64xf32>
    %c34 = arith.constant 34 : index
    %c0_135 = arith.constant 0 : index
    %273 = vector.load %arg18[%c34, %c0_135] : memref<56x64xf32, #tpu.memory_space<vmem>>, vector<2x64xf32>
    tpu.vector_store %arg18[%c34, %c0_135], %272 {strides = array<i32>} : memref<56x64xf32, #tpu.memory_space<vmem>>, vector<2x64xf32>,
    %274 = vector.extract_strided_slice %241 {offsets = [0, 960], sizes = [2, 64], strides = [1, 1]} : vector<2x1024xf32> to vector<2x64xf32>
    %c36 = arith.constant 36 : index
    %c0_136 = arith.constant 0 : index
    %275 = vector.load %arg18[%c36, %c0_136] : memref<56x64xf32, #tpu.memory_space<vmem>>, vector<2x64xf32>
    tpu.vector_store %arg18[%c36, %c0_136], %274 {strides = array<i32>} : memref<56x64xf32, #tpu.memory_space<vmem>>, vector<2x64xf32>,
    %c0_137 = arith.constant 0 : index
    %c0_138 = arith.constant 0 : index
    %276 = vector.load %arg13[%c0_137, %c0_138] : memref<1x32xf32, #tpu.memory_space<vmem>>, vector<1x32xf32>
    %c0_139 = arith.constant 0 : index
    %c0_140 = arith.constant 0 : index
    %277 = vector.load %arg18[%c0_139, %c0_140] : memref<56x64xf32, #tpu.memory_space<vmem>>, vector<40x64xf32>
    %278 = arith.truncf %277 : vector<40x64xf32> to vector<40x64xbf16>
    %c4_141 = arith.constant 4 : index
    %c0_142 = arith.constant 0 : index
    %c0_143 = arith.constant 0 : index
    %279 = vector.load %arg12[%c4_141, %c0_142, %c0_143] : memref<9x64x32xbf16, #tpu.memory_space<vmem>>, vector<1x64x32xbf16>
    %280 = vector.shape_cast %279 : vector<1x64x32xbf16> to vector<64x32xbf16>
    %cst_144 = arith.constant dense<0.000000e+00> : vector<40x32xf32>
    %281 = tpu.matmul %278, %280, %cst_144 {dimension_numbers = #tpu.dot_dimension_numbers<[1], [0], [0], [1], [0, 0, 1, 1], [], []>} : vector<40x64xbf16>, vector<64x32xbf16>, vector<40x32xf32> -> vector<40x32xf32>
    %282 = vector.broadcast %276 : vector<1x32xf32> to vector<40x32xf32>
    %283 = arith.addf %281, %282 : vector<40x32xf32>
    %cst_145 = arith.constant 0.000000e+00 : f32
    %284 = vector.broadcast %cst_145 : f32 to vector<40x32xf32>
    %285 = arith.maximumf %283, %284 : vector<40x32xf32>
    %c2_146 = arith.constant 2 : index
    %c0_147 = arith.constant 0 : index
    %286 = vector.load %arg18[%c2_146, %c0_147] : memref<56x64xf32, #tpu.memory_space<vmem>>, vector<40x64xf32>
    %287 = arith.truncf %286 : vector<40x64xf32> to vector<40x64xbf16>
    %c3_148 = arith.constant 3 : index
    %c0_149 = arith.constant 0 : index
    %c0_150 = arith.constant 0 : index
    %288 = vector.load %arg12[%c3_148, %c0_149, %c0_150] : memref<9x64x32xbf16, #tpu.memory_space<vmem>>, vector<1x64x32xbf16>
    %289 = vector.shape_cast %288 : vector<1x64x32xbf16> to vector<64x32xbf16>
    %cst_151 = arith.constant dense<0.000000e+00> : vector<40x32xf32>
    %290 = tpu.matmul %287, %289, %cst_151 {dimension_numbers = #tpu.dot_dimension_numbers<[1], [0], [0], [1], [0, 0, 1, 1], [], []>} : vector<40x64xbf16>, vector<64x32xbf16>, vector<40x32xf32> -> vector<40x32xf32>
    %c0_152 = arith.constant 0 : index
    %c0_153 = arith.constant 0 : index
    %291 = vector.load %arg18[%c0_152, %c0_153] : memref<56x64xf32, #tpu.memory_space<vmem>>, vector<40x64xf32>
    %292 = arith.truncf %291 : vector<40x64xf32> to vector<40x64xbf16>
    %c5_154 = arith.constant 5 : index
    %c0_155 = arith.constant 0 : index
    %c0_156 = arith.constant 0 : index
    %293 = vector.load %arg12[%c5_154, %c0_155, %c0_156] : memref<9x64x32xbf16, #tpu.memory_space<vmem>>, vector<1x64x32xbf16>
    %294 = vector.shape_cast %293 : vector<1x64x32xbf16> to vector<64x32xbf16>
    %cst_157 = arith.constant dense<0.000000e+00> : vector<40x32xf32>
    %295 = tpu.matmul %292, %294, %cst_157 {dimension_numbers = #tpu.dot_dimension_numbers<[1], [0], [0], [1], [0, 0, 1, 1], [], []>} : vector<40x64xbf16>, vector<64x32xbf16>, vector<40x32xf32> -> vector<40x32xf32>
    %296 = arith.addf %290, %295 : vector<40x32xf32>
    %297 = vector.broadcast %276 : vector<1x32xf32> to vector<40x32xf32>
    %298 = arith.addf %296, %297 : vector<40x32xf32>
    %cst_158 = arith.constant 0.000000e+00 : f32
    %299 = vector.broadcast %cst_158 : f32 to vector<40x32xf32>
    %300 = arith.maximumf %298, %299 : vector<40x32xf32>
    %c10_159 = arith.constant 10 : index
    %c0_160 = arith.constant 0 : index
    %301 = vector.load %arg18[%c10_159, %c0_160] : memref<56x64xf32, #tpu.memory_space<vmem>>, vector<40x64xf32>
    %302 = arith.truncf %301 : vector<40x64xf32> to vector<40x64xbf16>
    %c1_161 = arith.constant 1 : index
    %c0_162 = arith.constant 0 : index
    %c0_163 = arith.constant 0 : index
    %303 = vector.load %arg12[%c1_161, %c0_162, %c0_163] : memref<9x64x32xbf16, #tpu.memory_space<vmem>>, vector<1x64x32xbf16>
    %304 = vector.shape_cast %303 : vector<1x64x32xbf16> to vector<64x32xbf16>
    %cst_164 = arith.constant dense<0.000000e+00> : vector<40x32xf32>
    %305 = tpu.matmul %302, %304, %cst_164 {dimension_numbers = #tpu.dot_dimension_numbers<[1], [0], [0], [1], [0, 0, 1, 1], [], []>} : vector<40x64xbf16>, vector<64x32xbf16>, vector<40x32xf32> -> vector<40x32xf32>
    %c0_165 = arith.constant 0 : index
    %c0_166 = arith.constant 0 : index
    %306 = vector.load %arg18[%c0_165, %c0_166] : memref<56x64xf32, #tpu.memory_space<vmem>>, vector<40x64xf32>
    %307 = arith.truncf %306 : vector<40x64xf32> to vector<40x64xbf16>
    %c7_167 = arith.constant 7 : index
    %c0_168 = arith.constant 0 : index
    %c0_169 = arith.constant 0 : index
    %308 = vector.load %arg12[%c7_167, %c0_168, %c0_169] : memref<9x64x32xbf16, #tpu.memory_space<vmem>>, vector<1x64x32xbf16>
    %309 = vector.shape_cast %308 : vector<1x64x32xbf16> to vector<64x32xbf16>
    %cst_170 = arith.constant dense<0.000000e+00> : vector<40x32xf32>
    %310 = tpu.matmul %307, %309, %cst_170 {dimension_numbers = #tpu.dot_dimension_numbers<[1], [0], [0], [1], [0, 0, 1, 1], [], []>} : vector<40x64xbf16>, vector<64x32xbf16>, vector<40x32xf32> -> vector<40x32xf32>
    %311 = arith.addf %305, %310 : vector<40x32xf32>
    %312 = vector.broadcast %276 : vector<1x32xf32> to vector<40x32xf32>
    %313 = arith.addf %311, %312 : vector<40x32xf32>
    %cst_171 = arith.constant 0.000000e+00 : f32
    %314 = vector.broadcast %cst_171 : f32 to vector<40x32xf32>
    %315 = arith.maximumf %313, %314 : vector<40x32xf32>
    %c12_172 = arith.constant 12 : index
    %c0_173 = arith.constant 0 : index
    %316 = vector.load %arg18[%c12_172, %c0_173] : memref<56x64xf32, #tpu.memory_space<vmem>>, vector<40x64xf32>
    %317 = arith.truncf %316 : vector<40x64xf32> to vector<40x64xbf16>
    %c0_174 = arith.constant 0 : index
    %c0_175 = arith.constant 0 : index
    %c0_176 = arith.constant 0 : index
    %318 = vector.load %arg12[%c0_174, %c0_175, %c0_176] : memref<9x64x32xbf16, #tpu.memory_space<vmem>>, vector<1x64x32xbf16>
    %319 = vector.shape_cast %318 : vector<1x64x32xbf16> to vector<64x32xbf16>
    %cst_177 = arith.constant dense<0.000000e+00> : vector<40x32xf32>
    %320 = tpu.matmul %317, %319, %cst_177 {dimension_numbers = #tpu.dot_dimension_numbers<[1], [0], [0], [1], [0, 0, 1, 1], [], []>} : vector<40x64xbf16>, vector<64x32xbf16>, vector<40x32xf32> -> vector<40x32xf32>
    %c10_178 = arith.constant 10 : index
    %c0_179 = arith.constant 0 : index
    %321 = vector.load %arg18[%c10_178, %c0_179] : memref<56x64xf32, #tpu.memory_space<vmem>>, vector<40x64xf32>
    %322 = arith.truncf %321 : vector<40x64xf32> to vector<40x64xbf16>
    %c2_180 = arith.constant 2 : index
    %c0_181 = arith.constant 0 : index
    %c0_182 = arith.constant 0 : index
    %323 = vector.load %arg12[%c2_180, %c0_181, %c0_182] : memref<9x64x32xbf16, #tpu.memory_space<vmem>>, vector<1x64x32xbf16>
    %324 = vector.shape_cast %323 : vector<1x64x32xbf16> to vector<64x32xbf16>
    %cst_183 = arith.constant dense<0.000000e+00> : vector<40x32xf32>
    %325 = tpu.matmul %322, %324, %cst_183 {dimension_numbers = #tpu.dot_dimension_numbers<[1], [0], [0], [1], [0, 0, 1, 1], [], []>} : vector<40x64xbf16>, vector<64x32xbf16>, vector<40x32xf32> -> vector<40x32xf32>
    %326 = arith.addf %320, %325 : vector<40x32xf32>
    %c2_184 = arith.constant 2 : index
    %c0_185 = arith.constant 0 : index
    %327 = vector.load %arg18[%c2_184, %c0_185] : memref<56x64xf32, #tpu.memory_space<vmem>>, vector<40x64xf32>
    %328 = arith.truncf %327 : vector<40x64xf32> to vector<40x64xbf16>
    %c6_186 = arith.constant 6 : index
    %c0_187 = arith.constant 0 : index
    %c0_188 = arith.constant 0 : index
    %329 = vector.load %arg12[%c6_186, %c0_187, %c0_188] : memref<9x64x32xbf16, #tpu.memory_space<vmem>>, vector<1x64x32xbf16>
    %330 = vector.shape_cast %329 : vector<1x64x32xbf16> to vector<64x32xbf16>
    %cst_189 = arith.constant dense<0.000000e+00> : vector<40x32xf32>
    %331 = tpu.matmul %328, %330, %cst_189 {dimension_numbers = #tpu.dot_dimension_numbers<[1], [0], [0], [1], [0, 0, 1, 1], [], []>} : vector<40x64xbf16>, vector<64x32xbf16>, vector<40x32xf32> -> vector<40x32xf32>
    %332 = arith.addf %326, %331 : vector<40x32xf32>
    %c0_190 = arith.constant 0 : index
    %c0_191 = arith.constant 0 : index
    %333 = vector.load %arg18[%c0_190, %c0_191] : memref<56x64xf32, #tpu.memory_space<vmem>>, vector<40x64xf32>
    %334 = arith.truncf %333 : vector<40x64xf32> to vector<40x64xbf16>
    %c8_192 = arith.constant 8 : index
    %c0_193 = arith.constant 0 : index
    %c0_194 = arith.constant 0 : index
    %335 = vector.load %arg12[%c8_192, %c0_193, %c0_194] : memref<9x64x32xbf16, #tpu.memory_space<vmem>>, vector<1x64x32xbf16>
    %336 = vector.shape_cast %335 : vector<1x64x32xbf16> to vector<64x32xbf16>
    %cst_195 = arith.constant dense<0.000000e+00> : vector<40x32xf32>
    %337 = tpu.matmul %334, %336, %cst_195 {dimension_numbers = #tpu.dot_dimension_numbers<[1], [0], [0], [1], [0, 0, 1, 1], [], []>} : vector<40x64xbf16>, vector<64x32xbf16>, vector<40x32xf32> -> vector<40x32xf32>
    %338 = arith.addf %332, %337 : vector<40x32xf32>
    %339 = vector.broadcast %276 : vector<1x32xf32> to vector<40x32xf32>
    %340 = arith.addf %338, %339 : vector<40x32xf32>
    %cst_196 = arith.constant 0.000000e+00 : f32
    %341 = vector.broadcast %cst_196 : f32 to vector<40x32xf32>
    %342 = arith.maximumf %340, %341 : vector<40x32xf32>
    %cst_197 = arith.constant 0.000000e+00 : f32
    %343 = vector.broadcast %cst_197 : f32 to vector<136x32xf32>
    %c0_198 = arith.constant 0 : index
    %c0_199 = arith.constant 0 : index
    %344 = vector.load %arg19[%c0_198, %c0_199] : memref<136x32xf32, #tpu.memory_space<vmem>>, vector<136x32xf32>
    tpu.vector_store %arg19[%c0_198, %c0_199], %343 {strides = array<i32>} : memref<136x32xf32, #tpu.memory_space<vmem>>, vector<136x32xf32>,
    %345 = vector.extract_strided_slice %285 {offsets = [0, 0], sizes = [2, 32], strides = [1, 1]} : vector<40x32xf32> to vector<2x32xf32>
    %c0_200 = arith.constant 0 : index
    %c0_201 = arith.constant 0 : index
    %346 = vector.load %arg19[%c0_200, %c0_201] : memref<136x32xf32, #tpu.memory_space<vmem>>, vector<2x32xf32>
    tpu.vector_store %arg19[%c0_200, %c0_201], %345 {strides = array<i32>} : memref<136x32xf32, #tpu.memory_space<vmem>>, vector<2x32xf32>,
    %347 = vector.extract_strided_slice %285 {offsets = [2, 0], sizes = [2, 32], strides = [1, 1]} : vector<40x32xf32> to vector<2x32xf32>
    %c4_202 = arith.constant 4 : index
    %c0_203 = arith.constant 0 : index
    %348 = vector.load %arg19[%c4_202, %c0_203] : memref<136x32xf32, #tpu.memory_space<vmem>>, vector<2x32xf32>
    tpu.vector_store %arg19[%c4_202, %c0_203], %347 {strides = array<i32>} : memref<136x32xf32, #tpu.memory_space<vmem>>, vector<2x32xf32>,
    %349 = vector.extract_strided_slice %285 {offsets = [4, 0], sizes = [2, 32], strides = [1, 1]} : vector<40x32xf32> to vector<2x32xf32>
    %c8_204 = arith.constant 8 : index
    %c0_205 = arith.constant 0 : index
    %350 = vector.load %arg19[%c8_204, %c0_205] : memref<136x32xf32, #tpu.memory_space<vmem>>, vector<2x32xf32>
    tpu.vector_store %arg19[%c8_204, %c0_205], %349 {strides = array<i32>} : memref<136x32xf32, #tpu.memory_space<vmem>>, vector<2x32xf32>,
    %351 = vector.extract_strided_slice %285 {offsets = [6, 0], sizes = [2, 32], strides = [1, 1]} : vector<40x32xf32> to vector<2x32xf32>
    %c12_206 = arith.constant 12 : index
    %c0_207 = arith.constant 0 : index
    %352 = vector.load %arg19[%c12_206, %c0_207] : memref<136x32xf32, #tpu.memory_space<vmem>>, vector<2x32xf32>
    tpu.vector_store %arg19[%c12_206, %c0_207], %351 {strides = array<i32>} : memref<136x32xf32, #tpu.memory_space<vmem>>, vector<2x32xf32>,
    %353 = vector.extract_strided_slice %285 {offsets = [10, 0], sizes = [2, 32], strides = [1, 1]} : vector<40x32xf32> to vector<2x32xf32>
    %c32_208 = arith.constant 32 : index
    %c0_209 = arith.constant 0 : index
    %354 = vector.load %arg19[%c32_208, %c0_209] : memref<136x32xf32, #tpu.memory_space<vmem>>, vector<2x32xf32>
    tpu.vector_store %arg19[%c32_208, %c0_209], %353 {strides = array<i32>} : memref<136x32xf32, #tpu.memory_space<vmem>>, vector<2x32xf32>,
    %355 = vector.extract_strided_slice %285 {offsets = [12, 0], sizes = [2, 32], strides = [1, 1]} : vector<40x32xf32> to vector<2x32xf32>
    %c36_210 = arith.constant 36 : index
    %c0_211 = arith.constant 0 : index
    %356 = vector.load %arg19[%c36_210, %c0_211] : memref<136x32xf32, #tpu.memory_space<vmem>>, vector<2x32xf32>
    tpu.vector_store %arg19[%c36_210, %c0_211], %355 {strides = array<i32>} : memref<136x32xf32, #tpu.memory_space<vmem>>, vector<2x32xf32>,
    %357 = vector.extract_strided_slice %285 {offsets = [14, 0], sizes = [2, 32], strides = [1, 1]} : vector<40x32xf32> to vector<2x32xf32>
    %c40 = arith.constant 40 : index
    %c0_212 = arith.constant 0 : index
    %358 = vector.load %arg19[%c40, %c0_212] : memref<136x32xf32, #tpu.memory_space<vmem>>, vector<2x32xf32>
    tpu.vector_store %arg19[%c40, %c0_212], %357 {strides = array<i32>} : memref<136x32xf32, #tpu.memory_space<vmem>>, vector<2x32xf32>,
    %359 = vector.extract_strided_slice %285 {offsets = [16, 0], sizes = [2, 32], strides = [1, 1]} : vector<40x32xf32> to vector<2x32xf32>
    %c44 = arith.constant 44 : index
    %c0_213 = arith.constant 0 : index
    %360 = vector.load %arg19[%c44, %c0_213] : memref<136x32xf32, #tpu.memory_space<vmem>>, vector<2x32xf32>
    tpu.vector_store %arg19[%c44, %c0_213], %359 {strides = array<i32>} : memref<136x32xf32, #tpu.memory_space<vmem>>, vector<2x32xf32>,
    %361 = vector.extract_strided_slice %285 {offsets = [20, 0], sizes = [2, 32], strides = [1, 1]} : vector<40x32xf32> to vector<2x32xf32>
    %c64 = arith.constant 64 : index
    %c0_214 = arith.constant 0 : index
    %362 = vector.load %arg19[%c64, %c0_214] : memref<136x32xf32, #tpu.memory_space<vmem>>, vector<2x32xf32>
    tpu.vector_store %arg19[%c64, %c0_214], %361 {strides = array<i32>} : memref<136x32xf32, #tpu.memory_space<vmem>>, vector<2x32xf32>,
    %363 = vector.extract_strided_slice %285 {offsets = [22, 0], sizes = [2, 32], strides = [1, 1]} : vector<40x32xf32> to vector<2x32xf32>
    %c68 = arith.constant 68 : index
    %c0_215 = arith.constant 0 : index
    %364 = vector.load %arg19[%c68, %c0_215] : memref<136x32xf32, #tpu.memory_space<vmem>>, vector<2x32xf32>
    tpu.vector_store %arg19[%c68, %c0_215], %363 {strides = array<i32>} : memref<136x32xf32, #tpu.memory_space<vmem>>, vector<2x32xf32>,
    %365 = vector.extract_strided_slice %285 {offsets = [24, 0], sizes = [2, 32], strides = [1, 1]} : vector<40x32xf32> to vector<2x32xf32>
    %c72 = arith.constant 72 : index
    %c0_216 = arith.constant 0 : index
    %366 = vector.load %arg19[%c72, %c0_216] : memref<136x32xf32, #tpu.memory_space<vmem>>, vector<2x32xf32>
    tpu.vector_store %arg19[%c72, %c0_216], %365 {strides = array<i32>} : memref<136x32xf32, #tpu.memory_space<vmem>>, vector<2x32xf32>,
    %367 = vector.extract_strided_slice %285 {offsets = [26, 0], sizes = [2, 32], strides = [1, 1]} : vector<40x32xf32> to vector<2x32xf32>
    %c76 = arith.constant 76 : index
    %c0_217 = arith.constant 0 : index
    %368 = vector.load %arg19[%c76, %c0_217] : memref<136x32xf32, #tpu.memory_space<vmem>>, vector<2x32xf32>
    tpu.vector_store %arg19[%c76, %c0_217], %367 {strides = array<i32>} : memref<136x32xf32, #tpu.memory_space<vmem>>, vector<2x32xf32>,
    %369 = vector.extract_strided_slice %285 {offsets = [30, 0], sizes = [2, 32], strides = [1, 1]} : vector<40x32xf32> to vector<2x32xf32>
    %c96 = arith.constant 96 : index
    %c0_218 = arith.constant 0 : index
    %370 = vector.load %arg19[%c96, %c0_218] : memref<136x32xf32, #tpu.memory_space<vmem>>, vector<2x32xf32>
    tpu.vector_store %arg19[%c96, %c0_218], %369 {strides = array<i32>} : memref<136x32xf32, #tpu.memory_space<vmem>>, vector<2x32xf32>,
    %371 = vector.extract_strided_slice %285 {offsets = [32, 0], sizes = [2, 32], strides = [1, 1]} : vector<40x32xf32> to vector<2x32xf32>
    %c100 = arith.constant 100 : index
    %c0_219 = arith.constant 0 : index
    %372 = vector.load %arg19[%c100, %c0_219] : memref<136x32xf32, #tpu.memory_space<vmem>>, vector<2x32xf32>
    tpu.vector_store %arg19[%c100, %c0_219], %371 {strides = array<i32>} : memref<136x32xf32, #tpu.memory_space<vmem>>, vector<2x32xf32>,
    %373 = vector.extract_strided_slice %285 {offsets = [34, 0], sizes = [2, 32], strides = [1, 1]} : vector<40x32xf32> to vector<2x32xf32>
    %c104 = arith.constant 104 : index
    %c0_220 = arith.constant 0 : index
    %374 = vector.load %arg19[%c104, %c0_220] : memref<136x32xf32, #tpu.memory_space<vmem>>, vector<2x32xf32>
    tpu.vector_store %arg19[%c104, %c0_220], %373 {strides = array<i32>} : memref<136x32xf32, #tpu.memory_space<vmem>>, vector<2x32xf32>,
    %375 = vector.extract_strided_slice %285 {offsets = [36, 0], sizes = [2, 32], strides = [1, 1]} : vector<40x32xf32> to vector<2x32xf32>
    %c108 = arith.constant 108 : index
    %c0_221 = arith.constant 0 : index
    %376 = vector.load %arg19[%c108, %c0_221] : memref<136x32xf32, #tpu.memory_space<vmem>>, vector<2x32xf32>
    tpu.vector_store %arg19[%c108, %c0_221], %375 {strides = array<i32>} : memref<136x32xf32, #tpu.memory_space<vmem>>, vector<2x32xf32>,
    %377 = vector.extract_strided_slice %300 {offsets = [0, 0], sizes = [2, 32], strides = [1, 1]} : vector<40x32xf32> to vector<2x32xf32>
    %c2_222 = arith.constant 2 : index
    %c0_223 = arith.constant 0 : index
    %378 = vector.load %arg19[%c2_222, %c0_223] : memref<136x32xf32, #tpu.memory_space<vmem>>, vector<2x32xf32>
    tpu.vector_store %arg19[%c2_222, %c0_223], %377 {strides = array<i32>} : memref<136x32xf32, #tpu.memory_space<vmem>>, vector<2x32xf32>,
    %379 = vector.extract_strided_slice %300 {offsets = [2, 0], sizes = [2, 32], strides = [1, 1]} : vector<40x32xf32> to vector<2x32xf32>
    %c6_224 = arith.constant 6 : index
    %c0_225 = arith.constant 0 : index
    %380 = vector.load %arg19[%c6_224, %c0_225] : memref<136x32xf32, #tpu.memory_space<vmem>>, vector<2x32xf32>
    tpu.vector_store %arg19[%c6_224, %c0_225], %379 {strides = array<i32>} : memref<136x32xf32, #tpu.memory_space<vmem>>, vector<2x32xf32>,
    %381 = vector.extract_strided_slice %300 {offsets = [4, 0], sizes = [2, 32], strides = [1, 1]} : vector<40x32xf32> to vector<2x32xf32>
    %c10_226 = arith.constant 10 : index
    %c0_227 = arith.constant 0 : index
    %382 = vector.load %arg19[%c10_226, %c0_227] : memref<136x32xf32, #tpu.memory_space<vmem>>, vector<2x32xf32>
    tpu.vector_store %arg19[%c10_226, %c0_227], %381 {strides = array<i32>} : memref<136x32xf32, #tpu.memory_space<vmem>>, vector<2x32xf32>,
    %383 = vector.extract_strided_slice %300 {offsets = [10, 0], sizes = [2, 32], strides = [1, 1]} : vector<40x32xf32> to vector<2x32xf32>
    %c34_228 = arith.constant 34 : index
    %c0_229 = arith.constant 0 : index
    %384 = vector.load %arg19[%c34_228, %c0_229] : memref<136x32xf32, #tpu.memory_space<vmem>>, vector<2x32xf32>
    tpu.vector_store %arg19[%c34_228, %c0_229], %383 {strides = array<i32>} : memref<136x32xf32, #tpu.memory_space<vmem>>, vector<2x32xf32>,
    %385 = vector.extract_strided_slice %300 {offsets = [12, 0], sizes = [2, 32], strides = [1, 1]} : vector<40x32xf32> to vector<2x32xf32>
    %c38 = arith.constant 38 : index
    %c0_230 = arith.constant 0 : index
    %386 = vector.load %arg19[%c38, %c0_230] : memref<136x32xf32, #tpu.memory_space<vmem>>, vector<2x32xf32>
    tpu.vector_store %arg19[%c38, %c0_230], %385 {strides = array<i32>} : memref<136x32xf32, #tpu.memory_space<vmem>>, vector<2x32xf32>,
    %387 = vector.extract_strided_slice %300 {offsets = [14, 0], sizes = [2, 32], strides = [1, 1]} : vector<40x32xf32> to vector<2x32xf32>
    %c42 = arith.constant 42 : index
    %c0_231 = arith.constant 0 : index
    %388 = vector.load %arg19[%c42, %c0_231] : memref<136x32xf32, #tpu.memory_space<vmem>>, vector<2x32xf32>
    tpu.vector_store %arg19[%c42, %c0_231], %387 {strides = array<i32>} : memref<136x32xf32, #tpu.memory_space<vmem>>, vector<2x32xf32>,
    %389 = vector.extract_strided_slice %300 {offsets = [20, 0], sizes = [2, 32], strides = [1, 1]} : vector<40x32xf32> to vector<2x32xf32>
    %c66 = arith.constant 66 : index
    %c0_232 = arith.constant 0 : index
    %390 = vector.load %arg19[%c66, %c0_232] : memref<136x32xf32, #tpu.memory_space<vmem>>, vector<2x32xf32>
    tpu.vector_store %arg19[%c66, %c0_232], %389 {strides = array<i32>} : memref<136x32xf32, #tpu.memory_space<vmem>>, vector<2x32xf32>,
    %391 = vector.extract_strided_slice %300 {offsets = [22, 0], sizes = [2, 32], strides = [1, 1]} : vector<40x32xf32> to vector<2x32xf32>
    %c70 = arith.constant 70 : index
    %c0_233 = arith.constant 0 : index
    %392 = vector.load %arg19[%c70, %c0_233] : memref<136x32xf32, #tpu.memory_space<vmem>>, vector<2x32xf32>
    tpu.vector_store %arg19[%c70, %c0_233], %391 {strides = array<i32>} : memref<136x32xf32, #tpu.memory_space<vmem>>, vector<2x32xf32>,
    %393 = vector.extract_strided_slice %300 {offsets = [24, 0], sizes = [2, 32], strides = [1, 1]} : vector<40x32xf32> to vector<2x32xf32>
    %c74 = arith.constant 74 : index
    %c0_234 = arith.constant 0 : index
    %394 = vector.load %arg19[%c74, %c0_234] : memref<136x32xf32, #tpu.memory_space<vmem>>, vector<2x32xf32>
    tpu.vector_store %arg19[%c74, %c0_234], %393 {strides = array<i32>} : memref<136x32xf32, #tpu.memory_space<vmem>>, vector<2x32xf32>,
    %395 = vector.extract_strided_slice %300 {offsets = [30, 0], sizes = [2, 32], strides = [1, 1]} : vector<40x32xf32> to vector<2x32xf32>
    %c98 = arith.constant 98 : index
    %c0_235 = arith.constant 0 : index
    %396 = vector.load %arg19[%c98, %c0_235] : memref<136x32xf32, #tpu.memory_space<vmem>>, vector<2x32xf32>
    tpu.vector_store %arg19[%c98, %c0_235], %395 {strides = array<i32>} : memref<136x32xf32, #tpu.memory_space<vmem>>, vector<2x32xf32>,
    %397 = vector.extract_strided_slice %300 {offsets = [32, 0], sizes = [2, 32], strides = [1, 1]} : vector<40x32xf32> to vector<2x32xf32>
    %c102 = arith.constant 102 : index
    %c0_236 = arith.constant 0 : index
    %398 = vector.load %arg19[%c102, %c0_236] : memref<136x32xf32, #tpu.memory_space<vmem>>, vector<2x32xf32>
    tpu.vector_store %arg19[%c102, %c0_236], %397 {strides = array<i32>} : memref<136x32xf32, #tpu.memory_space<vmem>>, vector<2x32xf32>,
    %399 = vector.extract_strided_slice %300 {offsets = [34, 0], sizes = [2, 32], strides = [1, 1]} : vector<40x32xf32> to vector<2x32xf32>
    %c106 = arith.constant 106 : index
    %c0_237 = arith.constant 0 : index
    %400 = vector.load %arg19[%c106, %c0_237] : memref<136x32xf32, #tpu.memory_space<vmem>>, vector<2x32xf32>
    tpu.vector_store %arg19[%c106, %c0_237], %399 {strides = array<i32>} : memref<136x32xf32, #tpu.memory_space<vmem>>, vector<2x32xf32>,
    %401 = vector.extract_strided_slice %315 {offsets = [0, 0], sizes = [2, 32], strides = [1, 1]} : vector<40x32xf32> to vector<2x32xf32>
    %c16_238 = arith.constant 16 : index
    %c0_239 = arith.constant 0 : index
    %402 = vector.load %arg19[%c16_238, %c0_239] : memref<136x32xf32, #tpu.memory_space<vmem>>, vector<2x32xf32>
    tpu.vector_store %arg19[%c16_238, %c0_239], %401 {strides = array<i32>} : memref<136x32xf32, #tpu.memory_space<vmem>>, vector<2x32xf32>,
    %403 = vector.extract_strided_slice %315 {offsets = [2, 0], sizes = [2, 32], strides = [1, 1]} : vector<40x32xf32> to vector<2x32xf32>
    %c20_240 = arith.constant 20 : index
    %c0_241 = arith.constant 0 : index
    %404 = vector.load %arg19[%c20_240, %c0_241] : memref<136x32xf32, #tpu.memory_space<vmem>>, vector<2x32xf32>
    tpu.vector_store %arg19[%c20_240, %c0_241], %403 {strides = array<i32>} : memref<136x32xf32, #tpu.memory_space<vmem>>, vector<2x32xf32>,
    %405 = vector.extract_strided_slice %315 {offsets = [4, 0], sizes = [2, 32], strides = [1, 1]} : vector<40x32xf32> to vector<2x32xf32>
    %c24_242 = arith.constant 24 : index
    %c0_243 = arith.constant 0 : index
    %406 = vector.load %arg19[%c24_242, %c0_243] : memref<136x32xf32, #tpu.memory_space<vmem>>, vector<2x32xf32>
    tpu.vector_store %arg19[%c24_242, %c0_243], %405 {strides = array<i32>} : memref<136x32xf32, #tpu.memory_space<vmem>>, vector<2x32xf32>,
    %407 = vector.extract_strided_slice %315 {offsets = [6, 0], sizes = [2, 32], strides = [1, 1]} : vector<40x32xf32> to vector<2x32xf32>
    %c28 = arith.constant 28 : index
    %c0_244 = arith.constant 0 : index
    %408 = vector.load %arg19[%c28, %c0_244] : memref<136x32xf32, #tpu.memory_space<vmem>>, vector<2x32xf32>
    tpu.vector_store %arg19[%c28, %c0_244], %407 {strides = array<i32>} : memref<136x32xf32, #tpu.memory_space<vmem>>, vector<2x32xf32>,
    %409 = vector.extract_strided_slice %315 {offsets = [10, 0], sizes = [2, 32], strides = [1, 1]} : vector<40x32xf32> to vector<2x32xf32>
    %c48 = arith.constant 48 : index
    %c0_245 = arith.constant 0 : index
    %410 = vector.load %arg19[%c48, %c0_245] : memref<136x32xf32, #tpu.memory_space<vmem>>, vector<2x32xf32>
    tpu.vector_store %arg19[%c48, %c0_245], %409 {strides = array<i32>} : memref<136x32xf32, #tpu.memory_space<vmem>>, vector<2x32xf32>,
    %411 = vector.extract_strided_slice %315 {offsets = [12, 0], sizes = [2, 32], strides = [1, 1]} : vector<40x32xf32> to vector<2x32xf32>
    %c52 = arith.constant 52 : index
    %c0_246 = arith.constant 0 : index
    %412 = vector.load %arg19[%c52, %c0_246] : memref<136x32xf32, #tpu.memory_space<vmem>>, vector<2x32xf32>
    tpu.vector_store %arg19[%c52, %c0_246], %411 {strides = array<i32>} : memref<136x32xf32, #tpu.memory_space<vmem>>, vector<2x32xf32>,
    %413 = vector.extract_strided_slice %315 {offsets = [14, 0], sizes = [2, 32], strides = [1, 1]} : vector<40x32xf32> to vector<2x32xf32>
    %c56 = arith.constant 56 : index
    %c0_247 = arith.constant 0 : index
    %414 = vector.load %arg19[%c56, %c0_247] : memref<136x32xf32, #tpu.memory_space<vmem>>, vector<2x32xf32>
    tpu.vector_store %arg19[%c56, %c0_247], %413 {strides = array<i32>} : memref<136x32xf32, #tpu.memory_space<vmem>>, vector<2x32xf32>,
    %415 = vector.extract_strided_slice %315 {offsets = [16, 0], sizes = [2, 32], strides = [1, 1]} : vector<40x32xf32> to vector<2x32xf32>
    %c60 = arith.constant 60 : index
    %c0_248 = arith.constant 0 : index
    %416 = vector.load %arg19[%c60, %c0_248] : memref<136x32xf32, #tpu.memory_space<vmem>>, vector<2x32xf32>
    tpu.vector_store %arg19[%c60, %c0_248], %415 {strides = array<i32>} : memref<136x32xf32, #tpu.memory_space<vmem>>, vector<2x32xf32>,
    %417 = vector.extract_strided_slice %315 {offsets = [20, 0], sizes = [2, 32], strides = [1, 1]} : vector<40x32xf32> to vector<2x32xf32>
    %c80 = arith.constant 80 : index
    %c0_249 = arith.constant 0 : index
    %418 = vector.load %arg19[%c80, %c0_249] : memref<136x32xf32, #tpu.memory_space<vmem>>, vector<2x32xf32>
    tpu.vector_store %arg19[%c80, %c0_249], %417 {strides = array<i32>} : memref<136x32xf32, #tpu.memory_space<vmem>>, vector<2x32xf32>,
    %419 = vector.extract_strided_slice %315 {offsets = [22, 0], sizes = [2, 32], strides = [1, 1]} : vector<40x32xf32> to vector<2x32xf32>
    %c84 = arith.constant 84 : index
    %c0_250 = arith.constant 0 : index
    %420 = vector.load %arg19[%c84, %c0_250] : memref<136x32xf32, #tpu.memory_space<vmem>>, vector<2x32xf32>
    tpu.vector_store %arg19[%c84, %c0_250], %419 {strides = array<i32>} : memref<136x32xf32, #tpu.memory_space<vmem>>, vector<2x32xf32>,
    %421 = vector.extract_strided_slice %315 {offsets = [24, 0], sizes = [2, 32], strides = [1, 1]} : vector<40x32xf32> to vector<2x32xf32>
    %c88 = arith.constant 88 : index
    %c0_251 = arith.constant 0 : index
    %422 = vector.load %arg19[%c88, %c0_251] : memref<136x32xf32, #tpu.memory_space<vmem>>, vector<2x32xf32>
    tpu.vector_store %arg19[%c88, %c0_251], %421 {strides = array<i32>} : memref<136x32xf32, #tpu.memory_space<vmem>>, vector<2x32xf32>,
    %423 = vector.extract_strided_slice %315 {offsets = [26, 0], sizes = [2, 32], strides = [1, 1]} : vector<40x32xf32> to vector<2x32xf32>
    %c92 = arith.constant 92 : index
    %c0_252 = arith.constant 0 : index
    %424 = vector.load %arg19[%c92, %c0_252] : memref<136x32xf32, #tpu.memory_space<vmem>>, vector<2x32xf32>
    tpu.vector_store %arg19[%c92, %c0_252], %423 {strides = array<i32>} : memref<136x32xf32, #tpu.memory_space<vmem>>, vector<2x32xf32>,
    %425 = vector.extract_strided_slice %342 {offsets = [0, 0], sizes = [2, 32], strides = [1, 1]} : vector<40x32xf32> to vector<2x32xf32>
    %c18 = arith.constant 18 : index
    %c0_253 = arith.constant 0 : index
    %426 = vector.load %arg19[%c18, %c0_253] : memref<136x32xf32, #tpu.memory_space<vmem>>, vector<2x32xf32>
    tpu.vector_store %arg19[%c18, %c0_253], %425 {strides = array<i32>} : memref<136x32xf32, #tpu.memory_space<vmem>>, vector<2x32xf32>,
    %427 = vector.extract_strided_slice %342 {offsets = [2, 0], sizes = [2, 32], strides = [1, 1]} : vector<40x32xf32> to vector<2x32xf32>
    %c22_254 = arith.constant 22 : index
    %c0_255 = arith.constant 0 : index
    %428 = vector.load %arg19[%c22_254, %c0_255] : memref<136x32xf32, #tpu.memory_space<vmem>>, vector<2x32xf32>
    tpu.vector_store %arg19[%c22_254, %c0_255], %427 {strides = array<i32>} : memref<136x32xf32, #tpu.memory_space<vmem>>, vector<2x32xf32>,
    %429 = vector.extract_strided_slice %342 {offsets = [4, 0], sizes = [2, 32], strides = [1, 1]} : vector<40x32xf32> to vector<2x32xf32>
    %c26_256 = arith.constant 26 : index
    %c0_257 = arith.constant 0 : index
    %430 = vector.load %arg19[%c26_256, %c0_257] : memref<136x32xf32, #tpu.memory_space<vmem>>, vector<2x32xf32>
    tpu.vector_store %arg19[%c26_256, %c0_257], %429 {strides = array<i32>} : memref<136x32xf32, #tpu.memory_space<vmem>>, vector<2x32xf32>,
    %431 = vector.extract_strided_slice %342 {offsets = [10, 0], sizes = [2, 32], strides = [1, 1]} : vector<40x32xf32> to vector<2x32xf32>
    %c50 = arith.constant 50 : index
    %c0_258 = arith.constant 0 : index
    %432 = vector.load %arg19[%c50, %c0_258] : memref<136x32xf32, #tpu.memory_space<vmem>>, vector<2x32xf32>
    tpu.vector_store %arg19[%c50, %c0_258], %431 {strides = array<i32>} : memref<136x32xf32, #tpu.memory_space<vmem>>, vector<2x32xf32>,
    %433 = vector.extract_strided_slice %342 {offsets = [12, 0], sizes = [2, 32], strides = [1, 1]} : vector<40x32xf32> to vector<2x32xf32>
    %c54 = arith.constant 54 : index
    %c0_259 = arith.constant 0 : index
    %434 = vector.load %arg19[%c54, %c0_259] : memref<136x32xf32, #tpu.memory_space<vmem>>, vector<2x32xf32>
    tpu.vector_store %arg19[%c54, %c0_259], %433 {strides = array<i32>} : memref<136x32xf32, #tpu.memory_space<vmem>>, vector<2x32xf32>,
    %435 = vector.extract_strided_slice %342 {offsets = [14, 0], sizes = [2, 32], strides = [1, 1]} : vector<40x32xf32> to vector<2x32xf32>
    %c58 = arith.constant 58 : index
    %c0_260 = arith.constant 0 : index
    %436 = vector.load %arg19[%c58, %c0_260] : memref<136x32xf32, #tpu.memory_space<vmem>>, vector<2x32xf32>
    tpu.vector_store %arg19[%c58, %c0_260], %435 {strides = array<i32>} : memref<136x32xf32, #tpu.memory_space<vmem>>, vector<2x32xf32>,
    %437 = vector.extract_strided_slice %342 {offsets = [20, 0], sizes = [2, 32], strides = [1, 1]} : vector<40x32xf32> to vector<2x32xf32>
    %c82 = arith.constant 82 : index
    %c0_261 = arith.constant 0 : index
    %438 = vector.load %arg19[%c82, %c0_261] : memref<136x32xf32, #tpu.memory_space<vmem>>, vector<2x32xf32>
    tpu.vector_store %arg19[%c82, %c0_261], %437 {strides = array<i32>} : memref<136x32xf32, #tpu.memory_space<vmem>>, vector<2x32xf32>,
    %439 = vector.extract_strided_slice %342 {offsets = [22, 0], sizes = [2, 32], strides = [1, 1]} : vector<40x32xf32> to vector<2x32xf32>
    %c86 = arith.constant 86 : index
    %c0_262 = arith.constant 0 : index
    %440 = vector.load %arg19[%c86, %c0_262] : memref<136x32xf32, #tpu.memory_space<vmem>>, vector<2x32xf32>
    tpu.vector_store %arg19[%c86, %c0_262], %439 {strides = array<i32>} : memref<136x32xf32, #tpu.memory_space<vmem>>, vector<2x32xf32>,
    %441 = vector.extract_strided_slice %342 {offsets = [24, 0], sizes = [2, 32], strides = [1, 1]} : vector<40x32xf32> to vector<2x32xf32>
    %c90 = arith.constant 90 : index
    %c0_263 = arith.constant 0 : index
    %442 = vector.load %arg19[%c90, %c0_263] : memref<136x32xf32, #tpu.memory_space<vmem>>, vector<2x32xf32>
    tpu.vector_store %arg19[%c90, %c0_263], %441 {strides = array<i32>} : memref<136x32xf32, #tpu.memory_space<vmem>>, vector<2x32xf32>,
    %c0_264 = arith.constant 0 : index
    %c0_265 = arith.constant 0 : index
    %443 = vector.load %arg14[%c0_264, %c0_265] : memref<9x32xf32, #tpu.memory_space<vmem>>, vector<9x32xf32>
    %c0_266 = arith.constant 0 : index
    %c0_267 = arith.constant 0 : index
    %444 = vector.load %arg15[%c0_266, %c0_267] : memref<1x1xf32, #tpu.memory_space<vmem>>, vector<1x1xf32>
    %cst_268 = arith.constant 0.000000e+00 : f32
    %445 = vector.broadcast %cst_268 : f32 to vector<112x32xf32>
    %c0_269 = arith.constant 0 : index
    %c0_270 = arith.constant 0 : index
    %446 = vector.load %arg19[%c0_269, %c0_270] : memref<136x32xf32, #tpu.memory_space<vmem>>, vector<112x32xf32>
    %447 = vector.extract_strided_slice %443 {offsets = [4, 0], sizes = [1, 32], strides = [1, 1]} : vector<9x32xf32> to vector<1x32xf32>
    %448 = vector.broadcast %447 : vector<1x32xf32> to vector<112x32xf32>
    %449 = arith.mulf %446, %448 : vector<112x32xf32>
    %450 = arith.addf %445, %449 : vector<112x32xf32>
    %cst_271 = arith.constant dense<0.000000e+00> : vector<112xf32>
    %451 = vector.multi_reduction <add>, %450, %cst_271 [1] : vector<112x32xf32> to vector<112xf32>
    %452 = vector.shape_cast %451 : vector<112xf32> to vector<112x1xf32>
    %453 = vector.broadcast %444 : vector<1x1xf32> to vector<112x1xf32>
    %454 = arith.addf %452, %453 : vector<112x1xf32>
    %cst_272 = arith.constant 0.000000e+00 : f32
    %455 = vector.broadcast %cst_272 : f32 to vector<112x1xf32>
    %456 = arith.subf %455, %454 : vector<112x1xf32>
    %457 = math.exp %456 : vector<112x1xf32>
    %cst_273 = arith.constant 1.000000e+00 : f32
    %458 = vector.broadcast %cst_273 : f32 to vector<112x1xf32>
    %459 = arith.addf %458, %457 : vector<112x1xf32>
    %460 = tpu.reciprocal %459 {approx = true} : vector<112x1xf32> -> vector<112x1xf32>
    %c0_274 = arith.constant 0 : index
    %c0_275 = arith.constant 0 : index
    %461 = vector.load %arg17[%c0_274, %c0_275] : memref<448x1xf32, #tpu.memory_space<vmem>>, vector<112x1xf32>
    tpu.vector_store %arg17[%c0_274, %c0_275], %460 {strides = array<i32>} : memref<448x1xf32, #tpu.memory_space<vmem>>, vector<112x1xf32>,
    %cst_276 = arith.constant 0.000000e+00 : f32
    %462 = vector.broadcast %cst_276 : f32 to vector<112x32xf32>
    %c2_277 = arith.constant 2 : index
    %c0_278 = arith.constant 0 : index
    %463 = vector.load %arg19[%c2_277, %c0_278] : memref<136x32xf32, #tpu.memory_space<vmem>>, vector<112x32xf32>
    %464 = vector.extract_strided_slice %443 {offsets = [3, 0], sizes = [1, 32], strides = [1, 1]} : vector<9x32xf32> to vector<1x32xf32>
    %465 = vector.broadcast %464 : vector<1x32xf32> to vector<112x32xf32>
    %466 = arith.mulf %463, %465 : vector<112x32xf32>
    %467 = arith.addf %462, %466 : vector<112x32xf32>
    %c0_279 = arith.constant 0 : index
    %c0_280 = arith.constant 0 : index
    %468 = vector.load %arg19[%c0_279, %c0_280] : memref<136x32xf32, #tpu.memory_space<vmem>>, vector<112x32xf32>
    %469 = vector.extract_strided_slice %443 {offsets = [5, 0], sizes = [1, 32], strides = [1, 1]} : vector<9x32xf32> to vector<1x32xf32>
    %470 = vector.broadcast %469 : vector<1x32xf32> to vector<112x32xf32>
    %471 = arith.mulf %468, %470 : vector<112x32xf32>
    %472 = arith.addf %467, %471 : vector<112x32xf32>
    %cst_281 = arith.constant dense<0.000000e+00> : vector<112xf32>
    %473 = vector.multi_reduction <add>, %472, %cst_281 [1] : vector<112x32xf32> to vector<112xf32>
    %474 = vector.shape_cast %473 : vector<112xf32> to vector<112x1xf32>
    %475 = vector.broadcast %444 : vector<1x1xf32> to vector<112x1xf32>
    %476 = arith.addf %474, %475 : vector<112x1xf32>
    %cst_282 = arith.constant 0.000000e+00 : f32
    %477 = vector.broadcast %cst_282 : f32 to vector<112x1xf32>
    %478 = arith.subf %477, %476 : vector<112x1xf32>
    %479 = math.exp %478 : vector<112x1xf32>
    %cst_283 = arith.constant 1.000000e+00 : f32
    %480 = vector.broadcast %cst_283 : f32 to vector<112x1xf32>
    %481 = arith.addf %480, %479 : vector<112x1xf32>
    %482 = tpu.reciprocal %481 {approx = true} : vector<112x1xf32> -> vector<112x1xf32>
    %c112 = arith.constant 112 : index
    %c0_284 = arith.constant 0 : index
    %483 = vector.load %arg17[%c112, %c0_284] : memref<448x1xf32, #tpu.memory_space<vmem>>, vector<112x1xf32>
    tpu.vector_store %arg17[%c112, %c0_284], %482 {strides = array<i32>} : memref<448x1xf32, #tpu.memory_space<vmem>>, vector<112x1xf32>,
    %cst_285 = arith.constant 0.000000e+00 : f32
    %484 = vector.broadcast %cst_285 : f32 to vector<112x32xf32>
    %c16_286 = arith.constant 16 : index
    %c0_287 = arith.constant 0 : index
    %485 = vector.load %arg19[%c16_286, %c0_287] : memref<136x32xf32, #tpu.memory_space<vmem>>, vector<112x32xf32>
    %486 = vector.extract_strided_slice %443 {offsets = [1, 0], sizes = [1, 32], strides = [1, 1]} : vector<9x32xf32> to vector<1x32xf32>
    %487 = vector.broadcast %486 : vector<1x32xf32> to vector<112x32xf32>
    %488 = arith.mulf %485, %487 : vector<112x32xf32>
    %489 = arith.addf %484, %488 : vector<112x32xf32>
    %c0_288 = arith.constant 0 : index
    %c0_289 = arith.constant 0 : index
    %490 = vector.load %arg19[%c0_288, %c0_289] : memref<136x32xf32, #tpu.memory_space<vmem>>, vector<112x32xf32>
    %491 = vector.extract_strided_slice %443 {offsets = [7, 0], sizes = [1, 32], strides = [1, 1]} : vector<9x32xf32> to vector<1x32xf32>
    %492 = vector.broadcast %491 : vector<1x32xf32> to vector<112x32xf32>
    %493 = arith.mulf %490, %492 : vector<112x32xf32>
    %494 = arith.addf %489, %493 : vector<112x32xf32>
    %cst_290 = arith.constant dense<0.000000e+00> : vector<112xf32>
    %495 = vector.multi_reduction <add>, %494, %cst_290 [1] : vector<112x32xf32> to vector<112xf32>
    %496 = vector.shape_cast %495 : vector<112xf32> to vector<112x1xf32>
    %497 = vector.broadcast %444 : vector<1x1xf32> to vector<112x1xf32>
    %498 = arith.addf %496, %497 : vector<112x1xf32>
    %cst_291 = arith.constant 0.000000e+00 : f32
    %499 = vector.broadcast %cst_291 : f32 to vector<112x1xf32>
    %500 = arith.subf %499, %498 : vector<112x1xf32>
    %501 = math.exp %500 : vector<112x1xf32>
    %cst_292 = arith.constant 1.000000e+00 : f32
    %502 = vector.broadcast %cst_292 : f32 to vector<112x1xf32>
    %503 = arith.addf %502, %501 : vector<112x1xf32>
    %504 = tpu.reciprocal %503 {approx = true} : vector<112x1xf32> -> vector<112x1xf32>
    %c224 = arith.constant 224 : index
    %c0_293 = arith.constant 0 : index
    %505 = vector.load %arg17[%c224, %c0_293] : memref<448x1xf32, #tpu.memory_space<vmem>>, vector<112x1xf32>
    tpu.vector_store %arg17[%c224, %c0_293], %504 {strides = array<i32>} : memref<448x1xf32, #tpu.memory_space<vmem>>, vector<112x1xf32>,
    %cst_294 = arith.constant 0.000000e+00 : f32
    %506 = vector.broadcast %cst_294 : f32 to vector<112x32xf32>
    %c18_295 = arith.constant 18 : index
    %c0_296 = arith.constant 0 : index
    %507 = vector.load %arg19[%c18_295, %c0_296] : memref<136x32xf32, #tpu.memory_space<vmem>>, vector<112x32xf32>
    %508 = vector.extract_strided_slice %443 {offsets = [0, 0], sizes = [1, 32], strides = [1, 1]} : vector<9x32xf32> to vector<1x32xf32>
    %509 = vector.broadcast %508 : vector<1x32xf32> to vector<112x32xf32>
    %510 = arith.mulf %507, %509 : vector<112x32xf32>
    %511 = arith.addf %506, %510 : vector<112x32xf32>
    %c16_297 = arith.constant 16 : index
    %c0_298 = arith.constant 0 : index
    %512 = vector.load %arg19[%c16_297, %c0_298] : memref<136x32xf32, #tpu.memory_space<vmem>>, vector<112x32xf32>
    %513 = vector.extract_strided_slice %443 {offsets = [2, 0], sizes = [1, 32], strides = [1, 1]} : vector<9x32xf32> to vector<1x32xf32>
    %514 = vector.broadcast %513 : vector<1x32xf32> to vector<112x32xf32>
    %515 = arith.mulf %512, %514 : vector<112x32xf32>
    %516 = arith.addf %511, %515 : vector<112x32xf32>
    %c2_299 = arith.constant 2 : index
    %c0_300 = arith.constant 0 : index
    %517 = vector.load %arg19[%c2_299, %c0_300] : memref<136x32xf32, #tpu.memory_space<vmem>>, vector<112x32xf32>
    %518 = vector.extract_strided_slice %443 {offsets = [6, 0], sizes = [1, 32], strides = [1, 1]} : vector<9x32xf32> to vector<1x32xf32>
    %519 = vector.broadcast %518 : vector<1x32xf32> to vector<112x32xf32>
    %520 = arith.mulf %517, %519 : vector<112x32xf32>
    %521 = arith.addf %516, %520 : vector<112x32xf32>
    %c0_301 = arith.constant 0 : index
    %c0_302 = arith.constant 0 : index
    %522 = vector.load %arg19[%c0_301, %c0_302] : memref<136x32xf32, #tpu.memory_space<vmem>>, vector<112x32xf32>
    %523 = vector.extract_strided_slice %443 {offsets = [8, 0], sizes = [1, 32], strides = [1, 1]} : vector<9x32xf32> to vector<1x32xf32>
    %524 = vector.broadcast %523 : vector<1x32xf32> to vector<112x32xf32>
    %525 = arith.mulf %522, %524 : vector<112x32xf32>
    %526 = arith.addf %521, %525 : vector<112x32xf32>
    %cst_303 = arith.constant dense<0.000000e+00> : vector<112xf32>
    %527 = vector.multi_reduction <add>, %526, %cst_303 [1] : vector<112x32xf32> to vector<112xf32>
    %528 = vector.shape_cast %527 : vector<112xf32> to vector<112x1xf32>
    %529 = vector.broadcast %444 : vector<1x1xf32> to vector<112x1xf32>
    %530 = arith.addf %528, %529 : vector<112x1xf32>
    %cst_304 = arith.constant 0.000000e+00 : f32
    %531 = vector.broadcast %cst_304 : f32 to vector<112x1xf32>
    %532 = arith.subf %531, %530 : vector<112x1xf32>
    %533 = math.exp %532 : vector<112x1xf32>
    %cst_305 = arith.constant 1.000000e+00 : f32
    %534 = vector.broadcast %cst_305 : f32 to vector<112x1xf32>
    %535 = arith.addf %534, %533 : vector<112x1xf32>
    %536 = tpu.reciprocal %535 {approx = true} : vector<112x1xf32> -> vector<112x1xf32>
    %c336 = arith.constant 336 : index
    %c0_306 = arith.constant 0 : index
    %537 = vector.load %arg17[%c336, %c0_306] : memref<448x1xf32, #tpu.memory_space<vmem>>, vector<112x1xf32>
    tpu.vector_store %arg17[%c336, %c0_306], %536 {strides = array<i32>} : memref<448x1xf32, #tpu.memory_space<vmem>>, vector<112x1xf32>,
    return
  }
  func.func @transform_0(%arg0: i32) -> (i32, i32) {
    %c0_i32 = arith.constant 0 : i32
    %c0_i32_0 = arith.constant 0 : i32
    %c0_i32_1 = arith.constant 0 : i32
    return %c0_i32, %c0_i32_0 : i32, i32
  }
  func.func @transform_1(%arg0: i32) -> (i32, i32) {
    %c0_i32 = arith.constant 0 : i32
    %c0_i32_0 = arith.constant 0 : i32
    %c0_i32_1 = arith.constant 0 : i32
    return %c0_i32, %c0_i32_0 : i32, i32
  }
  func.func @transform_2(%arg0: i32) -> (i32, i32) {
    %c0_i32 = arith.constant 0 : i32
    %c0_i32_0 = arith.constant 0 : i32
    %c0_i32_1 = arith.constant 0 : i32
    return %c0_i32, %c0_i32_0 : i32, i32
  }
  func.func @transform_3(%arg0: i32) -> (i32, i32) {
    %c0_i32 = arith.constant 0 : i32
    %c0_i32_0 = arith.constant 0 : i32
    %c0_i32_1 = arith.constant 0 : i32
    return %c0_i32, %c0_i32_0 : i32, i32
  }
  func.func @transform_4(%arg0: i32) -> (i32, i32, i32) {
    %c0_i32 = arith.constant 0 : i32
    %c0_i32_0 = arith.constant 0 : i32
    %c0_i32_1 = arith.constant 0 : i32
    %c0_i32_2 = arith.constant 0 : i32
    return %c0_i32, %c0_i32_0, %c0_i32_1 : i32, i32, i32
  }
  func.func @transform_5(%arg0: i32) -> (i32, i32) {
    %c0_i32 = arith.constant 0 : i32
    %c0_i32_0 = arith.constant 0 : i32
    %c0_i32_1 = arith.constant 0 : i32
    return %c0_i32, %c0_i32_0 : i32, i32
  }
  func.func @transform_6(%arg0: i32) -> (i32, i32, i32) {
    %c0_i32 = arith.constant 0 : i32
    %c0_i32_0 = arith.constant 0 : i32
    %c0_i32_1 = arith.constant 0 : i32
    %c0_i32_2 = arith.constant 0 : i32
    return %c0_i32, %c0_i32_0, %c0_i32_1 : i32, i32, i32
  }
  func.func @transform_7(%arg0: i32) -> (i32, i32) {
    %c0_i32 = arith.constant 0 : i32
    %c0_i32_0 = arith.constant 0 : i32
    %c0_i32_1 = arith.constant 0 : i32
    return %c0_i32, %c0_i32_0 : i32, i32
  }
  func.func @transform_8(%arg0: i32) -> (i32, i32) {
    %c0_i32 = arith.constant 0 : i32
    %c0_i32_0 = arith.constant 0 : i32
    %c0_i32_1 = arith.constant 0 : i32
    return %c0_i32, %c0_i32_0 : i32, i32
  }
  func.func @transform_9(%arg0: i32) -> (i32, i32) {
    %c0_i32 = arith.constant 0 : i32
    %c0_i32_0 = arith.constant 0 : i32
    %c0_i32_1 = arith.constant 0 : i32
    return %c0_i32, %c0_i32_0 : i32, i32
  }
  func.func @transform_10(%arg0: i32) -> (i32, i32) {
    %c0_i32 = arith.constant 0 : i32
    %c0_i32_0 = arith.constant 0 : i32
    %c0_i32_1 = arith.constant 0 : i32
    return %c0_i32, %c0_i32_0 : i32, i32
  }
  func.func @transform_11(%arg0: i32) -> (i32, i32, i32) {
    %c0_i32 = arith.constant 0 : i32
    %c0_i32_0 = arith.constant 0 : i32
    %c0_i32_1 = arith.constant 0 : i32
    %c0_i32_2 = arith.constant 0 : i32
    return %c0_i32, %c0_i32_0, %c0_i32_1 : i32, i32, i32
  }
  func.func @transform_12(%arg0: i32) -> (i32, i32) {
    %c0_i32 = arith.constant 0 : i32
    %c0_i32_0 = arith.constant 0 : i32
    %c0_i32_1 = arith.constant 0 : i32
    return %c0_i32, %c0_i32_0 : i32, i32
  }
  func.func @transform_13(%arg0: i32) -> (i32, i32) {
    %c0_i32 = arith.constant 0 : i32
    %c0_i32_0 = arith.constant 0 : i32
    %c0_i32_1 = arith.constant 0 : i32
    return %c0_i32, %c0_i32_0 : i32, i32
  }
  func.func @transform_14(%arg0: i32) -> (i32, i32) {
    %c0_i32 = arith.constant 0 : i32
    %c0_i32_0 = arith.constant 0 : i32
    %c0_i32_1 = arith.constant 0 : i32
    return %c0_i32, %c0_i32_0 : i32, i32
  }
  func.func @transform_15(%arg0: i32) -> (i32, i32) {
    %c0_i32 = arith.constant 0 : i32
    %c0_i32_0 = arith.constant 0 : i32
    %c0_i32_1 = arith.constant 0 : i32
    return %c0_i32, %c0_i32_0 : i32, i32
  }
  func.func @transform_16(%arg0: i32) -> (i32, i32) {
    %c0_i32 = arith.constant 0 : i32
    %c0_i32_0 = arith.constant 0 : i32
    %c0_i32_1 = arith.constant 0 : i32
    return %c0_i32, %c0_i32_0 : i32, i32
  }
}

</mosaic_0001>

<bundles_post_ra>
// kernel: mul.1
= control target key start
LH: loop header
LB: loop body
LE: loop exit
PB: predicated region body
PF: predicated region fallthrough
CT: control target
= control target key end

     0   :  { %s804_s0 = inlined_call_operand.vmem [shape: f32[288,9], index: 0, kind: input, shape index: {}]   ;;  %s805_s1 = inlined_call_operand.vmem [shape: f32[288,9], index: 1, kind: input, shape index: {}]   ;;  %s806_s2 = inlined_call_operand.vmem [shape: f32[288,9], index: 2, kind: output, shape index: {}]  }
   0x1   :  { %v3_v0 = vld [vmem:[%s804_s0] sm:$0xff]  ;;  %v360_v2 = vld [vmem:[%s804_s0 + $0x8] sm:$0xff]  ;;  %v363_v5 = vld [vmem:[%s804_s0 + $0x10] sm:$0xff] }
   0x2   :  { %v4_v1 = vld [vmem:[%s805_s1] sm:$0xff]  ;;  %v361_v4 = vld [vmem:[%s805_s1 + $0x8] sm:$0xff]  ;;  %v364_v6 = vld [vmem:[%s805_s1 + $0x10] sm:$0xff] }
   0x3   :  { %v7_v3 = vmul.f32 %v4_v1, %v3_v0  ;;  %v16_v7 = vmul.f32 %v361_v4, %v360_v2  ;;  %v26_v8 = vmul.f32 %v364_v6, %v363_v5  ;;  %v366_v9 = vld [vmem:[%s804_s0 + $0x18] sm:$0xff]  ;;  %v369_v11 = vld [vmem:[%s804_s0 + $0x20] sm:$0xff]  ;;  %v372_v14 = vld [vmem:[%s804_s0 + $0x28] sm:$0xff] }
   0x4   :  { %v367_v10 = vld [vmem:[%s805_s1 + $0x18] sm:$0xff]  ;;  %v370_v13 = vld [vmem:[%s805_s1 + $0x20] sm:$0xff]  ;;  %v373_v15 = vld [vmem:[%s805_s1 + $0x28] sm:$0xff] }
   0x5   :  { %9 = vst [vmem:[%s806_s2] sm:$0xff] %v7_v3  ;;  %v36_v12 = vmul.f32 %v367_v10, %v366_v9  ;;  %362 = vst [vmem:[%s806_s2 + $0x8] sm:$0xff] %v16_v7  ;;  %v46_v16 = vmul.f32 %v370_v13, %v369_v11  ;;  %v56_v17 = vmul.f32 %v373_v15, %v372_v14  ;;  %v375_v18 = vld [vmem:[%s804_s0 + $0x30] sm:$0xff]  ;;  %v378_v20 = vld [vmem:[%s804_s0 + $0x38] sm:$0xff] }
   0x6   :  { %365 = vst [vmem:[%s806_s2 + $0x10] sm:$0xff] %v26_v8  ;;  %v376_v19 = vld [vmem:[%s805_s1 + $0x30] sm:$0xff]  ;;  %v379_v22 = vld [vmem:[%s805_s1 + $0x38] sm:$0xff]  ;;  %v381_v23 = vld [vmem:[%s804_s0 + $0x40] sm:$0xff] }
   0x7   :  { %368 = vst [vmem:[%s806_s2 + $0x18] sm:$0xff] %v36_v12  ;;  %v66_v21 = vmul.f32 %v376_v19, %v375_v18  ;;  %v382_v24 = vld [vmem:[%s805_s1 + $0x40] sm:$0xff]  ;;  %371 = vst [vmem:[%s806_s2 + $0x20] sm:$0xff] %v46_v16  ;;  %v76_v25 = vmul.f32 %v379_v22, %v378_v20  ;;  %v384_v27 = vld [vmem:[%s804_s0 + $0x48] sm:$0xff] }
   0x8   :  { %374 = vst [vmem:[%s806_s2 + $0x28] sm:$0xff] %v56_v17  ;;  %v86_v26 = vmul.f32 %v382_v24, %v381_v23  ;;  %v385_v28 = vld [vmem:[%s805_s1 + $0x48] sm:$0xff]  ;;  %v387_v29 = vld [vmem:[%s804_s0 + $0x50] sm:$0xff]  ;;  %v390_v32 = vld [vmem:[%s804_s0 + $0x58] sm:$0xff] }
   0x9   :  { %377 = vst [vmem:[%s806_s2 + $0x30] sm:$0xff] %v66_v21  ;;  %v96_v30 = vmul.f32 %v385_v28, %v384_v27  ;;  %v388_v31 = vld [vmem:[%s805_s1 + $0x50] sm:$0xff]  ;;  %v391_v33 = vld [vmem:[%s805_s1 + $0x58] sm:$0xff]  ;;  %380 = vst [vmem:[%s806_s2 + $0x38] sm:$0xff] %v76_v25 }
   0xa   :  { %383 = vst [vmem:[%s806_s2 + $0x40] sm:$0xff] %v86_v26  ;;  %v106_v34 = vmul.f32 %v388_v31, %v387_v29  ;;  %v116_v35 = vmul.f32 %v391_v33, %v390_v32  ;;  %v393_v36 = vld [vmem:[%s804_s0 + $0x60] sm:$0xff]  ;;  %v396_v38 = vld [vmem:[%s804_s0 + $0x68] sm:$0xff]  ;;  %v399_v41 = vld [vmem:[%s804_s0 + $0x70] sm:$0xff] }
   0xb   :  { %v394_v37 = vld [vmem:[%s805_s1 + $0x60] sm:$0xff]  ;;  %386 = vst [vmem:[%s806_s2 + $0x48] sm:$0xff] %v96_v30  ;;  %v397_v40 = vld [vmem:[%s805_s1 + $0x68] sm:$0xff]  ;;  %v400_v42 = vld [vmem:[%s805_s1 + $0x70] sm:$0xff] }
   0xc   :  { %v126_v39 = vmul.f32 %v394_v37, %v393_v36  ;;  %389 = vst [vmem:[%s806_s2 + $0x50] sm:$0xff] %v106_v34  ;;  %392 = vst [vmem:[%s806_s2 + $0x58] sm:$0xff] %v116_v35  ;;  %v136_v43 = vmul.f32 %v397_v40, %v396_v38  ;;  %v146_v44 = vmul.f32 %v400_v42, %v399_v41  ;;  %v402_v45 = vld [vmem:[%s804_s0 + $0x78] sm:$0xff]  ;;  %v405_v47 = vld [vmem:[%s804_s0 + $0x80] sm:$0xff] }
   0xd   :  { %v403_v46 = vld [vmem:[%s805_s1 + $0x78] sm:$0xff]  ;;  %v406_v49 = vld [vmem:[%s805_s1 + $0x80] sm:$0xff]  ;;  %v408_v50 = vld [vmem:[%s804_s0 + $0x88] sm:$0xff] }
   0xe   :  { %395 = vst [vmem:[%s806_s2 + $0x60] sm:$0xff] %v126_v39  ;;  %v156_v48 = vmul.f32 %v403_v46, %v402_v45  ;;  %v409_v51 = vld [vmem:[%s805_s1 + $0x88] sm:$0xff]  ;;  %398 = vst [vmem:[%s806_s2 + $0x68] sm:$0xff] %v136_v43  ;;  %v166_v52 = vmul.f32 %v406_v49, %v405_v47  ;;  %v411_v54 = vld [vmem:[%s804_s0 + $0x90] sm:$0xff] }
   0xf   :  { %401 = vst [vmem:[%s806_s2 + $0x70] sm:$0xff] %v146_v44  ;;  %v176_v53 = vmul.f32 %v409_v51, %v408_v50  ;;  %v412_v55 = vld [vmem:[%s805_s1 + $0x90] sm:$0xff]  ;;  %v414_v56 = vld [vmem:[%s804_s0 + $0x98] sm:$0xff]  ;;  %v417_v59 = vld [vmem:[%s804_s0 + $0xa0] sm:$0xff] }
  0x10   :  { %404 = vst [vmem:[%s806_s2 + $0x78] sm:$0xff] %v156_v48  ;;  %v186_v57 = vmul.f32 %v412_v55, %v411_v54  ;;  %v415_v58 = vld [vmem:[%s805_s1 + $0x98] sm:$0xff]  ;;  %v418_v60 = vld [vmem:[%s805_s1 + $0xa0] sm:$0xff]  ;;  %407 = vst [vmem:[%s806_s2 + $0x80] sm:$0xff] %v166_v52 }
  0x11   :  { %410 = vst [vmem:[%s806_s2 + $0x88] sm:$0xff] %v176_v53  ;;  %v196_v61 = vmul.f32 %v415_v58, %v414_v56  ;;  %v206_v62 = vmul.f32 %v418_v60, %v417_v59  ;;  %v420_v63 = vld [vmem:[%s804_s0 + $0xa8] sm:$0xff]  ;;  %v423_v1 = vld [vmem:[%s804_s0 + $0xb0] sm:$0xff]  ;;  %v426_v4 = vld [vmem:[%s804_s0 + $0xb8] sm:$0xff] }
  0x12   :  { %v421_v0 = vld [vmem:[%s805_s1 + $0xa8] sm:$0xff]  ;;  %413 = vst [vmem:[%s806_s2 + $0x90] sm:$0xff] %v186_v57  ;;  %v424_v3 = vld [vmem:[%s805_s1 + $0xb0] sm:$0xff]  ;;  %v427_v5 = vld [vmem:[%s805_s1 + $0xb8] sm:$0xff] }
  0x13   :  { %v216_v2 = vmul.f32 %v421_v0, %v420_v63  ;;  %416 = vst [vmem:[%s806_s2 + $0x98] sm:$0xff] %v196_v61  ;;  %419 = vst [vmem:[%s806_s2 + $0xa0] sm:$0xff] %v206_v62  ;;  %v226_v6 = vmul.f32 %v424_v3, %v423_v1  ;;  %v236_v7 = vmul.f32 %v427_v5, %v426_v4  ;;  %v429_v8 = vld [vmem:[%s804_s0 + $0xc0] sm:$0xff]  ;;  %v432_v10 = vld [vmem:[%s804_s0 + $0xc8] sm:$0xff] }
  0x14   :  { %v430_v9 = vld [vmem:[%s805_s1 + $0xc0] sm:$0xff]  ;;  %v433_v12 = vld [vmem:[%s805_s1 + $0xc8] sm:$0xff]  ;;  %v435_v13 = vld [vmem:[%s804_s0 + $0xd0] sm:$0xff] }
  0x15   :  { %422 = vst [vmem:[%s806_s2 + $0xa8] sm:$0xff] %v216_v2  ;;  %v246_v11 = vmul.f32 %v430_v9, %v429_v8  ;;  %v436_v14 = vld [vmem:[%s805_s1 + $0xd0] sm:$0xff]  ;;  %425 = vst [vmem:[%s806_s2 + $0xb0] sm:$0xff] %v226_v6  ;;  %v256_v15 = vmul.f32 %v433_v12, %v432_v10  ;;  %v438_v17 = vld [vmem:[%s804_s0 + $0xd8] sm:$0xff] }
  0x16   :  { %428 = vst [vmem:[%s806_s2 + $0xb8] sm:$0xff] %v236_v7  ;;  %v266_v16 = vmul.f32 %v436_v14, %v435_v13  ;;  %v439_v18 = vld [vmem:[%s805_s1 + $0xd8] sm:$0xff]  ;;  %v441_v19 = vld [vmem:[%s804_s0 + $0xe0] sm:$0xff]  ;;  %v444_v22 = vld [vmem:[%s804_s0 + $0xe8] sm:$0xff] }
  0x17   :  { %431 = vst [vmem:[%s806_s2 + $0xc0] sm:$0xff] %v246_v11  ;;  %v276_v20 = vmul.f32 %v439_v18, %v438_v17  ;;  %v442_v21 = vld [vmem:[%s805_s1 + $0xe0] sm:$0xff]  ;;  %v445_v23 = vld [vmem:[%s805_s1 + $0xe8] sm:$0xff]  ;;  %434 = vst [vmem:[%s806_s2 + $0xc8] sm:$0xff] %v256_v15 }
  0x18   :  { %437 = vst [vmem:[%s806_s2 + $0xd0] sm:$0xff] %v266_v16  ;;  %v286_v24 = vmul.f32 %v442_v21, %v441_v19  ;;  %v296_v25 = vmul.f32 %v445_v23, %v444_v22  ;;  %v447_v26 = vld [vmem:[%s804_s0 + $0xf0] sm:$0xff]  ;;  %v450_v28 = vld [vmem:[%s804_s0 + $0xf8] sm:$0xff]  ;;  %v453_v31 = vld [vmem:[%s804_s0 + $0x100] sm:$0xff] }
  0x19   :  { %v448_v27 = vld [vmem:[%s805_s1 + $0xf0] sm:$0xff]  ;;  %440 = vst [vmem:[%s806_s2 + $0xd8] sm:$0xff] %v276_v20  ;;  %v451_v30 = vld [vmem:[%s805_s1 + $0xf8] sm:$0xff]  ;;  %v454_v32 = vld [vmem:[%s805_s1 + $0x100] sm:$0xff] }
  0x1a   :  { %v306_v29 = vmul.f32 %v448_v27, %v447_v26  ;;  %443 = vst [vmem:[%s806_s2 + $0xe0] sm:$0xff] %v286_v24  ;;  %446 = vst [vmem:[%s806_s2 + $0xe8] sm:$0xff] %v296_v25  ;;  %v316_v33 = vmul.f32 %v451_v30, %v450_v28  ;;  %v326_v34 = vmul.f32 %v454_v32, %v453_v31  ;;  %v456_v35 = vld [vmem:[%s804_s0 + $0x108] sm:$0xff]  ;;  %v459_v37 = vld [vmem:[%s804_s0 + $0x110] sm:$0xff] }
  0x1b   :  { %v457_v36 = vld [vmem:[%s805_s1 + $0x108] sm:$0xff]  ;;  %v460_v39 = vld [vmem:[%s805_s1 + $0x110] sm:$0xff]  ;;  %v462_v40 = vld [vmem:[%s804_s0 + $0x118] sm:$0xff] }
  0x1c   :  { %449 = vst [vmem:[%s806_s2 + $0xf0] sm:$0xff] %v306_v29  ;;  %v336_v38 = vmul.f32 %v457_v36, %v456_v35  ;;  %v463_v41 = vld [vmem:[%s805_s1 + $0x118] sm:$0xff]  ;;  %452 = vst [vmem:[%s806_s2 + $0xf8] sm:$0xff] %v316_v33  ;;  %v346_v42 = vmul.f32 %v460_v39, %v459_v37 }
  0x1d   :  { %455 = vst [vmem:[%s806_s2 + $0x100] sm:$0xff] %v326_v34  ;;  %v356_v43 = vmul.f32 %v463_v41, %v462_v40 }
  0x1e   :  { %458 = vst [vmem:[%s806_s2 + $0x108] sm:$0xff] %v336_v38  ;;  %461 = vst [vmem:[%s806_s2 + $0x110] sm:$0xff] %v346_v42 }
  0x1f   :  { %464 = vst [vmem:[%s806_s2 + $0x118] sm:$0xff] %v356_v43 }

// kernel: squeeze.4
= control target key start
LH: loop header
LB: loop body
LE: loop exit
PB: predicated region body
PF: predicated region fallthrough
CT: control target
= control target key end

     0   :  { %s451_s8 = smov 122   ;;  %s452_s9 = smov 124   ;;  %vm8_vm0 = vcmask 15360   ;;  %s742_s0 = inlined_call_operand.vmem [shape: f32[112], index: 0, kind: input, shape index: {}]   ;;  %s743_s1 = inlined_call_operand.vmem [shape: f32[7,8,2], index: 1, kind: output, shape index: {}]  }
   0x1   :  { %v5_v0 = vld [vmem:[%s742_s0] sm:$0x1]  ;;  %s450_s0 = smov 126   ;;  %s453_s10 = smov 120  }
   0x2   :  { %6 = vst [vmem:[#allocation0] sm:$0x1] %v5_v0  ;;  %s454_s11 = smov 118   ;;  %s455_s12 = smov 116  }
   0x3   :  { %s456_s13 = smov 114   ;;  %s457_s14 = smov 112  }
   0x4   :  { %s458_s15 = smov 110   ;;  %s459_s16 = smov 108  }
   0x5   :  { %s460_s17 = smov 106   ;;  %s461_s18 = smov 104  }
   0x6   :  { %s462_s19 = smov 102   ;;  %s463_s20 = smov 100  }
   0x7   :  { %s464_s21 = smov 98   ;;  %s465_s22 = smov 96  }
   0x8   :  { %s466_s23 = smov 94   ;;  %s467_s24 = smov 92  }
   0x9   :  { %v10_v1 = vld [vmem:[#allocation0] sm:$0x1]   ;;  %s468_s25 = smov 90   ;;  %s469_s26 = smov 88  }
   0xa   :  { %v22_v2 = vld [vmem:[#allocation0] sm:$0x1]   ;;  %11 = vrot.lane.b32.xlu0 %v10_v1, %s450_s0  ;;  %s470_s27 = smov 86   ;;  %s471_s28 = smov 84  }
   0xb   :  { %23 = vrot.lane.b32.xlu1 %v22_v2, %s451_s8  ;;  %v16_v3 = vld [vmem:[#allocation0] sm:$0x1]   ;;  %s472_s29 = smov 82   ;;  %s473_s30 = smov 80  }
   0xc   :  { %v28_v4 = vld [vmem:[#allocation0] sm:$0x1]   ;;  %s474_s2 = smov 78   ;;  %s475_s3 = smov 76  }
   0xd   :  { %v34_v5 = vld [vmem:[#allocation0] sm:$0x1]   ;;  %s476_s4 = smov 74   ;;  %s477_s5 = smov 72  }
   0xe   :  { %17 = vrot.lane.b32.xlu0 %v16_v3, %s452_s9  ;;  %v40_v6 = vld [vmem:[#allocation0] sm:$0x1]   ;;  %s478_s6 = smov 70   ;;  %s479_s7 = smov 68  }
   0xf   :  { %29 = vrot.lane.b32.xlu1 %v28_v4, %s453_s10  ;;  %v46_v7 = vld [vmem:[#allocation0] sm:$0x1]   ;;  %s480_s0 = smov 66   ;;  %s481_s8 = smov 64  }
  0x10   :  { %v52_v8 = vld [vmem:[#allocation0] sm:$0x1]   ;;  %s482_s9 = smov 62   ;;  %s483_s10 = smov 60  }
  0x11   :  { %v58_v9 = vld [vmem:[#allocation0] sm:$0x1]  }
  0x12   :  { %35 = vrot.lane.b32.xlu0 %v34_v5, %s454_s11  ;;  %v64_v10 = vld [vmem:[#allocation0] sm:$0x1]   ;;  %s484_s11 = smov 58  }
  0x13   :  { %41 = vrot.lane.b32.xlu1 %v40_v6, %s455_s12  ;;  %v70_v11 = vld [vmem:[#allocation0] sm:$0x1]   ;;  %s485_s12 = smov 56  }
  0x14   :  { %v76_v12 = vld [vmem:[#allocation0] sm:$0x1]  }
  0x15   :  { %v82_v13 = vld [vmem:[#allocation0] sm:$0x1]  }
  0x16   :  { %47 = vrot.lane.b32.xlu0 %v46_v7, %s456_s13  ;;  %v88_v14 = vld [vmem:[#allocation0] sm:$0x1]   ;;  %s486_s13 = smov 54  }
  0x17   :  { %53 = vrot.lane.b32.xlu1 %v52_v8, %s457_s14  ;;  %v94_v15 = vld [vmem:[#allocation0] sm:$0x1]   ;;  %s487_s14 = smov 52  }
  0x18   :  { %v100_v16 = vld [vmem:[#allocation0] sm:$0x1]  }
  0x19   :  { %v106_v17 = vld [vmem:[#allocation0] sm:$0x1]  }
  0x1a   :  { %59 = vrot.lane.b32.xlu0 %v58_v9, %s458_s15  ;;  %v112_v18 = vld [vmem:[#allocation0] sm:$0x1]   ;;  %s488_s15 = smov 50  }
  0x1b   :  { %65 = vrot.lane.b32.xlu1 %v64_v10, %s459_s16  ;;  %v118_v19 = vld [vmem:[#allocation0] sm:$0x1]   ;;  %s489_s16 = smov 48  }
  0x1c   :  { %v124_v20 = vld [vmem:[#allocation0] sm:$0x1]  }
  0x1d   :  { %v130_v21 = vld [vmem:[#allocation0] sm:$0x1]  }
  0x1e   :  { %71 = vrot.lane.b32.xlu0 %v70_v11, %s460_s17  ;;  %v136_v22 = vld [vmem:[#allocation0] sm:$0x1]   ;;  %s490_s17 = smov 46  }
  0x1f   :  { %77 = vrot.lane.b32.xlu1 %v76_v12, %s461_s18  ;;  %v142_v23 = vld [vmem:[#allocation0] sm:$0x1]   ;;  %s491_s18 = smov 44  }
  0x20   :  { %v148_v24 = vld [vmem:[#allocation0] sm:$0x1]  }
  0x21   :  { %v154_v25 = vld [vmem:[#allocation0] sm:$0x1]  }
  0x22   :  { %83 = vrot.lane.b32.xlu0 %v82_v13, %s462_s19  ;;  %v160_v26 = vld [vmem:[#allocation0] sm:$0x1]   ;;  %s492_s19 = smov 42  }
  0x23   :  { %89 = vrot.lane.b32.xlu1 %v88_v14, %s463_s20  ;;  %v166_v27 = vld [vmem:[#allocation0] sm:$0x1]   ;;  %s493_s20 = smov 40  }
  0x24   :  { %v172_v28 = vld [vmem:[#allocation0] sm:$0x1]  }
  0x25   :  { %v178_v29 = vld [vmem:[#allocation0] sm:$0x1]  }
  0x26   :  { %95 = vrot.lane.b32.xlu0 %v94_v15, %s464_s21  ;;  %v184_v30 = vld [vmem:[#allocation0] sm:$0x1]   ;;  %s494_s21 = smov 38  }
  0x27   :  { %101 = vrot.lane.b32.xlu1 %v100_v16, %s465_s22  ;;  %v190_v31 = vld [vmem:[#allocation0] sm:$0x1]   ;;  %s495_s22 = smov 36  }
  0x28   :  { %v196_v32 = vld [vmem:[#allocation0] sm:$0x1]  }
  0x29   :  { %v202_v33 = vld [vmem:[#allocation0] sm:$0x1]  }
  0x2a   :  { %107 = vrot.lane.b32.xlu0 %v106_v17, %s466_s23  ;;  %v208_v34 = vld [vmem:[#allocation0] sm:$0x1]   ;;  %s496_s23 = smov 34  }
  0x2b   :  { %113 = vrot.lane.b32.xlu1 %v112_v18, %s467_s24  ;;  %v214_v35 = vld [vmem:[#allocation0] sm:$0x1]   ;;  %s497_s24 = smov 32  }
  0x2c   :  { %v220_v36 = vld [vmem:[#allocation0] sm:$0x1]  }
  0x2d   :  { %v226_v37 = vld [vmem:[#allocation0] sm:$0x1]  }
  0x2e   :  { %119 = vrot.lane.b32.xlu0 %v118_v19, %s468_s25  ;;  %v232_v38 = vld [vmem:[#allocation0] sm:$0x1]  }
  0x2f   :  { %125 = vrot.lane.b32.xlu1 %v124_v20, %s469_s26  ;;  %v238_v39 = vld [vmem:[#allocation0] sm:$0x1]  }
  0x30   :  { %v244_v40 = vld [vmem:[#allocation0] sm:$0x1]  }
  0x31   :  { %v250_v41 = vld [vmem:[#allocation0] sm:$0x1]  }
  0x32   :  { %131 = vrot.lane.b32.xlu0 %v130_v21, %s470_s27  ;;  %v256_v42 = vld [vmem:[#allocation0] sm:$0x1]   ;;  %s498_s27 = smov 30  }
  0x33   :  { %137 = vrot.lane.b32.xlu1 %v136_v22, %s471_s28  ;;  %v262_v43 = vld [vmem:[#allocation0] sm:$0x1]   ;;  %s499_s28 = smov 28  }
  0x34   :  { %v268_v44 = vld [vmem:[#allocation0] sm:$0x1]  }
  0x35   :  { %v274_v45 = vld [vmem:[#allocation0] sm:$0x1]  }
  0x36   :  { %143 = vrot.lane.b32.xlu0 %v142_v23, %s472_s29  ;;  %v280_v46 = vld [vmem:[#allocation0] sm:$0x1]   ;;  %s500_s29 = smov 26  }
  0x37   :  { %149 = vrot.lane.b32.xlu1 %v148_v24, %s473_s30  ;;  %v286_v47 = vld [vmem:[#allocation0] sm:$0x1]   ;;  %s501_s30 = smov 24  }
  0x38   :  { %v292_v48 = vld [vmem:[#allocation0] sm:$0x1]  }
  0x39   :  { %v298_v49 = vld [vmem:[#allocation0] sm:$0x1]  }
  0x3a   :  { %155 = vrot.lane.b32.xlu0 %v154_v25, %s474_s2  ;;  %v304_v50 = vld [vmem:[#allocation0] sm:$0x1]   ;;  %s502_s2 = smov 22  }
  0x3b   :  { %161 = vrot.lane.b32.xlu1 %v160_v26, %s475_s3  ;;  %v7_v51 = vld [vmem:[#allocation0] sm:$0x1]   ;;  %s503_s3 = smov 20  }
  0x3c   :  { %9 = vst.msk [vmem:[%s743_s1] sm:$0x1] %vm8_vm0, %v7_v51   ;;  %v310_v52 = vld [vmem:[#allocation0] sm:$0x1]  }
  0x3d   :  { %v316_v53 = vld [vmem:[#allocation0] sm:$0x1]  }
  0x3e   :  { %167 = vrot.lane.b32.xlu0 %v166_v27, %s476_s4  ;;  %v322_v54 = vld [vmem:[#allocation0] sm:$0x1]   ;;  %s504_s4 = smov 18  }
  0x3f   :  { %173 = vrot.lane.b32.xlu1 %v172_v28, %s477_s5  ;;  %v328_v55 = vld [vmem:[#allocation0] sm:$0x1]  }
  0x40   :  { %v334_v56 = vld [vmem:[#allocation0] sm:$0x1]  }
  0x42   :  { %179 = vrot.lane.b32.xlu0 %v178_v29, %s478_s6 }
  0x43   :  { %185 = vrot.lane.b32.xlu1 %v184_v30, %s479_s7 }
  0x46   :  { %191 = vrot.lane.b32.xlu0 %v190_v31, %s480_s0 }
  0x47   :  { %197 = vrot.lane.b32.xlu1 %v196_v32, %s481_s8 }
  0x4a   :  { %203 = vrot.lane.b32.xlu0 %v202_v33, %s482_s9 }
  0x4b   :  { %209 = vrot.lane.b32.xlu1 %v208_v34, %s483_s10 }
  0x4e   :  { %215 = vrot.lane.b32.xlu0 %v214_v35, %s484_s11 }
  0x4f   :  { %221 = vrot.lane.b32.xlu1 %v220_v36, %s485_s12 }
  0x52   :  { %227 = vrot.lane.b32.xlu0 %v226_v37, %s486_s13 }
  0x53   :  { %233 = vrot.lane.b32.xlu1 %v232_v38, %s487_s14 }
  0x56   :  { %239 = vrot.lane.b32.xlu0 %v238_v39, %s488_s15 }
  0x57   :  { %245 = vrot.lane.b32.xlu1 %v244_v40, %s489_s16 }
  0x5a   :  { %251 = vrot.lane.b32.xlu0 %v250_v41, %s490_s17 }
  0x5b   :  { %257 = vrot.lane.b32.xlu1 %v256_v42, %s491_s18 }
  0x5e   :  { %263 = vrot.lane.b32.xlu0 %v262_v43, %s492_s19 }
  0x5f   :  { %269 = vrot.lane.b32.xlu1 %v268_v44, %s493_s20 }
  0x62   :  { %275 = vrot.lane.b32.xlu0 %v274_v45, %s494_s21 }
  0x63   :  { %281 = vrot.lane.b32.xlu1 %v280_v46, %s495_s22 }
  0x66   :  { %287 = vrot.lane.b32.xlu0 %v286_v47, %s496_s23 }
  0x67   :  { %293 = vrot.lane.b32.xlu1 %v292_v48, %s497_s24 }
  0x6a   :  { %299 = vrot.lane.b32.xlu0 %v298_v49, %s498_s27 }
  0x6b   :  { %305 = vrot.lane.b32.xlu1 %v304_v50, %s499_s28 }
  0x6e   :  { %311 = vrot.lane.b32.xlu0 %v310_v52, %s500_s29 }
  0x6f   :  { %317 = vrot.lane.b32.xlu1 %v316_v53, %s501_s30 }
  0x72   :  { %323 = vrot.lane.b32.xlu0 %v322_v54, %s502_s2 }
  0x73   :  { %329 = vrot.lane.b32.xlu1 %v328_v55, %s503_s3 }
  0x76   :  { %335 = vrot.lane.b32.xlu0 %v334_v56, %s504_s4 }
  0x7c   :  { %v12_v57 = vpop.permute.xlu0 %11  }
  0x7d   :  { %v24_v58 = vpop.permute.xlu1 %23   ;;  %340 = vst.msk [vmem:[%s743_s1 + $0x1] sm:$0x1] %vm8_vm0, %v12_v57  }
  0x7e   :  { %342 = vst.msk [vmem:[%s743_s1 + $0x3] sm:$0x1] %vm8_vm0, %v24_v58  }
  0x80   :  { %v18_v59 = vpop.permute.xlu0 %17  }
  0x81   :  { %v30_v60 = vpop.permute.xlu1 %29   ;;  %341 = vst.msk [vmem:[%s743_s1 + $0x2] sm:$0x1] %vm8_vm0, %v18_v59  }
  0x82   :  { %343 = vst.msk [vmem:[%s743_s1 + $0x4] sm:$0x1] %vm8_vm0, %v30_v60  }
  0x84   :  { %v36_v61 = vpop.permute.xlu0 %35  }
  0x85   :  { %v42_v62 = vpop.permute.xlu1 %41   ;;  %344 = vst.msk [vmem:[%s743_s1 + $0x5] sm:$0x1] %vm8_vm0, %v36_v61  }
  0x86   :  { %345 = vst.msk [vmem:[%s743_s1 + $0x6] sm:$0x1] %vm8_vm0, %v42_v62  }
  0x88   :  { %v48_v63 = vpop.permute.xlu0 %47  }
  0x89   :  { %v54_v0 = vpop.permute.xlu1 %53   ;;  %346 = vst.msk [vmem:[%s743_s1 + $0x7] sm:$0x1] %vm8_vm0, %v48_v63  }
  0x8a   :  { %347 = vst.msk [vmem:[%s743_s1 + $0x8] sm:$0x1] %vm8_vm0, %v54_v0  }
  0x8c   :  { %v60_v1 = vpop.permute.xlu0 %59  }
  0x8d   :  { %v66_v2 = vpop.permute.xlu1 %65   ;;  %348 = vst.msk [vmem:[%s743_s1 + $0x9] sm:$0x1] %vm8_vm0, %v60_v1  }
  0x8e   :  { %349 = vst.msk [vmem:[%s743_s1 + $0xa] sm:$0x1] %vm8_vm0, %v66_v2  }
  0x90   :  { %v72_v3 = vpop.permute.xlu0 %71  }
  0x91   :  { %v78_v4 = vpop.permute.xlu1 %77   ;;  %350 = vst.msk [vmem:[%s743_s1 + $0xb] sm:$0x1] %vm8_vm0, %v72_v3  }
  0x92   :  { %351 = vst.msk [vmem:[%s743_s1 + $0xc] sm:$0x1] %vm8_vm0, %v78_v4  }
  0x94   :  { %v84_v5 = vpop.permute.xlu0 %83  }
  0x95   :  { %v90_v6 = vpop.permute.xlu1 %89   ;;  %352 = vst.msk [vmem:[%s743_s1 + $0xd] sm:$0x1] %vm8_vm0, %v84_v5  }
  0x96   :  { %353 = vst.msk [vmem:[%s743_s1 + $0xe] sm:$0x1] %vm8_vm0, %v90_v6  }
  0x98   :  { %v96_v7 = vpop.permute.xlu0 %95  }
  0x99   :  { %v102_v8 = vpop.permute.xlu1 %101   ;;  %354 = vst.msk [vmem:[%s743_s1 + $0xf] sm:$0x1] %vm8_vm0, %v96_v7  }
  0x9a   :  { %355 = vst.msk [vmem:[%s743_s1 + $0x10] sm:$0x1] %vm8_vm0, %v102_v8  }
  0x9c   :  { %v108_v9 = vpop.permute.xlu0 %107  }
  0x9d   :  { %v114_v10 = vpop.permute.xlu1 %113   ;;  %356 = vst.msk [vmem:[%s743_s1 + $0x11] sm:$0x1] %vm8_vm0, %v108_v9  }
  0x9e   :  { %357 = vst.msk [vmem:[%s743_s1 + $0x12] sm:$0x1] %vm8_vm0, %v114_v10  }
  0xa0   :  { %v120_v11 = vpop.permute.xlu0 %119  }
  0xa1   :  { %v126_v12 = vpop.permute.xlu1 %125   ;;  %358 = vst.msk [vmem:[%s743_s1 + $0x13] sm:$0x1] %vm8_vm0, %v120_v11  }
  0xa2   :  { %359 = vst.msk [vmem:[%s743_s1 + $0x14] sm:$0x1] %vm8_vm0, %v126_v12  }
  0xa4   :  { %v132_v13 = vpop.permute.xlu0 %131  }
  0xa5   :  { %v138_v14 = vpop.permute.xlu1 %137   ;;  %360 = vst.msk [vmem:[%s743_s1 + $0x15] sm:$0x1] %vm8_vm0, %v132_v13  }
  0xa6   :  { %361 = vst.msk [vmem:[%s743_s1 + $0x16] sm:$0x1] %vm8_vm0, %v138_v14  }
  0xa8   :  { %v144_v15 = vpop.permute.xlu0 %143  }
  0xa9   :  { %v150_v16 = vpop.permute.xlu1 %149   ;;  %362 = vst.msk [vmem:[%s743_s1 + $0x17] sm:$0x1] %vm8_vm0, %v144_v15  }
  0xaa   :  { %363 = vst.msk [vmem:[%s743_s1 + $0x18] sm:$0x1] %vm8_vm0, %v150_v16  }
  0xac   :  { %v156_v17 = vpop.permute.xlu0 %155  }
  0xad   :  { %v162_v18 = vpop.permute.xlu1 %161   ;;  %364 = vst.msk [vmem:[%s743_s1 + $0x19] sm:$0x1] %vm8_vm0, %v156_v17  }
  0xae   :  { %365 = vst.msk [vmem:[%s743_s1 + $0x1a] sm:$0x1] %vm8_vm0, %v162_v18  }
  0xb0   :  { %v168_v19 = vpop.permute.xlu0 %167  }
  0xb1   :  { %v174_v20 = vpop.permute.xlu1 %173   ;;  %366 = vst.msk [vmem:[%s743_s1 + $0x1b] sm:$0x1] %vm8_vm0, %v168_v19  }
  0xb2   :  { %367 = vst.msk [vmem:[%s743_s1 + $0x1c] sm:$0x1] %vm8_vm0, %v174_v20  }
  0xb4   :  { %v180_v21 = vpop.permute.xlu0 %179  }
  0xb5   :  { %v186_v22 = vpop.permute.xlu1 %185   ;;  %368 = vst.msk [vmem:[%s743_s1 + $0x1d] sm:$0x1] %vm8_vm0, %v180_v21  }
  0xb6   :  { %369 = vst.msk [vmem:[%s743_s1 + $0x1e] sm:$0x1] %vm8_vm0, %v186_v22  }
  0xb8   :  { %v192_v23 = vpop.permute.xlu0 %191  }
  0xb9   :  { %v198_v24 = vpop.permute.xlu1 %197   ;;  %370 = vst.msk [vmem:[%s743_s1 + $0x1f] sm:$0x1] %vm8_vm0, %v192_v23  }
  0xba   :  { %371 = vst.msk [vmem:[%s743_s1 + $0x20] sm:$0x1] %vm8_vm0, %v198_v24  }
  0xbc   :  { %v204_v25 = vpop.permute.xlu0 %203  }
  0xbd   :  { %v210_v26 = vpop.permute.xlu1 %209   ;;  %372 = vst.msk [vmem:[%s743_s1 + $0x21] sm:$0x1] %vm8_vm0, %v204_v25  }
  0xbe   :  { %373 = vst.msk [vmem:[%s743_s1 + $0x22] sm:$0x1] %vm8_vm0, %v210_v26  }
  0xc0   :  { %v216_v27 = vpop.permute.xlu0 %215  }
  0xc1   :  { %v222_v28 = vpop.permute.xlu1 %221   ;;  %374 = vst.msk [vmem:[%s743_s1 + $0x23] sm:$0x1] %vm8_vm0, %v216_v27  }
  0xc2   :  { %375 = vst.msk [vmem:[%s743_s1 + $0x24] sm:$0x1] %vm8_vm0, %v222_v28  }
  0xc4   :  { %v228_v29 = vpop.permute.xlu0 %227  }
  0xc5   :  { %v234_v30 = vpop.permute.xlu1 %233   ;;  %376 = vst.msk [vmem:[%s743_s1 + $0x25] sm:$0x1] %vm8_vm0, %v228_v29  }
  0xc6   :  { %377 = vst.msk [vmem:[%s743_s1 + $0x26] sm:$0x1] %vm8_vm0, %v234_v30  }
  0xc8   :  { %v240_v31 = vpop.permute.xlu0 %239  }
  0xc9   :  { %v246_v32 = vpop.permute.xlu1 %245   ;;  %378 = vst.msk [vmem:[%s743_s1 + $0x27] sm:$0x1] %vm8_vm0, %v240_v31  }
  0xca   :  { %379 = vst.msk [vmem:[%s743_s1 + $0x28] sm:$0x1] %vm8_vm0, %v246_v32  }
  0xcc   :  { %v252_v33 = vpop.permute.xlu0 %251  }
  0xcd   :  { %v258_v34 = vpop.permute.xlu1 %257   ;;  %380 = vst.msk [vmem:[%s743_s1 + $0x29] sm:$0x1] %vm8_vm0, %v252_v33  }
  0xce   :  { %381 = vst.msk [vmem:[%s743_s1 + $0x2a] sm:$0x1] %vm8_vm0, %v258_v34  }
  0xd0   :  { %v264_v35 = vpop.permute.xlu0 %263  }
  0xd1   :  { %v270_v36 = vpop.permute.xlu1 %269   ;;  %382 = vst.msk [vmem:[%s743_s1 + $0x2b] sm:$0x1] %vm8_vm0, %v264_v35  }
  0xd2   :  { %383 = vst.msk [vmem:[%s743_s1 + $0x2c] sm:$0x1] %vm8_vm0, %v270_v36  }
  0xd4   :  { %v276_v37 = vpop.permute.xlu0 %275  }
  0xd5   :  { %v282_v38 = vpop.permute.xlu1 %281   ;;  %384 = vst.msk [vmem:[%s743_s1 + $0x2d] sm:$0x1] %vm8_vm0, %v276_v37  }
  0xd6   :  { %385 = vst.msk [vmem:[%s743_s1 + $0x2e] sm:$0x1] %vm8_vm0, %v282_v38  }
  0xd8   :  { %v288_v39 = vpop.permute.xlu0 %287  }
  0xd9   :  { %v294_v40 = vpop.permute.xlu1 %293   ;;  %386 = vst.msk [vmem:[%s743_s1 + $0x2f] sm:$0x1] %vm8_vm0, %v288_v39  }
  0xda   :  { %387 = vst.msk [vmem:[%s743_s1 + $0x30] sm:$0x1] %vm8_vm0, %v294_v40  }
  0xdc   :  { %v300_v41 = vpop.permute.xlu0 %299  }
  0xdd   :  { %v306_v42 = vpop.permute.xlu1 %305   ;;  %388 = vst.msk [vmem:[%s743_s1 + $0x31] sm:$0x1] %vm8_vm0, %v300_v41  }
  0xde   :  { %389 = vst.msk [vmem:[%s743_s1 + $0x32] sm:$0x1] %vm8_vm0, %v306_v42  }
  0xe0   :  { %v312_v43 = vpop.permute.xlu0 %311  }
  0xe1   :  { %v318_v44 = vpop.permute.xlu1 %317   ;;  %390 = vst.msk [vmem:[%s743_s1 + $0x33] sm:$0x1] %vm8_vm0, %v312_v43  }
  0xe2   :  { %391 = vst.msk [vmem:[%s743_s1 + $0x34] sm:$0x1] %vm8_vm0, %v318_v44  }
  0xe4   :  { %v324_v45 = vpop.permute.xlu0 %323  }
  0xe5   :  { %v330_v46 = vpop.permute.xlu1 %329   ;;  %392 = vst.msk [vmem:[%s743_s1 + $0x35] sm:$0x1] %vm8_vm0, %v324_v45  }
  0xe6   :  { %393 = vst.msk [vmem:[%s743_s1 + $0x36] sm:$0x1] %vm8_vm0, %v330_v46  }
  0xe8   :  { %v336_v47 = vpop.permute.xlu0 %335  }
  0xe9   :  { %394 = vst.msk [vmem:[%s743_s1 + $0x37] sm:$0x1] %vm8_vm0, %v336_v47  }

// kernel: vae_forward.1
= control target key start
LH: loop header
LB: loop body
LE: loop exit
PB: predicated region body
PF: predicated region fallthrough
CT: control target
= control target key end

     0   :  { %v12506_v0 = vmov 1   ;;  %v12496_v1 = vmov 0   ;;  %v12500_v24 = vmov 2   ;;  %v12504_v33 = vmov 3   ;;  %s8324_s18 = smov 96   ;;  %s12478_s0 = inlined_call_operand.vmem [shape: f32[288,9], index: 0, kind: input, shape index: {}]   ;;  %s12479_s1 = inlined_call_operand.vmem [shape: f32[288,1], index: 1, kind: input, shape index: {}]   ;;  %s12480_s4 = inlined_call_operand.vmem [shape: bf16[9,32,64], index: 4, kind: input, shape index: {}]   ;;  %s12481_s2 = inlined_call_operand.vmem [shape: f32[9,32], index: 2, kind: input, shape index: {}]   ;;  %s12482_s3 = inlined_call_operand.vmem [shape: f32[1,32], index: 3, kind: input, shape index: {}]   ;;  %s12483_s6 = inlined_call_operand.vmem [shape: bf16[16,64,64], index: 6, kind: input, shape index: {}]   ;;  %s12484_s5 = inlined_call_operand.vmem [shape: f32[1,64], index: 5, kind: input, shape index: {}]   ;;  %s12485_s9 = inlined_call_operand.vmem [shape: bf16[32,1024], index: 9, kind: input, shape index: {}]   ;;  %s12486_s7 = inlined_call_operand.vmem [shape: f32[1,64], index: 7, kind: input, shape index: {}]   ;;  %s12487_s15 = inlined_call_operand.vmem [shape: f32[2,64], index: 15, kind: output, shape index: {0}]   ;;  %s12488_s8 = inlined_call_operand.vmem [shape: f32[2,32], index: 8, kind: input, shape index: {}]   ;;  %s12489_s11 = inlined_call_operand.vmem [shape: bf16[9,64,32], index: 11, kind: input, shape index: {}]   ;;  %s12490_s10 = inlined_call_operand.vmem [shape: f32[1,1024], index: 10, kind: input, shape index: {}]   ;;  %s12491_s13 = inlined_call_operand.vmem [shape: f32[9,32], index: 13, kind: input, shape index: {}]   ;;  %s12492_s12 = inlined_call_operand.vmem [shape: f32[1,32], index: 12, kind: input, shape index: {}]   ;;  %s12493_s14 = inlined_call_operand.<no memory space> [shape: f32[1,1], index: 14, kind: input, shape index: {}]   ;;  %s12494_s16 = inlined_call_operand.vmem [shape: f32[448,1], index: 16, kind: output, shape index: {1}]  }
   0x1   :  { %12549 = sst [smem:[#allocation188_spill]] %s12478_s0  ;;  %7781 = vset.pattern.permute.xlu0 %v12506_v0  ;;  %7780 = vset.pattern.permute.xlu1 %v12496_v1  ;;  %v12510_v34 = vmov 4   ;;  %v12502_v37 = vmov 5   ;;  %v12498_v46 = vmov 6   ;;  %v12508_v60 = vmov 7  }
   0x2   :  { %s12550_s23 = sld [smem:[#allocation188_spill]]  ;;  %vm2465_vm0 = vcmask 261120   ;;  %vm8323_vm1 = vmmov 0   ;;  %vm3193_vm2 = vcmask 523264   ;;  %vm4407_vm3 = vcmask 517120  }
   0x3   :  { %vm5713_vm4 = vcmask 254976   ;;  %vm5715_vm5 = vcmask 257026   ;;  %vm5717_vm6 = vcmask 259076   ;;  %vm5719_vm7 = vcmask 261126  }
   0x4   :  { %vm5947_vm8 = vcmask 7168  }
   0x8   :  { %v8416_v2 = vld [vmem:[%s12550_s23 + $0x10] sm:$0xff]  ;;  %v8421_v3 = vld [vmem:[%s12550_s23] sm:$0xff]  ;;  %v8428_v4 = vld [vmem:[%s12550_s23 + $0x18] sm:$0xff] }
   0x9   :  { %105 = vperm.xlu1 %7780, %v8416_v2   ;;  %350 = vperm.xlu0 %7781, %v8421_v3   ;;  %v8435_v5 = vld [vmem:[%s12550_s23 + $0x28] sm:$0xff]  ;;  %v8442_v6 = vld [vmem:[%s12550_s23 + $0x38] sm:$0xff]  ;;  %v8461_v9 = vld [vmem:[%s12550_s23 + $0x50] sm:$0xff] }
   0xa   :  { %v8449_v7 = vld [vmem:[%s12550_s23 + $0x48] sm:$0xff]  ;;  %v8456_v8 = vld [vmem:[%s12550_s23 + $0x58] sm:$0xff]  ;;  %v8480_v12 = vld [vmem:[%s12550_s23 + $0x80] sm:$0xff] }
   0xb   :  { %v8468_v10 = vld [vmem:[%s12550_s23 + $0x68] sm:$0xff]  ;;  %v8475_v11 = vld [vmem:[%s12550_s23 + $0x78] sm:$0xff]  ;;  %v8492_v14 = vld [vmem:[%s12550_s23 + $0x90] sm:$0xff] }
   0xc   :  { %v8487_v13 = vld [vmem:[%s12550_s23 + $0x88] sm:$0xff]  ;;  %v8499_v15 = vld [vmem:[%s12550_s23 + $0x98] sm:$0xff]  ;;  %v8516_v18 = vld [vmem:[%s12550_s23 + $0xc0] sm:$0xff] }
   0xd   :  { %110 = vperm.xlu1 %7780, %v8428_v4   ;;  %362 = vperm.xlu0 %7781, %v8428_v4   ;;  %v8504_v16 = vld [vmem:[%s12550_s23 + $0xb8] sm:$0xff]  ;;  %v8511_v17 = vld [vmem:[%s12550_s23 + $0xa8] sm:$0xff]  ;;  %v8535_v21 = vld [vmem:[%s12550_s23 + $0xe0] sm:$0xff] }
   0xe   :  { %v8523_v19 = vld [vmem:[%s12550_s23 + $0xd8] sm:$0xff]  ;;  %v8530_v20 = vld [vmem:[%s12550_s23 + $0xc8] sm:$0xff]  ;;  %v8576_v28 = vld [vmem:[%s12550_s23 + $0x20] sm:$0xff] }
   0xf   :  { %v88_v22 = vld [vmem:[%s12550_s23 + $0x108] sm:$0xff]  ;;  %v86_v25 = vld [vmem:[%s12550_s23 + $0xf8] sm:$0xff]  ;;  %v8583_v29 = vld [vmem:[%s12550_s23 + $0x30] sm:$0xff] }
  0x10   :  { %v8546_v23 = vld [vmem:[%s12550_s23 + $0xe8] sm:$0xff]  ;;  %v8564_v27 = vld [vmem:[%s12550_s23 + $0x118] sm:$0xff]  ;;  %v8593_v30 = vld [vmem:[%s12550_s23 + $0xd0] sm:$0xff] }
  0x11   :  { %120 = vperm.xlu1 %7780, %v8435_v5   ;;  %370 = vperm.xlu0 %7781, %v8435_v5   ;;  %v8557_v26 = vld [vmem:[%s12550_s23 + $0x8] sm:$0xff]  ;;  %v8600_v31 = vld [vmem:[%s12550_s23 + $0xf0] sm:$0xff]  ;;  %v8607_v32 = vld [vmem:[%s12550_s23 + $0x100] sm:$0xff] }
  0x12   :  { %v8643_v42 = vld [vmem:[%s12550_s23 + $0x60] sm:$0xff]  ;;  %v8655_v45 = vld [vmem:[%s12550_s23 + $0x70] sm:$0xff] }
  0x13   :  { %v8667_v49 = vld [vmem:[%s12550_s23 + $0xa0] sm:$0xff] }
  0x15   :  { %130 = vperm.xlu1 %7780, %v8442_v6   ;;  %378 = vperm.xlu0 %7781, %v8442_v6  }
  0x19   :  { %140 = vperm.xlu1 %7780, %v8449_v7   ;;  %386 = vperm.xlu0 %7781, %v8449_v7  }
  0x1d   :  { %150 = vperm.xlu1 %7780, %v8456_v8   ;;  %390 = vperm.xlu0 %7781, %v8461_v9  }
  0x21   :  { %160 = vperm.xlu1 %7780, %v8468_v10   ;;  %402 = vperm.xlu0 %7781, %v8468_v10  }
  0x25   :  { %170 = vperm.xlu1 %7780, %v8475_v11   ;;  %414 = vperm.xlu0 %7781, %v8480_v12  }
  0x29   :  { %180 = vperm.xlu1 %7780, %v8487_v13   ;;  %422 = vperm.xlu0 %7781, %v8492_v14  }
  0x2d   :  { %190 = vperm.xlu1 %7780, %v8499_v15   ;;  %442 = vperm.xlu0 %7781, %v8504_v16  }
  0x31   :  { %200 = vperm.xlu1 %7780, %v8511_v17   ;;  %446 = vperm.xlu0 %7781, %v8516_v18  }
  0x35   :  { %210 = vperm.xlu1 %7780, %v8504_v16   ;;  %458 = vperm.xlu0 %7781, %v8523_v19  }
  0x39   :  { %220 = vperm.xlu1 %7780, %v8530_v20   ;;  %462 = vperm.xlu0 %7781, %v8535_v21  }
  0x3d   :  { %230 = vperm.xlu1 %7780, %v8523_v19   ;;  %482 = vperm.xlu0 %7781, %v88_v22  }
  0x41   :  { %240 = vperm.xlu1 %7780, %v8546_v23   ;;  %7882 = vset.pattern.permute.xlu0 %v12500_v24 }
  0x42   :  { %590 = vperm.xlu0 %7882, %v8435_v5  }
  0x45   :  { %250 = vperm.xlu1 %7780, %v86_v25  }
  0x46   :  { %574 = vperm.xlu0 %7882, %v8557_v26  }
  0x49   :  { %260 = vperm.xlu1 %7780, %v88_v22  }
  0x4a   :  { %578 = vperm.xlu0 %7882, %v8416_v2  }
  0x4d   :  { %270 = vperm.xlu1 %7780, %v8564_v27  }
  0x4e   :  { %606 = vperm.xlu0 %7882, %v8449_v7  }
  0x51   :  { %7782 = vset.pattern.permute.xlu1 %v12506_v0 }
  0x52   :  { %354 = vperm.xlu1 %7782, %v8557_v26   ;;  %610 = vperm.xlu0 %7882, %v8461_v9  }
  0x56   :  { %358 = vperm.xlu1 %7782, %v8416_v2   ;;  %622 = vperm.xlu0 %7882, %v8468_v10  }
  0x5a   :  { %366 = vperm.xlu1 %7782, %v8576_v28   ;;  %630 = vperm.xlu0 %7882, %v8475_v11  }
  0x5e   :  { %374 = vperm.xlu1 %7782, %v8583_v29   ;;  %634 = vperm.xlu0 %7882, %v8480_v12  }
  0x62   :  { %7783 = vset.pattern.permute.xlu1 %v12500_v24  ;;  %654 = vperm.xlu0 %7882, %v8511_v17  }
  0x63   :  { %586 = vperm.xlu1 %7783, %v8576_v28  }
  0x66   :  { %674 = vperm.xlu0 %7882, %v8593_v30  }
  0x67   :  { %594 = vperm.xlu1 %7783, %v8583_v29  }
  0x6a   :  { %690 = vperm.xlu0 %7882, %v8600_v31  }
  0x6b   :  { %598 = vperm.xlu1 %7783, %v8442_v6  }
  0x6e   :  { %698 = vperm.xlu0 %7882, %v8607_v32  }
  0x6f   :  { %7784 = vset.pattern.permute.xlu1 %v12504_v33 }
  0x70   :  { %810 = vperm.xlu1 %7784, %v8435_v5  }
  0x72   :  { %710 = vperm.xlu0 %7882, %v8564_v27  }
  0x74   :  { %814 = vperm.xlu1 %7784, %v8583_v29  }
  0x76   :  { %7895 = vset.pattern.permute.xlu0 %v12504_v33 }
  0x77   :  { %806 = vperm.xlu0 %7895, %v8576_v28  }
  0x78   :  { %7785 = vset.pattern.permute.xlu1 %v12510_v34 }
  0x79   :  { %1026 = vperm.xlu1 %7785, %v8576_v28  }
  0x7b   :  { %818 = vperm.xlu0 %7895, %v8442_v6  }
  0x7d   :  { %1034 = vperm.xlu1 %7785, %v8583_v29  }
  0x7f   :  { %794 = vperm.xlu0 %7895, %v8557_v26  }
  0x81   :  { %1038 = vperm.xlu1 %7785, %v8442_v6  }
  0x83   :  { %798 = vperm.xlu0 %7895, %v8416_v2  }
  0x84   :  { %v8623_v35 = vpop.permute.xlu1 %105  ;;  %v8625_v36 = vpop.permute.xlu0 %350 }
  0x85   :  { %12551 = vst [vmem:[#allocation5_spill] sm:$0xff] %v8623_v35  ;;  %7786 = vset.pattern.permute.xlu1 %v12502_v37 }
  0x86   :  { %1250 = vperm.xlu1 %7786, %v8435_v5  }
  0x87   :  { %826 = vperm.xlu0 %7895, %v8449_v7  }
  0x88   :  { %v8630_v38 = vpop.permute.xlu1 %110  ;;  %v8632_v39 = vpop.permute.xlu0 %362 }
  0x89   :  { %12552 = vst [vmem:[#allocation6_spill] sm:$0xff] %v8630_v38  ;;  %12553 = vst [vmem:[#allocation7_spill] sm:$0xff] %v8632_v39  ;;  %v12602_v38 = vmov 3  }
  0x8a   :  { %1254 = vperm.xlu1 %7786, %v8583_v29  }
  0x8b   :  { %830 = vperm.xlu0 %7895, %v8461_v9  }
  0x8c   :  { %v8636_v40 = vpop.permute.xlu1 %120  ;;  %v8638_v41 = vpop.permute.xlu0 %370 }
  0x8e   :  { %7787 = vset.pattern.permute.xlu1 %v12500_v24 }
  0x8f   :  { %570 = vperm.xlu1 %7787, %v8421_v3   ;;  %838 = vperm.xlu0 %7895, %v8643_v42  }
  0x90   :  { %v8648_v43 = vpop.permute.xlu1 %130  ;;  %v8650_v44 = vpop.permute.xlu0 %378 }
  0x93   :  { %7788 = vset.pattern.permute.xlu1 %v12498_v46  ;;  %846 = vperm.xlu0 %7895, %v8655_v45  }
  0x94   :  { %v8659_v47 = vpop.permute.xlu1 %140  ;;  %1466 = vperm.xlu1 %7788, %v8576_v28   ;;  %v8662_v48 = vpop.permute.xlu0 %386 }
  0x95   :  { %12554 = vst [vmem:[#allocation8_spill] sm:$0xff] %v8659_v47  ;;  %12555 = vst [vmem:[#allocation9_spill] sm:$0xff] %v8662_v48 }
  0x97   :  { %870 = vperm.xlu0 %7895, %v8667_v49  }
  0x98   :  { %v8670_v50 = vpop.permute.xlu1 %150  ;;  %1470 = vperm.xlu1 %7788, %v8435_v5   ;;  %v8673_v51 = vpop.permute.xlu0 %390 }
  0x99   :  { %12556 = vst [vmem:[#allocation10_spill] sm:$0xff] %v8670_v50  ;;  %12557 = vst [vmem:[#allocation11_spill] sm:$0xff] %v8673_v51  ;;  %v12594_v50 = vmov 2  }
  0x9b   :  { %882 = vperm.xlu0 %7895, %v8504_v16  }
  0x9c   :  { %v8676_v52 = vpop.permute.xlu1 %160  ;;  %7789 = vset.pattern.permute.xlu1 %v12500_v24  ;;  %v8679_v53 = vpop.permute.xlu0 %402 }
  0x9d   :  { %12558 = vst [vmem:[#allocation12_spill] sm:$0xff] %v8676_v52  ;;  %12559 = vst [vmem:[#allocation13_spill] sm:$0xff] %v8679_v53  ;;  %582 = vperm.xlu1 %7789, %v8428_v4  }
  0x9f   :  { %890 = vperm.xlu0 %7895, %v8530_v20  }
  0xa0   :  { %v8683_v54 = vpop.permute.xlu1 %170  ;;  %v8685_v55 = vpop.permute.xlu0 %414 }
  0xa1   :  { %12560 = vst [vmem:[#allocation14_spill] sm:$0xff] %v8683_v54  ;;  %12561 = vst [vmem:[#allocation15_spill] sm:$0xff] %v8685_v55  ;;  %7790 = vset.pattern.permute.xlu1 %v12498_v46 }
  0xa2   :  { %1478 = vperm.xlu1 %7790, %v8442_v6  }
  0xa3   :  { %906 = vperm.xlu0 %7895, %v8546_v23  }
  0xa4   :  { %v8690_v56 = vpop.permute.xlu1 %180  ;;  %v8692_v57 = vpop.permute.xlu0 %422 }
  0xa5   :  { %12562 = vst [vmem:[#allocation16_spill] sm:$0xff] %v8690_v56  ;;  %12563 = vst [vmem:[#allocation17_spill] sm:$0xff] %v8692_v57  ;;  %v12588_v56 = vmov 5  }
  0xa6   :  { %7791 = vset.pattern.permute.xlu1 %v12504_v33 }
  0xa7   :  { %790 = vperm.xlu1 %7791, %v8421_v3   ;;  %930 = vperm.xlu0 %7895, %v8564_v27  }
  0xa8   :  { %v8697_v58 = vpop.permute.xlu1 %190  ;;  %v8699_v59 = vpop.permute.xlu0 %442 }
  0xa9   :  { %12564 = vst [vmem:[#allocation18_spill] sm:$0xff] %v8697_v58  ;;  %12565 = vst [vmem:[#allocation19_spill] sm:$0xff] %v8699_v59 }
  0xab   :  { %7792 = vset.pattern.permute.xlu1 %v12508_v60  ;;  %7905 = vset.pattern.permute.xlu0 %v12510_v34 }
  0xac   :  { %v8703_v61 = vpop.permute.xlu1 %200  ;;  %1686 = vperm.xlu1 %7792, %v8576_v28   ;;  %1030 = vperm.xlu0 %7905, %v8435_v5   ;;  %v8707_v62 = vpop.permute.xlu0 %446 }
  0xad   :  { %12566 = vst [vmem:[#allocation20_spill] sm:$0xff] %v8703_v61  ;;  %12567 = vst [vmem:[#allocation21_spill] sm:$0xff] %v8707_v62  ;;  %v12586_v61 = vmov 1  }
  0xb0   :  { %v8709_v63 = vpop.permute.xlu1 %210  ;;  %1690 = vperm.xlu1 %7792, %v8435_v5   ;;  %1014 = vperm.xlu0 %7905, %v8557_v26   ;;  %v8713_v22 = vpop.permute.xlu0 %458 }
  0xb1   :  { %12568 = vst [vmem:[#allocation22_spill] sm:$0xff] %v8709_v63  ;;  %12569 = vst [vmem:[#allocation23_spill] sm:$0xff] %v8713_v22  ;;  %v8777_v22 = vld [vmem:[%s12550_s23 + $0x40] sm:$0xff] }
  0xb4   :  { %v8715_v25 = vpop.permute.xlu1 %220  ;;  %7793 = vset.pattern.permute.xlu1 %v12504_v33  ;;  %1018 = vperm.xlu0 %7905, %v8416_v2   ;;  %v8719_v1 = vpop.permute.xlu0 %462 }
  0xb5   :  { %12570 = vst [vmem:[#allocation24_spill] sm:$0xff] %v8715_v25  ;;  %12571 = vst [vmem:[#allocation25_spill] sm:$0xff] %v8719_v1  ;;  %802 = vperm.xlu1 %7793, %v8428_v4   ;;  %v12512_v25 = vmov 8  }
  0xb8   :  { %v8722_v46 = vpop.permute.xlu1 %230  ;;  %1050 = vperm.xlu0 %7905, %v8461_v9   ;;  %v8725_v24 = vpop.permute.xlu0 %482 }
  0xb9   :  { %12572 = vst [vmem:[#allocation26_spill] sm:$0xff] %v8722_v46  ;;  %12573 = vst [vmem:[#allocation27_spill] sm:$0xff] %v8725_v24  ;;  %7794 = vset.pattern.permute.xlu1 %v12508_v60 }
  0xba   :  { %1698 = vperm.xlu1 %7794, %v8442_v6  }
  0xbc   :  { %v8729_v37 = vpop.permute.xlu1 %240  ;;  %1058 = vperm.xlu0 %7905, %v8643_v42  }
  0xbd   :  { %12574 = vst [vmem:[#allocation28_spill] sm:$0xff] %v8729_v37  ;;  %v8732_v33 = vpop.permute.xlu0 %590 }
  0xbe   :  { %7795 = vset.pattern.permute.xlu1 %v12510_v34  ;;  %v8751_v34 = vld [vmem:[%s12550_s23 + $0xb0] sm:$0xff] }
  0xbf   :  { %1010 = vperm.xlu1 %7795, %v8421_v3  }
  0xc0   :  { %v8736_v0 = vpop.permute.xlu1 %250  ;;  %1066 = vperm.xlu0 %7905, %v8655_v45  }
  0xc1   :  { %12575 = vst [vmem:[#allocation29_spill] sm:$0xff] %v8736_v0  ;;  %v8739_v1 = vpop.permute.xlu0 %574 }
  0xc3   :  { %7796 = vset.pattern.permute.xlu1 %v12512_v25 }
  0xc4   :  { %v8742_v60 = vpop.permute.xlu1 %260  ;;  %1906 = vperm.xlu1 %7796, %v8576_v28   ;;  %1074 = vperm.xlu0 %7905, %v8480_v12  }
  0xc5   :  { %12576 = vst [vmem:[#allocation30_spill] sm:$0xff] %v8742_v60  ;;  %v8746_v37 = vpop.permute.xlu0 %578  ;;  %v12580_v60 = vmov 4  }
  0xc6   :  { %12577 = vst [vmem:[#allocation31_spill] sm:$0xff] %v8746_v37 }
  0xc8   :  { %v8753_v0 = vpop.permute.xlu1 %270  ;;  %1910 = vperm.xlu1 %7796, %v8435_v5   ;;  %1098 = vperm.xlu0 %7905, %v8751_v34  }
  0xc9   :  { %12578 = vst [vmem:[#allocation32_spill] sm:$0xff] %v8753_v0  ;;  %v8757_v25 = vpop.permute.xlu0 %606  ;;  %v12583_v0 = vmov 8  }
  0xca   :  { %12579 = vst [vmem:[#allocation33_spill] sm:$0xff] %v8757_v25 }
  0xcc   :  { %7797 = vset.pattern.permute.xlu1 %v12580_v60  ;;  %1110 = vperm.xlu0 %7905, %v8530_v20  }
  0xcd   :  { %v8761_v24 = vpop.permute.xlu1 %354  ;;  %1022 = vperm.xlu1 %7797, %v8428_v4   ;;  %v8764_v62 = vpop.permute.xlu0 %610 }
  0xce   :  { %12581 = vst [vmem:[#allocation34_spill] sm:$0xff] %v8764_v62  ;;  %v12595_v62 = vmov 6  }
  0xd0   :  { %1114 = vperm.xlu0 %7905, %v8593_v30  }
  0xd1   :  { %v8767_v46 = vpop.permute.xlu1 %358  ;;  %7798 = vset.pattern.permute.xlu1 %v12583_v0  ;;  %v8770_v5 = vpop.permute.xlu0 %622 }
  0xd2   :  { %12582 = vst [vmem:[#allocation35_spill] sm:$0xff] %v8767_v46  ;;  %12584 = vst [vmem:[#allocation36_spill] sm:$0xff] %v8770_v5  ;;  %1918 = vperm.xlu1 %7798, %v8442_v6  }
  0xd4   :  { %1122 = vperm.xlu0 %7905, %v8535_v21  }
  0xd5   :  { %v8779_v63 = vpop.permute.xlu1 %366  ;;  %v8781_v59 = vpop.permute.xlu0 %630 }
  0xd6   :  { %12585 = vst [vmem:[#allocation37_spill] sm:$0xff] %v8781_v59  ;;  %7799 = vset.pattern.permute.xlu1 %v12586_v61 }
  0xd7   :  { %382 = vperm.xlu1 %7799, %v8777_v22  }
  0xd8   :  { %1138 = vperm.xlu0 %7905, %v8607_v32  }
  0xd9   :  { %v8786_v58 = vpop.permute.xlu1 %374  ;;  %v8788_v57 = vpop.permute.xlu0 %634 }
  0xda   :  { %12587 = vst [vmem:[#allocation38_spill] sm:$0xff] %v8788_v57 }
  0xdb   :  { %7800 = vset.pattern.permute.xlu1 %v12588_v56 }
  0xdc   :  { %1230 = vperm.xlu1 %7800, %v8421_v3   ;;  %1150 = vperm.xlu0 %7905, %v8564_v27  }
  0xdd   :  { %v8793_v55 = vpop.permute.xlu0 %654 }
  0xde   :  { %12589 = vst [vmem:[#allocation39_spill] sm:$0xff] %v8793_v55  ;;  %v8795_v54 = vpop.permute.xlu1 %586 }
  0xe0   :  { %1234 = vperm.xlu1 %7800, %v8557_v26   ;;  %7915 = vset.pattern.permute.xlu0 %v12588_v56 }
  0xe1   :  { %1246 = vperm.xlu0 %7915, %v8576_v28   ;;  %v8800_v59 = vpop.permute.xlu0 %674 }
  0xe2   :  { %12590 = vst [vmem:[#allocation40_spill] sm:$0xff] %v8800_v59  ;;  %v8802_v5 = vpop.permute.xlu1 %594 }
  0xe4   :  { %7801 = vset.pattern.permute.xlu1 %v12586_v61 }
  0xe5   :  { %394 = vperm.xlu1 %7801, %v8456_v8   ;;  %1258 = vperm.xlu0 %7915, %v8442_v6   ;;  %v8807_v57 = vpop.permute.xlu0 %690 }
  0xe6   :  { %12591 = vst [vmem:[#allocation41_spill] sm:$0xff] %v8807_v57  ;;  %v8809_v55 = vpop.permute.xlu1 %598 }
  0xe9   :  { %7802 = vset.pattern.permute.xlu1 %v12588_v56  ;;  %1238 = vperm.xlu0 %7915, %v8416_v2   ;;  %v8813_v53 = vpop.permute.xlu0 %698 }
  0xea   :  { %12592 = vst [vmem:[#allocation42_spill] sm:$0xff] %v8813_v53  ;;  %1242 = vperm.xlu1 %7802, %v8428_v4  }
  0xeb   :  { %v8816_v59 = vpop.permute.xlu1 %810 }
  0xed   :  { %1282 = vperm.xlu0 %7915, %v8468_v10   ;;  %v8819_v52 = vpop.permute.xlu0 %710 }
  0xee   :  { %12593 = vst [vmem:[#allocation43_spill] sm:$0xff] %v8819_v52  ;;  %7803 = vset.pattern.permute.xlu1 %v12594_v50 }
  0xef   :  { %v8822_v6 = vpop.permute.xlu1 %814  ;;  %602 = vperm.xlu1 %7803, %v8777_v22  }
  0xf1   :  { %1286 = vperm.xlu0 %7915, %v8655_v45  }
  0xf2   :  { %v8826_v57 = vpop.permute.xlu0 %806 }
  0xf3   :  { %7804 = vset.pattern.permute.xlu1 %v12595_v62 }
  0xf4   :  { %v8829_v53 = vpop.permute.xlu1 %1026  ;;  %1450 = vperm.xlu1 %7804, %v8421_v3  }
  0xf5   :  { %1302 = vperm.xlu0 %7915, %v8492_v14  }
  0xf6   :  { %v8833_v51 = vpop.permute.xlu0 %818 }
  0xf7   :  { %12596 = vst [vmem:[#allocation44_spill] sm:$0xff] %v8833_v51 }
  0xf8   :  { %v8835_v52 = vpop.permute.xlu1 %1034  ;;  %1454 = vperm.xlu1 %7804, %v8557_v26  }
  0xf9   :  { %1322 = vperm.xlu0 %7915, %v8504_v16  }
  0xfa   :  { %v8839_v25 = vpop.permute.xlu0 %794 }
  0xfc   :  { %v8841_v48 = vpop.permute.xlu1 %1038  ;;  %7805 = vset.pattern.permute.xlu1 %v12594_v50 }
  0xfd   :  { %12597 = vst [vmem:[#allocation45_spill] sm:$0xff] %v8841_v48  ;;  %614 = vperm.xlu1 %7805, %v8456_v8   ;;  %1326 = vperm.xlu0 %7915, %v8516_v18  }
  0xfe   :  { %v8846_v47 = vpop.permute.xlu0 %798 }
  0xff   :  { %12598 = vst [vmem:[#allocation46_spill] sm:$0xff] %v8846_v47 }
 0x101   :  { %v8848_v37 = vpop.permute.xlu1 %1250  ;;  %7806 = vset.pattern.permute.xlu1 %v12595_v62  ;;  %1338 = vperm.xlu0 %7915, %v8523_v19   ;;  %v12605_v19 = vmov 7  }
 0x102   :  { %12599 = vst [vmem:[#allocation47_spill] sm:$0xff] %v8848_v37  ;;  %1462 = vperm.xlu1 %7806, %v8428_v4   ;;  %v8853_v35 = vpop.permute.xlu0 %826 }
 0x103   :  { %12600 = vst [vmem:[#allocation48_spill] sm:$0xff] %v8853_v35 }
 0x105   :  { %v8855_v39 = vpop.permute.xlu1 %1254  ;;  %1346 = vperm.xlu0 %7915, %v8546_v23  }
 0x106   :  { %12601 = vst [vmem:[#allocation49_spill] sm:$0xff] %v8855_v39  ;;  %7807 = vset.pattern.permute.xlu1 %v12602_v38  ;;  %v8859_v46 = vpop.permute.xlu0 %830 }
 0x107   :  { %12603 = vst [vmem:[#allocation50_spill] sm:$0xff] %v8859_v46  ;;  %822 = vperm.xlu1 %7807, %v8777_v22  }
 0x109   :  { %1370 = vperm.xlu0 %7915, %v8564_v27  }
 0x10a   :  { %v8863_v47 = vpop.permute.xlu1 %570  ;;  %v8865_v37 = vpop.permute.xlu0 %838 }
 0x10b   :  { %12604 = vst [vmem:[#allocation51_spill] sm:$0xff] %v8865_v37  ;;  %7808 = vset.pattern.permute.xlu1 %v12605_v19 }
 0x10c   :  { %1670 = vperm.xlu1 %7808, %v8421_v3  }
 0x10d   :  { %7922 = vset.pattern.permute.xlu0 %v12595_v62 }
 0x10e   :  { %1474 = vperm.xlu0 %7922, %v8583_v29   ;;  %v8871_v35 = vpop.permute.xlu0 %846 }
 0x10f   :  { %12606 = vst [vmem:[#allocation52_spill] sm:$0xff] %v8871_v35  ;;  %v8873_v39 = vpop.permute.xlu1 %1466 }
 0x110   :  { %12607 = vst [vmem:[#allocation53_spill] sm:$0xff] %v8873_v39  ;;  %1674 = vperm.xlu1 %7808, %v8557_v26  }
 0x112   :  { %1458 = vperm.xlu0 %7922, %v8416_v2   ;;  %v8877_v27 = vpop.permute.xlu0 %870 }
 0x113   :  { %12608 = vst [vmem:[#allocation54_spill] sm:$0xff] %v8877_v27  ;;  %v8879_v46 = vpop.permute.xlu1 %1470 }
 0x114   :  { %12609 = vst [vmem:[#allocation55_spill] sm:$0xff] %v8879_v46  ;;  %7809 = vset.pattern.permute.xlu1 %v12602_v38 }
 0x115   :  { %834 = vperm.xlu1 %7809, %v8456_v8  }
 0x116   :  { %1486 = vperm.xlu0 %7922, %v8449_v7   ;;  %v8884_v37 = vpop.permute.xlu0 %882 }
 0x117   :  { %12610 = vst [vmem:[#allocation56_spill] sm:$0xff] %v8884_v37 }
 0x118   :  { %v8886_v48 = vpop.permute.xlu1 %582 }
 0x119   :  { %12611 = vst [vmem:[#allocation57_spill] sm:$0xff] %v8886_v48  ;;  %7810 = vset.pattern.permute.xlu1 %v12605_v19 }
 0x11a   :  { %1682 = vperm.xlu1 %7810, %v8428_v4   ;;  %1494 = vperm.xlu0 %7922, %v8456_v8   ;;  %v8891_v35 = vpop.permute.xlu0 %890 }
 0x11b   :  { %12612 = vst [vmem:[#allocation58_spill] sm:$0xff] %v8891_v35 }
 0x11d   :  { %v8893_v27 = vpop.permute.xlu1 %1478 }
 0x11e   :  { %12613 = vst [vmem:[#allocation59_spill] sm:$0xff] %v8893_v27  ;;  %7811 = vset.pattern.permute.xlu1 %v12586_v61  ;;  %1498 = vperm.xlu0 %7922, %v8643_v42   ;;  %v8897_v46 = vpop.permute.xlu0 %906 }
 0x11f   :  { %12614 = vst [vmem:[#allocation60_spill] sm:$0xff] %v8897_v46  ;;  %398 = vperm.xlu1 %7811, %v8643_v42  }
 0x122   :  { %v8900_v37 = vpop.permute.xlu1 %790  ;;  %1510 = vperm.xlu0 %7922, %v8475_v11   ;;  %v8903_v48 = vpop.permute.xlu0 %930 }
 0x123   :  { %12615 = vst [vmem:[#allocation61_spill] sm:$0xff] %v8900_v37  ;;  %12616 = vst [vmem:[#allocation62_spill] sm:$0xff] %v8903_v48  ;;  %7812 = vset.pattern.permute.xlu1 %v12580_v60  ;;  %v12623_v37 = vmov 0  }
 0x124   :  { %1042 = vperm.xlu1 %7812, %v8777_v22  }
 0x126   :  { %1518 = vperm.xlu0 %7922, %v8487_v13  }
 0x127   :  { %v8908_v35 = vpop.permute.xlu1 %1686  ;;  %v8910_v27 = vpop.permute.xlu0 %1030 }
 0x128   :  { %12617 = vst [vmem:[#allocation63_spill] sm:$0xff] %v8908_v35  ;;  %12618 = vst [vmem:[#allocation64_spill] sm:$0xff] %v8910_v27  ;;  %1046 = vperm.xlu1 %7812, %v8449_v7   ;;  %v2192_v35 = vld [vmem:[%s12479_s1 + $0x20] sm:$0xff] }
 0x12a   :  { %1534 = vperm.xlu0 %7922, %v8511_v17  }
 0x12b   :  { %v8914_v46 = vpop.permute.xlu1 %1690  ;;  %v8916_v39 = vpop.permute.xlu0 %1014 }
 0x12c   :  { %12619 = vst [vmem:[#allocation65_spill] sm:$0xff] %v8914_v46  ;;  %12620 = vst [vmem:[#allocation66_spill] sm:$0xff] %v8916_v39  ;;  %7813 = vset.pattern.permute.xlu1 %v12583_v0 }
 0x12d   :  { %1894 = vperm.xlu1 %7813, %v8557_v26  }
 0x12e   :  { %1554 = vperm.xlu0 %7922, %v8593_v30  }
 0x12f   :  { %v8921_v48 = vpop.permute.xlu0 %1018 }
 0x130   :  { %12621 = vst [vmem:[#allocation67_spill] sm:$0xff] %v8921_v48  ;;  %v8926_v27 = vpop.permute.xlu1 %802 }
 0x131   :  { %12622 = vst [vmem:[#allocation68_spill] sm:$0xff] %v8926_v27  ;;  %7814 = vset.pattern.permute.xlu1 %v12623_v37 }
 0x132   :  { %2246 = vperm.xlu1 %7814, %v2192_v35   ;;  %1562 = vperm.xlu0 %7922, %v8535_v21  }
 0x133   :  { %v8930_v46 = vpop.permute.xlu0 %1050 }
 0x134   :  { %12624 = vst [vmem:[#allocation69_spill] sm:$0xff] %v8930_v46 }
 0x135   :  { %v8932_v39 = vpop.permute.xlu1 %1698 }
 0x136   :  { %12625 = vst [vmem:[#allocation70_spill] sm:$0xff] %v8932_v39  ;;  %7815 = vset.pattern.permute.xlu1 %v12586_v61  ;;  %1578 = vperm.xlu0 %7922, %v8607_v32  }
 0x137   :  { %406 = vperm.xlu1 %7815, %v8655_v45   ;;  %v8937_v48 = vpop.permute.xlu0 %1058 }
 0x138   :  { %12626 = vst [vmem:[#allocation71_spill] sm:$0xff] %v8937_v48 }
 0x13a   :  { %v8939_v51 = vpop.permute.xlu1 %1010  ;;  %7924 = vset.pattern.permute.xlu0 %v12605_v19 }
 0x13b   :  { %410 = vperm.xlu1 %7815, %v8475_v11   ;;  %1694 = vperm.xlu0 %7924, %v8583_v29   ;;  %v8944_v35 = vpop.permute.xlu0 %1066 }
 0x13c   :  { %12627 = vst [vmem:[#allocation72_spill] sm:$0xff] %v8944_v35 }
 0x13f   :  { %7816 = vset.pattern.permute.xlu1 %v12580_v60  ;;  %v8947_v46 = vpop.permute.xlu1 %1906  ;;  %1678 = vperm.xlu0 %7924, %v8416_v2   ;;  %v8950_v27 = vpop.permute.xlu0 %1074 }
 0x140   :  { %12628 = vst [vmem:[#allocation73_spill] sm:$0xff] %v8947_v46  ;;  %12629 = vst [vmem:[#allocation74_spill] sm:$0xff] %v8950_v27  ;;  %1054 = vperm.xlu1 %7816, %v8456_v8   ;;  %v2194_v27 = vld [vmem:[%s12479_s1 + $0x30] sm:$0xff] }
 0x143   :  { %v8953_v48 = vpop.permute.xlu1 %1910  ;;  %1706 = vperm.xlu0 %7924, %v8449_v7   ;;  %v8956_v39 = vpop.permute.xlu0 %1098 }
 0x144   :  { %12630 = vst [vmem:[#allocation75_spill] sm:$0xff] %v8953_v48  ;;  %12631 = vst [vmem:[#allocation76_spill] sm:$0xff] %v8956_v39  ;;  %7817 = vset.pattern.permute.xlu1 %v12583_v0 }
 0x145   :  { %1898 = vperm.xlu1 %7817, %v8416_v2   ;;  %v2195_v2 = vld [vmem:[%s12479_s1 + $0x38] sm:$0xff] }
 0x147   :  { %1714 = vperm.xlu0 %7924, %v8456_v8   ;;  %v8961_v35 = vpop.permute.xlu0 %1110 }
 0x148   :  { %12632 = vst [vmem:[#allocation77_spill] sm:$0xff] %v8961_v35  ;;  %v8966_v46 = vpop.permute.xlu1 %1022 }
 0x149   :  { %12633 = vst [vmem:[#allocation78_spill] sm:$0xff] %v8966_v46  ;;  %7818 = vset.pattern.permute.xlu1 %v12623_v37 }
 0x14a   :  { %2256 = vperm.xlu1 %7818, %v2194_v27  }
 0x14b   :  { %1726 = vperm.xlu0 %7924, %v8655_v45   ;;  %v8970_v39 = vpop.permute.xlu0 %1114 }
 0x14c   :  { %12634 = vst [vmem:[#allocation79_spill] sm:$0xff] %v8970_v39 }
 0x14d   :  { %v8975_v48 = vpop.permute.xlu1 %1918 }
 0x14e   :  { %12635 = vst [vmem:[#allocation80_spill] sm:$0xff] %v8975_v48  ;;  %2261 = vperm.xlu1 %7818, %v2195_v2  }
 0x14f   :  { %1734 = vperm.xlu0 %7924, %v8480_v12   ;;  %v8978_v35 = vpop.permute.xlu0 %1122 }
 0x150   :  { %12636 = vst [vmem:[#allocation81_spill] sm:$0xff] %v8978_v35 }
 0x152   :  { %7819 = vset.pattern.permute.xlu1 %v12586_v61  ;;  %v8981_v46 = vpop.permute.xlu1 %382 }
 0x153   :  { %12637 = vst [vmem:[#allocation82_spill] sm:$0xff] %v8981_v46  ;;  %418 = vperm.xlu1 %7819, %v8487_v13   ;;  %1746 = vperm.xlu0 %7924, %v8499_v15   ;;  %v8985_v27 = vpop.permute.xlu0 %1138 }
 0x154   :  { %12638 = vst [vmem:[#allocation83_spill] sm:$0xff] %v8985_v27 }
 0x157   :  { %7820 = vset.pattern.permute.xlu1 %v12594_v50  ;;  %v8988_v39 = vpop.permute.xlu1 %1230  ;;  %1750 = vperm.xlu0 %7924, %v8667_v49   ;;  %v8991_v2 = vpop.permute.xlu0 %1150 }
 0x158   :  { %12639 = vst [vmem:[#allocation84_spill] sm:$0xff] %v8988_v39  ;;  %12640 = vst [vmem:[#allocation85_spill] sm:$0xff] %v8991_v2  ;;  %618 = vperm.xlu1 %7820, %v8643_v42  }
 0x15b   :  { %v8994_v35 = vpop.permute.xlu1 %1234  ;;  %1762 = vperm.xlu0 %7924, %v8504_v16  }
 0x15c   :  { %12641 = vst [vmem:[#allocation86_spill] sm:$0xff] %v8994_v35  ;;  %7821 = vset.pattern.permute.xlu1 %v12588_v56  ;;  %v8998_v46 = vpop.permute.xlu0 %1246 }
 0x15d   :  { %1262 = vperm.xlu1 %7821, %v8777_v22  }
 0x15f   :  { %1770 = vperm.xlu0 %7924, %v8530_v20  }
 0x160   :  { %v9002_v27 = vpop.permute.xlu1 %394  ;;  %v9004_v48 = vpop.permute.xlu0 %1258 }
 0x161   :  { %12642 = vst [vmem:[#allocation87_spill] sm:$0xff] %v9002_v27  ;;  %1266 = vperm.xlu1 %7821, %v8449_v7  }
 0x163   :  { %1774 = vperm.xlu0 %7924, %v8593_v30  }
 0x164   :  { %v9008_v2 = vpop.permute.xlu0 %1238 }
 0x165   :  { %12643 = vst [vmem:[#allocation88_spill] sm:$0xff] %v9008_v2  ;;  %7822 = vset.pattern.permute.xlu1 %v12586_v61  ;;  %v9011_v35 = vpop.permute.xlu1 %1242 }
 0x166   :  { %12644 = vst [vmem:[#allocation89_spill] sm:$0xff] %v9011_v35  ;;  %426 = vperm.xlu1 %7822, %v8499_v15  }
 0x167   :  { %1786 = vperm.xlu0 %7924, %v8546_v23  }
 0x168   :  { %v9015_v39 = vpop.permute.xlu0 %1282 }
 0x169   :  { %12645 = vst [vmem:[#allocation90_spill] sm:$0xff] %v9015_v39 }
 0x16a   :  { %7823 = vset.pattern.permute.xlu1 %v12594_v50  ;;  %v9018_v20 = vpop.permute.xlu1 %602 }
 0x16b   :  { %12646 = vst [vmem:[#allocation91_spill] sm:$0xff] %v9018_v20  ;;  %626 = vperm.xlu1 %7823, %v8655_v45   ;;  %1790 = vperm.xlu0 %7924, %v8600_v31  }
 0x16c   :  { %v9022_v27 = vpop.permute.xlu0 %1286 }
 0x16d   :  { %12647 = vst [vmem:[#allocation92_spill] sm:$0xff] %v9022_v27 }
 0x16f   :  { %7824 = vset.pattern.permute.xlu1 %v12588_v56  ;;  %v9025_v2 = vpop.permute.xlu1 %1450  ;;  %1798 = vperm.xlu0 %7924, %v8607_v32  }
 0x170   :  { %1270 = vperm.xlu1 %7824, %v8461_v9   ;;  %v9029_v23 = vpop.permute.xlu0 %1302 }
 0x171   :  { %12648 = vst [vmem:[#allocation93_spill] sm:$0xff] %v9029_v23 }
 0x173   :  { %v9031_v39 = vpop.permute.xlu1 %1454  ;;  %7928 = vset.pattern.permute.xlu0 %v12583_v0 }
 0x174   :  { %12649 = vst [vmem:[#allocation94_spill] sm:$0xff] %v9031_v39  ;;  %1274 = vperm.xlu1 %7824, %v8456_v8   ;;  %1914 = vperm.xlu0 %7928, %v8583_v29   ;;  %v9036_v20 = vpop.permute.xlu0 %1322 }
 0x175   :  { %12650 = vst [vmem:[#allocation95_spill] sm:$0xff] %v9036_v20 }
 0x178   :  { %7825 = vset.pattern.permute.xlu1 %v12594_v50  ;;  %v9039_v27 = vpop.permute.xlu1 %614  ;;  %1890 = vperm.xlu0 %7928, %v8421_v3   ;;  %v9042_v35 = vpop.permute.xlu0 %1326 }
 0x179   :  { %12651 = vst [vmem:[#allocation96_spill] sm:$0xff] %v9039_v27  ;;  %12652 = vst [vmem:[#allocation97_spill] sm:$0xff] %v9042_v35  ;;  %638 = vperm.xlu1 %7825, %v8487_v13  }
 0x17c   :  { %1902 = vperm.xlu0 %7928, %v8428_v4   ;;  %v9046_v23 = vpop.permute.xlu0 %1338 }
 0x17d   :  { %12653 = vst [vmem:[#allocation98_spill] sm:$0xff] %v9046_v23  ;;  %7826 = vset.pattern.permute.xlu1 %v12602_v38  ;;  %v9049_v39 = vpop.permute.xlu1 %1462 }
 0x17e   :  { %12654 = vst [vmem:[#allocation99_spill] sm:$0xff] %v9049_v39  ;;  %842 = vperm.xlu1 %7826, %v8468_v10  }
 0x180   :  { %1934 = vperm.xlu0 %7928, %v8456_v8   ;;  %v9053_v20 = vpop.permute.xlu0 %1346 }
 0x181   :  { %12655 = vst [vmem:[#allocation100_spill] sm:$0xff] %v9053_v20 }
 0x182   :  { %7827 = vset.pattern.permute.xlu1 %v12595_v62  ;;  %v9056_v27 = vpop.permute.xlu1 %822 }
 0x183   :  { %12656 = vst [vmem:[#allocation101_spill] sm:$0xff] %v9056_v27  ;;  %1482 = vperm.xlu1 %7827, %v8777_v22  }
 0x184   :  { %1942 = vperm.xlu0 %7928, %v8468_v10   ;;  %v9060_v4 = vpop.permute.xlu0 %1370 }
 0x185   :  { %12657 = vst [vmem:[#allocation102_spill] sm:$0xff] %v9060_v4 }
 0x187   :  { %7828 = vset.pattern.permute.xlu1 %v12594_v50  ;;  %v9063_v23 = vpop.permute.xlu1 %1670 }
 0x188   :  { %642 = vperm.xlu1 %7828, %v8492_v14   ;;  %1954 = vperm.xlu0 %7928, %v8480_v12  }
 0x189   :  { %v9067_v8 = vpop.permute.xlu0 %1474 }
 0x18b   :  { %v9069_v20 = vpop.permute.xlu1 %1674 }
 0x18c   :  { %12658 = vst [vmem:[#allocation103_spill] sm:$0xff] %v9069_v20  ;;  %646 = vperm.xlu1 %7828, %v8499_v15   ;;  %1982 = vperm.xlu0 %7928, %v8504_v16  }
 0x18d   :  { %v9073_v35 = vpop.permute.xlu0 %1458 }
 0x18e   :  { %12659 = vst [vmem:[#allocation104_spill] sm:$0xff] %v9073_v35 }
 0x190   :  { %7829 = vset.pattern.permute.xlu1 %v12602_v38  ;;  %v9076_v4 = vpop.permute.xlu1 %834  ;;  %1994 = vperm.xlu0 %7928, %v8593_v30  }
 0x191   :  { %12660 = vst [vmem:[#allocation105_spill] sm:$0xff] %v9076_v4  ;;  %850 = vperm.xlu1 %7829, %v8475_v11   ;;  %v9080_v27 = vpop.permute.xlu0 %1486  ;;  %v9095_v4 = vld [vmem:[%s12550_s23 + $0x110] sm:$0xff] }
 0x192   :  { %12661 = vst [vmem:[#allocation106_spill] sm:$0xff] %v9080_v27 }
 0x194   :  { %2002 = vperm.xlu0 %7928, %v8535_v21  }
 0x195   :  { %7830 = vset.pattern.permute.xlu1 %v12595_v62  ;;  %v9084_v39 = vpop.permute.xlu1 %1682  ;;  %v9086_v20 = vpop.permute.xlu0 %1494 }
 0x196   :  { %12662 = vst [vmem:[#allocation107_spill] sm:$0xff] %v9084_v39  ;;  %12663 = vst [vmem:[#allocation108_spill] sm:$0xff] %v9086_v20  ;;  %1490 = vperm.xlu1 %7830, %v8461_v9  }
 0x198   :  { %2010 = vperm.xlu0 %7928, %v8600_v31  }
 0x199   :  { %v9090_v16 = vpop.permute.xlu0 %1498 }
 0x19a   :  { %12664 = vst [vmem:[#allocation109_spill] sm:$0xff] %v9090_v16  ;;  %7831 = vset.pattern.permute.xlu1 %v12602_v38  ;;  %v9098_v27 = vpop.permute.xlu1 %398 }
 0x19b   :  { %12665 = vst [vmem:[#allocation110_spill] sm:$0xff] %v9098_v27  ;;  %854 = vperm.xlu1 %7831, %v8480_v12  }
 0x19c   :  { %2026 = vperm.xlu0 %7928, %v9095_v4  }
 0x19d   :  { %v9102_v20 = vpop.permute.xlu0 %1510 }
 0x19e   :  { %12666 = vst [vmem:[#allocation111_spill] sm:$0xff] %v9102_v20 }
 0x19f   :  { %858 = vperm.xlu1 %7831, %v8487_v13   ;;  %v9105_v39 = vpop.permute.xlu1 %1042 }
 0x1a0   :  { %12667 = vst [vmem:[#allocation112_spill] sm:$0xff] %v9105_v39  ;;  %7936 = vset.pattern.permute.xlu0 %v12623_v37 }
 0x1a1   :  { %95 = vperm.xlu0 %7936, %v8421_v3   ;;  %v9109_v16 = vpop.permute.xlu0 %1518 }
 0x1a2   :  { %12668 = vst [vmem:[#allocation113_spill] sm:$0xff] %v9109_v16 }
 0x1a3   :  { %7832 = vset.pattern.permute.xlu1 %v12580_v60  ;;  %v9112_v35 = vpop.permute.xlu1 %1046 }
 0x1a4   :  { %12669 = vst [vmem:[#allocation114_spill] sm:$0xff] %v9112_v35  ;;  %1062 = vperm.xlu1 %7832, %v8468_v10  }
 0x1a5   :  { %100 = vperm.xlu0 %7936, %v8557_v26   ;;  %v9116_v27 = vpop.permute.xlu0 %1534 }
 0x1a6   :  { %12670 = vst [vmem:[#allocation115_spill] sm:$0xff] %v9116_v27 }
 0x1a8   :  { %7833 = vset.pattern.permute.xlu1 %v12605_v19  ;;  %v9119_v20 = vpop.permute.xlu1 %1894 }
 0x1a9   :  { %1702 = vperm.xlu1 %7833, %v8777_v22   ;;  %115 = vperm.xlu0 %7936, %v8576_v28   ;;  %v9123_v3 = vpop.permute.xlu0 %1554 }
 0x1aa   :  { %12671 = vst [vmem:[#allocation116_spill] sm:$0xff] %v9123_v3 }
 0x1ad   :  { %7834 = vset.pattern.permute.xlu1 %v12602_v38  ;;  %v9126_v16 = vpop.permute.xlu1 %2246  ;;  %125 = vperm.xlu0 %7936, %v8583_v29   ;;  %v9129_v10 = vpop.permute.xlu0 %1562 }
 0x1ae   :  { %12672 = vst [vmem:[#allocation117_spill] sm:$0xff] %v9129_v10  ;;  %862 = vperm.xlu1 %7834, %v8492_v14  }
 0x1b1   :  { %135 = vperm.xlu0 %7936, %v8777_v22   ;;  %v9133_v26 = vpop.permute.xlu0 %1578 }
 0x1b2   :  { %12673 = vst [vmem:[#allocation118_spill] sm:$0xff] %v9133_v26  ;;  %866 = vperm.xlu1 %7834, %v8499_v15   ;;  %v9136_v27 = vpop.permute.xlu1 %406 }
 0x1b3   :  { %12674 = vst [vmem:[#allocation119_spill] sm:$0xff] %v9136_v27 }
 0x1b5   :  { %145 = vperm.xlu0 %7936, %v8461_v9  }
 0x1b6   :  { %7835 = vset.pattern.permute.xlu1 %v12580_v60  ;;  %v9140_v28 = vpop.permute.xlu1 %410  ;;  %v9142_v3 = vpop.permute.xlu0 %1694 }
 0x1b7   :  { %12675 = vst [vmem:[#allocation120_spill] sm:$0xff] %v9140_v28  ;;  %1070 = vperm.xlu1 %7835, %v8475_v11  }
 0x1b9   :  { %155 = vperm.xlu0 %7936, %v8643_v42  }
 0x1ba   :  { %v9146_v29 = vpop.permute.xlu0 %1678 }
 0x1bb   :  { %7836 = vset.pattern.permute.xlu1 %v12605_v19  ;;  %v9149_v26 = vpop.permute.xlu1 %1054 }
 0x1bc   :  { %12676 = vst [vmem:[#allocation121_spill] sm:$0xff] %v9149_v26  ;;  %1710 = vperm.xlu1 %7836, %v8461_v9  }
 0x1bd   :  { %165 = vperm.xlu0 %7936, %v8655_v45  }
 0x1be   :  { %v9153_v15 = vpop.permute.xlu0 %1706 }
 0x1bf   :  { %12677 = vst [vmem:[#allocation122_spill] sm:$0xff] %v9153_v15 }
 0x1c0   :  { %7837 = vset.pattern.permute.xlu1 %v12586_v61  ;;  %v9156_v10 = vpop.permute.xlu1 %1898 }
 0x1c1   :  { %430 = vperm.xlu1 %7837, %v8667_v49   ;;  %175 = vperm.xlu0 %7936, %v8480_v12  }
 0x1c2   :  { %v9160_v11 = vpop.permute.xlu0 %1714 }
 0x1c3   :  { %12678 = vst [vmem:[#allocation123_spill] sm:$0xff] %v9160_v11 }
 0x1c5   :  { %434 = vperm.xlu1 %7837, %v8511_v17   ;;  %v9163_v28 = vpop.permute.xlu1 %2256  ;;  %185 = vperm.xlu0 %7936, %v8492_v14  }
 0x1c6   :  { %v9166_v9 = vpop.permute.xlu0 %1726 }
 0x1c7   :  { %12679 = vst [vmem:[#allocation124_spill] sm:$0xff] %v9166_v9 }
 0x1c9   :  { %7838 = vset.pattern.permute.xlu1 %v12580_v60  ;;  %v9169_v27 = vpop.permute.xlu1 %2261  ;;  %195 = vperm.xlu0 %7936, %v8667_v49  }
 0x1ca   :  { %1078 = vperm.xlu1 %7838, %v8487_v13   ;;  %v9173_v26 = vpop.permute.xlu0 %1734 }
 0x1cb   :  { %12680 = vst [vmem:[#allocation125_spill] sm:$0xff] %v9173_v26 }
 0x1cd   :  { %205 = vperm.xlu0 %7936, %v8751_v34  }
 0x1ce   :  { %7839 = vset.pattern.permute.xlu1 %v12588_v56  ;;  %v9177_v12 = vpop.permute.xlu1 %418  ;;  %v9179_v17 = vpop.permute.xlu0 %1746 }
 0x1cf   :  { %12681 = vst [vmem:[#allocation126_spill] sm:$0xff] %v9177_v12  ;;  %12682 = vst [vmem:[#allocation127_spill] sm:$0xff] %v9179_v17  ;;  %1278 = vperm.xlu1 %7839, %v8643_v42   ;;  %v8285_v17 = vld [vmem:[%s12550_s23 + $0x50] sm:$0xff] }
 0x1d1   :  { %215 = vperm.xlu0 %7936, %v8516_v18   ;;  %v2189_v18 = vld [vmem:[%s12479_s1 + $0x8] sm:$0xff] }
 0x1d2   :  { %v9183_v9 = vpop.permute.xlu0 %1750 }
 0x1d3   :  { %12683 = vst [vmem:[#allocation128_spill] sm:$0xff] %v9183_v9  ;;  %7840 = vset.pattern.permute.xlu1 %v12583_v0  ;;  %v9186_v11 = vpop.permute.xlu1 %618 }
 0x1d4   :  { %12684 = vst [vmem:[#allocation129_spill] sm:$0xff] %v9186_v11  ;;  %1922 = vperm.xlu1 %7840, %v8777_v22   ;;  %v2191_v11 = vld [vmem:[%s12479_s1 + $0x18] sm:$0xff] }
 0x1d5   :  { %225 = vperm.xlu0 %7936, %v8593_v30  }
 0x1d6   :  { %v9190_v13 = vpop.permute.xlu0 %1762 }
 0x1d7   :  { %12685 = vst [vmem:[#allocation130_spill] sm:$0xff] %v9190_v13 }
 0x1d8   :  { %1926 = vperm.xlu1 %7840, %v8449_v7   ;;  %v9193_v26 = vpop.permute.xlu1 %1262 }
 0x1d9   :  { %12686 = vst [vmem:[#allocation131_spill] sm:$0xff] %v9193_v26  ;;  %235 = vperm.xlu0 %7936, %v8535_v21   ;;  %v7939_v21 = vld [vmem:[%s12480_s4 + $0x18] sm:$0xff]  }
 0x1da   :  { %v9196_v42 = vpop.permute.xlu0 %1770  ;;  %7323 = vmatprep.subr.bf16.mxu0 %v7939_v21 }
 0x1db   :  { %12687 = vst [vmem:[#allocation132_spill] sm:$0xff] %v9196_v42  ;;  %7324 = vmatpush3.bf16.msra.mxu0 %v7939_v21  ;;  %v2188_v21 = vld [vmem:[%s12479_s1] sm:$0xff] }
 0x1dc   :  { %7841 = vset.pattern.permute.xlu1 %v12623_v37  ;;  %v9202_v9 = vpop.permute.xlu1 %1266 }
 0x1dd   :  { %12688 = vst [vmem:[#allocation133_spill] sm:$0xff] %v9202_v9  ;;  %2231 = vperm.xlu1 %7841, %v2189_v18   ;;  %245 = vperm.xlu0 %7936, %v8600_v31   ;;  %v2193_v31 = vld [vmem:[%s12479_s1 + $0x28] sm:$0xff] }
 0x1de   :  { %v9205_v30 = vpop.permute.xlu0 %1774 }
 0x1df   :  { %12689 = vst [vmem:[#allocation134_spill] sm:$0xff] %v9205_v30 }
 0x1e1   :  { %7842 = vset.pattern.permute.xlu1 %v12586_v61  ;;  %v9208_v7 = vpop.permute.xlu1 %426  ;;  %255 = vperm.xlu0 %7936, %v8607_v32   ;;  %v7940_v32 = vld [vmem:[%s12480_s4 + $0x10] sm:$0xff]  }
 0x1e2   :  { %12690 = vst [vmem:[#allocation135_spill] sm:$0xff] %v9208_v7  ;;  %438 = vperm.xlu1 %7842, %v8751_v34   ;;  %v9215_v22 = vpop.permute.xlu0 %1786  ;;  %7325 = vmatprep.subr.bf16.mxu0 %v7940_v32  ;;  %v2200_v7 = vld [vmem:[%s12479_s1 + $0x60] sm:$0xff] }
 0x1e3   :  { %12691 = vst [vmem:[#allocation136_spill] sm:$0xff] %v9215_v22  ;;  %7326 = vmatpush3.bf16.msra.mxu0 %v7940_v32  ;;  %v9238_v22 = vld [vmem:[%s12550_s23 + $0x98] sm:$0xff] }
 0x1e5   :  { %265 = vperm.xlu0 %7936, %v9095_v4  }
 0x1e6   :  { %7843 = vset.pattern.permute.xlu1 %v12580_v60  ;;  %v9225_v18 = vpop.permute.xlu1 %626  ;;  %v9227_v30 = vpop.permute.xlu0 %1790 }
 0x1e7   :  { %12692 = vst [vmem:[#allocation137_spill] sm:$0xff] %v9225_v18  ;;  %12693 = vst [vmem:[#allocation138_spill] sm:$0xff] %v9227_v30  ;;  %1082 = vperm.xlu1 %7843, %v8492_v14   ;;  %v2197_v14 = vld [vmem:[%s12479_s1 + $0x48] sm:$0xff] }
 0x1e9   :  { %2251 = vperm.xlu0 %7936, %v2193_v31  }
 0x1ea   :  { %v9233_v4 = vpop.permute.xlu0 %1798 }
 0x1eb   :  { %12694 = vst [vmem:[#allocation139_spill] sm:$0xff] %v9233_v4  ;;  %1086 = vperm.xlu1 %7843, %v9238_v22   ;;  %v9241_v42 = vpop.permute.xlu1 %1270  ;;  %v9254_v4 = vld [vmem:[%s12550_s23 + $0x78] sm:$0xff] }
 0x1ec   :  { %12695 = vst [vmem:[#allocation140_spill] sm:$0xff] %v9241_v42 }
 0x1ed   :  { %2226 = vperm.xlu0 %7936, %v2188_v21   ;;  %v2198_v21 = vld [vmem:[%s12479_s1 + $0x50] sm:$0xff] }
 0x1ef   :  { %7844 = vset.pattern.permute.xlu1 %v12588_v56  ;;  %v9247_v31 = vpop.permute.xlu1 %1274  ;;  %v9249_v32 = vpop.permute.xlu0 %1914 }
 0x1f0   :  { %12696 = vst [vmem:[#allocation141_spill] sm:$0xff] %v9247_v31  ;;  %1290 = vperm.xlu1 %7844, %v9254_v4  }
 0x1f1   :  { %2271 = vperm.xlu0 %7936, %v2197_v14   ;;  %v9271_v14 = vld [vmem:[%s12480_s4 + $0x8] sm:$0xff]  }
 0x1f2   :  { %7331 = vmatprep.subr.bf16.mxu0 %v9271_v14 }
 0x1f3   :  { %v9260_v30 = vpop.permute.xlu0 %1890 }
 0x1f4   :  { %7845 = vset.pattern.permute.xlu1 %v12583_v0  ;;  %v9263_v13 = vpop.permute.xlu1 %638 }
 0x1f5   :  { %12697 = vst [vmem:[#allocation142_spill] sm:$0xff] %v9263_v13  ;;  %1930 = vperm.xlu1 %7845, %v8285_v17   ;;  %2276 = vperm.xlu0 %7936, %v2198_v21   ;;  %v2190_v13 = vld [vmem:[%s12479_s1 + $0x10] sm:$0xff]  ;;  %v2204_v21 = vld [vmem:[%s12479_s1 + $0x80] sm:$0xff] }
 0x1f7   :  { %v9276_v12 = vpop.permute.xlu0 %1902 }
 0x1f9   :  { %7846 = vset.pattern.permute.xlu1 %v12623_v37  ;;  %v9283_v17 = vpop.permute.xlu1 %842  ;;  %2286 = vperm.xlu0 %7936, %v2200_v7  }
 0x1fa   :  { %12698 = vst [vmem:[#allocation143_spill] sm:$0xff] %v9283_v17  ;;  %2236 = vperm.xlu1 %7846, %v2190_v13   ;;  %v9301_v13 = vld [vmem:[%s12550_s23 + $0xc8] sm:$0xff] }
 0x1fb   :  { %v9288_v18 = vpop.permute.xlu0 %1934  ;;  %12702 = vst [vmem:[#allocation147_spill] sm:$0xff] %v9301_v13 }
 0x1fc   :  { %12699 = vst [vmem:[#allocation144_spill] sm:$0xff] %v9288_v18 }
 0x1fd   :  { %2306 = vperm.xlu0 %7936, %v2204_v21  }
 0x1fe   :  { %2241 = vperm.xlu1 %7846, %v2191_v11   ;;  %v9293_v31 = vpop.permute.xlu1 %1482 }
 0x1ff   :  { %12700 = vst [vmem:[#allocation145_spill] sm:$0xff] %v9293_v31  ;;  %v9295_v42 = vpop.permute.xlu0 %1942 }
 0x200   :  { %12701 = vst [vmem:[#allocation146_spill] sm:$0xff] %v9295_v42 }
 0x202   :  { %7847 = vset.pattern.permute.xlu1 %v12586_v61 }
 0x203   :  { %450 = vperm.xlu1 %7847, %v9301_v13   ;;  %v9304_v7 = vpop.permute.xlu1 %642  ;;  %v9306_v17 = vpop.permute.xlu0 %1954 }
 0x204   :  { %12703 = vst [vmem:[#allocation148_spill] sm:$0xff] %v9304_v7  ;;  %12704 = vst [vmem:[#allocation149_spill] sm:$0xff] %v9306_v17  ;;  %v9322_v7 = vld [vmem:[%s12550_s23 + $0x80] sm:$0xff] }
 0x207   :  { %7848 = vset.pattern.permute.xlu1 %v12594_v50  ;;  %v9309_v11 = vpop.permute.xlu1 %646  ;;  %v9311_v21 = vpop.permute.xlu0 %1982 }
 0x208   :  { %12705 = vst [vmem:[#allocation150_spill] sm:$0xff] %v9309_v11  ;;  %12706 = vst [vmem:[#allocation151_spill] sm:$0xff] %v9311_v21  ;;  %650 = vperm.xlu1 %7848, %v8667_v49   ;;  %v9330_v21 = vld [vmem:[%s12550_s23 + $0x88] sm:$0xff] }
 0x209   :  { %12710 = vst [vmem:[#allocation155_spill] sm:$0xff] %v9330_v21  ;;  %v9341_v11 = vld [vmem:[%s12550_s23 + $0x68] sm:$0xff] }
 0x20b   :  { %v9314_v42 = vpop.permute.xlu0 %1994 }
 0x20c   :  { %12707 = vst [vmem:[#allocation152_spill] sm:$0xff] %v9314_v42  ;;  %7849 = vset.pattern.permute.xlu1 %v12588_v56  ;;  %v9317_v18 = vpop.permute.xlu1 %850 }
 0x20d   :  { %12708 = vst [vmem:[#allocation153_spill] sm:$0xff] %v9317_v18  ;;  %1294 = vperm.xlu1 %7849, %v9322_v7  }
 0x20f   :  { %v9325_v17 = vpop.permute.xlu0 %2002 }
 0x210   :  { %12709 = vst [vmem:[#allocation154_spill] sm:$0xff] %v9325_v17 }
 0x211   :  { %1298 = vperm.xlu1 %7849, %v9330_v21   ;;  %v9333_v49 = vpop.permute.xlu1 %1490 }
 0x212   :  { %12711 = vst [vmem:[#allocation156_spill] sm:$0xff] %v9333_v49 }
 0x213   :  { %v9335_v42 = vpop.permute.xlu0 %2010 }
 0x214   :  { %12712 = vst [vmem:[#allocation157_spill] sm:$0xff] %v9335_v42  ;;  %v9354_v42 = vld [vmem:[%s12550_s23 + $0xd0] sm:$0xff] }
 0x215   :  { %7850 = vset.pattern.permute.xlu1 %v12595_v62  ;;  %12716 = vst [vmem:[#allocation161_spill] sm:$0xff] %v9354_v42 }
 0x216   :  { %1502 = vperm.xlu1 %7850, %v9341_v11   ;;  %v9344_v17 = vpop.permute.xlu1 %854 }
 0x217   :  { %12713 = vst [vmem:[#allocation158_spill] sm:$0xff] %v9344_v17  ;;  %v9346_v18 = vpop.permute.xlu0 %2026 }
 0x218   :  { %12714 = vst [vmem:[#allocation159_spill] sm:$0xff] %v9346_v18  ;;  %v9364_v18 = vld [vmem:[%s12550_s23 + $0xb8] sm:$0xff] }
 0x219   :  { %12718 = vst [vmem:[#allocation163_spill] sm:$0xff] %v9364_v18 }
 0x21a   :  { %7851 = vset.pattern.permute.xlu1 %v12586_v61  ;;  %v9349_v15 = vpop.permute.xlu1 %858 }
 0x21b   :  { %12715 = vst [vmem:[#allocation160_spill] sm:$0xff] %v9349_v15  ;;  %454 = vperm.xlu1 %7851, %v9354_v42  }
 0x21c   :  { %v96_v49 = vpop.permute.xlu0 %95 }
 0x21f   :  { %7852 = vset.pattern.permute.xlu1 %v12594_v50  ;;  %v9358_v31 = vpop.permute.xlu1 %1062 }
 0x220   :  { %12717 = vst [vmem:[#allocation162_spill] sm:$0xff] %v9358_v31  ;;  %658 = vperm.xlu1 %7852, %v8751_v34   ;;  %v101_v17 = vpop.permute.xlu0 %100  ;;  %v273_v31 = vlaneseq }
 0x222   :  { %v9378_v37 = vshrl.u32 %v273_v31, 7  ;;  %v9397_v31 = vld [vmem:[%s12550_s23 + $0xc0] sm:$0xff] }
 0x224   :  { %662 = vperm.xlu1 %7852, %v9364_v18   ;;  %v9367_v15 = vpop.permute.xlu1 %1702  ;;  %v116_v26 = vpop.permute.xlu0 %115  ;;  %v9417_v18 = vsub.s32 2, %v9378_v37 }
 0x225   :  { %12719 = vst [vmem:[#allocation164_spill] sm:$0xff] %v9367_v15 }
 0x226   :  { %12729 = vst [vmem:[#allocation174_spill] sm:$0xff] %v9417_v18 }
 0x228   :  { %7853 = vset.pattern.permute.xlu1 %v12588_v56  ;;  %v126_v9 = vpop.permute.xlu0 %125  ;;  %v9384_v56 = vsub.s32 0, %v9378_v37 }
 0x229   :  { %1306 = vperm.xlu1 %7853, %v9238_v22   ;;  %v9371_v35 = vpop.permute.xlu1 %862 }
 0x22a   :  { %12720 = vst [vmem:[#allocation165_spill] sm:$0xff] %v9371_v35  ;;  %12724 = vst [vmem:[#allocation169_spill] sm:$0xff] %v9384_v56  ;;  %v9392_v35 = vld [vmem:[%s12481_s2] sm:$0xff] }
 0x22c   :  { %v9373_v34 = vpop.permute.xlu0 %135 }
 0x22d   :  { %12721 = vst [vmem:[#allocation166_spill] sm:$0xff] %v9373_v34  ;;  %7854 = vset.pattern.permute.xlu1 %v12595_v62  ;;  %v9376_v39 = vpop.permute.xlu1 %866 }
 0x22e   :  { %12722 = vst [vmem:[#allocation167_spill] sm:$0xff] %v9376_v39  ;;  %1506 = vperm.xlu1 %7854, %v8655_v45   ;;  %v9401_v45 = vsub.s32 1, %v9378_v37 }
 0x230   :  { %v9381_v15 = vpop.permute.xlu0 %145  ;;  %12726 = vst [vmem:[#allocation171_spill] sm:$0xff] %v9401_v45  ;;  %v9414_v34 = vrot.slane %v9392_v35, %v9401_v45  ;;  %v9433_v45 = vrot.slane %v9392_v35, %v9417_v18 }
 0x231   :  { %12723 = vst [vmem:[#allocation168_spill] sm:$0xff] %v9381_v15 }
 0x232   :  { %7855 = vset.pattern.permute.xlu1 %v12594_v50  ;;  %v9387_v61 = vpop.permute.xlu1 %1070 }
 0x233   :  { %12725 = vst [vmem:[#allocation170_spill] sm:$0xff] %v9387_v61  ;;  %666 = vperm.xlu1 %7855, %v9397_v31   ;;  %v9407_v61 = vrot.slane %v9392_v35, %v9384_v56  ;;  %v503_v56 = vmul.f32 %v9414_v34, %v8786_v58 }
 0x234   :  { %v9403_v39 = vpop.permute.xlu0 %155 }
 0x235   :  { %12727 = vst [vmem:[#allocation172_spill] sm:$0xff] %v9403_v39  ;;  %v283_v42 = vmul.f32 %v9407_v61, %v126_v9  ;;  %v281_v39 = vmul.f32 %v9407_v61, %v116_v26  ;;  %v9438_v26 = vld [vmem:[%s12550_s23 + $0xa8] sm:$0xff] }
 0x236   :  { %12732 = vst [vmem:[#allocation177_spill] sm:$0xff] %v9438_v26 }
 0x237   :  { %670 = vperm.xlu1 %7855, %v9301_v13   ;;  %v9410_v15 = vpop.permute.xlu1 %1710  ;;  %v9426_v13 = vsub.s32 3, %v9378_v37  ;;  %v539_v9 = vadd.f32 %v503_v56, %v283_v42  ;;  %v9452_v56 = vsub.s32 4, %v9378_v37  ;;  %v497_v42 = vmul.f32 %v9414_v34, %v8625_v36 }
 0x238   :  { %12728 = vst [vmem:[#allocation173_spill] sm:$0xff] %v9410_v15  ;;  %v9420_v0 = vpop.permute.xlu0 %165  ;;  %v501_v15 = vmul.f32 %v9414_v34, %v8779_v63  ;;  %v723_v63 = vmul.f32 %v9433_v45, %v8802_v5  ;;  %v498_v36 = vmul.f32 %v9414_v34, %v8761_v24  ;;  %v718_v24 = vmul.f32 %v9433_v45, %v8739_v1 }
 0x239   :  { %12730 = vst [vmem:[#allocation175_spill] sm:$0xff] %v9420_v0  ;;  %12731 = vst [vmem:[#allocation176_spill] sm:$0xff] %v9426_v13  ;;  %v9449_v18 = vrot.slane %v9392_v35, %v9426_v13 }
 0x23a   :  { %v537_v21 = vadd.f32 %v501_v15, %v281_v39  ;;  %12735 = vst [vmem:[#allocation180_spill] sm:$0xff] %v9452_v56  ;;  %v278_v39 = vmul.f32 %v9407_v61, %v101_v17  ;;  %v9461_v15 = vsub.s32 5, %v9378_v37  ;;  %v759_v5 = vadd.f32 %v723_v63, %v539_v9 }
 0x23b   :  { %7856 = vset.pattern.permute.xlu1 %v12602_v38  ;;  %v282_v9 = vmul.f32 %v9407_v61, %v8636_v40  ;;  %v502_v63 = vmul.f32 %v9414_v34, %v8638_v41  ;;  %v504_v40 = vmul.f32 %v9414_v34, %v8650_v44  ;;  %v722_v41 = vmul.f32 %v9433_v45, %v8732_v33 }
 0x23c   :  { %874 = vperm.xlu1 %7856, %v9438_v26   ;;  %v9441_v58 = vpop.permute.xlu1 %430  ;;  %v9443_v0 = vpop.permute.xlu0 %175  ;;  %v721_v26 = vmul.f32 %v9433_v45, %v8795_v54  ;;  %12736 = vst [vmem:[#allocation181_spill] sm:$0xff] %v9461_v15  ;;  %v941_v54 = vmul.f32 %v9449_v18, %v8826_v57  ;;  %v9486_v57 = vrot.slane %v9392_v35, %v9452_v56  ;;  %v12745_v56 = vld [vmem:[#allocation61_spill] sm:$0xff] }
 0x23d   :  { %12733 = vst [vmem:[#allocation178_spill] sm:$0xff] %v9441_v58  ;;  %12734 = vst [vmem:[#allocation179_spill] sm:$0xff] %v9443_v0  ;;  %v277_v58 = vmul.f32 %v9407_v61, %v96_v49  ;;  %v9473_v49 = vsub.s32 6, %v9378_v37  ;;  %v9498_v1 = vrot.slane %v9392_v35, %v9461_v15  ;;  %v538_v33 = vadd.f32 %v502_v63, %v282_v9  ;;  %v12743_v63 = vld [vmem:[#allocation44_spill] sm:$0xff] }
 0x23e   :  { %v757_v17 = vadd.f32 %v721_v26, %v537_v21  ;;  %v534_v21 = vadd.f32 %v498_v36, %v278_v39  ;;  %v942_v39 = vmul.f32 %v9449_v18, %v8816_v59  ;;  %v1161_v36 = vmul.f32 %v9486_v57, %v8829_v53 }
 0x23f   :  { %12739 = vst [vmem:[#allocation184_spill] sm:$0xff] %v9473_v49  ;;  %v758_v59 = vadd.f32 %v722_v41, %v538_v33  ;;  %v1381_v53 = vmul.f32 %v9498_v1, %v8998_v46  ;;  %v9540_v41 = vsub.s32 7, %v9378_v37 }
 0x240   :  { %7857 = vset.pattern.permute.xlu1 %v12595_v62  ;;  %v9464_v13 = vpop.permute.xlu1 %434  ;;  %v9466_v0 = vpop.permute.xlu0 %185 }
 0x241   :  { %12737 = vst [vmem:[#allocation182_spill] sm:$0xff] %v9464_v13  ;;  %12738 = vst [vmem:[#allocation183_spill] sm:$0xff] %v9466_v0  ;;  %1514 = vperm.xlu1 %7857, %v9322_v7   ;;  %v943_v13 = vmul.f32 %v9449_v18, %v8822_v6  ;;  %v533_v0 = vadd.f32 %v497_v42, %v277_v58  ;;  %v284_v7 = vmul.f32 %v9407_v61, %v8648_v43 }
 0x242   :  { %v717_v58 = vmul.f32 %v9433_v45, %v8863_v47  ;;  %v9504_v42 = vrot.slane %v9392_v35, %v9473_v49  ;;  %v977_v43 = vadd.f32 %v941_v54, %v757_v17  ;;  %v9518_v47 = vld [vmem:[%s12550_s23 + $0x60] sm:$0xff]  ;;  %v938_v54 = vmul.f32 %v9449_v18, %v8839_v25  ;;  %12749 = vst [vmem:[#allocation61_spill] sm:$0xff] %v9540_v41 }
 0x243   :  { %v979_v26 = vadd.f32 %v943_v13, %v759_v5  ;;  %v724_v13 = vmul.f32 %v9433_v45, %v8809_v55  ;;  %v1163_v5 = vmul.f32 %v9486_v57, %v8835_v52  ;;  %12742 = vst [vmem:[#allocation187_spill] sm:$0xff] %v9518_v47  ;;  %v754_v17 = vadd.f32 %v718_v24, %v534_v21  ;;  %v12747_v24 = vld [vmem:[#allocation45_spill] sm:$0xff] }
 0x244   :  { %v9494_v6 = vpop.permute.xlu0 %195  ;;  %v753_v55 = vadd.f32 %v717_v58, %v533_v0  ;;  %v540_v9 = vadd.f32 %v504_v40, %v284_v7  ;;  %v944_v52 = vmul.f32 %v9449_v18, %v12743_v63  ;;  %v1197_v25 = vadd.f32 %v1161_v36, %v977_v43  ;;  %v12748_v7 = vld [vmem:[#allocation49_spill] sm:$0xff]  ;;  %v12750_v58 = vld [vmem:[#allocation66_spill] sm:$0xff] }
 0x245   :  { %12740 = vst [vmem:[#allocation185_spill] sm:$0xff] %v9494_v6  ;;  %7858 = vset.pattern.permute.xlu1 %v12605_v19  ;;  %v9507_v44 = vpop.permute.xlu1 %1078  ;;  %v1199_v15 = vadd.f32 %v1163_v5, %v979_v26  ;;  %v937_v6 = vmul.f32 %v9449_v18, %v12745_v56  ;;  %v1164_v21 = vmul.f32 %v9486_v57, %v12747_v24 }
 0x246   :  { %12741 = vst [vmem:[#allocation186_spill] sm:$0xff] %v9507_v44  ;;  %1718 = vperm.xlu1 %7858, %v9518_v47   ;;  %v12746_v44 = vld [vmem:[#allocation64_spill] sm:$0xff]  ;;  %v760_v0 = vadd.f32 %v724_v13, %v540_v9  ;;  %v1383_v40 = vmul.f32 %v9498_v1, %v12748_v7  ;;  %v978_v26 = vadd.f32 %v942_v39, %v758_v59 }
 0x247   :  { %v1162_v47 = vmul.f32 %v9486_v57, %v12746_v44  ;;  %v1158_v44 = vmul.f32 %v9486_v57, %v12750_v58  ;;  %v973_v46 = vadd.f32 %v937_v6, %v753_v55  ;;  %v974_v43 = vadd.f32 %v938_v54, %v754_v17  ;;  %v12752_v54 = vld [vmem:[#allocation47_spill] sm:$0xff]  ;;  %v12753_v55 = vld [vmem:[#allocation53_spill] sm:$0xff] }
 0x248   :  { %v9527_v49 = vpop.permute.xlu0 %205  ;;  %v980_v33 = vadd.f32 %v944_v52, %v760_v0  ;;  %v1384_v13 = vmul.f32 %v9498_v1, %v9004_v48  ;;  %v1603_v5 = vmul.f32 %v9504_v42, %v9067_v8  ;;  %v1419_v36 = vadd.f32 %v1383_v40, %v1199_v15  ;;  %v12755_v0 = vld [vmem:[#allocation84_spill] sm:$0xff] }
 0x249   :  { %12744 = vst [vmem:[#allocation44_spill] sm:$0xff] %v9527_v49  ;;  %v1198_v9 = vadd.f32 %v1162_v47, %v978_v26  ;;  %v1417_v39 = vadd.f32 %v1381_v53, %v1197_v25  ;;  %v9557_v6 = vrot.slane %v9392_v35, %v9540_v41  ;;  %v1382_v48 = vmul.f32 %v9498_v1, %v12752_v54  ;;  %v12757_v26 = vld [vmem:[#allocation59_spill] sm:$0xff] }
 0x24a   :  { %1722 = vperm.xlu1 %7858, %v9341_v11   ;;  %v9543_v56 = vpop.permute.xlu1 %1278  ;;  %v1157_v11 = vmul.f32 %v9486_v57, %v8939_v51  ;;  %v1200_v59 = vadd.f32 %v1164_v21, %v980_v33  ;;  %v1601_v8 = vmul.f32 %v9504_v42, %v12753_v55  ;;  %v1194_v17 = vadd.f32 %v1158_v44, %v974_v43  ;;  %v9567_v51 = vld [vmem:[%s12550_s23 + $0xd8] sm:$0xff]  ;;  %v12756_v21 = vld [vmem:[#allocation86_spill] sm:$0xff]  ;;  %v9589_v33 = vld [vmem:[%s12481_s2 + $0x8] ss:$0 sm:$0xff] }
 0x24b   :  { %v1823_v63 = vmul.f32 %v9557_v6, %v9142_v3  ;;  %v1639_v52 = vadd.f32 %v1603_v5, %v1419_v36  ;;  %v1418_v25 = vadd.f32 %v1382_v48, %v1198_v9  ;;  %v1377_v24 = vmul.f32 %v9498_v1, %v12755_v0  ;;  %v12758_v44 = vld [vmem:[#allocation55_spill] sm:$0xff]  ;;  %v12764_v0 = vld [vmem:[#allocation73_spill] sm:$0xff] }
 0x24c   :  { %v9551_v37 = vpop.permute.xlu0 %215  ;;  %v1193_v15 = vadd.f32 %v1157_v11, %v973_v46  ;;  %v1420_v35 = vadd.f32 %v1384_v13, %v1200_v59  ;;  %v1378_v7 = vmul.f32 %v9498_v1, %v12756_v21  ;;  %v1637_v40 = vadd.f32 %v1601_v8, %v1417_v39  ;;  %v12759_v43 = vld [vmem:[#allocation63_spill] sm:$0xff]  ;;  %v12761_v8 = vld [vmem:[#allocation94_spill] sm:$0xff] }
 0x24d   :  { %12751 = vst [vmem:[#allocation64_spill] sm:$0xff] %v9551_v37  ;;  %v1604_v58 = vmul.f32 %v9504_v42, %v12757_v26  ;;  %v1602_v46 = vmul.f32 %v9504_v42, %v12758_v44  ;;  %v1821_v3 = vmul.f32 %v9557_v6, %v12759_v43  ;;  %v2043_v11 = vmul.f32 %v9589_v33, %v9249_v32  ;;  %v9599_v59 = vld [vmem:[%s12550_s23 + $0xb0] sm:$0xff]  ;;  %v9877_v37 = vld [vmem:[%s12550_s23 + $0x118] sm:$0xff] }
 0x24e   :  { %7859 = vset.pattern.permute.xlu1 %v12594_v50  ;;  %v1414_v13 = vadd.f32 %v1378_v7, %v1194_v17  ;;  %v1413_v36 = vadd.f32 %v1377_v24, %v1193_v15  ;;  %v1859_v39 = vadd.f32 %v1823_v63, %v1639_v52  ;;  %v1597_v55 = vmul.f32 %v9504_v42, %v9025_v2  ;;  %v12763_v63 = vld [vmem:[#allocation70_spill] sm:$0xff]  ;;  %v12765_v21 = vld [vmem:[#allocation75_spill] sm:$0xff] }
 0x24f   :  { %678 = vperm.xlu1 %7859, %v9567_v51   ;;  %v9570_v47 = vpop.permute.xlu1 %1922  ;;  %v1640_v9 = vadd.f32 %v1604_v58, %v1420_v35  ;;  %v1638_v48 = vadd.f32 %v1602_v46, %v1418_v25  ;;  %v1598_v15 = vmul.f32 %v9504_v42, %v12761_v8  ;;  %v1857_v17 = vadd.f32 %v1821_v3, %v1637_v40  ;;  %v12762_v35 = vld [vmem:[#allocation65_spill] sm:$0xff]  ;;  %v2207_v2 = vld [vmem:[%s12479_s1 + $0x98] sm:$0xff] }
 0x250   :  { %v9574_v53 = vpop.permute.xlu0 %225  ;;  %v1822_v32 = vmul.f32 %v9557_v6, %v12762_v35  ;;  %v1824_v52 = vmul.f32 %v9557_v6, %v12763_v63  ;;  %v2041_v24 = vmul.f32 %v9589_v33, %v12764_v0  ;;  %v2042_v7 = vmul.f32 %v9589_v33, %v12765_v21  ;;  %2321 = vperm.xlu0 %7936, %v2207_v2   ;;  %v12767_v8 = vld [vmem:[#allocation103_spill] sm:$0xff] }
 0x251   :  { %12754 = vst [vmem:[#allocation45_spill] sm:$0xff] %v9574_v53  ;;  %v1634_v25 = vadd.f32 %v1598_v15, %v1414_v13  ;;  %v1633_v26 = vadd.f32 %v1597_v55, %v1413_v36  ;;  %v2079_v46 = vadd.f32 %v2043_v11, %v1859_v39  ;;  %v1817_v3 = vmul.f32 %v9557_v6, %v9063_v23  ;;  %v9631_v36 = vld [vmem:[%s12550_s23 + $0x90] sm:$0xff]  ;;  %v12769_v11 = vld [vmem:[#allocation80_spill] sm:$0xff] }
 0x252   :  { %v1860_v58 = vadd.f32 %v1824_v52, %v1640_v9  ;;  %v1858_v43 = vadd.f32 %v1822_v32, %v1638_v48  ;;  %v1818_v13 = vmul.f32 %v9557_v6, %v12767_v8  ;;  %v2077_v9 = vadd.f32 %v2041_v24, %v1857_v17  ;;  %v12768_v55 = vld [vmem:[#allocation35_spill] sm:$0xff]  ;;  %v9641_v23 = vld [vmem:[%s12482_s3] ss:$0 sm:$0xff]  ;;  %v12770_v52 = vld [vmem:[#allocation6_spill] sm:$0xff] }
 0x253   :  { %7860 = vset.pattern.permute.xlu1 %v12602_v38  ;;  %v9592_v5 = vpop.permute.xlu1 %1926  ;;  %v499_v15 = vmul.f32 %v9414_v34, %v12768_v55  ;;  %v2044_v39 = vmul.f32 %v9589_v33, %v12769_v11  ;;  %v2037_v35 = vmul.f32 %v9589_v33, %v9260_v30  ;;  %v1853_v63 = vadd.f32 %v1817_v3, %v1633_v26  ;;  %v12771_v0 = vld [vmem:[#allocation7_spill] sm:$0xff]  ;;  %v12821_v53 = vld [vmem:[#allocation166_spill] sm:$0xff] }
 0x254   :  { %878 = vperm.xlu1 %7860, %v9599_v59   ;;  %v9602_v54 = vpop.permute.xlu0 %235  ;;  %v2078_v48 = vadd.f32 %v2042_v7, %v1858_v43  ;;  %v1854_v32 = vadd.f32 %v1818_v13, %v1634_v25  ;;  %v280_v17 = vmul.f32 %v9407_v61, %v12770_v52  ;;  %v500_v24 = vmul.f32 %v9414_v34, %v12771_v0  ;;  %v12773_v43 = vld [vmem:[#allocation5_spill] sm:$0xff]  ;;  %v12775_v26 = vld [vmem:[#allocation31_spill] sm:$0xff] }
 0x255   :  { %12760 = vst [vmem:[#allocation49_spill] sm:$0xff] %v9602_v54  ;;  %v2080_v21 = vadd.f32 %v2044_v39, %v1860_v58  ;;  %v2122_v7 = vadd.f32 %v9641_v23, %v2079_v46  ;;  %v279_v8 = vmul.f32 %v9407_v61, %v12773_v43  ;;  %v2038_v55 = vmul.f32 %v9589_v33, %v9119_v20  ;;  %v12776_v58 = vld [vmem:[#allocation57_spill] sm:$0xff]  ;;  %v12777_v43 = vld [vmem:[#allocation68_spill] sm:$0xff] }
 0x256   :  { %v2120_v25 = vadd.f32 %v9641_v23, %v2077_v9  ;;  %v719_v3 = vmul.f32 %v9433_v45, %v12775_v26  ;;  %v720_v13 = vmul.f32 %v9433_v45, %v12776_v58  ;;  %v2121_v39 = vadd.f32 %v9641_v23, %v2078_v48 }
 0x257   :  { %v535_v11 = vadd.f32 %v499_v15, %v279_v8  ;;  %v2074_v46 = vadd.f32 %v2038_v55, %v1854_v32  ;;  %v2073_v52 = vadd.f32 %v2037_v35, %v1853_v63  ;;  %v536_v0 = vadd.f32 %v500_v24, %v280_v17  ;;  %v12780_v32 = vld [vmem:[#allocation78_spill] sm:$0xff] }
 0x258   :  { %7861 = vset.pattern.permute.xlu1 %v12595_v62  ;;  %v9620_v40 = vpop.permute.xlu1 %2231  ;;  %v9622_v44 = vpop.permute.xlu0 %245  ;;  %v940_v20 = vmul.f32 %v9449_v18, %v12777_v43  ;;  %v2123_v41 = vadd.f32 %v9641_v23, %v2080_v21  ;;  %v2158_v9 = vmax.f32 %v2122_v7, 0.0  ;;  %v2156_v58 = vmax.f32 %v2120_v25, 0.0  ;;  %v12782_v7 = vld [vmem:[#allocation67_spill] sm:$0xff]  ;;  %v12783_v43 = vld [vmem:[#allocation89_spill] sm:$0xff] }
 0x259   :  { %12766 = vst [vmem:[#allocation66_spill] sm:$0xff] %v9622_v44  ;;  %1522 = vperm.xlu1 %7861, %v9631_v36   ;;  %v12779_v44 = vld [vmem:[#allocation46_spill] sm:$0xff]  ;;  %v756_v15 = vadd.f32 %v720_v13, %v536_v0  ;;  %v1160_v48 = vmul.f32 %v9486_v57, %v12780_v32  ;;  %v755_v63 = vadd.f32 %v719_v3, %v535_v11  ;;  %v2157_v24 = vmax.f32 %v2121_v39, 0.0 }
 0x25a   :  { %v939_v26 = vmul.f32 %v9449_v18, %v12779_v44  ;;  %v2117_v17 = vadd.f32 %v9641_v23, %v2074_v46  ;;  %v2116_v21 = vadd.f32 %v9641_v23, %v2073_v52  ;;  %v1159_v44 = vmul.f32 %v9486_v57, %v12782_v7  ;;  %v12784_v46 = vld [vmem:[#allocation88_spill] sm:$0xff] }
 0x25b   :  { %v976_v8 = vadd.f32 %v940_v20, %v756_v15  ;;  %v2159_v55 = vmax.f32 %v2123_v41, 0.0  ;;  %v2410_v13 = vmul.f32 %v9163_v28, %v2158_v9  ;;  %v1380_v32 = vmul.f32 %v9498_v1, %v12783_v43  ;;  %v12786_v41 = vld [vmem:[#allocation99_spill] sm:$0xff] }
 0x25c   :  { %v9649_v2 = vpop.permute.xlu0 %255  ;;  %v975_v0 = vadd.f32 %v939_v26, %v755_v63  ;;  %v2408_v3 = vmul.f32 %v9126_v16, %v2156_v58  ;;  %v1379_v39 = vmul.f32 %v9498_v1, %v12784_v46  ;;  %v1600_v28 = vmul.f32 %v9504_v42, %v12786_v41  ;;  %v12787_v58 = vld [vmem:[#allocation104_spill] sm:$0xff]  ;;  %v12790_v41 = vld [vmem:[#allocation155_spill] sm:$0xff] }
 0x25d   :  { %12772 = vst [vmem:[#allocation47_spill] sm:$0xff] %v9649_v2  ;;  %1526 = vperm.xlu1 %7861, %v9238_v22   ;;  %v9657_v30 = vpop.permute.xlu1 %438  ;;  %v1196_v11 = vadd.f32 %v1160_v48, %v976_v8  ;;  %v2411_v52 = vmul.f32 %v9169_v27, %v2159_v55  ;;  %v2153_v9 = vmax.f32 %v2117_v17, 0.0  ;;  %v2152_v26 = vmax.f32 %v2116_v21, 0.0  ;;  %v7942_v27 = vld [vmem:[%s12480_s4] sm:$0xff]  }
 0x25e   :  { %12774 = vst [vmem:[#allocation53_spill] sm:$0xff] %v9657_v30  ;;  %v1195_v16 = vadd.f32 %v1159_v44, %v975_v0  ;;  %v1599_v48 = vmul.f32 %v9504_v42, %v12787_v58  ;;  %v1819_v21 = vmul.f32 %v9557_v6, %v9146_v29  ;;  %v2039_v43 = vmul.f32 %v9589_v33, %v9156_v10  ;;  %v9718_v29 = vld [vmem:[%s12550_s23 + $0xa0] sm:$0xff] }
 0x25f   :  { %v1416_v7 = vadd.f32 %v1380_v32, %v1196_v11  ;;  %v2405_v8 = vmul.f32 %v9620_v40, %v2153_v9  ;;  %v2040_v32 = vmul.f32 %v9589_v33, %v9276_v12  ;;  %v285_v30 = vmul.f32 %v9407_v61, %v12821_v53 }
 0x260   :  { %v9668_v2 = vpop.permute.xlu0 %265  ;;  %v1415_v17 = vadd.f32 %v1379_v39, %v1195_v16  ;;  %v12789_v39 = vld [vmem:[#allocation177_spill] sm:$0xff] }
 0x261   :  { %12778 = vst [vmem:[#allocation84_spill] sm:$0xff] %v9668_v2  ;;  %7862 = vset.pattern.permute.xlu1 %v12605_v19  ;;  %v1636_v44 = vadd.f32 %v1600_v28, %v1416_v7  ;;  %v12794_v7 = vld [vmem:[#allocation161_spill] sm:$0xff] }
 0x262   :  { %1730 = vperm.xlu1 %7862, %v9254_v4   ;;  %v9676_v35 = vpop.permute.xlu1 %1082  ;;  %v1635_v40 = vadd.f32 %v1599_v48, %v1415_v17 }
 0x263   :  { %12781 = vst [vmem:[#allocation86_spill] sm:$0xff] %v9676_v35  ;;  %v12831_v35 = vld [vmem:[#allocation114_spill] sm:$0xff] }
 0x264   :  { %v2252_v25 = vpop.permute.xlu0 %2251  ;;  %v1855_v11 = vadd.f32 %v1819_v21, %v1635_v40 }
 0x265   :  { %v2409_v2 = vmul.f32 %v2252_v25, %v2157_v24  ;;  %v2447_v24 = vpack.c.bf16 %v2411_v52, %v2410_v13  ;;  %v12788_v25 = vld [vmem:[#allocation107_spill] sm:$0xff] }
 0x266   :  { %7863 = vset.pattern.permute.xlu1 %v12602_v38  ;;  %v9690_v20 = vpop.permute.xlu1 %1086 }
 0x267   :  { %12785 = vst [vmem:[#allocation59_spill] sm:$0xff] %v9690_v20  ;;  %886 = vperm.xlu1 %7863, %v9397_v31   ;;  %v2446_v15 = vpack.c.bf16 %v2409_v2, %v2408_v3  ;;  %v1820_v2 = vmul.f32 %v9557_v6, %v12788_v25  ;;  %v1166_v20 = vmul.f32 %v9486_v57, %v12831_v35 }
 0x268   :  { %v2227_v63 = vpop.permute.xlu0 %2226 }
 0x269   :  { %v2404_v55 = vmul.f32 %v2227_v63, %v2152_v26  ;;  %7327 = vmatprep.mubr.msk.bf16.mxu0 %vm2465_vm0, %v2446_v15  ;;  %v1856_v3 = vadd.f32 %v1820_v2, %v1636_v44  ;;  %v12791_v15 = vmov 8   ;;  %v12792_v63 = vld [vmem:[#allocation187_spill] sm:$0xff]  ;;  %v2209_v2 = vld [vmem:[%s12479_s1 + $0xa8] sm:$0xff] }
 0x26a   :  { %7328 = vmatmul.mubr.msk.bf16.vlgmr.msra.gmra.mxu0 %vm2465_vm0, %v2447_v24  ;;  %2331 = vperm.xlu0 %7936, %v2209_v2   ;;  %v8299_v44 = vld [vmem:[%s12550_s23 + $0x70] sm:$0xff]  ;;  %v7943_v2 = vld [vmem:[%s12480_s4 + $0x28] sm:$0xff]  }
 0x26b   :  { %v2440_v13 = vpack.c.bf16 %v2405_v8, %v2404_v55  ;;  %7864 = vset.pattern.permute.xlu1 %v12580_v60  ;;  %v9708_v0 = vpop.permute.xlu1 %1290  ;;  %7332 = vmatpush3.bf16.msra.mxu0 %v9271_v14  ;;  %v2075_v14 = vadd.f32 %v2039_v43, %v1855_v11  ;;  %v2076_v46 = vadd.f32 %v2040_v32, %v1856_v3  ;;  %v12796_v55 = vld [vmem:[#allocation163_spill] sm:$0xff]  ;;  %v12799_v43 = vmov 1   ;;  %v9766_v32 = vld [vmem:[%s12550_s23 + $0xe8] sm:$0xff] }
 0x26c   :  { %1090 = vperm.xlu1 %7864, %v9718_v29   ;;  %7333 = vmatprep.subr.bf16.mxu0 %v7942_v27 }
 0x26d   :  { %7335 = vmatprep.mubr.msk.bf16.mxu0 %vm2465_vm0, %v2440_v13  ;;  %v2118_v12 = vadd.f32 %v9641_v23, %v2075_v14  ;;  %v2119_v52 = vadd.f32 %v9641_v23, %v2076_v46  ;;  %v2211_v13 = vld [vmem:[%s12479_s1 + $0xb8] sm:$0xff] }
 0x26e   :  { %2341 = vperm.xlu0 %7936, %v2211_v13   ;;  %v7944_v13 = vld [vmem:[%s12480_s4 + $0x20] sm:$0xff]  }
 0x26f   :  { %7334 = vmatpush3.bf16.msra.mxu0 %v7942_v27  ;;  %v2154_v9 = vmax.f32 %v2118_v12, 0.0  ;;  %v2155_v26 = vmax.f32 %v2119_v52, 0.0  ;;  %v2196_v52 = vld [vmem:[%s12479_s1 + $0x40] sm:$0xff] }
 0x270   :  { %1094 = vperm.xlu1 %7864, %v12789_v39   ;;  %v9723_v10 = vpop.permute.xlu1 %1930  ;;  %7339 = vmatprep.subr.bf16.mxu0 %v7943_v2 }
 0x274   :  { %7865 = vset.pattern.permute.xlu1 %v12605_v19 }
 0x275   :  { %1738 = vperm.xlu1 %7865, %v12790_v41   ;;  %v2237_v28 = vpop.permute.xlu1 %2236 }
 0x276   :  { %v2406_v58 = vmul.f32 %v2237_v28, %v2154_v9  ;;  %v12805_v28 = vmov 0  }
 0x279   :  { %7866 = vset.pattern.permute.xlu1 %v12791_v15  ;;  %v2242_v16 = vpop.permute.xlu1 %2241 }
 0x27a   :  { %v2407_v48 = vmul.f32 %v2242_v16, %v2155_v26  ;;  %1938 = vperm.xlu1 %7866, %v12792_v63   ;;  %v9798_v16 = vld [vmem:[%s12550_s23 + $0xf0] sm:$0xff] }
 0x27c   :  { %v2441_v24 = vpack.c.bf16 %v2407_v48, %v2406_v58 }
 0x27e   :  { %7867 = vset.pattern.permute.xlu1 %v12602_v38  ;;  %v9732_v27 = vpop.permute.xlu1 %450  ;;  %7336 = vmatmul.mubr.msk.bf16.vlgmr.msra.gmra.mxu0 %vm2465_vm0, %v2441_v24 }
 0x27f   :  { %12793 = vst [vmem:[#allocation55_spill] sm:$0xff] %v9732_v27  ;;  %894 = vperm.xlu1 %7867, %v12794_v7   ;;  %7340 = vmatpush3.bf16.msra.mxu0 %v7943_v2  ;;  %v9842_v2 = vld [vmem:[%s12550_s23 + $0x100] sm:$0xff] }
 0x280   :  { %7341 = vmatprep.subr.bf16.mxu0 %v7944_v13 }
 0x283   :  { %898 = vperm.xlu1 %7867, %v9567_v51   ;;  %v9737_v8 = vpop.permute.xlu1 %650  ;;  %7342 = vmatpush3.bf16.msra.mxu0 %v7944_v13  ;;  %v9851_v13 = vld [vmem:[%s12550_s23 + $0xe0] sm:$0xff] }
 0x284   :  { %12795 = vst [vmem:[#allocation63_spill] sm:$0xff] %v9737_v8 }
 0x287   :  { %7868 = vset.pattern.permute.xlu1 %v12580_v60 }
 0x288   :  { %1102 = vperm.xlu1 %7868, %v12796_v55   ;;  %v9741_v17 = vpop.permute.xlu1 %1294 }
 0x28c   :  { %7869 = vset.pattern.permute.xlu1 %v12605_v19  ;;  %v9744_v25 = vpop.permute.xlu1 %1298 }
 0x28d   :  { %12797 = vst [vmem:[#allocation94_spill] sm:$0xff] %v9744_v25  ;;  %1742 = vperm.xlu1 %7869, %v9631_v36  }
 0x291   :  { %7870 = vset.pattern.permute.xlu1 %v12791_v15  ;;  %v9751_v21 = vpop.permute.xlu1 %1502 }
 0x292   :  { %1946 = vperm.xlu1 %7870, %v8299_v44  }
 0x296   :  { %1950 = vperm.xlu1 %7870, %v9254_v4   ;;  %v9760_v40 = vpop.permute.xlu1 %454  ;;  %v12802_v4 = vmov 5  }
 0x297   :  { %12798 = vst [vmem:[#allocation65_spill] sm:$0xff] %v9760_v40 }
 0x29a   :  { %7871 = vset.pattern.permute.xlu1 %v12799_v43 }
 0x29b   :  { %466 = vperm.xlu1 %7871, %v9766_v32   ;;  %v9769_v3 = vpop.permute.xlu1 %658 }
 0x29c   :  { %12800 = vst [vmem:[#allocation70_spill] sm:$0xff] %v9769_v3 }
 0x29f   :  { %7872 = vset.pattern.permute.xlu1 %v12580_v60  ;;  %v9772_v11 = vpop.permute.xlu1 %662 }
 0x2a0   :  { %12801 = vst [vmem:[#allocation73_spill] sm:$0xff] %v9772_v11  ;;  %1106 = vperm.xlu1 %7872, %v9397_v31  }
 0x2a4   :  { %7873 = vset.pattern.permute.xlu1 %v12802_v4  ;;  %v9776_v14 = vpop.permute.xlu1 %1306 }
 0x2a5   :  { %12803 = vst [vmem:[#allocation75_spill] sm:$0xff] %v9776_v14  ;;  %1310 = vperm.xlu1 %7873, %v9718_v29   ;;  %v12830_v14 = vld [vmem:[#allocation112_spill] sm:$0xff] }
 0x2a9   :  { %1314 = vperm.xlu1 %7873, %v12789_v39   ;;  %v9780_v46 = vpop.permute.xlu1 %1506 }
 0x2ad   :  { %7874 = vset.pattern.permute.xlu1 %v12791_v15 }
 0x2ae   :  { %1958 = vperm.xlu1 %7874, %v12790_v41   ;;  %v9784_v12 = vpop.permute.xlu1 %666  ;;  %v9804_v41 = vld [vmem:[%s12550_s23 + $0xf8] sm:$0xff] }
 0x2af   :  { %12804 = vst [vmem:[#allocation103_spill] sm:$0xff] %v9784_v12 }
 0x2b2   :  { %7875 = vset.pattern.permute.xlu1 %v12805_v28  ;;  %v9790_v9 = vpop.permute.xlu1 %670 }
 0x2b3   :  { %12806 = vst [vmem:[#allocation35_spill] sm:$0xff] %v9790_v9  ;;  %2266 = vperm.xlu1 %7875, %v2196_v52   ;;  %v2199_v52 = vld [vmem:[%s12479_s1 + $0x58] sm:$0xff] }
 0x2b7   :  { %7876 = vset.pattern.permute.xlu1 %v12799_v43  ;;  %v9793_v26 = vpop.permute.xlu1 %874 }
 0x2b8   :  { %12807 = vst [vmem:[#allocation80_spill] sm:$0xff] %v9793_v26  ;;  %470 = vperm.xlu1 %7876, %v9798_v16   ;;  %v12826_v26 = vld [vmem:[#allocation9_spill] sm:$0xff] }
 0x2bc   :  { %474 = vperm.xlu1 %7876, %v9804_v41   ;;  %v9807_v58 = vpop.permute.xlu1 %1514 }
 0x2bd   :  { %12808 = vst [vmem:[#allocation6_spill] sm:$0xff] %v9807_v58  ;;  %v12833_v58 = vld [vmem:[#allocation133_spill] sm:$0xff] }
 0x2c0   :  { %7877 = vset.pattern.permute.xlu1 %v12580_v60 }
 0x2c1   :  { %1118 = vperm.xlu1 %7877, %v9567_v51   ;;  %v9811_v48 = vpop.permute.xlu1 %1718 }
 0x2c5   :  { %7878 = vset.pattern.permute.xlu1 %v12802_v4  ;;  %v9814_v63 = vpop.permute.xlu1 %1722 }
 0x2c6   :  { %1318 = vperm.xlu1 %7878, %v9599_v59  }
 0x2ca   :  { %7879 = vset.pattern.permute.xlu1 %v12791_v15  ;;  %v9818_v24 = vpop.permute.xlu1 %678 }
 0x2cb   :  { %12809 = vst [vmem:[#allocation7_spill] sm:$0xff] %v9818_v24  ;;  %1962 = vperm.xlu1 %7879, %v9631_v36   ;;  %v12814_v24 = vld [vmem:[#allocation147_spill] sm:$0xff] }
 0x2cf   :  { %1966 = vperm.xlu1 %7879, %v9238_v22   ;;  %v9825_v44 = vpop.permute.xlu1 %878 }
 0x2d0   :  { %12810 = vst [vmem:[#allocation5_spill] sm:$0xff] %v9825_v44 }
 0x2d3   :  { %7880 = vset.pattern.permute.xlu1 %v12805_v28 }
 0x2d4   :  { %2281 = vperm.xlu1 %7880, %v2199_v52   ;;  %v9834_v36 = vpop.permute.xlu1 %1522 }
 0x2d5   :  { %12811 = vst [vmem:[#allocation31_spill] sm:$0xff] %v9834_v36 }
 0x2d8   :  { %7881 = vset.pattern.permute.xlu1 %v12799_v43  ;;  %v9837_v22 = vpop.permute.xlu1 %1526 }
 0x2d9   :  { %12812 = vst [vmem:[#allocation57_spill] sm:$0xff] %v9837_v22  ;;  %478 = vperm.xlu1 %7881, %v9842_v2   ;;  %v2212_v22 = vld [vmem:[%s12479_s1 + $0xc0] sm:$0xff] }
 0x2da   :  { %2346 = vperm.xlu0 %7936, %v2212_v22   ;;  %v1386_v22 = vmul.f32 %v9498_v1, %v12833_v58  ;;  %v12838_v58 = vld [vmem:[#allocation122_spill] sm:$0xff] }
 0x2dd   :  { %7883 = vset.pattern.permute.xlu1 %v12594_v50  ;;  %v9846_v54 = vpop.permute.xlu1 %1730 }
 0x2de   :  { %682 = vperm.xlu1 %7883, %v9851_v13  }
 0x2e2   :  { %686 = vperm.xlu1 %7883, %v9766_v32   ;;  %v9855_v52 = vpop.permute.xlu1 %886 }
 0x2e3   :  { %12813 = vst [vmem:[#allocation68_spill] sm:$0xff] %v9855_v52  ;;  %v9871_v52 = vld [vmem:[%s12550_s23 + $0x110] sm:$0xff] }
 0x2e6   :  { %7884 = vset.pattern.permute.xlu1 %v12802_v4 }
 0x2e7   :  { %1330 = vperm.xlu1 %7884, %v12814_v24   ;;  %v9859_v12 = vpop.permute.xlu1 %1090 }
 0x2e8   :  { %12815 = vst [vmem:[#allocation46_spill] sm:$0xff] %v9859_v12 }
 0x2eb   :  { %7885 = vset.pattern.permute.xlu1 %v12595_v62  ;;  %v9862_v9 = vpop.permute.xlu1 %1094 }
 0x2ec   :  { %12816 = vst [vmem:[#allocation78_spill] sm:$0xff] %v9862_v9  ;;  %1530 = vperm.xlu1 %7885, %v9718_v29  }
 0x2f0   :  { %7886 = vset.pattern.permute.xlu1 %v12799_v43  ;;  %v9866_v27 = vpop.permute.xlu1 %1738 }
 0x2f1   :  { %12817 = vst [vmem:[#allocation67_spill] sm:$0xff] %v9866_v27  ;;  %486 = vperm.xlu1 %7886, %v9871_v52  }
 0x2f5   :  { %490 = vperm.xlu1 %7886, %v9877_v37   ;;  %v9880_v44 = vpop.permute.xlu1 %1938 }
 0x2f9   :  { %7887 = vset.pattern.permute.xlu1 %v12594_v50 }
 0x2fa   :  { %694 = vperm.xlu1 %7887, %v9804_v41   ;;  %v9884_v43 = vpop.permute.xlu1 %894 }
 0x2fb   :  { %12818 = vst [vmem:[#allocation89_spill] sm:$0xff] %v9884_v43  ;;  %v12823_v43 = vld [vmem:[#allocation82_spill] sm:$0xff] }
 0x2fc   :  { %v505_v11 = vmul.f32 %v9414_v34, %v12823_v43  ;;  %v12827_v43 = vld [vmem:[#allocation33_spill] sm:$0xff] }
 0x2fd   :  { %v726_v8 = vmul.f32 %v9433_v45, %v12827_v43 }
 0x2fe   :  { %7888 = vset.pattern.permute.xlu1 %v12802_v4  ;;  %v9887_v3 = vpop.permute.xlu1 %898  ;;  %v541_v12 = vadd.f32 %v505_v11, %v285_v30  ;;  %v506_v30 = vmul.f32 %v9414_v34, %v12826_v26  ;;  %v12829_v26 = vld [vmem:[#allocation48_spill] sm:$0xff] }
 0x2ff   :  { %12819 = vst [vmem:[#allocation88_spill] sm:$0xff] %v9887_v3  ;;  %1334 = vperm.xlu1 %7888, %v12794_v7   ;;  %v12824_v7 = vld [vmem:[#allocation91_spill] sm:$0xff] }
 0x300   :  { %v725_v3 = vmul.f32 %v9433_v45, %v12824_v7  ;;  %v12828_v7 = vld [vmem:[#allocation101_spill] sm:$0xff] }
 0x302   :  { %v761_v11 = vadd.f32 %v725_v3, %v541_v12  ;;  %v946_v3 = vmul.f32 %v9449_v18, %v12829_v26 }
 0x303   :  { %7889 = vset.pattern.permute.xlu1 %v12595_v62  ;;  %v9891_v40 = vpop.permute.xlu1 %1102 }
 0x304   :  { %12820 = vst [vmem:[#allocation99_spill] sm:$0xff] %v9891_v40  ;;  %1538 = vperm.xlu1 %7889, %v9599_v59   ;;  %v9907_v40 = vld [vmem:[%s12550_s23 + $0x108] sm:$0xff] }
 0x308   :  { %1542 = vperm.xlu1 %7889, %v12796_v55   ;;  %v9897_v49 = vpop.permute.xlu1 %1742  ;;  %v12825_v55 = vld [vmem:[#allocation8_spill] sm:$0xff] }
 0x309   :  { %12822 = vst [vmem:[#allocation104_spill] sm:$0xff] %v9897_v49  ;;  %v286_v9 = vmul.f32 %v9407_v61, %v12825_v55  ;;  %v945_v49 = vmul.f32 %v9449_v18, %v12828_v7  ;;  %v1165_v7 = vmul.f32 %v9486_v57, %v12830_v14 }
 0x30b   :  { %v542_v55 = vadd.f32 %v506_v30, %v286_v9  ;;  %v981_v12 = vadd.f32 %v945_v49, %v761_v11  ;;  %v12834_v49 = vld [vmem:[#allocation131_spill] sm:$0xff]  ;;  %v12835_v11 = vld [vmem:[#allocation106_spill] sm:$0xff] }
 0x30c   :  { %7890 = vset.pattern.permute.xlu1 %v12594_v50  ;;  %v1606_v14 = vmul.f32 %v9504_v42, %v12835_v11 }
 0x30d   :  { %702 = vperm.xlu1 %7890, %v9907_v40   ;;  %v9910_v53 = vpop.permute.xlu1 %1946  ;;  %v762_v43 = vadd.f32 %v726_v8, %v542_v55  ;;  %v1201_v9 = vadd.f32 %v1165_v7, %v981_v12  ;;  %v1385_v8 = vmul.f32 %v9498_v1, %v12834_v49  ;;  %v1826_v12 = vmul.f32 %v9557_v6, %v12838_v58  ;;  %v2215_v49 = vld [vmem:[%s12479_s1 + $0xd8] sm:$0xff]  ;;  %v2218_v58 = vld [vmem:[%s12479_s1 + $0xf0] sm:$0xff] }
 0x30e   :  { %2361 = vperm.xlu0 %7936, %v2215_v49  }
 0x30f   :  { %v982_v25 = vadd.f32 %v946_v3, %v762_v43  ;;  %v1421_v35 = vadd.f32 %v1385_v8, %v1201_v9  ;;  %v12837_v3 = vld [vmem:[#allocation145_spill] sm:$0xff] }
 0x310   :  { %v1605_v43 = vmul.f32 %v9504_v42, %v12837_v3  ;;  %v12841_v3 = vld [vmem:[#allocation11_spill] sm:$0xff] }
 0x311   :  { %7891 = vset.pattern.permute.xlu1 %v12602_v38  ;;  %v9921_v36 = vpop.permute.xlu1 %1950  ;;  %v1202_v30 = vadd.f32 %v1166_v20, %v982_v25 }
 0x312   :  { %902 = vperm.xlu1 %7891, %v9851_v13   ;;  %v1641_v20 = vadd.f32 %v1605_v43, %v1421_v35  ;;  %v12842_v43 = vld [vmem:[#allocation168_spill] sm:$0xff]  ;;  %2376 = vperm.xlu0 %7936, %v2218_v58   ;;  %v12845_v58 = vld [vmem:[#allocation87_spill] sm:$0xff] }
 0x313   :  { %v1422_v55 = vadd.f32 %v1386_v22, %v1202_v30  ;;  %v12840_v22 = vld [vmem:[#allocation164_spill] sm:$0xff]  ;;  %v2046_v30 = vmul.f32 %v9589_v33, %v9592_v5  ;;  %v287_v5 = vmul.f32 %v9407_v61, %v12842_v43 }
 0x314   :  { %v1825_v9 = vmul.f32 %v9557_v6, %v12840_v22 }
 0x315   :  { %v1642_v7 = vadd.f32 %v1606_v14, %v1422_v55 }
 0x316   :  { %7892 = vset.pattern.permute.xlu1 %v12595_v62  ;;  %v9934_v27 = vpop.permute.xlu1 %466  ;;  %v1861_v8 = vadd.f32 %v1825_v9, %v1641_v20  ;;  %v12843_v20 = vld [vmem:[#allocation34_spill] sm:$0xff] }
 0x317   :  { %12832 = vst [vmem:[#allocation107_spill] sm:$0xff] %v9934_v27  ;;  %1546 = vperm.xlu1 %7892, %v9397_v31   ;;  %v1862_v11 = vadd.f32 %v1826_v12, %v1642_v7  ;;  %v727_v22 = vmul.f32 %v9433_v45, %v12843_v20  ;;  %v508_v20 = vmul.f32 %v9414_v34, %v12845_v58 }
 0x319   :  { %v2082_v35 = vadd.f32 %v2046_v30, %v1862_v11  ;;  %v2272_v30 = vpop.permute.xlu0 %2271  ;;  %v12844_v11 = vld [vmem:[#allocation50_spill] sm:$0xff] }
 0x31b   :  { %1550 = vperm.xlu1 %7892, %v12814_v24   ;;  %v9944_v26 = vpop.permute.xlu1 %1106  ;;  %v2045_v24 = vmul.f32 %v9589_v33, %v9570_v47  ;;  %v507_v47 = vmul.f32 %v9414_v34, %v12841_v3  ;;  %v2125_v12 = vadd.f32 %v9641_v23, %v2082_v35  ;;  %v947_v35 = vmul.f32 %v9449_v18, %v12844_v11  ;;  %v12847_v11 = vld [vmem:[#allocation69_spill] sm:$0xff] }
 0x31c   :  { %12836 = vst [vmem:[#allocation177_spill] sm:$0xff] %v9944_v26 }
 0x31d   :  { %v2081_v55 = vadd.f32 %v2045_v24, %v1861_v8  ;;  %v543_v9 = vadd.f32 %v507_v47, %v287_v5  ;;  %v2220_v24 = vld [vmem:[%s12479_s1 + $0x100] sm:$0xff]  ;;  %v2161_v49 = vmax.f32 %v2125_v12, 0.0  ;;  %v2222_v47 = vld [vmem:[%s12479_s1 + $0x110] sm:$0xff] }
 0x31e   :  { %2386 = vperm.xlu0 %7936, %v2220_v24  }
 0x31f   :  { %7893 = vset.pattern.permute.xlu1 %v12605_v19  ;;  %v2124_v7 = vadd.f32 %v9641_v23, %v2081_v55  ;;  %v763_v3 = vadd.f32 %v727_v22, %v543_v9  ;;  %v2413_v43 = vmul.f32 %v2272_v30, %v2161_v49  ;;  %v1167_v22 = vmul.f32 %v9486_v57, %v12847_v11  ;;  %v12848_v9 = vld [vmem:[#allocation96_spill] sm:$0xff] }
 0x320   :  { %1754 = vperm.xlu1 %7893, %v12789_v39   ;;  %v9952_v25 = vpop.permute.xlu1 %1310  ;;  %v728_v26 = vmul.f32 %v9433_v45, %v12848_v9  ;;  %v12854_v11 = vld [vmem:[#allocation140_spill] sm:$0xff] }
 0x321   :  { %12839 = vst [vmem:[#allocation155_spill] sm:$0xff] %v9952_v25  ;;  %v2160_v8 = vmax.f32 %v2124_v7, 0.0  ;;  %v12846_v7 = vld [vmem:[#allocation10_spill] sm:$0xff]  ;;  %v983_v25 = vadd.f32 %v947_v35, %v763_v3  ;;  %v1387_v9 = vmul.f32 %v9498_v1, %v12854_v11 }
 0x322   :  { %2396 = vperm.xlu0 %7936, %v2222_v47   ;;  %v288_v27 = vmul.f32 %v9407_v61, %v12846_v7 }
 0x323   :  { %v1203_v7 = vadd.f32 %v1167_v22, %v983_v25  ;;  %v12857_v22 = vld [vmem:[#allocation156_spill] sm:$0xff] }
 0x324   :  { %7894 = vset.pattern.permute.xlu1 %v12594_v50  ;;  %v9964_v14 = vpop.permute.xlu1 %1314  ;;  %v544_v49 = vadd.f32 %v508_v20, %v288_v27 }
 0x325   :  { %706 = vperm.xlu1 %7894, %v9871_v52  }
 0x329   :  { %7896 = vset.pattern.permute.xlu1 %v12602_v38  ;;  %v9976_v50 = vpop.permute.xlu1 %1958 }
 0x32a   :  { %910 = vperm.xlu1 %7896, %v9798_v16   ;;  %v7329_v24 = vpop.f32.mrf.mxu0 }
 0x32c   :  { %v10006_v47 = vpop.f32.mrf.mxu0 }
 0x32d   :  { %12851 = vst [vmem:[#allocation161_spill] sm:$0xff] %v10006_v47  ;;  %v1607_v47 = vmul.f32 %v9504_v42, %v12857_v22 }
 0x32e   :  { %914 = vperm.xlu1 %7896, %v9804_v41   ;;  %v2267_v55 = vpop.permute.xlu1 %2266  ;;  %v7330_v20 = vpop.f32.mrf.mxu0 }
 0x32f   :  { %v2412_v5 = vmul.f32 %v2267_v55, %v2160_v8  ;;  %v12850_v8 = vld [vmem:[#allocation105_spill] sm:$0xff] }
 0x330   :  { %v948_v55 = vmul.f32 %v9449_v18, %v12850_v8 }
 0x331   :  { %v2588_v12 = vpack.c.bf16 %v2413_v43, %v2412_v5  ;;  %v764_v43 = vadd.f32 %v728_v26, %v544_v49  ;;  %v12852_v5 = vld [vmem:[#allocation121_spill] sm:$0xff]  ;;  %v1423_v26 = vadd.f32 %v1387_v9, %v1203_v7  ;;  %v12856_v49 = vld [vmem:[#allocation108_spill] sm:$0xff] }
 0x332   :  { %7897 = vset.pattern.permute.xlu1 %v12595_v62  ;;  %v1168_v58 = vmul.f32 %v9486_v57, %v12852_v5  ;;  %v1608_v5 = vmul.f32 %v9504_v42, %v12856_v49  ;;  %v12861_v9 = vld [vmem:[#allocation173_spill] sm:$0xff] }
 0x333   :  { %1558 = vperm.xlu1 %7897, %v9567_v51   ;;  %v10001_v30 = vpop.permute.xlu1 %470  ;;  %7343 = vmatprep.mubr.msk.bf16.mxu0 %vm2465_vm0, %v2588_v12  ;;  %v984_v3 = vadd.f32 %v948_v55, %v764_v43  ;;  %v12855_v12 = vld [vmem:[#allocation141_spill] sm:$0xff]  ;;  %v1643_v43 = vadd.f32 %v1607_v47, %v1423_v26  ;;  %v12863_v47 = vld [vmem:[#allocation144_spill] sm:$0xff] }
 0x334   :  { %12849 = vst [vmem:[#allocation187_spill] sm:$0xff] %v10001_v30  ;;  %v1388_v27 = vmul.f32 %v9498_v1, %v12855_v12  ;;  %v12890_v30 = vld [vmem:[#allocation162_spill] sm:$0xff] }
 0x335   :  { %v1204_v8 = vadd.f32 %v1168_v58, %v984_v3  ;;  %v12860_v58 = vld [vmem:[#allocation123_spill] sm:$0xff] }
 0x336   :  { %v1828_v7 = vmul.f32 %v9557_v6, %v12860_v58 }
 0x337   :  { %7898 = vset.pattern.permute.xlu1 %v12605_v19  ;;  %v10011_v35 = vpop.permute.xlu1 %474  ;;  %v1424_v25 = vadd.f32 %v1388_v27, %v1204_v8  ;;  %v1827_v27 = vmul.f32 %v9557_v6, %v12861_v9  ;;  %v2047_v8 = vmul.f32 %v9589_v33, %v9723_v10 }
 0x338   :  { %12853 = vst [vmem:[#allocation163_spill] sm:$0xff] %v10011_v35  ;;  %1758 = vperm.xlu1 %7898, %v9599_v59   ;;  %v10022_v35 = vpop.f32.mrf.mxu0 }
 0x339   :  { %12858 = vst [vmem:[#allocation147_spill] sm:$0xff] %v10022_v35  ;;  %v1644_v3 = vadd.f32 %v1608_v5, %v1424_v25  ;;  %v1863_v26 = vadd.f32 %v1827_v27, %v1643_v43 }
 0x33b   :  { %v1864_v5 = vadd.f32 %v1828_v7, %v1644_v3  ;;  %v2083_v25 = vadd.f32 %v2047_v8, %v1863_v26  ;;  %v2277_v7 = vpop.permute.xlu0 %2276 }
 0x33c   :  { %7899 = vset.pattern.permute.xlu1 %v12602_v38  ;;  %v10025_v55 = vpop.permute.xlu1 %1118 }
 0x33d   :  { %12859 = vst [vmem:[#allocation166_spill] sm:$0xff] %v10025_v55  ;;  %918 = vperm.xlu1 %7899, %v9842_v2   ;;  %v2126_v9 = vadd.f32 %v9641_v23, %v2083_v25  ;;  %v12889_v55 = vld [vmem:[#allocation71_spill] sm:$0xff] }
 0x33e   :  { %v7337_v11 = vpop.f32.mrf.mxu0 }
 0x33f   :  { %v10028_v12 = vadd.f32 %v7337_v11, %v7329_v24  ;;  %v2048_v24 = vmul.f32 %v9589_v33, %v12863_v47 }
 0x340   :  { %v10036_v49 = vpop.f32.mrf.mxu0 }
 0x341   :  { %12862 = vst [vmem:[#allocation82_spill] sm:$0xff] %v10036_v49  ;;  %922 = vperm.xlu1 %7899, %v9907_v40   ;;  %v10039_v22 = vpop.permute.xlu1 %1318  ;;  %v2084_v58 = vadd.f32 %v2048_v24, %v1864_v5 }
 0x342   :  { %v7338_v11 = vpop.f32.mrf.mxu0 }
 0x343   :  { %v10043_v35 = vadd.f32 %v7338_v11, %v7330_v20  ;;  %v2127_v43 = vadd.f32 %v9641_v23, %v2084_v58  ;;  %v2162_v20 = vmax.f32 %v2126_v9, 0.0  ;;  %v7945_v58 = vld [vmem:[%s12480_s4 + $0x38] sm:$0xff]   ;;  %v2202_v9 = vld [vmem:[%s12479_s1 + $0x70] sm:$0xff] }
 0x344   :  { %7347 = vmatprep.subr.bf16.mxu1 %v7945_v58 }
 0x345   :  { %7900 = vset.pattern.permute.xlu1 %v12580_v60  ;;  %v2163_v3 = vmax.f32 %v2127_v43, 0.0  ;;  %v2414_v8 = vmul.f32 %v2277_v7, %v2162_v20  ;;  %7348 = vmatpush3.bf16.msra.mxu1 %v7945_v58  ;;  %v7946_v20 = vld [vmem:[%s12480_s4 + $0x30] sm:$0xff]   ;;  %v2205_v58 = vld [vmem:[%s12479_s1 + $0x88] sm:$0xff] }
 0x346   :  { %1126 = vperm.xlu1 %7900, %v9766_v32   ;;  %v10047_v10 = vpop.permute.xlu1 %1962  ;;  %7349 = vmatprep.subr.bf16.mxu1 %v7946_v20 }
 0x349   :  { %7350 = vmatpush3.bf16.msra.mxu1 %v7946_v20 }
 0x34a   :  { %7901 = vset.pattern.permute.xlu1 %v12605_v19  ;;  %v10051_v49 = vpop.permute.xlu1 %1966 }
 0x34b   :  { %1766 = vperm.xlu1 %7901, %v9397_v31   ;;  %v2201_v31 = vld [vmem:[%s12479_s1 + $0x68] sm:$0xff] }
 0x34f   :  { %7902 = vset.pattern.permute.xlu1 %v12791_v15  ;;  %v2282_v27 = vpop.permute.xlu1 %2281 }
 0x350   :  { %v2415_v47 = vmul.f32 %v2282_v27, %v2163_v3  ;;  %1970 = vperm.xlu1 %7902, %v9718_v29  }
 0x352   :  { %v2589_v24 = vpack.c.bf16 %v2415_v47, %v2414_v8  ;;  %v8308_v47 = vld [vmem:[%s12550_s23 + $0xc0] sm:$0xff] }
 0x354   :  { %1974 = vperm.xlu1 %7902, %v12789_v39   ;;  %v10058_v26 = vpop.permute.xlu1 %478  ;;  %7344 = vmatmul.mubr.msk.bf16.vlgmr.msra.gmra.mxu0 %vm2465_vm0, %v2589_v24  ;;  %v8309_v24 = vld [vmem:[%s12550_s23 + $0xc8] sm:$0xff] }
 0x355   :  { %12864 = vst [vmem:[#allocation91_spill] sm:$0xff] %v10058_v26  ;;  %v12886_v26 = vld [vmem:[#allocation51_spill] sm:$0xff] }
 0x358   :  { %7903 = vset.pattern.permute.xlu1 %v12805_v28 }
 0x359   :  { %2291 = vperm.xlu1 %7903, %v2201_v31   ;;  %v10065_v11 = vpop.permute.xlu1 %682 }
 0x35a   :  { %12865 = vst [vmem:[#allocation8_spill] sm:$0xff] %v10065_v11  ;;  %v12882_v11 = vld [vmem:[#allocation12_spill] sm:$0xff] }
 0x35d   :  { %7904 = vset.pattern.permute.xlu1 %v12602_v38  ;;  %v10068_v5 = vpop.permute.xlu1 %686 }
 0x35e   :  { %12866 = vst [vmem:[#allocation9_spill] sm:$0xff] %v10068_v5  ;;  %926 = vperm.xlu1 %7904, %v9871_v52  }
 0x362   :  { %7906 = vset.pattern.permute.xlu1 %v12580_v60  ;;  %v10072_v29 = vpop.permute.xlu1 %1330 }
 0x363   :  { %12867 = vst [vmem:[#allocation33_spill] sm:$0xff] %v10072_v29  ;;  %1130 = vperm.xlu1 %7906, %v9798_v16   ;;  %v12888_v29 = vld [vmem:[#allocation143_spill] sm:$0xff] }
 0x367   :  { %1134 = vperm.xlu1 %7906, %v9804_v41   ;;  %v10076_v39 = vpop.permute.xlu1 %1530 }
 0x36b   :  { %7907 = vset.pattern.permute.xlu1 %v12605_v19 }
 0x36c   :  { %1778 = vperm.xlu1 %7907, %v9567_v51   ;;  %v10080_v25 = vpop.permute.xlu1 %486 }
 0x36d   :  { %12868 = vst [vmem:[#allocation101_spill] sm:$0xff] %v10080_v25 }
 0x370   :  { %7908 = vset.pattern.permute.xlu1 %v12791_v15  ;;  %v10083_v38 = vpop.permute.xlu1 %490 }
 0x371   :  { %12869 = vst [vmem:[#allocation48_spill] sm:$0xff] %v10083_v38  ;;  %1978 = vperm.xlu1 %7908, %v9599_v59   ;;  %v2203_v59 = vld [vmem:[%s12479_s1 + $0x78] sm:$0xff] }
 0x375   :  { %7909 = vset.pattern.permute.xlu1 %v12805_v28  ;;  %v10093_v43 = vpop.permute.xlu1 %694 }
 0x376   :  { %12870 = vst [vmem:[#allocation112_spill] sm:$0xff] %v10093_v43  ;;  %2296 = vperm.xlu1 %7909, %v2202_v9  }
 0x37a   :  { %2301 = vperm.xlu1 %7909, %v2203_v59   ;;  %v10101_v7 = vpop.permute.xlu1 %1334 }
 0x37e   :  { %7910 = vset.pattern.permute.xlu1 %v12580_v60 }
 0x37f   :  { %1142 = vperm.xlu1 %7910, %v9907_v40   ;;  %v10105_v3 = vpop.permute.xlu1 %1538 }
 0x383   :  { %7911 = vset.pattern.permute.xlu1 %v12802_v4  ;;  %v10108_v27 = vpop.permute.xlu1 %1542 }
 0x384   :  { %1342 = vperm.xlu1 %7911, %v9851_v13  }
 0x388   :  { %7912 = vset.pattern.permute.xlu1 %v12791_v15  ;;  %v10112_v8 = vpop.permute.xlu1 %702 }
 0x389   :  { %12871 = vst [vmem:[#allocation114_spill] sm:$0xff] %v10112_v8  ;;  %1986 = vperm.xlu1 %7912, %v8308_v47  }
 0x38d   :  { %1990 = vperm.xlu1 %7912, %v8309_v24   ;;  %v10120_v31 = vpop.permute.xlu1 %902  ;;  %v7947_v24 = vld [vmem:[%s12480_s4 + $0x48] sm:$0xff]  }
 0x38e   :  { %12872 = vst [vmem:[#allocation133_spill] sm:$0xff] %v10120_v31  ;;  %7355 = vmatprep.subr.bf16.mxu0 %v7947_v24  ;;  %v12880_v31 = vld [vmem:[#allocation110_spill] sm:$0xff] }
 0x38f   :  { %7356 = vmatpush3.bf16.msra.mxu0 %v7947_v24  ;;  %v12879_v24 = vld [vmem:[#allocation172_spill] sm:$0xff]  ;;  %v509_v43 = vmul.f32 %v9414_v34, %v12880_v31  ;;  %v949_v31 = vmul.f32 %v9449_v18, %v12886_v26 }
 0x391   :  { %7913 = vset.pattern.permute.xlu1 %v12805_v28 }
 0x392   :  { %2311 = vperm.xlu1 %7913, %v2205_v58   ;;  %v10126_v9 = vpop.permute.xlu1 %1546  ;;  %v7948_v58 = vld [vmem:[%s12480_s4 + $0x40] sm:$0xff]  }
 0x393   :  { %12873 = vst [vmem:[#allocation131_spill] sm:$0xff] %v10126_v9  ;;  %7357 = vmatprep.subr.bf16.mxu0 %v7948_v58 }
 0x394   :  { %7358 = vmatpush3.bf16.msra.mxu0 %v7948_v58 }
 0x396   :  { %7914 = vset.pattern.permute.xlu1 %v12580_v60  ;;  %v10129_v20 = vpop.permute.xlu1 %1550 }
 0x397   :  { %12874 = vst [vmem:[#allocation106_spill] sm:$0xff] %v10129_v20  ;;  %1146 = vperm.xlu1 %7914, %v9871_v52  }
 0x39b   :  { %7916 = vset.pattern.permute.xlu1 %v12802_v4  ;;  %v10133_v59 = vpop.permute.xlu1 %1754 }
 0x39c   :  { %1350 = vperm.xlu1 %7916, %v9798_v16  }
 0x3a0   :  { %1354 = vperm.xlu1 %7916, %v9804_v41   ;;  %v10137_v47 = vpop.permute.xlu1 %706 }
 0x3a1   :  { %12875 = vst [vmem:[#allocation145_spill] sm:$0xff] %v10137_v47  ;;  %v2206_v47 = vld [vmem:[%s12479_s1 + $0x90] sm:$0xff] }
 0x3a4   :  { %7917 = vset.pattern.permute.xlu1 %v12791_v15 }
 0x3a5   :  { %1998 = vperm.xlu1 %7917, %v9567_v51   ;;  %v10144_v60 = vpop.permute.xlu1 %910 }
 0x3a6   :  { %12876 = vst [vmem:[#allocation122_spill] sm:$0xff] %v10144_v60  ;;  %v289_v60 = vmul.f32 %v9407_v61, %v12879_v24  ;;  %v12885_v24 = vld [vmem:[#allocation36_spill] sm:$0xff] }
 0x3a7   :  { %v730_v5 = vmul.f32 %v9433_v45, %v12885_v24  ;;  %v1170_v24 = vmul.f32 %v9486_v57, %v12890_v30 }
 0x3a8   :  { %v545_v25 = vadd.f32 %v509_v43, %v289_v60 }
 0x3a9   :  { %7918 = vset.pattern.permute.xlu1 %v12805_v28  ;;  %v10153_v8 = vpop.permute.xlu1 %914 }
 0x3aa   :  { %12877 = vst [vmem:[#allocation164_spill] sm:$0xff] %v10153_v8  ;;  %2316 = vperm.xlu1 %7918, %v2206_v47   ;;  %v290_v47 = vmul.f32 %v9407_v61, %v12882_v11  ;;  %v12883_v8 = vld [vmem:[#allocation13_spill] sm:$0xff] }
 0x3ab   :  { %v510_v20 = vmul.f32 %v9414_v34, %v12883_v8  ;;  %v950_v8 = vmul.f32 %v9449_v18, %v12888_v29 }
 0x3ad   :  { %v546_v11 = vadd.f32 %v510_v20, %v290_v47  ;;  %v12892_v20 = vld [vmem:[#allocation90_spill] sm:$0xff] }
 0x3ae   :  { %7919 = vset.pattern.permute.xlu1 %v12802_v4  ;;  %v10156_v51 = vpop.permute.xlu1 %1558 }
 0x3af   :  { %12878 = vst [vmem:[#allocation11_spill] sm:$0xff] %v10156_v51  ;;  %1358 = vperm.xlu1 %7919, %v9842_v2   ;;  %v12884_v51 = vld [vmem:[#allocation129_spill] sm:$0xff]  ;;  %v766_v38 = vadd.f32 %v730_v5, %v546_v11  ;;  %v1390_v5 = vmul.f32 %v9498_v1, %v12892_v20 }
 0x3b0   :  { %v729_v9 = vmul.f32 %v9433_v45, %v12884_v51  ;;  %v1169_v51 = vmul.f32 %v9486_v57, %v12889_v55  ;;  %v12893_v55 = vld [vmem:[#allocation109_spill] sm:$0xff] }
 0x3b1   :  { %v1609_v11 = vmul.f32 %v9504_v42, %v12893_v55 }
 0x3b2   :  { %v765_v43 = vadd.f32 %v729_v9, %v545_v25  ;;  %v986_v25 = vadd.f32 %v950_v8, %v766_v38  ;;  %v1389_v9 = vmul.f32 %v9498_v1, %v9543_v56 }
 0x3b3   :  { %1362 = vperm.xlu1 %7919, %v9907_v40   ;;  %v10164_v58 = vpop.permute.xlu1 %1758 }
 0x3b4   :  { %12881 = vst [vmem:[#allocation168_spill] sm:$0xff] %v10164_v58  ;;  %v985_v58 = vadd.f32 %v949_v31, %v765_v43  ;;  %v1206_v29 = vadd.f32 %v1170_v24, %v986_v25  ;;  %v1829_v31 = vmul.f32 %v9557_v6, %v9811_v48  ;;  %v12895_v24 = vld [vmem:[#allocation146_spill] sm:$0xff] }
 0x3b5   :  { %v2050_v25 = vmul.f32 %v9589_v33, %v12895_v24 }
 0x3b6   :  { %v1205_v47 = vadd.f32 %v1169_v51, %v985_v58  ;;  %v1426_v56 = vadd.f32 %v1390_v5, %v1206_v29  ;;  %v1830_v58 = vmul.f32 %v9557_v6, %v9814_v63  ;;  %v2049_v51 = vmul.f32 %v9589_v33, %v9880_v44 }
 0x3b7   :  { %7920 = vset.pattern.permute.xlu1 %v12595_v62 }
 0x3b8   :  { %1566 = vperm.xlu1 %7920, %v9766_v32   ;;  %v10178_v60 = vpop.permute.xlu1 %918  ;;  %v1425_v30 = vadd.f32 %v1389_v9, %v1205_v47  ;;  %v12896_v47 = vld [vmem:[#allocation175_spill] sm:$0xff] }
 0x3b9   :  { %12887 = vst [vmem:[#allocation34_spill] sm:$0xff] %v10178_v60  ;;  %v291_v33 = vmul.f32 %v9407_v61, %v12896_v47 }
 0x3ba   :  { %v1645_v8 = vadd.f32 %v1609_v11, %v1425_v30  ;;  %v12897_v11 = vld [vmem:[#allocation119_spill] sm:$0xff] }
 0x3bb   :  { %v511_v30 = vmul.f32 %v9414_v34, %v12897_v11 }
 0x3bc   :  { %7921 = vset.pattern.permute.xlu1 %v12802_v4  ;;  %v10187_v26 = vpop.permute.xlu1 %922  ;;  %v1610_v4 = vmul.f32 %v9504_v42, %v9751_v21 }
 0x3bd   :  { %12891 = vst [vmem:[#allocation50_spill] sm:$0xff] %v10187_v26  ;;  %1366 = vperm.xlu1 %7921, %v9871_v52  }
 0x3be   :  { %v1646_v43 = vadd.f32 %v1610_v4, %v1426_v56  ;;  %v547_v56 = vadd.f32 %v511_v30, %v291_v33  ;;  %v12905_v30 = vld [vmem:[#allocation153_spill] sm:$0xff] }
 0x3c0   :  { %v1866_v9 = vadd.f32 %v1830_v58, %v1646_v43 }
 0x3c1   :  { %7923 = vset.pattern.permute.xlu1 %v12595_v62  ;;  %v10199_v38 = vpop.permute.xlu1 %1126 }
 0x3c2   :  { %12894 = vst [vmem:[#allocation87_spill] sm:$0xff] %v10199_v38  ;;  %1570 = vperm.xlu1 %7923, %v9798_v16   ;;  %v1865_v16 = vadd.f32 %v1829_v31, %v1645_v8  ;;  %v2086_v48 = vadd.f32 %v2050_v25, %v1866_v9  ;;  %v2287_v31 = vpop.permute.xlu0 %2286  ;;  %v12898_v8 = vld [vmem:[#allocation120_spill] sm:$0xff] }
 0x3c4   :  { %v2085_v20 = vadd.f32 %v2049_v51, %v1865_v16  ;;  %v2129_v29 = vadd.f32 %v9641_v23, %v2086_v48  ;;  %v12899_v51 = vld [vmem:[#allocation137_spill] sm:$0xff]  ;;  %v12900_v16 = vld [vmem:[#allocation14_spill] sm:$0xff] }
 0x3c5   :  { %v731_v24 = vmul.f32 %v9433_v45, %v12899_v51  ;;  %v292_v9 = vmul.f32 %v9407_v61, %v12900_v16 }
 0x3c6   :  { %1574 = vperm.xlu1 %7923, %v9804_v41   ;;  %v10209_v21 = vpop.permute.xlu1 %1766  ;;  %v2128_v63 = vadd.f32 %v9641_v23, %v2085_v20  ;;  %v2165_v4 = vmax.f32 %v2129_v29, 0.0  ;;  %v512_v23 = vmul.f32 %v9414_v34, %v12898_v8  ;;  %v12901_v20 = vld [vmem:[#allocation52_spill] sm:$0xff]  ;;  %v12903_v29 = vld [vmem:[#allocation37_spill] sm:$0xff] }
 0x3c7   :  { %v767_v48 = vadd.f32 %v731_v24, %v547_v56  ;;  %v732_v47 = vmul.f32 %v9433_v45, %v12903_v29  ;;  %v12908_v8 = vld [vmem:[#allocation92_spill] sm:$0xff]  ;;  %v1392_v24 = vmul.f32 %v9498_v1, %v9708_v0 }
 0x3c8   :  { %v2164_v55 = vmax.f32 %v2128_v63, 0.0  ;;  %v548_v33 = vadd.f32 %v512_v23, %v292_v9  ;;  %v1391_v23 = vmul.f32 %v9498_v1, %v12908_v8  ;;  %v1611_v9 = vmul.f32 %v9504_v42, %v9780_v46 }
 0x3c9   :  { %v1832_v46 = vmul.f32 %v9557_v6, %v9846_v54  ;;  %v2208_v54 = vld [vmem:[%s12479_s1 + $0xa0] sm:$0xff] }
 0x3ca   :  { %1582 = vperm.xlu1 %7923, %v9907_v40   ;;  %v2416_v43 = vmul.f32 %v2287_v31, %v2164_v55  ;;  %v12904_v55 = vld [vmem:[#allocation72_spill] sm:$0xff]  ;;  %v768_v56 = vadd.f32 %v732_v47, %v548_v33  ;;  %v12911_v33 = vld [vmem:[#allocation15_spill] sm:$0xff] }
 0x3cb   :  { %v10214_v5 = vpop.permute.xlu1 %1970  ;;  %v1171_v11 = vmul.f32 %v9486_v57, %v12904_v55  ;;  %v513_v55 = vmul.f32 %v9414_v34, %v12911_v33 }
 0x3ce   :  { %7925 = vset.pattern.permute.xlu1 %v12605_v19 }
 0x3cf   :  { %1782 = vperm.xlu1 %7925, %v9851_v13   ;;  %v10219_v44 = vpop.permute.xlu1 %1974 }
 0x3d3   :  { %7926 = vset.pattern.permute.xlu1 %v12595_v62  ;;  %v951_v62 = vmul.f32 %v9449_v18, %v12901_v20 }
 0x3d4   :  { %1586 = vperm.xlu1 %7926, %v9871_v52   ;;  %v2292_v58 = vpop.permute.xlu1 %2291 }
 0x3d5   :  { %v2417_v13 = vmul.f32 %v2292_v58, %v2165_v4  ;;  %v952_v4 = vmul.f32 %v9449_v18, %v12905_v30  ;;  %v987_v31 = vadd.f32 %v951_v62, %v767_v48  ;;  %v12906_v58 = vld [vmem:[#allocation170_spill] sm:$0xff]  ;;  %v12910_v62 = vld [vmem:[#allocation111_spill] sm:$0xff] }
 0x3d6   :  { %v1612_v48 = vmul.f32 %v9504_v42, %v12910_v62  ;;  %v12912_v30 = vld [vmem:[#allocation179_spill] sm:$0xff] }
 0x3d7   :  { %v2666_v25 = vpack.c.bf16 %v2417_v13, %v2416_v43  ;;  %v1172_v13 = vmul.f32 %v9486_v57, %v12906_v58  ;;  %v988_v51 = vadd.f32 %v952_v4, %v768_v56  ;;  %v293_v0 = vmul.f32 %v9407_v61, %v12912_v30 }
 0x3d8   :  { %1590 = vperm.xlu1 %7926, %v9877_v37  }
 0x3d9   :  { %v10237_v63 = vpop.permute.xlu1 %926  ;;  %7351 = vmatprep.mubr.msk.bf16.mxu1 %vm2465_vm0, %v2666_v25  ;;  %v1207_v25 = vadd.f32 %v1171_v11, %v987_v31  ;;  %v1208_v16 = vadd.f32 %v1172_v13, %v988_v51  ;;  %v12913_v11 = vld [vmem:[#allocation124_spill] sm:$0xff]  ;;  %v10278_v13 = vld [vmem:[%s12481_s2 + $0x8] ss:$0 sm:$0xff]  ;;  %v12915_v51 = vld [vmem:[#allocation38_spill] sm:$0xff] }
 0x3da   :  { %12902 = vst [vmem:[#allocation10_spill] sm:$0xff] %v10237_v63  ;;  %v1831_v4 = vmul.f32 %v9557_v6, %v12913_v11  ;;  %v2051_v8 = vmul.f32 %v10278_v13, %v9910_v53  ;;  %v12918_v11 = vld [vmem:[#allocation16_spill] sm:$0xff]  ;;  %v13005_v63 = vld [vmem:[#allocation79_spill] sm:$0xff] }
 0x3db   :  { %v1428_v29 = vadd.f32 %v1392_v24, %v1208_v16  ;;  %v1427_v47 = vadd.f32 %v1391_v23, %v1207_v25  ;;  %v2052_v23 = vmul.f32 %v10278_v13, %v9921_v36  ;;  %v549_v24 = vadd.f32 %v513_v55, %v293_v0  ;;  %v10301_v55 = vld [vmem:[%s12482_s3] ss:$0 sm:$0xff] }
 0x3dc   :  { %7927 = vset.pattern.permute.xlu1 %v12605_v19 }
 0x3dd   :  { %1794 = vperm.xlu1 %7927, %v9804_v41   ;;  %v1647_v31 = vadd.f32 %v1611_v9, %v1427_v47  ;;  %v1648_v58 = vadd.f32 %v1612_v48, %v1428_v29  ;;  %v12916_v29 = vld [vmem:[#allocation126_spill] sm:$0xff] }
 0x3de   :  { %v10250_v43 = vpop.permute.xlu1 %1130  ;;  %v514_v36 = vmul.f32 %v9414_v34, %v12916_v29  ;;  %v12917_v47 = vld [vmem:[#allocation158_spill] sm:$0xff]  ;;  %v7949_v29 = vld [vmem:[%s12480_s4 + $0x58] sm:$0xff]  }
 0x3df   :  { %12907 = vst [vmem:[#allocation69_spill] sm:$0xff] %v10250_v43  ;;  %v1868_v25 = vadd.f32 %v1832_v46, %v1648_v58  ;;  %v1867_v16 = vadd.f32 %v1831_v4, %v1647_v31  ;;  %v953_v33 = vmul.f32 %v9449_v18, %v12917_v47  ;;  %v294_v4 = vmul.f32 %v9407_v61, %v12918_v11  ;;  %v12919_v31 = vld [vmem:[#allocation74_spill] sm:$0xff]  ;;  %v13028_v43 = vld [vmem:[#allocation117_spill] sm:$0xff] }
 0x3e0   :  { %v1173_v46 = vmul.f32 %v9486_v57, %v12919_v31  ;;  %v12920_v58 = vld [vmem:[#allocation142_spill] sm:$0xff]  ;;  %7363 = vmatprep.subr.bf16.mxu1 %v7949_v29  ;;  %v10656_v38 = vmul.f32 %v9504_v42, %v13028_v43  ;;  %v1620_v43 = vmul.f32 %v9504_v42, %v10108_v27 }
 0x3e1   :  { %1802 = vperm.xlu1 %7927, %v9907_v40   ;;  %v2087_v9 = vadd.f32 %v2051_v8, %v1867_v16  ;;  %v2088_v62 = vadd.f32 %v2052_v23, %v1868_v25  ;;  %v550_v23 = vadd.f32 %v514_v36, %v294_v4  ;;  %v12923_v47 = vld [vmem:[#allocation6_spill] sm:$0xff] }
 0x3e2   :  { %v10259_v20 = vpop.permute.xlu1 %1134  ;;  %v12924_v31 = vld [vmem:[#allocation94_spill] sm:$0xff]  ;;  %13029 = vst [vmem:[#allocation170_spill] sm:$0xff] %v10656_v38 }
 0x3e3   :  { %12909 = vst [vmem:[#allocation96_spill] sm:$0xff] %v10259_v20  ;;  %v2130_v30 = vadd.f32 %v10301_v55, %v2087_v9  ;;  %v2131_v0 = vadd.f32 %v10301_v55, %v2088_v62  ;;  %v13003_v20 = vld [vmem:[#allocation76_spill] sm:$0xff] }
 0x3e5   :  { %7929 = vset.pattern.permute.xlu1 %v12791_v15  ;;  %v2167_v25 = vmax.f32 %v2131_v0, 0.0  ;;  %v1394_v0 = vmul.f32 %v9498_v1, %v12924_v31 }
 0x3e6   :  { %2006 = vperm.xlu1 %7929, %v9766_v32   ;;  %v733_v32 = vmul.f32 %v9433_v45, %v12915_v51 }
 0x3e7   :  { %v10273_v56 = vpop.permute.xlu1 %1778 }
 0x3e8   :  { %12914 = vst [vmem:[#allocation105_spill] sm:$0xff] %v10273_v56  ;;  %v769_v53 = vadd.f32 %v733_v32, %v549_v24  ;;  %v1393_v32 = vmul.f32 %v9498_v1, %v9741_v17  ;;  %v2166_v24 = vmax.f32 %v2130_v30, 0.0  ;;  %v1619_v56 = vmul.f32 %v9504_v42, %v10105_v3 }
 0x3ea   :  { %7930 = vset.pattern.permute.xlu1 %v12805_v28  ;;  %v989_v8 = vadd.f32 %v953_v33, %v769_v53  ;;  %v12922_v53 = vld [vmem:[#allocation186_spill] sm:$0xff]  ;;  %v1613_v33 = vmul.f32 %v9504_v42, %v12923_v47 }
 0x3eb   :  { %2326 = vperm.xlu1 %7930, %v2208_v54   ;;  %v12921_v54 = vld [vmem:[#allocation160_spill] sm:$0xff]  ;;  %v1174_v36 = vmul.f32 %v9486_v57, %v12922_v53 }
 0x3ec   :  { %v10290_v48 = vpop.permute.xlu1 %1978  ;;  %v954_v51 = vmul.f32 %v9449_v18, %v12921_v54  ;;  %v1209_v9 = vadd.f32 %v1173_v46, %v989_v8 }
 0x3ee   :  { %v1429_v30 = vadd.f32 %v1393_v32, %v1209_v9  ;;  %v12927_v32 = vld [vmem:[#allocation113_spill] sm:$0xff] }
 0x3ef   :  { %7931 = vset.pattern.permute.xlu1 %v12605_v19  ;;  %v734_v19 = vmul.f32 %v9433_v45, %v12920_v58  ;;  %v7950_v58 = vld [vmem:[%s12480_s4 + $0x50] sm:$0xff]  }
 0x3f0   :  { %1806 = vperm.xlu1 %7931, %v9871_v52  }
 0x3f1   :  { %v2297_v52 = vpop.permute.xlu1 %2296  ;;  %v770_v16 = vadd.f32 %v734_v19, %v550_v23  ;;  %v12925_v19 = vld [vmem:[#allocation125_spill] sm:$0xff]  ;;  %v1649_v23 = vadd.f32 %v1613_v33, %v1429_v30  ;;  %v12932_v30 = vld [vmem:[#allocation183_spill] sm:$0xff] }
 0x3f2   :  { %v2418_v11 = vmul.f32 %v2297_v52, %v2166_v24  ;;  %v1833_v8 = vmul.f32 %v9557_v6, %v12925_v19  ;;  %v295_v31 = vmul.f32 %v9407_v61, %v12932_v30  ;;  %v12939_v30 = vld [vmem:[#allocation165_spill] sm:$0xff] }
 0x3f3   :  { %v990_v17 = vadd.f32 %v954_v51, %v770_v16  ;;  %v2210_v51 = vld [vmem:[%s12479_s1 + $0xb0] sm:$0xff] }
 0x3f4   :  { %1810 = vperm.xlu1 %7931, %v9877_v37   ;;  %v1869_v9 = vadd.f32 %v1833_v8, %v1649_v23  ;;  %v12934_v8 = vld [vmem:[#allocation18_spill] sm:$0xff] }
 0x3f5   :  { %v2302_v62 = vpop.permute.xlu1 %2301  ;;  %v1210_v52 = vadd.f32 %v1174_v36, %v990_v17  ;;  %v12935_v23 = vld [vmem:[#allocation150_spill] sm:$0xff] }
 0x3f6   :  { %v2419_v4 = vmul.f32 %v2302_v62, %v2167_v25  ;;  %v12928_v25 = vld [vmem:[#allocation149_spill] sm:$0xff]  ;;  %v12929_v62 = vld [vmem:[#allocation67_spill] sm:$0xff] }
 0x3f7   :  { %v1430_v24 = vadd.f32 %v1394_v0, %v1210_v52  ;;  %v2053_v16 = vmul.f32 %v10278_v13, %v12928_v25  ;;  %v1834_v53 = vmul.f32 %v9557_v6, %v12929_v62  ;;  %v296_v52 = vmul.f32 %v9407_v61, %v12934_v8  ;;  %v12936_v25 = vld [vmem:[#allocation167_spill] sm:$0xff]  ;;  %v12937_v62 = vld [vmem:[#allocation148_spill] sm:$0xff] }
 0x3f8   :  { %v2667_v46 = vpack.c.bf16 %v2419_v4, %v2418_v11  ;;  %7932 = vset.pattern.permute.xlu1 %v12791_v15  ;;  %v12931_v4 = vld [vmem:[#allocation17_spill] sm:$0xff] }
 0x3f9   :  { %2014 = vperm.xlu1 %7932, %v9804_v41   ;;  %v1614_v41 = vmul.f32 %v9504_v42, %v12927_v32  ;;  %v2089_v33 = vadd.f32 %v2053_v16, %v1869_v9  ;;  %v515_v17 = vmul.f32 %v9414_v34, %v12931_v4  ;;  %v956_v16 = vmul.f32 %v9449_v18, %v12936_v25  ;;  %v2213_v9 = vld [vmem:[%s12479_s1 + $0xc8] sm:$0xff] }
 0x3fa   :  { %v10332_v54 = vpop.permute.xlu1 %1142  ;;  %7352 = vmatmul.mubr.msk.bf16.vlgmr.msra.gmra.mxu1 %vm2465_vm0, %v2667_v46  ;;  %v12942_v25 = vld [vmem:[#allocation57_spill] sm:$0xff] }
 0x3fb   :  { %12926 = vst [vmem:[#allocation121_spill] sm:$0xff] %v10332_v54  ;;  %7364 = vmatpush3.bf16.msra.mxu1 %v7949_v29  ;;  %v1650_v47 = vadd.f32 %v1614_v41, %v1430_v24  ;;  %v2054_v29 = vmul.f32 %v10278_v13, %v9976_v50  ;;  %v2132_v50 = vadd.f32 %v10301_v55, %v2089_v33  ;;  %v2307_v33 = vpop.permute.xlu0 %2306  ;;  %v13002_v54 = vld [vmem:[#allocation62_spill] sm:$0xff] }
 0x3fc   :  { %7365 = vmatprep.subr.bf16.mxu1 %v7950_v58 }
 0x3fd   :  { %7933 = vset.pattern.permute.xlu1 %v12805_v28  ;;  %v1870_v11 = vadd.f32 %v1834_v53, %v1650_v47  ;;  %v735_v53 = vmul.f32 %v9433_v45, %v12937_v62  ;;  %v2168_v47 = vmax.f32 %v2132_v50, 0.0  ;;  %v12940_v50 = vld [vmem:[#allocation86_spill] sm:$0xff]  ;;  %v12943_v62 = vld [vmem:[#allocation93_spill] sm:$0xff] }
 0x3fe   :  { %2336 = vperm.xlu1 %7933, %v2210_v51   ;;  %v551_v51 = vadd.f32 %v515_v17, %v295_v31  ;;  %v955_v31 = vmul.f32 %v9449_v18, %v12939_v30  ;;  %v1175_v8 = vmul.f32 %v9486_v57, %v12940_v50  ;;  %v10396_v30 = vpop.f32.mrf.mxu0  ;;  %v12949_v50 = vld [vmem:[#allocation104_spill] sm:$0xff] }
 0x3ff   :  { %v10345_v36 = vpop.permute.xlu1 %1342  ;;  %7366 = vmatpush3.bf16.msra.mxu1 %v7950_v58  ;;  %v2090_v0 = vadd.f32 %v2054_v29, %v1870_v11  ;;  %v12933_v58 = vld [vmem:[#allocation135_spill] sm:$0xff]  ;;  %12944 = vst [vmem:[#allocation141_spill] sm:$0xff] %v10396_v30 }
 0x400   :  { %12930 = vst [vmem:[#allocation140_spill] sm:$0xff] %v10345_v36  ;;  %v516_v19 = vmul.f32 %v9414_v34, %v12933_v58  ;;  %v12938_v11 = vld [vmem:[#allocation59_spill] sm:$0xff] }
 0x401   :  { %v2133_v41 = vadd.f32 %v10301_v55, %v2090_v0  ;;  %v1176_v4 = vmul.f32 %v9486_v57, %v12938_v11 }
 0x402   :  { %7934 = vset.pattern.permute.xlu1 %v12791_v15  ;;  %v552_v24 = vadd.f32 %v516_v19, %v296_v52  ;;  %v10383_v19 = vld [vmem:[%s12480_s4 + $0x68] sm:$0xff]   ;;  %v12941_v52 = vld [vmem:[#allocation75_spill] sm:$0xff] }
 0x403   :  { %2018 = vperm.xlu1 %7934, %v9842_v2   ;;  %v736_v2 = vmul.f32 %v9433_v45, %v12935_v23  ;;  %v2169_v17 = vmax.f32 %v2133_v41, 0.0  ;;  %v1396_v23 = vmul.f32 %v9498_v1, %v12941_v52  ;;  %7371 = vmatprep.subr.bf16.mxu0 %v10383_v19  ;;  %v2056_v52 = vmul.f32 %v10278_v13, %v10051_v49  ;;  %v10431_v49 = vld [vmem:[%s12480_s4 + $0x78] sm:$0xff]  }
 0x404   :  { %v10355_v46 = vpop.permute.xlu1 %1986  ;;  %12953 = vst [vmem:[#allocation172_spill] sm:$0xff] %v10431_v49  ;;  %7379 = vmatprep.subr.bf16.mxu1 %v10431_v49  ;;  %v13042_v49 = vld [vmem:[#allocation139_spill] sm:$0xff] }
 0x405   :  { %v772_v29 = vadd.f32 %v736_v2, %v552_v24  ;;  %v2420_v2 = vmul.f32 %v2307_v33, %v2168_v47  ;;  %v2214_v33 = vld [vmem:[%s12479_s1 + $0xd0] sm:$0xff] }
 0x407   :  { %2022 = vperm.xlu1 %7934, %v9907_v40   ;;  %v771_v40 = vadd.f32 %v735_v53, %v551_v51  ;;  %v992_v0 = vadd.f32 %v956_v16, %v772_v29  ;;  %v1616_v16 = vmul.f32 %v9504_v42, %v12942_v25  ;;  %v1395_v53 = vmul.f32 %v9498_v1, %v12943_v62 }
 0x408   :  { %v10365_v32 = vpop.permute.xlu1 %1990 }
 0x409   :  { %v991_v41 = vadd.f32 %v955_v31, %v771_v40  ;;  %v1212_v24 = vadd.f32 %v1176_v4, %v992_v0  ;;  %v12946_v40 = vld [vmem:[#allocation127_spill] sm:$0xff] }
 0x40a   :  { %v12947_v4 = vld [vmem:[#allocation31_spill] sm:$0xff] }
 0x40b   :  { %7935 = vset.pattern.permute.xlu1 %v12805_v28  ;;  %v1211_v29 = vadd.f32 %v1175_v8, %v991_v41  ;;  %v1432_v11 = vadd.f32 %v1396_v23, %v1212_v24  ;;  %v1835_v8 = vmul.f32 %v9557_v6, %v12949_v50  ;;  %v2055_v41 = vmul.f32 %v10278_v13, %v10047_v10 }
 0x40c   :  { %2351 = vperm.xlu1 %7935, %v2213_v9  }
 0x40d   :  { %v2312_v58 = vpop.permute.xlu1 %2311 }
 0x40e   :  { %v2421_v51 = vmul.f32 %v2312_v58, %v2169_v17  ;;  %v1652_v17 = vadd.f32 %v1616_v16, %v1432_v11  ;;  %v1431_v58 = vadd.f32 %v1395_v53, %v1211_v29  ;;  %v2217_v29 = vld [vmem:[%s12479_s1 + $0xe8] sm:$0xff]  ;;  %v2219_v11 = vld [vmem:[%s12479_s1 + $0xf8] sm:$0xff] }
 0x410   :  { %v2744_v9 = vpack.c.bf16 %v2421_v51, %v2420_v2  ;;  %7937 = vset.pattern.permute.xlu1 %v12791_v15  ;;  %v1836_v15 = vmul.f32 %v9557_v6, %v12946_v40  ;;  %v2216_v51 = vld [vmem:[%s12479_s1 + $0xe0] sm:$0xff] }
 0x411   :  { %2030 = vperm.xlu1 %7937, %v9877_v37   ;;  %v1615_v37 = vmul.f32 %v9504_v42, %v12947_v4  ;;  %v2322_v4 = vpop.permute.xlu0 %2321 }
 0x412   :  { %v10398_v47 = vpop.permute.xlu1 %1146  ;;  %7359 = vmatprep.mubr.msk.bf16.mxu0 %vm2465_vm0, %v2744_v9  ;;  %v1872_v24 = vadd.f32 %v1836_v15, %v1652_v17 }
 0x413   :  { %12945 = vst [vmem:[#allocation108_spill] sm:$0xff] %v10398_v47 }
 0x414   :  { %v7345_v31 = vpop.f32.mrf.mxu0  ;;  %v2092_v62 = vadd.f32 %v2056_v52, %v1872_v24 }
 0x415   :  { %v10409_v0 = vadd.f32 %v7345_v31, %v10028_v12  ;;  %7938 = vset.pattern.permute.xlu1 %v12805_v28  ;;  %v1651_v12 = vadd.f32 %v1615_v37, %v1431_v58  ;;  %v2221_v37 = vld [vmem:[%s12479_s1 + $0x108] sm:$0xff]  ;;  %v12971_v28 = vld [vmem:[#allocation80_spill] sm:$0xff] }
 0x416   :  { %2356 = vperm.xlu1 %7938, %v2214_v33   ;;  %v10416_v23 = vpop.f32.mrf.mxu0  ;;  %v958_v30 = vmul.f32 %v9449_v18, %v12971_v28 }
 0x417   :  { %12948 = vst [vmem:[#allocation156_spill] sm:$0xff] %v10409_v0  ;;  %12950 = vst [vmem:[#allocation123_spill] sm:$0xff] %v10416_v23  ;;  %v10418_v2 = vpop.permute.xlu1 %1350  ;;  %v1871_v9 = vadd.f32 %v1835_v8, %v1651_v12  ;;  %v2223_v8 = vld [vmem:[%s12479_s1 + $0x118] sm:$0xff]  ;;  %v12973_v0 = vld [vmem:[#allocation78_spill] sm:$0xff] }
 0x418   :  { %12951 = vst [vmem:[#allocation173_spill] sm:$0xff] %v10418_v2  ;;  %v7346_v25 = vpop.f32.mrf.mxu0  ;;  %v13014_v2 = vld [vmem:[#allocation85_spill] sm:$0xff] }
 0x419   :  { %v10426_v16 = vadd.f32 %v7346_v25, %v10043_v35  ;;  %v2091_v10 = vadd.f32 %v2055_v41, %v1871_v9  ;;  %v2135_v35 = vadd.f32 %v10301_v55, %v2092_v62  ;;  %v10462_v41 = vld [vmem:[%s12480_s4 + $0x88] sm:$0xff]  }
 0x41a   :  { %2366 = vperm.xlu1 %7938, %v2216_v51   ;;  %v7952_v51 = vld [vmem:[%s12480_s4 + $0x60] sm:$0xff]   ;;  %12957 = vst [vmem:[#allocation129_spill] sm:$0xff] %v10462_v41 }
 0x41b   :  { %12952 = vst [vmem:[#allocation144_spill] sm:$0xff] %v10426_v16  ;;  %v10433_v53 = vpop.permute.xlu1 %1354  ;;  %v2134_v40 = vadd.f32 %v10301_v55, %v2091_v10  ;;  %v2171_v15 = vmax.f32 %v2135_v35, 0.0 }
 0x41c   :  { %12954 = vst [vmem:[#allocation110_spill] sm:$0xff] %v10433_v53  ;;  %v12988_v53 = vld [vmem:[#allocation28_spill] sm:$0xff] }
 0x41d   :  { %v2170_v17 = vmax.f32 %v2134_v40, 0.0  ;;  %v2423_v58 = vmul.f32 %v2322_v4, %v2171_v15  ;;  %v12966_v15 = vld [vmem:[#allocation185_spill] sm:$0xff] }
 0x41e   :  { %2371 = vperm.xlu1 %7938, %v2217_v29   ;;  %v297_v4 = vmul.f32 %v9407_v61, %v12966_v15 }
 0x420   :  { %v10443_v33 = vpop.permute.xlu1 %1998 }
 0x421   :  { %12955 = vst [vmem:[#allocation12_spill] sm:$0xff] %v10443_v33  ;;  %v13044_v33 = vld [vmem:[#allocation55_spill] sm:$0xff] }
 0x422   :  { %2381 = vperm.xlu1 %7938, %v2219_v11   ;;  %v12965_v11 = vld [vmem:[#allocation20_spill] sm:$0xff] }
 0x423   :  { %v298_v40 = vmul.f32 %v9407_v61, %v12965_v11  ;;  %v12972_v11 = vld [vmem:[#allocation54_spill] sm:$0xff] }
 0x424   :  { %v957_v23 = vmul.f32 %v9449_v18, %v12972_v11 }
 0x425   :  { %v2317_v31 = vpop.permute.xlu1 %2316 }
 0x426   :  { %v2422_v50 = vmul.f32 %v2317_v31, %v2170_v17  ;;  %2391 = vperm.xlu1 %7938, %v2221_v37   ;;  %v12967_v37 = vld [vmem:[#allocation39_spill] sm:$0xff]  ;;  %v12968_v31 = vld [vmem:[#allocation178_spill] sm:$0xff] }
 0x427   :  { %v738_v17 = vmul.f32 %v9433_v45, %v12967_v37  ;;  %v1178_v37 = vmul.f32 %v9486_v57, %v12973_v0 }
 0x428   :  { %v2745_v52 = vpack.c.bf16 %v2423_v58, %v2422_v50  ;;  %v517_v58 = vmul.f32 %v9414_v34, %v12968_v31  ;;  %v12974_v31 = vld [vmem:[#allocation46_spill] sm:$0xff] }
 0x42a   :  { %2401 = vperm.xlu1 %7938, %v2223_v8   ;;  %v10455_v12 = vpop.permute.xlu1 %1358  ;;  %7360 = vmatmul.mubr.msk.bf16.vlgmr.msra.gmra.mxu0 %vm2465_vm0, %v2745_v52  ;;  %v12969_v8 = vld [vmem:[#allocation63_spill] sm:$0xff] }
 0x42b   :  { %12956 = vst [vmem:[#allocation13_spill] sm:$0xff] %v10455_v12  ;;  %7372 = vmatpush3.bf16.msra.mxu0 %v10383_v19  ;;  %v12963_v19 = vld [vmem:[#allocation182_spill] sm:$0xff]  ;;  %v737_v52 = vmul.f32 %v9433_v45, %v12969_v8 }
 0x42c   :  { %7373 = vmatprep.subr.bf16.mxu0 %v7952_v51  ;;  %v518_v10 = vmul.f32 %v9414_v34, %v12963_v19  ;;  %v553_v19 = vadd.f32 %v517_v58, %v297_v4  ;;  %v12976_v4 = vld [vmem:[#allocation19_spill] sm:$0xff]  ;;  %v12977_v58 = vld [vmem:[#allocation22_spill] sm:$0xff] }
 0x42d   :  { %v520_v28 = vmul.f32 %v9414_v34, %v12976_v4  ;;  %v300_v11 = vmul.f32 %v9407_v61, %v12977_v58 }
 0x42e   :  { %v10464_v24 = vpop.permute.xlu1 %1362  ;;  %v554_v50 = vadd.f32 %v518_v10, %v298_v40  ;;  %v773_v15 = vadd.f32 %v737_v52, %v553_v19  ;;  %v1177_v10 = vmul.f32 %v9486_v57, %v12974_v31  ;;  %v1398_v40 = vmul.f32 %v9498_v1, %v9964_v14  ;;  %v12978_v52 = vld [vmem:[#allocation23_spill] sm:$0xff]  ;;  %v12981_v14 = vld [vmem:[#allocation21_spill] sm:$0xff] }
 0x42f   :  { %12958 = vst [vmem:[#allocation36_spill] sm:$0xff] %v10464_v24  ;;  %7374 = vmatpush3.bf16.msra.mxu0 %v7952_v51  ;;  %v12980_v19 = vld [vmem:[#allocation155_spill] sm:$0xff] }
 0x430   :  { %7387 = vmatprep.subr.bf16.mxu0 %v10462_v41  ;;  %v774_v16 = vadd.f32 %v738_v17, %v554_v50  ;;  %v524_v17 = vmul.f32 %v9414_v34, %v12978_v52  ;;  %v12979_v50 = vld [vmem:[#allocation26_spill] sm:$0xff]  ;;  %v993_v0 = vadd.f32 %v957_v23, %v773_v15  ;;  %v1397_v31 = vmul.f32 %v9498_v1, %v12980_v19 }
 0x431   :  { %v1617_v23 = vmul.f32 %v9504_v42, %v10076_v39  ;;  %v556_v15 = vadd.f32 %v520_v28, %v300_v11  ;;  %v1838_v28 = vmul.f32 %v9557_v6, %v10133_v59  ;;  %v2058_v59 = vmul.f32 %v10278_v13, %v10219_v44 }
 0x432   :  { %v994_v41 = vadd.f32 %v958_v30, %v774_v16  ;;  %v304_v30 = vmul.f32 %v9407_v61, %v12979_v50  ;;  %v1213_v24 = vadd.f32 %v1177_v10, %v993_v0  ;;  %v12989_v10 = vld [vmem:[#allocation29_spill] sm:$0xff]  ;;  %v12991_v0 = vld [vmem:[#allocation32_spill] sm:$0xff] }
 0x433   :  { %v10467_v25 = vpop.permute.xlu1 %1566  ;;  %v10543_v39 = vmul.f32 %v9407_v61, %v12989_v10 }
 0x434   :  { %12959 = vst [vmem:[#allocation51_spill] sm:$0xff] %v10467_v25  ;;  %v1214_v16 = vadd.f32 %v1178_v37, %v994_v41  ;;  %v12986_v37 = vld [vmem:[#allocation24_spill] sm:$0xff] }
 0x435   :  { %v10529_v19 = vmul.f32 %v9407_v61, %v12986_v37 }
 0x436   :  { %v1434_v50 = vadd.f32 %v1398_v40, %v1214_v16  ;;  %v1433_v40 = vadd.f32 %v1397_v31, %v1213_v24  ;;  %v10551_v16 = vmul.f32 %v9407_v61, %v12991_v0  ;;  %v12996_v0 = vld [vmem:[#allocation42_spill] sm:$0xff] }
 0x438   :  { %v10469_v9 = vpop.permute.xlu1 %1366  ;;  %v1653_v24 = vadd.f32 %v1617_v23, %v1433_v40 }
 0x439   :  { %12960 = vst [vmem:[#allocation143_spill] sm:$0xff] %v10469_v9  ;;  %v12983_v9 = vld [vmem:[#allocation30_spill] sm:$0xff] }
 0x43a   :  { %v310_v58 = vmul.f32 %v9407_v61, %v12983_v9  ;;  %v10535_v9 = vadd.f32 %v524_v17, %v304_v30  ;;  %v12992_v17 = vld [vmem:[#allocation40_spill] sm:$0xff] }
 0x43b   :  { %v10555_v30 = vmul.f32 %v9433_v45, %v12992_v17  ;;  %v12997_v17 = vld [vmem:[#allocation43_spill] sm:$0xff] }
 0x43c   :  { %v10573_v47 = vmul.f32 %v9433_v45, %v12997_v17  ;;  %v10591_v17 = vmul.f32 %v9449_v18, %v13002_v54  ;;  %v13008_v54 = vld [vmem:[#allocation83_spill] sm:$0xff] }
 0x43d   :  { %v10471_v62 = vpop.permute.xlu1 %1570  ;;  %v10609_v26 = vmul.f32 %v9486_v57, %v13008_v54 }
 0x43e   :  { %12961 = vst [vmem:[#allocation71_spill] sm:$0xff] %v10471_v62 }
 0x43f   :  { %13009 = vst [vmem:[#allocation14_spill] sm:$0xff] %v10609_v26 }
 0x441   :  { %v10473_v29 = vpop.permute.xlu1 %1574 }
 0x442   :  { %12962 = vst [vmem:[#allocation162_spill] sm:$0xff] %v10473_v29  ;;  %v12984_v29 = vld [vmem:[#allocation115_spill] sm:$0xff] }
 0x443   :  { %v1618_v52 = vmul.f32 %v9504_v42, %v12984_v29  ;;  %v10539_v29 = vmul.f32 %v9407_v61, %v12988_v53  ;;  %v12993_v53 = vld [vmem:[#allocation73_spill] sm:$0xff] }
 0x444   :  { %v740_v37 = vmul.f32 %v9433_v45, %v12993_v53  ;;  %v12998_v53 = vld [vmem:[#allocation56_spill] sm:$0xff] }
 0x445   :  { %v10477_v35 = vpop.permute.xlu1 %1582  ;;  %v1654_v31 = vadd.f32 %v1618_v52, %v1434_v50  ;;  %v13000_v52 = vld [vmem:[#allocation58_spill] sm:$0xff]  ;;  %v13001_v50 = vld [vmem:[#allocation60_spill] sm:$0xff] }
 0x446   :  { %12964 = vst [vmem:[#allocation90_spill] sm:$0xff] %v10477_v35  ;;  %v12982_v35 = vld [vmem:[#allocation27_spill] sm:$0xff]  ;;  %v10581_v44 = vmul.f32 %v9449_v18, %v13000_v52  ;;  %v10585_v40 = vmul.f32 %v9449_v18, %v13001_v50  ;;  %v776_v52 = vadd.f32 %v740_v37, %v556_v15  ;;  %v10601_v50 = vmul.f32 %v9486_v57, %v13005_v63 }
 0x447   :  { %v530_v4 = vmul.f32 %v9414_v34, %v12982_v35  ;;  %v13012_v37 = vld [vmem:[#allocation99_spill] sm:$0xff] }
 0x448   :  { %v1180_v63 = vmul.f32 %v9486_v57, %v13012_v37  ;;  %v13020_v37 = vld [vmem:[#allocation70_spill] sm:$0xff] }
 0x449   :  { %v10547_v11 = vadd.f32 %v530_v4, %v310_v58  ;;  %v12995_v4 = vld [vmem:[#allocation41_spill] sm:$0xff] }
 0x44a   :  { %v10489_v51 = vpop.permute.xlu1 %1782  ;;  %v10565_v58 = vmul.f32 %v9433_v45, %v12995_v4  ;;  %v1874_v4 = vadd.f32 %v1838_v28, %v1654_v31  ;;  %v13006_v28 = vld [vmem:[#allocation81_spill] sm:$0xff] }
 0x44b   :  { %12970 = vst [vmem:[#allocation109_spill] sm:$0xff] %v10489_v51  ;;  %12990 = vst [vmem:[#allocation119_spill] sm:$0xff] %v10547_v11  ;;  %v10605_v31 = vmul.f32 %v9486_v57, %v13006_v28  ;;  %v10621_v28 = vmul.f32 %v9486_v57, %v13014_v2  ;;  %v13021_v2 = vld [vmem:[#allocation98_spill] sm:$0xff] }
 0x44c   :  { %v2094_v25 = vadd.f32 %v2058_v59, %v1874_v4  ;;  %v13017_v59 = vld [vmem:[#allocation65_spill] sm:$0xff] }
 0x44d   :  { %13007 = vst [vmem:[#allocation137_spill] sm:$0xff] %v10605_v31  ;;  %13015 = vst [vmem:[#allocation37_spill] sm:$0xff] %v10621_v28  ;;  %v523_v4 = vmul.f32 %v9414_v34, %v13017_v59  ;;  %v10637_v28 = vmul.f32 %v9498_v1, %v13021_v2 }
 0x44e   :  { %v2137_v59 = vadd.f32 %v10301_v55, %v2094_v25 }
 0x44f   :  { %v10501_v8 = vpop.permute.xlu1 %1586 }
 0x450   :  { %12975 = vst [vmem:[#allocation146_spill] sm:$0xff] %v10501_v8  ;;  %v10515_v8 = vmul.f32 %v9414_v34, %v12981_v14  ;;  %v12987_v14 = vld [vmem:[#allocation25_spill] sm:$0xff] }
 0x451   :  { %v10533_v35 = vmul.f32 %v9414_v34, %v12987_v14  ;;  %v12994_v14 = vld [vmem:[#allocation128_spill] sm:$0xff] }
 0x452   :  { %v1837_v10 = vmul.f32 %v9557_v6, %v12994_v14  ;;  %v960_v14 = vmul.f32 %v9449_v18, %v12998_v53  ;;  %v1179_v53 = vmul.f32 %v9486_v57, %v13003_v20  ;;  %v13010_v20 = vld [vmem:[#allocation44_spill] sm:$0xff] }
 0x453   :  { %v10525_v41 = vpop.permute.xlu1 %1590  ;;  %v299_v62 = vmul.f32 %v9407_v61, %v13010_v20  ;;  %v13018_v20 = vld [vmem:[#allocation95_spill] sm:$0xff] }
 0x454   :  { %12985 = vst [vmem:[#allocation175_spill] sm:$0xff] %v10525_v41  ;;  %v10569_v41 = vmul.f32 %v9433_v45, %v12996_v0  ;;  %v2057_v0 = vmul.f32 %v10278_v13, %v10214_v5  ;;  %v1873_v5 = vadd.f32 %v1837_v10, %v1653_v24  ;;  %v13016_v10 = vld [vmem:[#allocation45_spill] sm:$0xff]  ;;  %v1400_v26 = vmul.f32 %v9498_v1, %v13018_v20  ;;  %v13026_v20 = vld [vmem:[#allocation116_spill] sm:$0xff] }
 0x455   :  { %v303_v24 = vmul.f32 %v9407_v61, %v13016_v10  ;;  %v996_v11 = vadd.f32 %v960_v14, %v776_v52  ;;  %v13022_v10 = vld [vmem:[#allocation100_spill] sm:$0xff]  ;;  %v13027_v14 = vld [vmem:[#allocation5_spill] sm:$0xff] }
 0x456   :  { %v2093_v54 = vadd.f32 %v2057_v0, %v1873_v5  ;;  %v10641_v36 = vmul.f32 %v9498_v1, %v13022_v10  ;;  %v13024_v0 = vld [vmem:[#allocation102_spill] sm:$0xff]  ;;  %v959_v52 = vmul.f32 %v9449_v18, %v13027_v14 }
 0x457   :  { %v10645_v5 = vmul.f32 %v9498_v1, %v13024_v0  ;;  %v1216_v2 = vadd.f32 %v1180_v63, %v996_v11  ;;  %v13030_v10 = vld [vmem:[#allocation118_spill] sm:$0xff]  ;;  %v559_v0 = vadd.f32 %v523_v4, %v303_v24  ;;  %v13036_v24 = vld [vmem:[#allocation136_spill] sm:$0xff] }
 0x458   :  { %v10577_v23 = vpop.permute.xlu1 %1794  ;;  %13023 = vst [vmem:[#allocation72_spill] sm:$0xff] %v10641_v36  ;;  %v10660_v36 = vmul.f32 %v9504_v42, %v13030_v10  ;;  %v2136_v25 = vadd.f32 %v10301_v55, %v2093_v54  ;;  %v13035_v63 = vld [vmem:[#allocation134_spill] sm:$0xff]  ;;  %v10679_v4 = vmul.f32 %v9557_v6, %v13036_v24  ;;  %v13038_v54 = vld [vmem:[#allocation89_spill] sm:$0xff]  ;;  %v522_v24 = vmul.f32 %v9414_v34, %v13044_v33 }
 0x459   :  { %12999 = vst [vmem:[#allocation120_spill] sm:$0xff] %v10577_v23  ;;  %v13004_v23 = vld [vmem:[#allocation77_spill] sm:$0xff]  ;;  %13025 = vst [vmem:[#allocation153_spill] sm:$0xff] %v10645_v5  ;;  %v10675_v10 = vmul.f32 %v9557_v6, %v13035_v63  ;;  %v1436_v38 = vadd.f32 %v1400_v26, %v1216_v2  ;;  %v10691_v63 = vmul.f32 %v9557_v6, %v13042_v49  ;;  %v2332_v2 = vpop.permute.xlu0 %2331 }
 0x45a   :  { %v10597_v51 = vmul.f32 %v9486_v57, %v13004_v23  ;;  %v13011_v23 = vld [vmem:[#allocation53_spill] sm:$0xff]  ;;  %13031 = vst [vmem:[#allocation92_spill] sm:$0xff] %v10660_v36  ;;  %13037 = vst [vmem:[#allocation15_spill] sm:$0xff] %v10679_v4  ;;  %v963_v36 = vmul.f32 %v9449_v18, %v13038_v54  ;;  %v779_v4 = vadd.f32 %v10555_v30, %v559_v0  ;;  %v2172_v54 = vmax.f32 %v2136_v25, 0.0  ;;  %v13048_v0 = vld [vmem:[#allocation154_spill] sm:$0xff] }
 0x45b   :  { %v519_v15 = vmul.f32 %v9414_v34, %v13011_v23  ;;  %v13019_v23 = vld [vmem:[#allocation97_spill] sm:$0xff]  ;;  %13043 = vst [vmem:[#allocation124_spill] sm:$0xff] %v10691_v63  ;;  %v1399_v26 = vmul.f32 %v9498_v1, %v10039_v22  ;;  %v10708_v25 = vmul.f32 %v10278_v13, %v13048_v0  ;;  %v558_v22 = vadd.f32 %v522_v24, %v10529_v19  ;;  %v13053_v19 = vld [vmem:[#allocation68_spill] sm:$0xff] }
 0x45c   :  { %v10617_v12 = vpop.permute.xlu1 %1802  ;;  %v10631_v31 = vmul.f32 %v9498_v1, %v13019_v23  ;;  %v10650_v23 = vmul.f32 %v9504_v42, %v13026_v20  ;;  %v13033_v20 = vld [vmem:[#allocation130_spill] sm:$0xff]  ;;  %v999_v33 = vadd.f32 %v963_v36, %v779_v4  ;;  %v1403_v36 = vmul.f32 %v9498_v1, %v10101_v7 }
 0x45d   :  { %13013 = vst [vmem:[#allocation52_spill] sm:$0xff] %v10617_v12  ;;  %v739_v12 = vmul.f32 %v9433_v45, %v13020_v37  ;;  %v555_v37 = vadd.f32 %v519_v15, %v299_v62  ;;  %v1840_v62 = vmul.f32 %v9557_v6, %v13033_v20  ;;  %v13034_v15 = vld [vmem:[#allocation132_spill] sm:$0xff]  ;;  %v2173_v20 = vmax.f32 %v2137_v59, 0.0  ;;  %v13045_v59 = vld [vmem:[#allocation151_spill] sm:$0xff]  ;;  %v13054_v7 = vld [vmem:[#allocation66_spill] sm:$0xff] }
 0x45e   :  { %v10669_v14 = vmul.f32 %v9557_v6, %v13034_v15  ;;  %v2060_v60 = vmul.f32 %v10278_v13, %v13045_v59  ;;  %v1219_v24 = vadd.f32 %v10601_v50, %v999_v33 }
 0x45f   :  { %v775_v11 = vadd.f32 %v739_v12, %v555_v37  ;;  %v13041_v12 = vld [vmem:[#allocation64_spill] sm:$0xff]  ;;  %v2425_v30 = vmul.f32 %v2332_v2, %v2173_v20  ;;  %v13050_v20 = vld [vmem:[#allocation7_spill] sm:$0xff] }
 0x460   :  { %v301_v37 = vmul.f32 %v9407_v61, %v13041_v12  ;;  %v1439_v33 = vadd.f32 %v1403_v36, %v1219_v24 }
 0x461   :  { %v10662_v5 = vpop.permute.xlu1 %2006  ;;  %v995_v27 = vadd.f32 %v959_v52, %v775_v11  ;;  %v1656_v52 = vadd.f32 %v1620_v43, %v1436_v38  ;;  %v13047_v11 = vld [vmem:[#allocation35_spill] sm:$0xff] }
 0x462   :  { %13032 = vst [vmem:[#allocation111_spill] sm:$0xff] %v10662_v5  ;;  %v13039_v5 = vld [vmem:[#allocation138_spill] sm:$0xff]  ;;  %v742_v12 = vmul.f32 %v9433_v45, %v13047_v11  ;;  %v557_v59 = vadd.f32 %v10515_v8, %v301_v37  ;;  %v13049_v38 = vld [vmem:[#allocation103_spill] sm:$0xff]  ;;  %v13051_v11 = vld [vmem:[#allocation168_spill] sm:$0xff] }
 0x463   :  { %v10685_v15 = vmul.f32 %v9557_v6, %v13039_v5  ;;  %v13046_v5 = vld [vmem:[#allocation152_spill] sm:$0xff]  ;;  %v741_v43 = vmul.f32 %v9433_v45, %v13049_v38  ;;  %v1839_v8 = vmul.f32 %v9557_v6, %v13051_v11  ;;  %v13057_v38 = vld [vmem:[#allocation187_spill] sm:$0xff] }
 0x464   :  { %v778_v37 = vadd.f32 %v742_v12, %v558_v22  ;;  %v527_v50 = vmul.f32 %v9414_v34, %v13057_v38 }
 0x465   :  { %13040 = vst [vmem:[#allocation179_spill] sm:$0xff] %v10685_v15  ;;  %v10700_v15 = vmul.f32 %v10278_v13, %v13046_v5  ;;  %v1215_v5 = vadd.f32 %v1179_v53, %v995_v27  ;;  %v13052_v53 = vld [vmem:[#allocation49_spill] sm:$0xff]  ;;  %v961_v27 = vmul.f32 %v9449_v18, %v13053_v19  ;;  %v777_v12 = vadd.f32 %v741_v43, %v557_v59  ;;  %v13059_v43 = vld [vmem:[#allocation166_spill] sm:$0xff] }
 0x466   :  { %v2327_v49 = vpop.permute.xlu1 %2326  ;;  %v305_v3 = vmul.f32 %v9407_v61, %v13052_v53 }
 0x467   :  { %v2424_v63 = vmul.f32 %v2327_v49, %v2172_v54  ;;  %v744_v54 = vmul.f32 %v9433_v45, %v13050_v20  ;;  %v1435_v2 = vadd.f32 %v1399_v26, %v1215_v5  ;;  %v1876_v49 = vadd.f32 %v1840_v62, %v1656_v52  ;;  %v13055_v62 = vld [vmem:[#allocation88_spill] sm:$0xff]  ;;  %v13056_v5 = vld [vmem:[#allocation177_spill] sm:$0xff] }
 0x468   :  { %v964_v26 = vmul.f32 %v9449_v18, %v13055_v62  ;;  %v1181_v22 = vmul.f32 %v9486_v57, %v13056_v5  ;;  %v13058_v20 = vld [vmem:[#allocation157_spill] sm:$0xff]  ;;  %v997_v59 = vadd.f32 %v961_v27, %v777_v12  ;;  %v13060_v62 = vld [vmem:[#allocation47_spill] sm:$0xff] }
 0x469   :  { %v2822_v4 = vpack.c.bf16 %v2425_v30, %v2424_v63  ;;  %v307_v63 = vmul.f32 %v9407_v61, %v13054_v7  ;;  %v1655_v52 = vadd.f32 %v1619_v56, %v1435_v2  ;;  %v2059_v30 = vmul.f32 %v10278_v13, %v10290_v48  ;;  %v13061_v5 = vld [vmem:[#allocation107_spill] sm:$0xff] }
 0x46a   :  { %v780_v11 = vadd.f32 %v744_v54, %v10535_v9  ;;  %v2096_v53 = vadd.f32 %v2060_v60, %v1876_v49  ;;  %v561_v56 = vadd.f32 %v10533_v35, %v305_v3  ;;  %v998_v48 = vadd.f32 %v10581_v44, %v778_v37  ;;  %v13062_v49 = vld [vmem:[#allocation48_spill] sm:$0xff]  ;;  %v13064_v37 = vld [vmem:[#allocation163_spill] sm:$0xff] }
 0x46b   :  { %v10727_v0 = vpop.permute.xlu1 %1806  ;;  %7367 = vmatprep.mubr.msk.bf16.mxu1 %vm2465_vm0, %v2822_v4  ;;  %v10742_v4 = vmul.f32 %v10278_v13, %v13058_v20  ;;  %v1875_v19 = vadd.f32 %v1839_v8, %v1655_v52  ;;  %v1184_v2 = vmul.f32 %v9486_v57, %v13059_v43  ;;  %v309_v36 = vmul.f32 %v9407_v61, %v13060_v62  ;;  %v13063_v8 = vld [vmem:[#allocation84_spill] sm:$0xff]  ;;  %v13065_v52 = vld [vmem:[#allocation33_spill] sm:$0xff] }
 0x46c   :  { %v1000_v24 = vadd.f32 %v964_v26, %v780_v11  ;;  %v526_v38 = vmul.f32 %v9414_v34, %v13061_v5  ;;  %v1217_v60 = vadd.f32 %v1181_v22, %v997_v59  ;;  %v563_v54 = vadd.f32 %v527_v50, %v307_v63  ;;  %v13067_v22 = vld [vmem:[#allocation9_spill] sm:$0xff] }
 0x46d   :  { %v2095_v9 = vadd.f32 %v2059_v30, %v1875_v19  ;;  %v532_v35 = vmul.f32 %v9414_v34, %v13062_v49  ;;  %v1659_v44 = vadd.f32 %v10650_v23, %v1439_v33  ;;  %v311_v3 = vmul.f32 %v9407_v61, %v13063_v8  ;;  %v13066_v30 = vld [vmem:[#allocation91_spill] sm:$0xff]  ;;  %v13069_v19 = vld [vmem:[#allocation106_spill] sm:$0xff]  ;;  %v13070_v8 = vld [vmem:[#allocation8_spill] sm:$0xff] }
 0x46e   :  { %v528_v27 = vmul.f32 %v9414_v34, %v13064_v37  ;;  %v1402_v26 = vmul.f32 %v9498_v1, %v13065_v52  ;;  %v2139_v12 = vadd.f32 %v10301_v55, %v2096_v53  ;;  %v1220_v20 = vadd.f32 %v1184_v2, %v1000_v24  ;;  %v13068_v61 = vld [vmem:[#allocation131_spill] sm:$0xff]  ;;  %v2342_v52 = vpop.permute.xlu0 %2341 }
 0x46f   :  { %v10749_v7 = vpop.permute.xlu1 %1810  ;;  %v529_v63 = vmul.f32 %v9414_v34, %v13066_v30  ;;  %v746_v50 = vmul.f32 %v9433_v45, %v13067_v22  ;;  %v1218_v23 = vadd.f32 %v10597_v51, %v998_v48  ;;  %v562_v33 = vadd.f32 %v526_v38, %v10539_v29  ;;  %v13074_v22 = vld [vmem:[#allocation11_spill] sm:$0xff] }
 0x470   :  { %v1621_v11 = vmul.f32 %v9504_v42, %v13068_v61  ;;  %v1622_v59 = vmul.f32 %v9504_v42, %v13069_v19  ;;  %v2138_v53 = vadd.f32 %v10301_v55, %v2095_v9  ;;  %v568_v2 = vadd.f32 %v532_v35, %v10551_v16  ;;  %v13075_v19 = vld [vmem:[#allocation105_spill] sm:$0xff] }
 0x471   :  { %v1437_v62 = vadd.f32 %v10631_v31, %v1217_v60  ;;  %v783_v24 = vadd.f32 %v10565_v58, %v563_v54  ;;  %v1879_v51 = vadd.f32 %v10675_v10, %v1659_v44  ;;  %v564_v29 = vadd.f32 %v528_v27, %v10543_v39  ;;  %v13071_v39 = vld [vmem:[#allocation101_spill] sm:$0xff] }
 0x472   :  { %v1438_v48 = vadd.f32 %v1402_v26, %v1218_v23  ;;  %v2175_v5 = vmax.f32 %v2139_v12, 0.0  ;;  %v1841_v38 = vmul.f32 %v9557_v6, %v10209_v21  ;;  %v565_v49 = vadd.f32 %v529_v63, %v309_v36  ;;  %v13072_v21 = vld [vmem:[#allocation112_spill] sm:$0xff] }
 0x473   :  { %v745_v37 = vmul.f32 %v9433_v45, %v13070_v8  ;;  %v782_v9 = vadd.f32 %v746_v50, %v562_v33  ;;  %v1440_v16 = vadd.f32 %v10637_v28, %v1220_v20  ;;  %v1657_v31 = vadd.f32 %v1621_v11, %v1437_v62  ;;  %v13081_v8 = vld [vmem:[#allocation145_spill] sm:$0xff] }
 0x474   :  { %v10775_v43 = vpop.permute.xlu1 %2014  ;;  %v1658_v60 = vadd.f32 %v1622_v59, %v1438_v48  ;;  %v2061_v58 = vmul.f32 %v10278_v13, %v10355_v46  ;;  %v2174_v10 = vmax.f32 %v2138_v53, 0.0  ;;  %v531_v54 = vmul.f32 %v9414_v34, %v13071_v39  ;;  %v13073_v46 = vld [vmem:[#allocation133_spill] sm:$0xff]  ;;  %v13076_v53 = vld [vmem:[#allocation114_spill] sm:$0xff] }
 0x475   :  { %v788_v35 = vadd.f32 %v10573_v47, %v568_v2  ;;  %v748_v36 = vmul.f32 %v9433_v45, %v13072_v21  ;;  %v2099_v27 = vadd.f32 %v10700_v15, %v1879_v51  ;;  %v2427_v26 = vmul.f32 %v2342_v52, %v2175_v5  ;;  %v13077_v2 = vld [vmem:[#allocation34_spill] sm:$0xff]  ;;  %v13079_v5 = vld [vmem:[#allocation12_spill] sm:$0xff]  ;;  %v13086_v21 = vld [vmem:[#allocation37_spill] sm:$0xff] }
 0x476   :  { %v1877_v12 = vadd.f32 %v1841_v38, %v1657_v31  ;;  %v2062_v28 = vmul.f32 %v10278_v13, %v10365_v32  ;;  %v781_v30 = vadd.f32 %v745_v37, %v561_v56  ;;  %v965_v63 = vmul.f32 %v9449_v18, %v13073_v46  ;;  %v7954_v32 = vld [vmem:[%s12480_s4 + $0x70] sm:$0xff]  }
 0x477   :  { %v1624_v34 = vmul.f32 %v9504_v42, %v13074_v22  ;;  %v785_v47 = vadd.f32 %v10569_v41, %v565_v49  ;;  %v1002_v50 = vadd.f32 %v10585_v40, %v782_v9  ;;  %v1878_v15 = vadd.f32 %v10669_v14, %v1658_v60  ;;  %v13080_v49 = vld [vmem:[#allocation172_spill] sm:$0xff]  ;;  %v13083_v31 = vld [vmem:[#allocation87_spill] sm:$0xff] }
 0x478   :  { %v2097_v23 = vadd.f32 %v2061_v58, %v1877_v12  ;;  %v567_v61 = vadd.f32 %v531_v54, %v311_v3  ;;  %v1008_v56 = vadd.f32 %v10591_v17, %v788_v35  ;;  %v784_v11 = vadd.f32 %v748_v36, %v564_v29  ;;  %v13078_v17 = vld [vmem:[#allocation122_spill] sm:$0xff]  ;;  %v13082_v9 = vld [vmem:[#allocation164_spill] sm:$0xff] }
 0x479   :  { %v2337_v44 = vpop.permute.xlu1 %2336  ;;  %v1844_v59 = vmul.f32 %v9557_v6, %v13075_v19  ;;  %v750_v41 = vmul.f32 %v9433_v45, %v13076_v53  ;;  %v969_v40 = vmul.f32 %v9449_v18, %v13077_v2  ;;  %v2098_v62 = vadd.f32 %v2062_v28, %v1878_v15  ;;  %v13085_v54 = vld [vmem:[#allocation140_spill] sm:$0xff]  ;;  %v13090_v53 = vld [vmem:[#allocation13_spill] sm:$0xff]  ;;  %v13091_v2 = vld [vmem:[#allocation71_spill] sm:$0xff] }
 0x47a   :  { %v2426_v20 = vmul.f32 %v2337_v44, %v2174_v10  ;;  %v10819_v51 = vadd.f32 %v10301_v55, %v2099_v27  ;;  %v1001_v3 = vadd.f32 %v965_v63, %v781_v30  ;;  %v967_v29 = vmul.f32 %v9449_v18, %v13078_v17  ;;  %v13084_v10 = vld [vmem:[#allocation69_spill] sm:$0xff] }
 0x47b   :  { %v1660_v48 = vadd.f32 %v1624_v34, %v1440_v16  ;;  %v2064_v38 = vmul.f32 %v10278_v13, %v13079_v5  ;;  %v751_v37 = vmul.f32 %v9433_v45, %v13081_v8  ;;  %v968_v52 = vmul.f32 %v9449_v18, %v13082_v9  ;;  %v13087_v45 = vld [vmem:[#allocation119_spill] sm:$0xff]  ;;  %v13088_v30 = vld [vmem:[#allocation137_spill] sm:$0xff] }
 0x47c   :  { %v2823_v33 = vpack.c.bf16 %v2427_v26, %v2426_v20  ;;  %v1186_v60 = vmul.f32 %v9486_v57, %v13083_v31  ;;  %v2140_v58 = vadd.f32 %v10301_v55, %v2097_v23  ;;  %v1187_v16 = vmul.f32 %v9486_v57, %v13084_v10  ;;  %v13089_v63 = vld [vmem:[#allocation173_spill] sm:$0xff]  ;;  %v13098_v31 = vld [vmem:[#allocation72_spill] sm:$0xff] }
 0x47d   :  { %v1880_v39 = vadd.f32 %v1844_v59, %v1660_v48  ;;  %v1405_v35 = vmul.f32 %v9498_v1, %v13085_v54  ;;  %v10838_v36 = vadd.f32 %v13086_v21, %v1008_v56  ;;  %v786_v44 = vadd.f32 %v750_v41, %v13087_v45  ;;  %v2347_v59 = vpop.permute.xlu0 %2346  ;;  %v13099_v10 = vld [vmem:[#allocation121_spill] sm:$0xff]  ;;  %v13101_v21 = vld [vmem:[#allocation108_spill] sm:$0xff] }
 0x47e   :  { %v10815_v14 = vpop.permute.xlu1 %2018  ;;  %7368 = vmatmul.mubr.msk.bf16.vlgmr.msra.gmra.mxu1 %vm2465_vm0, %v2823_v33  ;;  %v1005_v27 = vadd.f32 %v969_v40, %v785_v47  ;;  %v2141_v12 = vadd.f32 %v10301_v55, %v2098_v62  ;;  %v2178_v28 = vmax.f32 %v10819_v51, 0.0  ;;  %v1003_v20 = vadd.f32 %v967_v29, %v783_v24  ;;  %v13092_v40 = vld [vmem:[#allocation50_spill] sm:$0xff]  ;;  %v13094_v29 = vld [vmem:[#allocation51_spill] sm:$0xff]  ;;  %v13116_v51 = vld [vmem:[#allocation153_spill] sm:$0xff] }
 0x47f   :  { %7380 = vmatpush3.bf16.msra.mxu1 %v13080_v49  ;;  %v1221_v46 = vadd.f32 %v13088_v30, %v1001_v3  ;;  %v1407_v22 = vmul.f32 %v9498_v1, %v13089_v63  ;;  %v2100_v34 = vadd.f32 %v2064_v38, %v1880_v39  ;;  %v787_v23 = vadd.f32 %v751_v37, %v567_v61  ;;  %v13093_v3 = vld [vmem:[#allocation14_spill] sm:$0xff]  ;;  %v13096_v38 = vld [vmem:[#allocation109_spill] sm:$0xff]  ;;  %v13097_v37 = vld [vmem:[#allocation96_spill] sm:$0xff] }
 0x480   :  { %7381 = vmatprep.subr.bf16.mxu1 %v7954_v32  ;;  %v1004_v15 = vadd.f32 %v968_v52, %v784_v11  ;;  %v1222_v33 = vadd.f32 %v1186_v60, %v1002_v50  ;;  %v2176_v56 = vmax.f32 %v2140_v58, 0.0  ;;  %v1223_v19 = vadd.f32 %v1187_v16, %v1003_v20  ;;  %v13095_v50 = vld [vmem:[#allocation10_spill] sm:$0xff] }
 0x481   :  { %v1441_v47 = vadd.f32 %v1405_v35, %v1221_v46  ;;  %v1409_v41 = vmul.f32 %v9498_v1, %v13090_v53  ;;  %v1627_v24 = vmul.f32 %v9504_v42, %v13091_v2  ;;  %v970_v62 = vmul.f32 %v9449_v18, %v13092_v40 }
 0x482   :  { %v10841_v26 = vpop.permute.xlu1 %2022  ;;  %v1225_v17 = vadd.f32 %v13093_v3, %v1005_v27  ;;  %v2177_v61 = vmax.f32 %v2141_v12, 0.0  ;;  %v971_v11 = vmul.f32 %v9449_v18, %v13095_v50  ;;  %v1443_v48 = vadd.f32 %v1407_v22, %v1223_v19  ;;  %v13100_v18 = vld [vmem:[#allocation170_spill] sm:$0xff]  ;;  %v13110_v50 = vld [vmem:[#allocation15_spill] sm:$0xff] }
 0x483   :  { %7382 = vmatpush3.bf16.msra.mxu1 %v7954_v32  ;;  %v1626_v32 = vmul.f32 %v9504_v42, %v13094_v29  ;;  %v2143_v5 = vadd.f32 %v10301_v55, %v2100_v34  ;;  %v1845_v49 = vmul.f32 %v9557_v6, %v13096_v38  ;;  %v1188_v9 = vmul.f32 %v9486_v57, %v13097_v37  ;;  %v13102_v27 = vld [vmem:[#allocation110_spill] sm:$0xff]  ;;  %v2362_v29 = vpop.permute.xlu0 %2361 }
 0x484   :  { %v2428_v52 = vmul.f32 %v2347_v59, %v2176_v56  ;;  %v1442_v60 = vadd.f32 %v13098_v31, %v1222_v33  ;;  %v1190_v16 = vmul.f32 %v9486_v57, %v13099_v10  ;;  %v1445_v39 = vadd.f32 %v1409_v41, %v1225_v17  ;;  %v13103_v56 = vld [vmem:[#allocation36_spill] sm:$0xff]  ;;  %v13104_v59 = vld [vmem:[#allocation162_spill] sm:$0xff] }
 0x485   :  { %v1663_v54 = vadd.f32 %v1627_v24, %v1443_v48  ;;  %v1661_v35 = vadd.f32 %v13100_v18, %v1441_v47  ;;  %v1191_v45 = vmul.f32 %v9486_v57, %v13101_v21  ;;  %v1408_v12 = vmul.f32 %v9498_v1, %v13102_v27  ;;  %v13105_v47 = vld [vmem:[#allocation111_spill] sm:$0xff]  ;;  %v13106_v24 = vld [vmem:[#allocation92_spill] sm:$0xff]  ;;  %v13111_v48 = vld [vmem:[#allocation90_spill] sm:$0xff] }
 0x486   :  { %v1662_v20 = vadd.f32 %v1626_v32, %v1442_v60  ;;  %v1006_v46 = vadd.f32 %v970_v62, %v786_v44  ;;  %v1007_v63 = vadd.f32 %v971_v11, %v787_v23  ;;  %v2179_v22 = vmax.f32 %v2143_v5, 0.0  ;;  %v13107_v44 = vld [vmem:[#allocation143_spill] sm:$0xff]  ;;  %v13109_v32 = vld [vmem:[#allocation120_spill] sm:$0xff]  ;;  %v13112_v38 = vld [vmem:[#allocation146_spill] sm:$0xff] }
 0x487   :  { %v2352_v8 = vpop.permute.xlu1 %2351  ;;  %v1881_v34 = vadd.f32 %v1845_v49, %v1661_v35  ;;  %v1224_v33 = vadd.f32 %v1188_v9, %v1004_v15  ;;  %v1410_v19 = vmul.f32 %v9498_v1, %v13103_v56  ;;  %v1628_v53 = vmul.f32 %v9504_v42, %v13104_v59  ;;  %v13108_v62 = vld [vmem:[#allocation179_spill] sm:$0xff]  ;;  %v13114_v35 = vld [vmem:[#allocation52_spill] sm:$0xff] }
 0x488   :  { %v2429_v58 = vmul.f32 %v2352_v8, %v2177_v61  ;;  %v2066_v41 = vmul.f32 %v10278_v13, %v13105_v47  ;;  %v1226_v2 = vadd.f32 %v1190_v16, %v1006_v46  ;;  %v1665_v40 = vadd.f32 %v13106_v24, %v1445_v39  ;;  %v13113_v16 = vld [vmem:[#allocation124_spill] sm:$0xff] }
 0x489   :  { %v1411_v23 = vmul.f32 %v9498_v1, %v13107_v44  ;;  %v1883_v15 = vadd.f32 %v13108_v62, %v1663_v54  ;;  %v1227_v3 = vadd.f32 %v1191_v45, %v1007_v63  ;;  %v1444_v17 = vadd.f32 %v1408_v12, %v1224_v33  ;;  %v13115_v12 = vld [vmem:[#allocation175_spill] sm:$0xff]  ;;  %v2377_v44 = vpop.permute.xlu0 %2376 }
 0x48a   :  { %v2900_v30 = vpack.c.bf16 %v2429_v58, %v2428_v52  ;;  %v1848_v61 = vmul.f32 %v9557_v6, %v13109_v32  ;;  %v1882_v11 = vadd.f32 %v13110_v50, %v1662_v20  ;;  %v1630_v5 = vmul.f32 %v9504_v42, %v13111_v48 }
 0x48b   :  { %v1631_v49 = vmul.f32 %v9504_v42, %v13112_v38  ;;  %v2431_v8 = vmul.f32 %v2362_v29, %v2179_v22  ;;  %v2101_v37 = vadd.f32 %v10708_v25, %v1881_v34  ;;  %v1446_v1 = vadd.f32 %v1410_v19, %v1226_v2 }
 0x48c   :  { %v2031_v57 = vpop.permute.xlu1 %2030  ;;  %7375 = vmatprep.mubr.msk.bf16.mxu0 %vm2465_vm0, %v2900_v30  ;;  %v1664_v9 = vadd.f32 %v1628_v53, %v1444_v17  ;;  %v2102_v52 = vadd.f32 %v2066_v41, %v1882_v11  ;;  %v2068_v31 = vmul.f32 %v10278_v13, %v10775_v43  ;;  %v1447_v60 = vadd.f32 %v1411_v23, %v1227_v3  ;;  %v13118_v41 = vld [vmem:[#allocation129_spill] sm:$0xff] }
 0x48d   :  { %v2103_v58 = vadd.f32 %v10742_v4, %v1883_v15  ;;  %v1851_v10 = vmul.f32 %v9557_v6, %v10727_v0  ;;  %v1885_v39 = vadd.f32 %v13113_v16, %v1665_v40  ;;  %v1850_v21 = vmul.f32 %v9557_v6, %v13114_v35  ;;  %v2387_v38 = vpop.permute.xlu0 %2386 }
 0x48e   :  { %v1884_v18 = vadd.f32 %v1848_v61, %v1664_v9  ;;  %v2069_v25 = vmul.f32 %v10278_v13, %v10815_v14  ;;  %v1666_v43 = vadd.f32 %v1630_v5, %v1446_v1  ;;  %v1667_v27 = vadd.f32 %v1631_v49, %v1447_v60  ;;  %v7956_v14 = vld [vmem:[%s12480_s4 + $0x80] sm:$0xff]   ;;  %s8325_s4 = smov 64  }
 0x48f   :  { %v1632_v4 = vmul.f32 %v9504_v42, %v13115_v12  ;;  %v2144_v0 = vadd.f32 %v10301_v55, %v2101_v37  ;;  %v2070_v30 = vmul.f32 %v10278_v13, %v10841_v26  ;;  %v2145_v63 = vadd.f32 %v10301_v55, %v2102_v52  ;;  %v13117_v26 = vld [vmem:[#allocation159_spill] sm:$0xff]  ;;  %v8312_v37 = vld [vmem:[%s12482_s3] ss:$0 sm:$0xff] }
 0x490   :  { %v2104_v20 = vadd.f32 %v2068_v31, %v1884_v18  ;;  %v1887_v22 = vadd.f32 %v1851_v10, %v1667_v27  ;;  %v2146_v42 = vadd.f32 %v10301_v55, %v2103_v58  ;;  %v1886_v33 = vadd.f32 %v1850_v21, %v1666_v43  ;;  %v13119_v21 = vld [vmem:[#allocation156_spill] sm:$0xff] }
 0x491   :  { %v2357_v54 = vpop.permute.xlu1 %2356  ;;  %v1852_v56 = vmul.f32 %v9557_v6, %v10749_v7  ;;  %v2105_v19 = vadd.f32 %v2069_v25, %v1885_v39  ;;  %v2071_v59 = vmul.f32 %v10278_v13, %v13117_v26  ;;  %v2180_v47 = vmax.f32 %v2144_v0, 0.0  ;;  %v2397_v10 = vpop.permute.xlu0 %2396  ;;  %v13120_v27 = vld [vmem:[#allocation144_spill] sm:$0xff] }
 0x492   :  { %v2430_v45 = vmul.f32 %v2357_v54, %v2178_v28  ;;  %v1448_v28 = vadd.f32 %v13116_v51, %v10838_v36  ;;  %v2106_v2 = vadd.f32 %v2070_v30, %v1886_v33  ;;  %v2072_v36 = vmul.f32 %v10278_v13, %v2031_v57  ;;  %v10980_v30 = vpop.f32.mrf.mxu0 }
 0x493   :  { %v2181_v24 = vmax.f32 %v2145_v63, 0.0  ;;  %v2147_v40 = vadd.f32 %v10301_v55, %v2104_v20  ;;  %v2107_v23 = vadd.f32 %v2071_v59, %v1887_v22  ;;  %v2182_v7 = vmax.f32 %v2146_v42, 0.0  ;;  %v7958_v20 = vld [vmem:[%s12483_s6 + $0x38] sm:$0xff]   ;;  %v7961_v22 = vld [vmem:[%s12483_s6 + $0x8] sm:$0xff]  }
 0x494   :  { %v2901_v46 = vpack.c.bf16 %v2431_v8, %v2430_v45  ;;  %v1668_v53 = vadd.f32 %v1632_v4, %v1448_v28  ;;  %v2148_v15 = vadd.f32 %v10301_v55, %v2105_v19  ;;  %v2149_v50 = vadd.f32 %v10301_v55, %v2106_v2  ;;  %v7957_v4 = vld [vmem:[%s12483_s6 + $0x18] sm:$0xff]   ;;  %v7962_v42 = vld [vmem:[%s12483_s6 + $0x28] sm:$0xff]   ;;  %v7964_v19 = vld [vmem:[%s12483_s6 + $0x20] sm:$0xff]  }
 0x495   :  { %v2367_v34 = vpop.permute.xlu1 %2366  ;;  %v2183_v61 = vmax.f32 %v2147_v40, 0.0  ;;  %v2150_v57 = vadd.f32 %v10301_v55, %v2107_v23  ;;  %v2434_v48 = vmul.f32 %v2377_v44, %v2182_v7  ;;  %v8322_v0 = vmov 0.0   ;;  %v13121_v7 = vld [vmem:[#allocation161_spill] sm:$0xff] }
 0x496   :  { %7376 = vmatmul.mubr.msk.bf16.vlgmr.msra.gmra.mxu0 %vm2465_vm0, %v2901_v46  ;;  %v1888_v62 = vadd.f32 %v1852_v56, %v1668_v53  ;;  %v2432_v3 = vmul.f32 %v2367_v34, %v2180_v47  ;;  %v2184_v11 = vmax.f32 %v2148_v15, 0.0  ;;  %v2185_v8 = vmax.f32 %v2149_v50, 0.0  ;;  %5696 = vst.msk [vmem:[#allocation3] sm:$0xff] %vm2465_vm0, %v8322_v0  ;;  %5697 = vst.msk [vmem:[#allocation3 + $0x8] sm:$0xff] %vm2465_vm0, %v8322_v0  ;;  %v7959_v46 = vld [vmem:[%s12483_s6 + $0x10] sm:$0xff]   ;;  %v7963_v56 = vld [vmem:[%s12483_s6] sm:$0xff]  }
 0x497   :  { %7388 = vmatpush3.bf16.msra.mxu0 %v13118_v41  ;;  %v2186_v60 = vmax.f32 %v2150_v57, 0.0  ;;  %5698 = vst.msk [vmem:[#allocation3 + $0x10] sm:$0xff] %vm2465_vm0, %v8322_v0  ;;  %5699 = vst.msk [vmem:[#allocation3 + $0x18] sm:$0xff] %vm2465_vm0, %v8322_v0  ;;  %7395 = vmatprep.subr.bf16.mxu1 %v8322_v0 }
 0x498   :  { %7389 = vmatprep.subr.bf16.mxu0 %v7956_v14  ;;  %v2108_v29 = vadd.f32 %v2072_v36, %v1888_v62  ;;  %v2436_v52 = vmul.f32 %v2387_v38, %v2184_v11  ;;  %5700 = vst.msk [vmem:[#allocation3 + $0x20] sm:$0xff] %vm2465_vm0, %v8322_v0  ;;  %5701 = vst.msk [vmem:[#allocation3 + $0x28] sm:$0xff] %vm2465_vm0, %v8322_v0  ;;  %v13122_v62 = vld [vmem:[#allocation82_spill] sm:$0xff] }
 0x499   :  { %v2372_v6 = vpop.permute.xlu1 %2371  ;;  %v2438_v39 = vmul.f32 %v2397_v10, %v2186_v60  ;;  %5702 = vst.msk [vmem:[#allocation3 + $0x30] sm:$0xff] %vm2465_vm0, %v8322_v0  ;;  %5703 = vst.msk [vmem:[#allocation3 + $0x38] sm:$0xff] %vm2465_vm0, %v8322_v0  ;;  %v2574_v15 = vadd.f32 %v13122_v62, %v13121_v7  ;;  %v7982_v62 = vld [vmem:[%s12483_s6 + $0xd8] sm:$0xff]  }
 0x49a   :  { %v2433_v17 = vmul.f32 %v2372_v6, %v2181_v24  ;;  %v2151_v1 = vadd.f32 %v8312_v37, %v2108_v29  ;;  %5704 = vst.msk [vmem:[#allocation3 + $0x40] sm:$0xff] %vm2465_vm0, %v8322_v0  ;;  %5705 = vst.msk [vmem:[#allocation3 + $0x48] sm:$0xff] %vm2465_vm0, %v8322_v0 }
 0x49b   :  { %7390 = vmatpush3.bf16.msra.mxu0 %v7956_v14  ;;  %5706 = vst.msk [vmem:[#allocation3 + $0x50] sm:$0xff] %vm2465_vm0, %v8322_v0  ;;  %5707 = vst.msk [vmem:[#allocation3 + $0x58] sm:$0xff] %vm2465_vm0, %v8322_v0  ;;  %v7960_v14 = vld [vmem:[%s12483_s6 + $0x30] sm:$0xff]  }
 0x49c   :  { %v2978_v32 = vpack.c.bf16 %v2433_v17, %v2432_v3  ;;  %v2187_v58 = vmax.f32 %v2151_v1, 0.0  ;;  %7407 = vmatprep.subr.bf16.mxu0 %v8322_v0  ;;  %5708 = vst.msk [vmem:[#allocation3 + $0x60] sm:$0xff] %vm2465_vm0, %v8322_v0  ;;  %5709 = vst.msk [vmem:[#allocation3 + $0x68] sm:$0xff] %vm2465_vm0, %v8322_v0  ;;  %v13123_v17 = vld [vmem:[#allocation123_spill] sm:$0xff] }
 0x49d   :  { %v2382_v13 = vpop.permute.xlu1 %2381  ;;  %5710 = vst.msk [vmem:[#allocation3 + $0x70] sm:$0xff] %vm2465_vm0, %v8322_v0  ;;  %5711 = vst.msk [vmem:[#allocation3 + $0x78] sm:$0xff] %vm2465_vm0, %v8322_v0  ;;  %v2662_v29 = vadd.f32 %v13123_v17, %v2574_v15  ;;  %v7983_v15 = vld [vmem:[%s12483_s6 + $0xf0] sm:$0xff]   ;;  %v7985_v17 = vld [vmem:[%s12483_s6 + $0xe8] sm:$0xff]  }
 0x49e   :  { %v2435_v5 = vmul.f32 %v2382_v13, %v2183_v61  ;;  %7383 = vmatprep.mubr.msk.bf16.mxu1 %vm2465_vm0, %v2978_v32  ;;  %5712 = vst.msk [vmem:[#allocation3 + $0x80] sm:$0xff] %vm2465_vm0, %v8322_v0 }
 0x49f   :  { %4733 = vst.msk [vmem:[#allocation2] sm:$0xff] %vm3193_vm2, %v8322_v0  ;;  %4734 = vst.msk [vmem:[#allocation2 + $0x8] sm:$0xff] %vm3193_vm2, %v8322_v0 }
 0x4a0   :  { %v2979_v49 = vpack.c.bf16 %v2435_v5, %v2434_v48  ;;  %4735 = vst.msk [vmem:[#allocation2 + $0x10] sm:$0xff] %vm3193_vm2, %v8322_v0  ;;  %4736 = vst.msk [vmem:[#allocation2 + $0x18] sm:$0xff] %vm3193_vm2, %v8322_v0 }
 0x4a1   :  { %v2392_v9 = vpop.permute.xlu1 %2391  ;;  %4737 = vst.msk [vmem:[#allocation2 + $0x20] sm:$0xff] %vm3193_vm2, %v8322_v0  ;;  %4738 = vst.msk [vmem:[#allocation2 + $0x28] sm:$0xff] %vm3193_vm2, %v8322_v0 }
 0x4a2   :  { %v2437_v31 = vmul.f32 %v2392_v9, %v2185_v8  ;;  %7384 = vmatmul.mubr.msk.bf16.vlgmr.msra.gmra.mxu1 %vm2465_vm0, %v2979_v49  ;;  %4739 = vst.msk [vmem:[#allocation2 + $0x30] sm:$0xff] %vm3193_vm2, %v8322_v0 }
 0x4a3   :  { %7396 = vmatpush3.bf16.msra.mxu1 %v7958_v20  ;;  %7403 = vmatprep.mubr.msk.bf16.mxu1 %vm8323_vm1, %v8322_v0  ;;  %v7969_v20 = vld [vmem:[%s12483_s6 + $0x68] sm:$0xff]  }
 0x4a4   :  { %v3056_v55 = vpack.c.bf16 %v2437_v31, %v2436_v52  ;;  %7397 = vmatprep.subr.bf16.mxu1 %v8322_v0  ;;  %v11034_v31 = vld [vmem:[%s12484_s5] ss:$0 sm:$0xff] }
 0x4a5   :  { %v2402_v16 = vpop.permute.xlu1 %2401 }
 0x4a6   :  { %v2439_v54 = vmul.f32 %v2402_v16, %v2187_v58  ;;  %7391 = vmatprep.mubr.msk.bf16.mxu0 %vm2465_vm0, %v3056_v55 }
 0x4a7   :  { %7398 = vmatpush3.bf16.msra.mxu1 %v7960_v14 }
 0x4a8   :  { %v3057_v18 = vpack.c.bf16 %v2439_v54, %v2438_v39  ;;  %7399 = vmatprep.subr.bf16.mxu1 %v8322_v0  ;;  %v7965_v39 = vld [vmem:[%s12483_s6 + $0x78] sm:$0xff]  }
 0x4aa   :  { %7392 = vmatmul.mubr.msk.bf16.vlgmr.msra.gmra.mxu0 %vm2465_vm0, %v3057_v18  ;;  %v7966_v18 = vld [vmem:[%s12483_s6 + $0x58] sm:$0xff]  }
 0x4ab   :  { %7408 = vmatpush3.bf16.msra.mxu0 %v7957_v4  ;;  %7400 = vmatpush3.bf16.msra.mxu1 %v7962_v42 }
 0x4ac   :  { %7409 = vmatprep.subr.bf16.mxu0 %v8322_v0  ;;  %7401 = vmatprep.subr.bf16.mxu1 %v8322_v0 }
 0x4ad   :  { %7415 = vmatprep.mubr.msk.bf16.mxu0 %vm8323_vm1, %v8322_v0 }
 0x4af   :  { %7410 = vmatpush3.bf16.msra.mxu0 %v7959_v46  ;;  %7402 = vmatpush3.bf16.msra.mxu1 %v7964_v19  ;;  %v7970_v46 = vld [vmem:[%s12483_s6 + $0x48] sm:$0xff]  }
 0x4b0   :  { %7411 = vmatprep.subr.bf16.mxu0 %v8322_v0  ;;  %7419 = vmatprep.subr.bf16.mxu1 %v8322_v0 }
 0x4b3   :  { %7412 = vmatpush3.bf16.msra.mxu0 %v7961_v22 }
 0x4b4   :  { %7413 = vmatprep.subr.bf16.mxu0 %v8322_v0 }
 0x4b7   :  { %7414 = vmatpush3.bf16.msra.mxu0 %v7963_v56 }
 0x4b8   :  { %7431 = vmatprep.subr.bf16.mxu0 %v8322_v0 }
 0x4ba   :  { %v7353_v35 = vpop.f32.mrf.mxu1 }
 0x4bb   :  { %v2742_v25 = vadd.f32 %v7353_v35, %v13119_v21  ;;  %v13124_v35 = vld [vmem:[#allocation147_spill] sm:$0xff]  ;;  %v13125_v21 = vld [vmem:[#allocation141_spill] sm:$0xff] }
 0x4bc   :  { %v10934_v45 = vpop.f32.mrf.mxu1 }
 0x4bd   :  { %v2740_v61 = vadd.f32 %v10934_v45, %v2662_v29  ;;  %v7986_v29 = vld [vmem:[%s12483_s6 + $0xc8] sm:$0xff]  }
 0x4be   :  { %v7354_v43 = vpop.f32.mrf.mxu1 }
 0x4bf   :  { %v2743_v12 = vadd.f32 %v7354_v43, %v13120_v27  ;;  %v7967_v43 = vld [vmem:[%s12483_s6 + $0x70] sm:$0xff]  }
 0x4c0   :  { %v2728_v26 = vpop.f32.mrf.mxu1 }
 0x4ea   :  { %v7361_v63 = vpop.f32.mrf.mxu0 }
 0x4eb   :  { %v2820_v51 = vadd.f32 %v7361_v63, %v2742_v25  ;;  %v2577_v25 = vadd.f32 %v13125_v21, %v13124_v35  ;;  %v8004_v35 = vld [vmem:[%s12483_s6 + $0x140] sm:$0xff]   ;;  %v8005_v21 = vld [vmem:[%s12483_s6 + $0x1b8] sm:$0xff]  }
 0x4ec   :  { %v2803_v28 = vpop.f32.mrf.mxu0 }
 0x4ed   :  { %v2818_v57 = vadd.f32 %v2803_v28, %v2740_v61  ;;  %v2663_v27 = vadd.f32 %v10980_v30, %v2577_v25  ;;  %v7988_v61 = vld [vmem:[%s12483_s6 + $0xc0] sm:$0xff]  }
 0x4ee   :  { %v7362_v34 = vpop.f32.mrf.mxu0 }
 0x4ef   :  { %v2821_v33 = vadd.f32 %v7362_v34, %v2743_v12  ;;  %v7968_v12 = vld [vmem:[%s12483_s6 + $0x50] sm:$0xff]   ;;  %v2741_v4 = vadd.f32 %v2728_v26, %v2663_v27  ;;  %v7972_v34 = vld [vmem:[%s12483_s6 + $0x40] sm:$0xff]   ;;  %v7974_v26 = vld [vmem:[%s12483_s6 + $0x98] sm:$0xff]  }
 0x4f0   :  { %v2806_v36 = vpop.f32.mrf.mxu0  ;;  %v8007_v27 = vld [vmem:[%s12483_s6 + $0x1b0] sm:$0xff]  }
 0x4f1   :  { %v2819_v30 = vadd.f32 %v2806_v36, %v2741_v4  ;;  %v8009_v4 = vld [vmem:[%s12483_s6 + $0x1a8] sm:$0xff]  }
 0x53e   :  { %v7369_v59 = vpop.f32.mrf.mxu1 }
 0x53f   :  { %v2898_v53 = vadd.f32 %v7369_v59, %v2820_v51  ;;  %v7971_v51 = vld [vmem:[%s12483_s6 + $0x60] sm:$0xff]  }
 0x540   :  { %v2881_v47 = vpop.f32.mrf.mxu1 }
 0x541   :  { %v2896_v48 = vadd.f32 %v2881_v47, %v2818_v57  ;;  %v7990_v57 = vld [vmem:[%s12483_s6 + $0x118] sm:$0xff]  }
 0x542   :  { %v7370_v41 = vpop.f32.mrf.mxu1 }
 0x543   :  { %v2899_v2 = vadd.f32 %v7370_v41, %v2821_v33  ;;  %v7973_v33 = vld [vmem:[%s12483_s6 + $0xb8] sm:$0xff]   ;;  %v7976_v41 = vld [vmem:[%s12483_s6 + $0x90] sm:$0xff]  }
 0x544   :  { %v2884_v3 = vpop.f32.mrf.mxu1 }
 0x545   :  { %v2897_v63 = vadd.f32 %v2884_v3, %v2819_v30  ;;  %v7984_v3 = vld [vmem:[%s12483_s6 + $0xd0] sm:$0xff]   ;;  %v8010_v30 = vld [vmem:[%s12483_s6 + $0x188] sm:$0xff]  }
 0x556   :  { %v7377_v24 = vpop.f32.mrf.mxu0 }
 0x557   :  { %v2976_v40 = vadd.f32 %v7377_v24, %v2898_v53  ;;  %v7975_v53 = vld [vmem:[%s12483_s6 + $0xb0] sm:$0xff]   ;;  %v7978_v24 = vld [vmem:[%s12483_s6 + $0x88] sm:$0xff]  }
 0x558   :  { %v2959_v44 = vpop.f32.mrf.mxu0 }
 0x559   :  { %v2974_v49 = vadd.f32 %v2959_v44, %v2896_v48  ;;  %v7991_v48 = vld [vmem:[%s12483_s6 + $0x130] sm:$0xff]  }
 0x55a   :  { %v7378_v23 = vpop.f32.mrf.mxu0 }
 0x55b   :  { %v2977_v6 = vadd.f32 %v7378_v23, %v2899_v2  ;;  %v7977_v2 = vld [vmem:[%s12483_s6 + $0xa8] sm:$0xff]   ;;  %v7980_v23 = vld [vmem:[%s12483_s6 + $0x80] sm:$0xff]  }
 0x55c   :  { %v2962_v38 = vpop.f32.mrf.mxu0 }
 0x55d   :  { %v2975_v28 = vadd.f32 %v2962_v38, %v2897_v63  ;;  %v7992_v38 = vld [vmem:[%s12483_s6 + $0x110] sm:$0xff]  }
 0x562   :  { %v7385_v32 = vpop.f32.mrf.mxu1 }
 0x563   :  { %v3054_v50 = vadd.f32 %v7385_v32, %v2976_v40  ;;  %v7979_v40 = vld [vmem:[%s12483_s6 + $0xa0] sm:$0xff]  }
 0x564   :  { %v3037_v13 = vpop.f32.mrf.mxu1  ;;  %v7987_v32 = vld [vmem:[%s12483_s6 + $0xe0] sm:$0xff]  }
 0x565   :  { %v3052_v37 = vadd.f32 %v3037_v13, %v2974_v49  ;;  %v7993_v49 = vld [vmem:[%s12483_s6 + $0x128] sm:$0xff]  }
 0x566   :  { %v7386_v11 = vpop.f32.mrf.mxu1 }
 0x567   :  { %v3055_v5 = vadd.f32 %v7386_v11, %v2977_v6  ;;  %v7981_v6 = vld [vmem:[%s12483_s6 + $0xf8] sm:$0xff]  }
 0x568   :  { %v3040_v14 = vpop.f32.mrf.mxu1 }
 0x569   :  { %v3053_v42 = vadd.f32 %v3040_v14, %v2975_v28  ;;  %v8013_v14 = vld [vmem:[%s12483_s6 + $0x1f8] sm:$0xff]  }
 0x56a   :  { %v7393_v8 = vpop.f32.mrf.mxu0  ;;  %v8014_v28 = vld [vmem:[%s12483_s6 + $0x1d8] sm:$0xff]  }
 0x56b   :  { %v11029_v1 = vadd.f32 %v7393_v8, %v3054_v50  ;;  %v7989_v50 = vld [vmem:[%s12483_s6 + $0x138] sm:$0xff]  }
 0x56c   :  { %v3115_v9 = vpop.f32.mrf.mxu0 }
 0x56d   :  { %v3130_v52 = vadd.f32 %v3115_v9, %v3052_v37  ;;  %v7994_v37 = vld [vmem:[%s12483_s6 + $0x108] sm:$0xff]  }
 0x56e   :  { %v7394_v60 = vpop.f32.mrf.mxu0 }
 0x56f   :  { %v3141_v55 = vadd.f32 %v11034_v31, %v3130_v52  ;;  %v3133_v58 = vadd.f32 %v7394_v60, %v3055_v5  ;;  %v3143_v5 = vadd.f32 %v11034_v31, %v11029_v1  ;;  %v7995_v1 = vld [vmem:[%s12483_s6 + $0x120] sm:$0xff]  }
 0x570   :  { %v3118_v22 = vpop.f32.mrf.mxu0  ;;  %v7996_v52 = vld [vmem:[%s12483_s6 + $0x100] sm:$0xff]  }
 0x571   :  { %v3145_v10 = vmax.f32 %v3141_v55, 0.0  ;;  %v11038_v16 = vadd.f32 %v11034_v31, %v3133_v58  ;;  %v3131_v19 = vadd.f32 %v3118_v22, %v3053_v42  ;;  %v3147_v8 = vmax.f32 %v3143_v5, 0.0  ;;  %v7998_v55 = vld [vmem:[%s12483_s6 + $0x158] sm:$0xff]   ;;  %v7999_v58 = vld [vmem:[%s12483_s6 + $0x170] sm:$0xff]   ;;  %v8017_v42 = vld [vmem:[%s12483_s6 + $0x1e8] sm:$0xff]  }
 0x572   :  { %v8015_v22 = vld [vmem:[%s12483_s6 + $0x1f0] sm:$0xff]  }
 0x573   :  { %v3149_v54 = vpack.c.bf16 %v3145_v10, %v3145_v10  ;;  %v3142_v47 = vadd.f32 %v11034_v31, %v3131_v19  ;;  %v3773_v9 = vpack.c.bf16 %v3147_v8, %v3147_v8  ;;  %v7997_v31 = vld [vmem:[%s12483_s6 + $0x178] sm:$0xff]   ;;  %v8000_v10 = vld [vmem:[%s12483_s6 + $0x150] sm:$0xff]   ;;  %v8020_v19 = vld [vmem:[%s12483_s6 + $0x1c0] sm:$0xff]  }
 0x575   :  { %v3168_v45 = vrot.slane %v3149_v54, 1  ;;  %7416 = vmatmul.mubr.msk.bf16.vlgmr.msra.gmra.mxu0 %vm3193_vm2, %v3149_v54  ;;  %v3391_v56 = vrot.slane %v3149_v54, 3  ;;  %v3313_v59 = vrot.slane %v3149_v54, 2  ;;  %v3146_v36 = vmax.f32 %v3142_v47, 0.0  ;;  %v8002_v54 = vld [vmem:[%s12483_s6 + $0x148] sm:$0xff]  }
 0x576   :  { %7432 = vmatpush3.bf16.msra.mxu0 %v7965_v39  ;;  %7439 = vmatprep.mubr.msk.bf16.mxu0 %vm8323_vm1, %v8322_v0  ;;  %v3861_v60 = vrot.slane %v3773_v9, 1  ;;  %v8001_v39 = vld [vmem:[%s12483_s6 + $0x168] sm:$0xff]   ;;  %v4017_v25 = vrot.slane %v3773_v9, 3 }
 0x577   :  { %7404 = vmatmul.mubr.msk.bf16.vlgmr.msra.gmra.mxu1 %vm3193_vm2, %v3168_v45  ;;  %7433 = vmatprep.subr.bf16.mxu0 %v8322_v0  ;;  %v3460_v44 = vpack.c.bf16 %v3146_v36, %v3146_v36  ;;  %v8006_v45 = vld [vmem:[%s12483_s6 + $0x198] sm:$0xff]  }
 0x578   :  { %7420 = vmatpush3.bf16.msra.mxu1 %v7966_v18  ;;  %7427 = vmatprep.mubr.msk.bf16.mxu1 %vm8323_vm1, %v8322_v0  ;;  %v8003_v18 = vld [vmem:[%s12483_s6 + $0x160] sm:$0xff]  }
 0x579   :  { %7421 = vmatprep.subr.bf16.mxu1 %v8322_v0  ;;  %v3548_v7 = vrot.slane %v3460_v44, 1  ;;  %v3704_v13 = vrot.slane %v3460_v44, 3  ;;  %v3626_v11 = vrot.slane %v3460_v44, 2 }
 0x57a   :  { %7434 = vmatpush3.bf16.msra.mxu0 %v7967_v43  ;;  %v3939_v43 = vrot.slane %v3773_v9, 2 }
 0x57b   :  { %7435 = vmatprep.subr.bf16.mxu0 %v8322_v0 }
 0x57c   :  { %7422 = vmatpush3.bf16.msra.mxu1 %v7968_v12  ;;  %v8008_v12 = vld [vmem:[%s12483_s6 + $0x190] sm:$0xff]  }
 0x57d   :  { %7423 = vmatprep.subr.bf16.mxu1 %v8322_v0 }
 0x57e   :  { %7436 = vmatpush3.bf16.msra.mxu0 %v7969_v20  ;;  %v3148_v20 = vmax.f32 %v11038_v16, 0.0  ;;  %v8012_v16 = vld [vmem:[%s12483_s6 + $0x180] sm:$0xff]  }
 0x57f   :  { %7437 = vmatprep.subr.bf16.mxu0 %v8322_v0 }
 0x580   :  { %7424 = vmatpush3.bf16.msra.mxu1 %v7970_v46  ;;  %v8011_v46 = vld [vmem:[%s12483_s6 + $0x1a0] sm:$0xff]   ;;  %v4086_v63 = vpack.c.bf16 %v3148_v20, %v3148_v20 }
 0x581   :  { %7425 = vmatprep.subr.bf16.mxu1 %v8322_v0 }
 0x582   :  { %7438 = vmatpush3.bf16.msra.mxu0 %v7971_v51  ;;  %v4174_v51 = vrot.slane %v4086_v63, 1 }
 0x583   :  { %7455 = vmatprep.subr.bf16.mxu0 %v8322_v0 }
 0x584   :  { %7426 = vmatpush3.bf16.msra.mxu1 %v7972_v34  ;;  %v8016_v34 = vld [vmem:[%s12483_s6 + $0x1d0] sm:$0xff]  }
 0x585   :  { %7440 = vmatmul.mubr.msk.bf16.vlgmr.msra.gmra.mxu0 %vm3193_vm2, %v3391_v56  ;;  %7443 = vmatprep.subr.bf16.mxu1 %v8322_v0  ;;  %v8019_v56 = vld [vmem:[%s12483_s6 + $0x1e0] sm:$0xff]  }
 0x586   :  { %7456 = vmatpush3.bf16.msra.mxu0 %v7973_v33  ;;  %7463 = vmatprep.mubr.msk.bf16.mxu0 %vm8323_vm1, %v8322_v0  ;;  %v8018_v33 = vld [vmem:[%s12483_s6 + $0x1c8] sm:$0xff]  }
 0x587   :  { %7428 = vmatmul.mubr.msk.bf16.vlgmr.msra.gmra.mxu1 %vm3193_vm2, %v3313_v59  ;;  %7457 = vmatprep.subr.bf16.mxu0 %v8322_v0  ;;  %v4252_v59 = vrot.slane %v4086_v63, 2 }
 0x588   :  { %7444 = vmatpush3.bf16.msra.mxu1 %v7974_v26  ;;  %7451 = vmatprep.mubr.msk.bf16.mxu1 %vm8323_vm1, %v8322_v0  ;;  %v4330_v26 = vrot.slane %v4086_v63, 3 }
 0x589   :  { %7445 = vmatprep.subr.bf16.mxu1 %v8322_v0 }
 0x58a   :  { %7458 = vmatpush3.bf16.msra.mxu0 %v7975_v53  ;;  %v13126_v53 = vmov 0  }
 0x58b   :  { %7459 = vmatprep.subr.bf16.mxu0 %v8322_v0 }
 0x58c   :  { %7446 = vmatpush3.bf16.msra.mxu1 %v7976_v41 }
 0x58d   :  { %7447 = vmatprep.subr.bf16.mxu1 %v8322_v0 }
 0x58e   :  { %7460 = vmatpush3.bf16.msra.mxu0 %v7977_v2 }
 0x58f   :  { %7461 = vmatprep.subr.bf16.mxu0 %v8322_v0 }
 0x590   :  { %7448 = vmatpush3.bf16.msra.mxu1 %v7978_v24 }
 0x591   :  { %7449 = vmatprep.subr.bf16.mxu1 %v8322_v0 }
 0x592   :  { %7462 = vmatpush3.bf16.msra.mxu0 %v7979_v40 }
 0x593   :  { %7479 = vmatprep.subr.bf16.mxu0 %v8322_v0 }
 0x594   :  { %7450 = vmatpush3.bf16.msra.mxu1 %v7980_v23 }
 0x595   :  { %7464 = vmatmul.mubr.msk.bf16.vlgmr.msra.gmra.mxu0 %vm3193_vm2, %v3548_v7  ;;  %7467 = vmatprep.subr.bf16.mxu1 %v8322_v0  ;;  %v4428_v7 = vld [vmem:[%s12485_s9 + $0x40] sm:$0xff] }
 0x596   :  { %7480 = vmatpush3.bf16.msra.mxu0 %v7981_v6  ;;  %7487 = vmatprep.mubr.msk.bf16.mxu0 %vm8323_vm1, %v8322_v0 }
 0x597   :  { %7452 = vmatmul.mubr.msk.bf16.vlgmr.msra.gmra.mxu1 %vm3193_vm2, %v3460_v44  ;;  %7481 = vmatprep.subr.bf16.mxu0 %v8322_v0 }
 0x598   :  { %7468 = vmatpush3.bf16.msra.mxu1 %v7982_v62  ;;  %7475 = vmatprep.mubr.msk.bf16.mxu1 %vm8323_vm1, %v8322_v0  ;;  %v4432_v62 = vld [vmem:[%s12485_s9 + $0x60] sm:$0xff] }
 0x599   :  { %7469 = vmatprep.subr.bf16.mxu1 %v8322_v0 }
 0x59a   :  { %7482 = vmatpush3.bf16.msra.mxu0 %v7983_v15  ;;  %v4429_v15 = vld [vmem:[%s12485_s9 + $0x48] sm:$0xff] }
 0x59b   :  { %7483 = vmatprep.subr.bf16.mxu0 %v8322_v0 }
 0x59c   :  { %7470 = vmatpush3.bf16.msra.mxu1 %v7984_v3  ;;  %v7002_v3 = vcombine.low %v4428_v7, %v4432_v62 }
 0x59d   :  { %7471 = vmatprep.subr.bf16.mxu1 %v8322_v0 }
 0x59e   :  { %7484 = vmatpush3.bf16.msra.mxu0 %v7985_v17  ;;  %v7003_v17 = vcombine.high %v4428_v7, %v4432_v62 }
 0x59f   :  { %7485 = vmatprep.subr.bf16.mxu0 %v8322_v0 }
 0x5a0   :  { %7472 = vmatpush3.bf16.msra.mxu1 %v7986_v29  ;;  %v4433_v29 = vld [vmem:[%s12485_s9 + $0x68] sm:$0xff] }
 0x5a1   :  { %7473 = vmatprep.subr.bf16.mxu1 %v8322_v0 }
 0x5a2   :  { %7486 = vmatpush3.bf16.msra.mxu0 %v7987_v32  ;;  %v7004_v32 = vcombine.low %v4429_v15, %v4433_v29 }
 0x5a3   :  { %7503 = vmatprep.subr.bf16.mxu0 %v8322_v0 }
 0x5a4   :  { %7474 = vmatpush3.bf16.msra.mxu1 %v7988_v61  ;;  %v7005_v61 = vcombine.high %v4429_v15, %v4433_v29 }
 0x5a5   :  { %7488 = vmatmul.mubr.msk.bf16.vlgmr.msra.gmra.mxu0 %vm3193_vm2, %v3704_v13  ;;  %7491 = vmatprep.subr.bf16.mxu1 %v8322_v0 }
 0x5a6   :  { %7504 = vmatpush3.bf16.msra.mxu0 %v7989_v50  ;;  %7511 = vmatprep.mubr.msk.bf16.mxu0 %vm8323_vm1, %v8322_v0 }
 0x5a7   :  { %7476 = vmatmul.mubr.msk.bf16.vlgmr.msra.gmra.mxu1 %vm3193_vm2, %v3626_v11  ;;  %7505 = vmatprep.subr.bf16.mxu0 %v8322_v0 }
 0x5a8   :  { %7492 = vmatpush3.bf16.msra.mxu1 %v7990_v57  ;;  %7499 = vmatprep.mubr.msk.bf16.mxu1 %vm8323_vm1, %v8322_v0 }
 0x5a9   :  { %7493 = vmatprep.subr.bf16.mxu1 %v8322_v0 }
 0x5aa   :  { %7506 = vmatpush3.bf16.msra.mxu0 %v7991_v48 }
 0x5ab   :  { %7507 = vmatprep.subr.bf16.mxu0 %v8322_v0 }
 0x5ac   :  { %7494 = vmatpush3.bf16.msra.mxu1 %v7992_v38 }
 0x5ad   :  { %7495 = vmatprep.subr.bf16.mxu1 %v8322_v0 }
 0x5ae   :  { %7508 = vmatpush3.bf16.msra.mxu0 %v7993_v49 }
 0x5af   :  { %7509 = vmatprep.subr.bf16.mxu0 %v8322_v0 }
 0x5b0   :  { %7496 = vmatpush3.bf16.msra.mxu1 %v7994_v37 }
 0x5b1   :  { %7497 = vmatprep.subr.bf16.mxu1 %v8322_v0 }
 0x5b2   :  { %7510 = vmatpush3.bf16.msra.mxu0 %v7995_v1 }
 0x5b3   :  { %7527 = vmatprep.subr.bf16.mxu0 %v8322_v0 }
 0x5b4   :  { %7498 = vmatpush3.bf16.msra.mxu1 %v7996_v52 }
 0x5b5   :  { %7512 = vmatmul.mubr.msk.bf16.vlgmr.msra.gmra.mxu0 %vm3193_vm2, %v3861_v60  ;;  %7515 = vmatprep.subr.bf16.mxu1 %v8322_v0 }
 0x5b6   :  { %7528 = vmatpush3.bf16.msra.mxu0 %v7997_v31  ;;  %7535 = vmatprep.mubr.msk.bf16.mxu0 %vm8323_vm1, %v8322_v0 }
 0x5b7   :  { %7500 = vmatmul.mubr.msk.bf16.vlgmr.msra.gmra.mxu1 %vm3193_vm2, %v3773_v9  ;;  %7529 = vmatprep.subr.bf16.mxu0 %v8322_v0 }
 0x5b8   :  { %7516 = vmatpush3.bf16.msra.mxu1 %v7998_v55  ;;  %7523 = vmatprep.mubr.msk.bf16.mxu1 %vm8323_vm1, %v8322_v0 }
 0x5b9   :  { %7517 = vmatprep.subr.bf16.mxu1 %v8322_v0 }
 0x5ba   :  { %7530 = vmatpush3.bf16.msra.mxu0 %v7999_v58 }
 0x5bb   :  { %7531 = vmatprep.subr.bf16.mxu0 %v8322_v0 }
 0x5bc   :  { %7518 = vmatpush3.bf16.msra.mxu1 %v8000_v10 }
 0x5bd   :  { %7519 = vmatprep.subr.bf16.mxu1 %v8322_v0 }
 0x5be   :  { %7532 = vmatpush3.bf16.msra.mxu0 %v8001_v39 }
 0x5bf   :  { %7533 = vmatprep.subr.bf16.mxu0 %v8322_v0 }
 0x5c0   :  { %7520 = vmatpush3.bf16.msra.mxu1 %v8002_v54 }
 0x5c1   :  { %7521 = vmatprep.subr.bf16.mxu1 %v8322_v0 }
 0x5c2   :  { %7534 = vmatpush3.bf16.msra.mxu0 %v8003_v18 }
 0x5c3   :  { %7551 = vmatprep.subr.bf16.mxu0 %v8322_v0 }
 0x5c4   :  { %7522 = vmatpush3.bf16.msra.mxu1 %v8004_v35 }
 0x5c5   :  { %7536 = vmatmul.mubr.msk.bf16.vlgmr.msra.gmra.mxu0 %vm3193_vm2, %v4017_v25  ;;  %7539 = vmatprep.subr.bf16.mxu1 %v8322_v0 }
 0x5c6   :  { %7552 = vmatpush3.bf16.msra.mxu0 %v8005_v21  ;;  %7559 = vmatprep.mubr.msk.bf16.mxu0 %vm8323_vm1, %v8322_v0 }
 0x5c7   :  { %7524 = vmatmul.mubr.msk.bf16.vlgmr.msra.gmra.mxu1 %vm3193_vm2, %v3939_v43  ;;  %7553 = vmatprep.subr.bf16.mxu0 %v8322_v0 }
 0x5c8   :  { %7540 = vmatpush3.bf16.msra.mxu1 %v8006_v45  ;;  %7547 = vmatprep.mubr.msk.bf16.mxu1 %vm8323_vm1, %v8322_v0 }
 0x5c9   :  { %7541 = vmatprep.subr.bf16.mxu1 %v8322_v0 }
 0x5ca   :  { %7554 = vmatpush3.bf16.msra.mxu0 %v8007_v27 }
 0x5cb   :  { %7555 = vmatprep.subr.bf16.mxu0 %v8322_v0 }
 0x5cc   :  { %7542 = vmatpush3.bf16.msra.mxu1 %v8008_v12 }
 0x5cd   :  { %7543 = vmatprep.subr.bf16.mxu1 %v8322_v0 }
 0x5ce   :  { %7556 = vmatpush3.bf16.msra.mxu0 %v8009_v4 }
 0x5cf   :  { %7557 = vmatprep.subr.bf16.mxu0 %v8322_v0 }
 0x5d0   :  { %7544 = vmatpush3.bf16.msra.mxu1 %v8010_v30 }
 0x5d1   :  { %7545 = vmatprep.subr.bf16.mxu1 %v8322_v0 }
 0x5d2   :  { %7558 = vmatpush3.bf16.msra.mxu0 %v8011_v46 }
 0x5d3   :  { %7575 = vmatprep.subr.bf16.mxu0 %v8322_v0 }
 0x5d4   :  { %7546 = vmatpush3.bf16.msra.mxu1 %v8012_v16 }
 0x5d5   :  { %7560 = vmatmul.mubr.msk.bf16.vlgmr.msra.gmra.mxu0 %vm3193_vm2, %v4174_v51  ;;  %7563 = vmatprep.subr.bf16.mxu1 %v8322_v0 }
 0x5d6   :  { %7576 = vmatpush3.bf16.msra.mxu0 %v8013_v14  ;;  %7583 = vmatprep.mubr.msk.bf16.mxu0 %vm8323_vm1, %v8322_v0 }
 0x5d7   :  { %7548 = vmatmul.mubr.msk.bf16.vlgmr.msra.gmra.mxu1 %vm3193_vm2, %v4086_v63  ;;  %7577 = vmatprep.subr.bf16.mxu0 %v8322_v0 }
 0x5d8   :  { %7564 = vmatpush3.bf16.msra.mxu1 %v8014_v28  ;;  %7571 = vmatprep.mubr.msk.bf16.mxu1 %vm8323_vm1, %v8322_v0 }
 0x5d9   :  { %7565 = vmatprep.subr.bf16.mxu1 %v8322_v0 }
 0x5da   :  { %7578 = vmatpush3.bf16.msra.mxu0 %v8015_v22 }
 0x5db   :  { %7579 = vmatprep.subr.bf16.mxu0 %v8322_v0 }
 0x5dc   :  { %7566 = vmatpush3.bf16.msra.mxu1 %v8016_v34 }
 0x5dd   :  { %7567 = vmatprep.subr.bf16.mxu1 %v8322_v0 }
 0x5de   :  { %7580 = vmatpush3.bf16.msra.mxu0 %v8017_v42 }
 0x5df   :  { %7581 = vmatprep.subr.bf16.mxu0 %v8322_v0 }
 0x5e0   :  { %7568 = vmatpush3.bf16.msra.mxu1 %v8018_v33 }
 0x5e1   :  { %7569 = vmatprep.subr.bf16.mxu1 %v8322_v0 }
 0x5e2   :  { %7582 = vmatpush3.bf16.msra.mxu0 %v8019_v56 }
 0x5e3   :  { %4614 = vmatprep.subr.bf16.mxu0 %v7005_v61 }
 0x5e4   :  { %7570 = vmatpush3.bf16.msra.mxu1 %v8020_v19 }
 0x5e5   :  { %7584 = vmatmul.mubr.msk.bf16.vlgmr.msra.gmra.mxu0 %vm3193_vm2, %v4330_v26  ;;  %4573 = vmatprep.subr.bf16.mxu1 %v7003_v17 }
 0x5e6   :  { %4634 = vmatprep.mubr.bf16.mxu0 %v13126_v53  ;;  %4615 = vmatpush1.bf16.msra.mxu0 %v7004_v32 }
 0x5e7   :  { %7572 = vmatmul.mubr.msk.bf16.vlgmr.msra.gmra.mxu1 %vm3193_vm2, %v4252_v59 }
 0x5e8   :  { %4593 = vmatprep.mubr.bf16.mxu1 %v13126_v53  ;;  %4574 = vmatpush1.bf16.msra.mxu1 %v7002_v3 }
 0x635   :  { %v3298_v47 = vpop.f32.mrf.mxu0 }
 0x637   :  { %v3231_v41 = vpop.f32.mrf.mxu1  ;;  %v7417_v2 = vpop.f32.mrf.mxu0 }
 0x638   :  { %v3299_v36 = vadd.f32 %v3298_v47, %v3231_v41 }
 0x639   :  { %v7405_v24 = vpop.f32.mrf.mxu1  ;;  %v3301_v40 = vpop.f32.mrf.mxu0 }
 0x63b   :  { %v3234_v44 = vpop.f32.mrf.mxu1  ;;  %v7418_v23 = vpop.f32.mrf.mxu0 }
 0x63d   :  { %v7406_v6 = vpop.f32.mrf.mxu1 }
 0x645   :  { %v3453_v50 = vpop.f32.mrf.mxu0 }
 0x647   :  { %v3375_v13 = vpop.f32.mrf.mxu1  ;;  %v7441_v57 = vpop.f32.mrf.mxu0 }
 0x648   :  { %v3381_v11 = vadd.f32 %v3375_v13, %v3299_v36  ;;  %v6993_v57 = vld [vmem:[%s12486_s7] ss:$0 sm:$0xff] }
 0x649   :  { %v7429_v48 = vpop.f32.mrf.mxu1  ;;  %v3456_v5 = vpop.f32.mrf.mxu0 }
 0x64a   :  { %v3459_v38 = vadd.f32 %v3453_v50, %v3381_v11 }
 0x64b   :  { %v3378_v49 = vpop.f32.mrf.mxu1  ;;  %v7442_v8 = vpop.f32.mrf.mxu0 }
 0x64d   :  { %v7430_v37 = vpop.f32.mrf.mxu1 }
 0x655   :  { %v3610_v1 = vpop.f32.mrf.mxu0 }
 0x657   :  { %v3531_v9 = vpop.f32.mrf.mxu1  ;;  %v7465_v52 = vpop.f32.mrf.mxu0 }
 0x658   :  { %v3537_v31 = vadd.f32 %v3531_v9, %v3459_v38  ;;  %v4420_v52 = vld [vmem:[%s12485_s9] sm:$0xff] }
 0x659   :  { %v7453_v60 = vpop.f32.mrf.mxu1  ;;  %v3613_v55 = vpop.f32.mrf.mxu0 }
 0x65a   :  { %v3616_v58 = vadd.f32 %v3610_v1, %v3537_v31  ;;  %v4424_v31 = vld [vmem:[%s12485_s9 + $0x20] sm:$0xff]  ;;  %v4421_v60 = vld [vmem:[%s12485_s9 + $0x8] sm:$0xff] }
 0x65b   :  { %v3534_v10 = vpop.f32.mrf.mxu1  ;;  %v7466_v39 = vpop.f32.mrf.mxu0  ;;  %v6995_v55 = vcombine.high %v4420_v52, %v4424_v31 }
 0x65c   :  { %v6994_v10 = vcombine.low %v4420_v52, %v4424_v31  ;;  %v13132_v52 = vld [vmem:[#allocation184_spill] sm:$0xff] }
 0x65d   :  { %v7454_v54 = vpop.f32.mrf.mxu1  ;;  %4575 = vmatprep.subr.bf16.mxu1 %v6995_v55 }
 0x65e   :  { %4576 = vmatpush1.bf16.msra.mxu1 %v6994_v10 }
 0x665   :  { %v3766_v18 = vpop.f32.mrf.mxu0 }
 0x667   :  { %v3688_v35 = vpop.f32.mrf.mxu1  ;;  %v7489_v21 = vpop.f32.mrf.mxu0 }
 0x668   :  { %v3694_v59 = vadd.f32 %v3688_v35, %v3616_v58  ;;  %v4425_v58 = vld [vmem:[%s12485_s9 + $0x28] sm:$0xff]  ;;  %v4434_v35 = vld [vmem:[%s12485_s9 + $0x70] sm:$0xff]  ;;  %v4431_v21 = vld [vmem:[%s12485_s9 + $0x58] sm:$0xff] }
 0x669   :  { %v7477_v25 = vpop.f32.mrf.mxu1  ;;  %v3769_v45 = vpop.f32.mrf.mxu0  ;;  %v6996_v39 = vcombine.low %v4421_v60, %v4425_v58  ;;  %v6997_v54 = vcombine.high %v4421_v60, %v4425_v58  ;;  %v13133_v58 = vld [vmem:[#allocation181_spill] sm:$0xff] }
 0x66a   :  { %v3772_v47 = vadd.f32 %v3766_v18, %v3694_v59  ;;  %v4430_v18 = vld [vmem:[%s12485_s9 + $0x50] sm:$0xff]  ;;  %v4435_v45 = vld [vmem:[%s12485_s9 + $0x78] sm:$0xff] }
 0x66b   :  { %v3691_v43 = vpop.f32.mrf.mxu1  ;;  %v7490_v27 = vpop.f32.mrf.mxu0  ;;  %4616 = vmatprep.subr.bf16.mxu0 %v6997_v54  ;;  %v7007_v25 = vcombine.high %v4430_v18, %v4434_v35  ;;  %v8024_v59 = vld [vmem:[%s12489_s11 + $0xb0] sm:$0xff]  }
 0x66c   :  { %4617 = vmatpush1.bf16.msra.mxu0 %v6996_v39  ;;  %v7006_v43 = vcombine.low %v4430_v18, %v4434_v35  ;;  %v7008_v27 = vcombine.low %v4431_v21, %v4435_v45  ;;  %v13134_v39 = vld [vmem:[#allocation61_spill] sm:$0xff] }
 0x66d   :  { %v7478_v12 = vpop.f32.mrf.mxu1  ;;  %4655 = vmatprep.subr.bf16.mxu1 %v7007_v25 }
 0x66e   :  { %v7009_v12 = vcombine.high %v4431_v21, %v4435_v45 }
 0x670   :  { %4696 = vmatprep.subr.bf16.mxu0 %v7009_v12 }
 0x675   :  { %v3923_v4 = vpop.f32.mrf.mxu0 }
 0x677   :  { %v3844_v20 = vpop.f32.mrf.mxu1  ;;  %v7513_v30 = vpop.f32.mrf.mxu0 }
 0x678   :  { %v3850_v2 = vadd.f32 %v3844_v20, %v3772_v47  ;;  %v4409_v20 = vld [vmem:[%s12488_s8] sm:$0x3] }
 0x679   :  { %v7501_v46 = vpop.f32.mrf.mxu1  ;;  %v3926_v63 = vpop.f32.mrf.mxu0  ;;  %v4436_v47 = vld [vmem:[%s12490_s10] sm:$0xff] }
 0x67a   :  { %v3929_v23 = vadd.f32 %v3923_v4, %v3850_v2  ;;  %v4422_v63 = vld [vmem:[%s12485_s9 + $0x10] sm:$0xff]  ;;  %v4465_v31 = vrot.slane %v4436_v47, %v13132_v52  ;;  %v4461_v10 = vrot.slane %v4436_v47, %v13133_v58  ;;  %v4469_v54 = vrot.slane %v4436_v47, %v13134_v39 }
 0x67b   :  { %v3847_v16 = vpop.f32.mrf.mxu1  ;;  %v7514_v14 = vpop.f32.mrf.mxu0 }
 0x67c   :  { %v4426_v16 = vld [vmem:[%s12485_s9 + $0x30] sm:$0xff]  ;;  %v4423_v14 = vld [vmem:[%s12485_s9 + $0x18] sm:$0xff] }
 0x67d   :  { %v7502_v51 = vpop.f32.mrf.mxu1 }
 0x67e   :  { %v4427_v51 = vld [vmem:[%s12485_s9 + $0x38] sm:$0xff] }
 0x685   :  { %v4079_v28 = vpop.f32.mrf.mxu0 }
 0x687   :  { %v4001_v22 = vpop.f32.mrf.mxu1  ;;  %v7537_v34 = vpop.f32.mrf.mxu0 }
 0x688   :  { %v4007_v62 = vadd.f32 %v4001_v22, %v3929_v23  ;;  %v6999_v34 = vcombine.high %v4422_v63, %v4426_v16  ;;  %v13129_v23 = vld [vmem:[#allocation171_spill] sm:$0xff] }
 0x689   :  { %v7525_v42 = vpop.f32.mrf.mxu1  ;;  %v4082_v33 = vpop.f32.mrf.mxu0 }
 0x68a   :  { %v4085_v3 = vadd.f32 %v4079_v28, %v4007_v62  ;;  %v7001_v42 = vcombine.high %v4423_v14, %v4427_v51  ;;  %v6998_v33 = vcombine.low %v4422_v63, %v4426_v16 }
 0x68b   :  { %v4004_v56 = vpop.f32.mrf.mxu1  ;;  %v7538_v19 = vpop.f32.mrf.mxu0 }
 0x68c   :  { %v7000_v56 = vcombine.low %v4423_v14, %v4427_v51  ;;  %v8022_v19 = vld [vmem:[%s12489_s11 + $0xb8] sm:$0xff]  }
 0x68d   :  { %v7526_v26 = vpop.f32.mrf.mxu1 }
 0x68e   :  { %v8023_v26 = vld [vmem:[%s12489_s11 + $0x90] sm:$0xff]  }
 0x695   :  { %v4236_v41 = vpop.f32.mrf.mxu0 }
 0x697   :  { %v4157_v36 = vpop.f32.mrf.mxu1  ;;  %v7561_v24 = vpop.f32.mrf.mxu0 }
 0x698   :  { %v4163_v17 = vadd.f32 %v4157_v36, %v4085_v3  ;;  %v13128_v36 = vld [vmem:[#allocation174_spill] sm:$0xff] }
 0x699   :  { %v7549_v40 = vpop.f32.mrf.mxu1  ;;  %v4239_v44 = vpop.f32.mrf.mxu0  ;;  %v4449_v24 = vrot.slane %v4436_v47, %v13128_v36 }
 0x69a   :  { %v4242_v32 = vadd.f32 %v4236_v41, %v4163_v17  ;;  %v13127_v41 = vld [vmem:[#allocation169_spill] sm:$0xff] }
 0x69b   :  { %v4160_v6 = vpop.f32.mrf.mxu1  ;;  %v7562_v7 = vpop.f32.mrf.mxu0  ;;  %v4441_v2 = vrot.slane %v4436_v47, %v13127_v41  ;;  %v8025_v40 = vld [vmem:[%s12489_s11 + $0x88] sm:$0xff]  }
 0x69c   :  { %v8026_v44 = vld [vmem:[%s12489_s11 + $0xa8] sm:$0xff]   ;;  %v4445_v6 = vrot.slane %v4436_v47, %v13129_v23  ;;  %v13130_v7 = vld [vmem:[#allocation176_spill] sm:$0xff] }
 0x69d   :  { %v7550_v15 = vpop.f32.mrf.mxu1  ;;  %v4453_v62 = vrot.slane %v4436_v47, %v13130_v7 }
 0x6a5   :  { %v4392_v29 = vpop.f32.mrf.mxu0 }
 0x6a7   :  { %v4314_v61 = vpop.f32.mrf.mxu1  ;;  %v7585_v50 = vpop.f32.mrf.mxu0 }
 0x6a8   :  { %v4320_v13 = vadd.f32 %v4314_v61, %v4242_v32  ;;  %v8027_v32 = vld [vmem:[%s12489_s11 + $0x80] sm:$0xff]  }
 0x6a9   :  { %v7573_v11 = vpop.f32.mrf.mxu1  ;;  %v4395_v48 = vpop.f32.mrf.mxu0  ;;  %v8028_v61 = vld [vmem:[%s12489_s11 + $0xa0] sm:$0xff]  }
 0x6aa   :  { %v4398_v5 = vadd.f32 %v4392_v29, %v4320_v13 }
 0x6ab   :  { %v4317_v38 = vpop.f32.mrf.mxu1  ;;  %v7586_v49 = vpop.f32.mrf.mxu0 }
 0x6ac   :  { %v4406_v8 = vadd.f32 %v6993_v57, %v4398_v5 }
 0x6ad   :  { %v7574_v37 = vpop.f32.mrf.mxu1 }
 0x6ae   :  { %4408 = vst.msk [vmem:[%s12487_s15] sm:$0x3] %vm4407_vm3, %v4406_v8  ;;  %v4410_v1 = vmul.f32 0.5, %v4406_v8 }
 0x6b0   :  { %v4411_v9 = vmul.f32 1.442695, %v4410_v1  ;;  %v13131_v1 = vld [vmem:[#allocation180_spill] sm:$0xff] }
 0x6b2   :  { %8057 = vpow2.f32 %v4411_v9  ;;  %v4457_v9 = vrot.slane %v4436_v47, %v13131_v1 }
 0x6bf   :  { %v8058_v4 = vpop.eup %8057 }
 0x6c0   :  { %4414 = vrot.lane.b32.xlu0 %v8058_v4, %s8324_s18 }
 0x732   :  { %v4415_v30 = vpop.permute.xlu0 %4414 }
 0x733   :  { %v4417_v46 = vmul.f32 %v4415_v30, %v4409_v20 }
 0x735   :  { %v4418_v28 = vadd.f32 %v4417_v46, %v4406_v8 }
 0x737   :  { %v4419_v22 = vpack.c.bf16 %v4418_v28, %v4418_v28 }
 0x739   :  { %7010 = vmatmul.mubr.msk.bf16.vlgmr.msra.gmra.mxu1 %vm2465_vm0, %v4419_v22  ;;  %7011 = vmatmul.mubr.msk.bf16.vlgmr.msra.gmra.mxu0 %vm2465_vm0, %v4419_v22 }
 0x73a   :  { %4656 = vmatpush1.bf16.msra.mxu1 %v7006_v43  ;;  %4697 = vmatpush1.bf16.msra.mxu0 %v7008_v27 }
 0x73b   :  { %4657 = vmatprep.subr.bf16.mxu1 %v6999_v34  ;;  %4698 = vmatprep.subr.bf16.mxu0 %v7001_v42 }
 0x73c   :  { %4675 = vmatprep.mubr.bf16.mxu1 %v13126_v53  ;;  %4716 = vmatprep.mubr.bf16.mxu0 %v13126_v53  ;;  %v8021_v53 = vld [vmem:[%s12489_s11 + $0x98] sm:$0xff]  }
 0x73e   :  { %4658 = vmatpush1.bf16.msra.mxu1 %v6998_v33  ;;  %4699 = vmatpush1.bf16.msra.mxu0 %v7000_v56 }
 0x73f   :  { %7587 = vmatprep.subr.bf16.mxu1 %v8322_v0  ;;  %7607 = vmatprep.subr.bf16.mxu0 %v8322_v0 }
 0x741   :  { %7012 = vmatmul.mubr.msk.bf16.vlgmr.msra.gmra.mxu1 %vm2465_vm0, %v4419_v22  ;;  %7013 = vmatmul.mubr.msk.bf16.vlgmr.msra.gmra.mxu0 %vm2465_vm0, %v4419_v22 }
 0x742   :  { %7595 = vmatprep.mubr.msk.bf16.mxu1 %vm8323_vm1, %v8322_v0  ;;  %7615 = vmatprep.mubr.msk.bf16.mxu0 %vm8323_vm1, %v8322_v0 }
 0x743   :  { %7588 = vmatpush3.bf16.msra.mxu1 %v8021_v53  ;;  %7608 = vmatpush3.bf16.msra.mxu0 %v8022_v19 }
 0x744   :  { %7589 = vmatprep.subr.bf16.mxu1 %v8322_v0  ;;  %7609 = vmatprep.subr.bf16.mxu0 %v8322_v0 }
 0x747   :  { %7590 = vmatpush3.bf16.msra.mxu1 %v8023_v26  ;;  %7610 = vmatpush3.bf16.msra.mxu0 %v8024_v59  ;;  %v8029_v59 = vld [vmem:[%s12489_s11 + $0x78] sm:$0xff]  }
 0x748   :  { %7591 = vmatprep.subr.bf16.mxu1 %v8322_v0  ;;  %7611 = vmatprep.subr.bf16.mxu0 %v8322_v0 }
 0x74b   :  { %7592 = vmatpush3.bf16.msra.mxu1 %v8025_v40  ;;  %7612 = vmatpush3.bf16.msra.mxu0 %v8026_v44  ;;  %v8030_v40 = vld [vmem:[%s12489_s11 + $0x70] sm:$0xff]  }
 0x74c   :  { %7593 = vmatprep.subr.bf16.mxu1 %v8322_v0  ;;  %7613 = vmatprep.subr.bf16.mxu0 %v8322_v0 }
 0x74f   :  { %7594 = vmatpush3.bf16.msra.mxu1 %v8027_v32  ;;  %7614 = vmatpush3.bf16.msra.mxu0 %v8028_v61  ;;  %v8036_v61 = vld [vmem:[%s12489_s11 + $0xe0] sm:$0xff]  }
 0x750   :  { %7627 = vmatprep.subr.bf16.mxu1 %v8322_v0  ;;  %7647 = vmatprep.subr.bf16.mxu0 %v8322_v0 }
 0x7f9   :  { %v4595_v15 = vpop.f32.mrf.mxu1  ;;  %v4636_v3 = vpop.f32.mrf.mxu0 }
 0x7fa   :  { %v4596_v17 = vadd.f32 %v4595_v15, %v4441_v2  ;;  %v4637_v29 = vadd.f32 %v4636_v3, %v4449_v24  ;;  %v8031_v24 = vld [vmem:[%s12489_s11 + $0xf8] sm:$0xff]   ;;  %v8032_v15 = vld [vmem:[%s12489_s11 + $0x68] sm:$0xff]  }
 0x7fb   :  { %v4597_v50 = vpop.f32.mrf.mxu1  ;;  %v4638_v13 = vpop.f32.mrf.mxu0 }
 0x7fc   :  { %v4725_v57 = vmax.f32 %v4596_v17, 0.0  ;;  %v4727_v11 = vmax.f32 %v4637_v29, 0.0  ;;  %v4598_v48 = vadd.f32 %v4597_v50, %v4445_v6  ;;  %v4639_v5 = vadd.f32 %v4638_v13, %v4453_v62  ;;  %v8033_v6 = vld [vmem:[%s12489_s11 + $0xf0] sm:$0xff]   ;;  %v8034_v17 = vld [vmem:[%s12489_s11 + $0xe8] sm:$0xff]   ;;  %v8035_v29 = vld [vmem:[%s12489_s11 + $0x60] sm:$0xff]  }
 0x7fd   :  { %v4599_v38 = vpop.f32.mrf.mxu1  ;;  %v4640_v49 = vpop.f32.mrf.mxu0 }
 0x7fe   :  { %4740 = vst.msk [vmem:[#allocation2] sm:$0x3] %vm4407_vm3, %v4725_v57  ;;  %4752 = vst.msk [vmem:[#allocation2 + $0xa] sm:$0x3] %vm4407_vm3, %v4727_v11  ;;  %v4726_v8 = vmax.f32 %v4598_v48, 0.0  ;;  %v4728_v37 = vmax.f32 %v4639_v5, 0.0  ;;  %4742 = vrot.lane.b32.xlu1 %v4725_v57, %s8325_s4 }
 0x7ff   :  { %v4600_v60 = vpop.f32.mrf.mxu1  ;;  %v4641_v55 = vpop.f32.mrf.mxu0  ;;  %v8039_v5 = vld [vmem:[%s12489_s11 + $0x58] sm:$0xff]   ;;  %v8038_v38 = vld [vmem:[%s12489_s11 + $0x30] sm:$0xff]  }
 0x800   :  { %4746 = vst.msk [vmem:[#allocation2 + $0x4] sm:$0x3] %vm4407_vm3, %v4726_v8  ;;  %4758 = vst.msk [vmem:[#allocation2 + $0xe] sm:$0x3] %vm4407_vm3, %v4728_v37  ;;  %4748 = vrot.lane.b32.xlu0 %v4726_v8, %s8325_s4  ;;  %v8041_v8 = vld [vmem:[%s12489_s11 + $0x50] sm:$0xff]   ;;  %v8042_v60 = vld [vmem:[%s12489_s11 + $0x48] sm:$0xff]  }
 0x801   :  { %v4677_v18 = vpop.f32.mrf.mxu1  ;;  %v4718_v35 = vpop.f32.mrf.mxu0  ;;  %v8043_v55 = vld [vmem:[%s12489_s11 + $0x20] sm:$0xff]  }
 0x802   :  { %v4678_v21 = vadd.f32 %v4677_v18, %v4457_v9  ;;  %v4719_v25 = vadd.f32 %v4718_v35, %v4465_v31  ;;  %4754 = vrot.lane.b32.xlu1 %v4727_v11, %s8325_s4  ;;  %v8037_v11 = vld [vmem:[%s12489_s11 + $0x38] sm:$0xff]   ;;  %v8040_v9 = vld [vmem:[%s12489_s11 + $0x28] sm:$0xff]  }
 0x803   :  { %v4679_v45 = vpop.f32.mrf.mxu1  ;;  %v4720_v43 = vpop.f32.mrf.mxu0  ;;  %v8045_v35 = vld [vmem:[%s12489_s11 + $0x18] sm:$0xff]  }
 0x804   :  { %v4729_v27 = vmax.f32 %v4678_v21, 0.0  ;;  %v4731_v12 = vmax.f32 %v4719_v25, 0.0  ;;  %v4680_v4 = vadd.f32 %v4679_v45, %v4461_v10  ;;  %v4721_v20 = vadd.f32 %v4720_v43, %v4469_v54  ;;  %4760 = vrot.lane.b32.xlu0 %v4728_v37, %s8325_s4  ;;  %v8044_v54 = vld [vmem:[%s12489_s11 + $0x40] sm:$0xff]   ;;  %v8047_v25 = vld [vmem:[%s12489_s11 + $0xd8] sm:$0xff]   ;;  %v8046_v45 = vld [vmem:[%s12489_s11 + $0x10] sm:$0xff]  }
 0x805   :  { %v4681_v30 = vpop.f32.mrf.mxu1  ;;  %v4722_v46 = vpop.f32.mrf.mxu0  ;;  %v8049_v43 = vld [vmem:[%s12489_s11 + $0xd0] sm:$0xff]  }
 0x806   :  { %4764 = vst.msk [vmem:[#allocation2 + $0x14] sm:$0x3] %vm4407_vm3, %v4729_v27  ;;  %4776 = vst.msk [vmem:[#allocation2 + $0x1e] sm:$0x3] %vm4407_vm3, %v4731_v12  ;;  %v4730_v63 = vmax.f32 %v4680_v4, 0.0  ;;  %v4732_v16 = vmax.f32 %v4721_v20, 0.0  ;;  %4766 = vrot.lane.b32.xlu1 %v4729_v27, %s8325_s4 }
 0x807   :  { %v4682_v14 = vpop.f32.mrf.mxu1  ;;  %v4723_v51 = vpop.f32.mrf.mxu0  ;;  %v8048_v27 = vld [vmem:[%s12489_s11 + $0x8] sm:$0xff]   ;;  %v8051_v30 = vld [vmem:[%s12489_s11] sm:$0xff]  }
 0x808   :  { %4770 = vst.msk [vmem:[#allocation2 + $0x18] sm:$0x3] %vm4407_vm3, %v4730_v63  ;;  %4782 = vst.msk [vmem:[#allocation2 + $0x22] sm:$0x3] %vm4407_vm3, %v4732_v16  ;;  %4772 = vrot.lane.b32.xlu0 %v4730_v63, %s8325_s4  ;;  %v8050_v4 = vld [vmem:[%s12489_s11 + $0xc8] sm:$0xff]   ;;  %v8052_v46 = vld [vmem:[%s12489_s11 + $0xc0] sm:$0xff]  }
 0x809   :  { %v5115_v20 = vld [vmem:[#allocation2 + $0x2a] sm:$0xff]  ;;  %v8053_v51 = vld [vmem:[%s12489_s11 + $0x118] sm:$0xff]  }
 0x80a   :  { %4778 = vrot.lane.b32.xlu1 %v4731_v12, %s8325_s4  ;;  %v5118_v63 = vpack.c.bf16 %v5115_v20, %v5115_v20 }
 0x80c   :  { %4784 = vrot.lane.b32.xlu0 %v4732_v16, %s8325_s4 }
 0x870   :  { %v4743_v28 = vpop.permute.xlu1 %4742 }
 0x871   :  { %4745 = vst.msk [vmem:[#allocation2 + $0x2] sm:$0x3] %vm4407_vm3, %v4743_v28 }
 0x872   :  { %v4749_v22 = vpop.permute.xlu0 %4748 }
 0x873   :  { %4751 = vst.msk [vmem:[#allocation2 + $0x6] sm:$0x3] %vm4407_vm3, %v4749_v22  ;;  %v8054_v22 = vld [vmem:[%s12489_s11 + $0x110] sm:$0xff]  }
 0x874   :  { %v4755_v34 = vpop.permute.xlu1 %4754 }
 0x875   :  { %4757 = vst.msk [vmem:[#allocation2 + $0xc] sm:$0x3] %vm4407_vm3, %v4755_v34 }
 0x876   :  { %v4761_v42 = vpop.permute.xlu0 %4760 }
 0x877   :  { %4763 = vst.msk [vmem:[#allocation2 + $0x10] sm:$0x3] %vm4407_vm3, %v4761_v42 }
 0x878   :  { %v4767_v33 = vpop.permute.xlu1 %4766 }
 0x879   :  { %4769 = vst.msk [vmem:[#allocation2 + $0x16] sm:$0x3] %vm4407_vm3, %v4767_v33  ;;  %v8055_v33 = vld [vmem:[%s12489_s11 + $0x108] sm:$0xff]  }
 0x87a   :  { %v4773_v56 = vpop.permute.xlu0 %4772  ;;  %v4789_v19 = vld [vmem:[#allocation2] sm:$0xff] }
 0x87b   :  { %4775 = vst.msk [vmem:[#allocation2 + $0x1a] sm:$0x3] %vm4407_vm3, %v4773_v56  ;;  %v4906_v57 = vld [vmem:[#allocation2 + $0x2] sm:$0xff] }
 0x87c   :  { %v4779_v53 = vpop.permute.xlu1 %4778  ;;  %v4790_v26 = vld [vmem:[#allocation2 + $0x8] sm:$0xff] }
 0x87d   :  { %4781 = vst.msk [vmem:[#allocation2 + $0x20] sm:$0x3] %vm4407_vm3, %v4779_v53  ;;  %v11454_v47 = vpack.c.bf16 %v4790_v26, %v4789_v19  ;;  %v5316_v53 = vld [vmem:[#allocation2 + $0x2c] sm:$0xff]  ;;  %v8056_v19 = vld [vmem:[%s12489_s11 + $0x100] sm:$0xff]  }
 0x87e   :  { %v4785_v2 = vpop.permute.xlu0 %4784  ;;  %v4907_v13 = vld [vmem:[#allocation2 + $0xa] sm:$0xff]  ;;  %v5319_v26 = vpack.c.bf16 %v5316_v53, %v5316_v53 }
 0x87f   :  { %4787 = vst.msk [vmem:[#allocation2 + $0x24] sm:$0x3] %vm4407_vm3, %v4785_v2  ;;  %7596 = vmatmul.mubr.msk.bf16.vlgmr.msra.gmra.mxu1 %vm3193_vm2, %v11454_v47  ;;  %7616 = vmatmul.mubr.msk.bf16.vlgmr.msra.gmra.mxu0 %vm3193_vm2, %v11454_v47  ;;  %v11517_v48 = vpack.c.bf16 %v4907_v13, %v4906_v57  ;;  %v5312_v14 = vld [vmem:[#allocation2 + $0xc] sm:$0xff] }
 0x880   :  { %7628 = vmatpush3.bf16.msra.mxu1 %v8029_v59  ;;  %7599 = vmatprep.mubr.msk.bf16.mxu1 %vm8323_vm1, %v8322_v0  ;;  %v4791_v62 = vld [vmem:[#allocation2 + $0x10] sm:$0xff]  ;;  %v11672_v59 = vld [vmem:[%s12491_s13] sm:$0xff] }
 0x881   :  { %7629 = vmatprep.subr.bf16.mxu1 %v8322_v0  ;;  %7619 = vmatprep.mubr.msk.bf16.mxu0 %vm8323_vm1, %v8322_v0  ;;  %v4908_v37 = vld [vmem:[#allocation2 + $0x12] sm:$0xff] }
 0x882   :  { %v4792_v44 = vld [vmem:[#allocation2 + $0x18] sm:$0xff]  ;;  %7648 = vmatpush3.bf16.msra.mxu0 %v8031_v24  ;;  %v5116_v21 = vpack.c.bf16 %v4908_v37, %v4907_v13  ;;  %v11674_v2 = vld [vmem:[#allocation3 + $0x78] sm:$0xff]  ;;  %v11680_v24 = vrot.slane %v11672_v59, %v13127_v41 }
 0x883   :  { %7649 = vmatprep.subr.bf16.mxu0 %v8322_v0  ;;  %v11479_v3 = vpack.c.bf16 %v4792_v44, %v4791_v62  ;;  %v5313_v16 = vld [vmem:[#allocation2 + $0x14] sm:$0xff] }
 0x884   :  { %7630 = vmatpush3.bf16.msra.mxu1 %v8030_v40  ;;  %v4909_v49 = vld [vmem:[#allocation2 + $0x1a] sm:$0xff]  ;;  %v5317_v28 = vpack.c.bf16 %v5313_v16, %v5312_v14  ;;  %v11684_v40 = vrot.slane %v11672_v59, %v13128_v36  ;;  %v6427_v44 = vld [vmem:[#allocation3 + $0x7a] sm:$0xff] }
 0x885   :  { %7631 = vmatprep.subr.bf16.mxu1 %v8322_v0  ;;  %v11541_v31 = vpack.c.bf16 %v4909_v49, %v4908_v37  ;;  %v5314_v42 = vld [vmem:[#allocation2 + $0x1c] sm:$0xff] }
 0x886   :  { %7650 = vmatpush3.bf16.msra.mxu0 %v8033_v6  ;;  %v4793_v32 = vld [vmem:[#allocation2 + $0x20] sm:$0xff] }
 0x887   :  { %7600 = vmatmul.mubr.msk.bf16.gmra.mxu1 %vm3193_vm2, %v11479_v3  ;;  %7620 = vmatmul.mubr.msk.bf16.gmra.mxu0 %vm3193_vm2, %v11479_v3  ;;  %v11502_v50 = vpack.c.bf16 %v4793_v32, %v4793_v32  ;;  %v4910_v10 = vld [vmem:[#allocation2 + $0x22] sm:$0xff]  ;;  %v11699_v36 = vld [vmem:[%s12492_s12] ss:$0 sm:$0xff] }
 0x888   :  { %7632 = vmatpush3.bf16.msra.mxu1 %v8032_v15  ;;  %7603 = vmatprep.mubr.msk.bf16.mxu1 %vm8323_vm1, %v8322_v0  ;;  %v11564_v18 = vpack.c.bf16 %v4910_v10, %v4910_v10  ;;  %v5117_v12 = vpack.c.bf16 %v4910_v10, %v4909_v49  ;;  %v5315_v34 = vld [vmem:[#allocation2 + $0x24] sm:$0xff]  ;;  %v6445_v15 = vmul.f32 %v11680_v24, %v6427_v44 }
 0x889   :  { %7623 = vmatprep.mubr.msk.bf16.mxu0 %vm8323_vm1, %v8322_v0  ;;  %7651 = vmatprep.subr.bf16.mxu0 %v8322_v0  ;;  %v5318_v56 = vpack.c.bf16 %v5315_v34, %v5314_v42 }
 0x88a   :  { %7633 = vmatprep.subr.bf16.mxu1 %v8322_v0  ;;  %7652 = vmatpush3.bf16.msra.mxu0 %v8034_v17 }
 0x88b   :  { %7653 = vmatprep.subr.bf16.mxu0 %v8322_v0 }
 0x88c   :  { %7634 = vmatpush3.bf16.msra.mxu1 %v8035_v29 }
 0x88d   :  { %7667 = vmatprep.subr.bf16.mxu1 %v8322_v0 }
 0x88e   :  { %7654 = vmatpush3.bf16.msra.mxu0 %v8036_v61 }
 0x88f   :  { %7604 = vmatmul.mubr.msk.bf16.gmra.mxu1 %vm3193_vm2, %v11502_v50  ;;  %7624 = vmatmul.mubr.msk.bf16.gmra.mxu0 %vm3193_vm2, %v11502_v50 }
 0x890   :  { %7635 = vmatprep.mubr.msk.bf16.mxu1 %vm8323_vm1, %v8322_v0  ;;  %7655 = vmatprep.mubr.msk.bf16.mxu0 %vm8323_vm1, %v8322_v0 }
 0x891   :  { %7687 = vmatprep.subr.bf16.mxu0 %v8322_v0 }
 0x897   :  { %7636 = vmatmul.mubr.msk.bf16.vlgmr.msra.gmra.mxu1 %vm3193_vm2, %v11517_v48  ;;  %7656 = vmatmul.mubr.msk.bf16.vlgmr.msra.gmra.mxu0 %vm3193_vm2, %v11454_v47 }
 0x898   :  { %7668 = vmatpush3.bf16.msra.mxu1 %v8037_v11  ;;  %7639 = vmatprep.mubr.msk.bf16.mxu1 %vm8323_vm1, %v8322_v0 }
 0x899   :  { %7669 = vmatprep.subr.bf16.mxu1 %v8322_v0  ;;  %7659 = vmatprep.mubr.msk.bf16.mxu0 %vm8323_vm1, %v8322_v0 }
 0x89a   :  { %7688 = vmatpush3.bf16.msra.mxu0 %v8039_v5 }
 0x89b   :  { %7689 = vmatprep.subr.bf16.mxu0 %v8322_v0 }
 0x89c   :  { %7670 = vmatpush3.bf16.msra.mxu1 %v8038_v38 }
 0x89d   :  { %7671 = vmatprep.subr.bf16.mxu1 %v8322_v0 }
 0x89e   :  { %7690 = vmatpush3.bf16.msra.mxu0 %v8041_v8 }
 0x89f   :  { %7640 = vmatmul.mubr.msk.bf16.gmra.mxu1 %vm3193_vm2, %v11541_v31  ;;  %7660 = vmatmul.mubr.msk.bf16.gmra.mxu0 %vm3193_vm2, %v11479_v3 }
 0x8a0   :  { %7672 = vmatpush3.bf16.msra.mxu1 %v8040_v9  ;;  %7643 = vmatprep.mubr.msk.bf16.mxu1 %vm8323_vm1, %v8322_v0 }
 0x8a1   :  { %7663 = vmatprep.mubr.msk.bf16.mxu0 %vm8323_vm1, %v8322_v0  ;;  %7691 = vmatprep.subr.bf16.mxu0 %v8322_v0 }
 0x8a2   :  { %7673 = vmatprep.subr.bf16.mxu1 %v8322_v0  ;;  %7692 = vmatpush3.bf16.msra.mxu0 %v8042_v60 }
 0x8a3   :  { %7693 = vmatprep.subr.bf16.mxu0 %v8322_v0 }
 0x8a4   :  { %7674 = vmatpush3.bf16.msra.mxu1 %v8043_v55 }
 0x8a5   :  { %7707 = vmatprep.subr.bf16.mxu1 %v8322_v0 }
 0x8a6   :  { %7694 = vmatpush3.bf16.msra.mxu0 %v8044_v54 }
 0x8a7   :  { %7644 = vmatmul.mubr.msk.bf16.gmra.mxu1 %vm3193_vm2, %v11564_v18  ;;  %7664 = vmatmul.mubr.msk.bf16.gmra.mxu0 %vm3193_vm2, %v11502_v50 }
 0x8a8   :  { %7675 = vmatprep.mubr.msk.bf16.mxu1 %vm8323_vm1, %v8322_v0  ;;  %7695 = vmatprep.mubr.msk.bf16.mxu0 %vm8323_vm1, %v8322_v0 }
 0x8a9   :  { %7727 = vmatprep.subr.bf16.mxu0 %v8322_v0 }
 0x8af   :  { %7676 = vmatmul.mubr.msk.bf16.vlgmr.msra.gmra.mxu1 %vm3193_vm2, %v5116_v21  ;;  %7696 = vmatmul.mubr.msk.bf16.vlgmr.msra.gmra.mxu0 %vm3193_vm2, %v5116_v21 }
 0x8b0   :  { %7708 = vmatpush3.bf16.msra.mxu1 %v8045_v35  ;;  %7679 = vmatprep.mubr.msk.bf16.mxu1 %vm8323_vm1, %v8322_v0 }
 0x8b1   :  { %7709 = vmatprep.subr.bf16.mxu1 %v8322_v0  ;;  %7699 = vmatprep.mubr.msk.bf16.mxu0 %vm8323_vm1, %v8322_v0 }
 0x8b2   :  { %7728 = vmatpush3.bf16.msra.mxu0 %v8047_v25 }
 0x8b3   :  { %7729 = vmatprep.subr.bf16.mxu0 %v8322_v0 }
 0x8b4   :  { %7710 = vmatpush3.bf16.msra.mxu1 %v8046_v45 }
 0x8b5   :  { %7711 = vmatprep.subr.bf16.mxu1 %v8322_v0 }
 0x8b6   :  { %7730 = vmatpush3.bf16.msra.mxu0 %v8049_v43 }
 0x8b7   :  { %7680 = vmatmul.mubr.msk.bf16.gmra.mxu1 %vm3193_vm2, %v5117_v12  ;;  %7700 = vmatmul.mubr.msk.bf16.gmra.mxu0 %vm3193_vm2, %v5117_v12 }
 0x8b8   :  { %7712 = vmatpush3.bf16.msra.mxu1 %v8048_v27  ;;  %7683 = vmatprep.mubr.msk.bf16.mxu1 %vm8323_vm1, %v8322_v0 }
 0x8b9   :  { %7703 = vmatprep.mubr.msk.bf16.mxu0 %vm8323_vm1, %v8322_v0  ;;  %7731 = vmatprep.subr.bf16.mxu0 %v8322_v0 }
 0x8ba   :  { %7713 = vmatprep.subr.bf16.mxu1 %v8322_v0  ;;  %7732 = vmatpush3.bf16.msra.mxu0 %v8050_v4 }
 0x8bb   :  { %7733 = vmatprep.subr.bf16.mxu0 %v8322_v0 }
 0x8bc   :  { %7714 = vmatpush3.bf16.msra.mxu1 %v8051_v30 }
 0x8bd   :  { %7747 = vmatprep.subr.bf16.mxu1 %v8322_v0 }
 0x8be   :  { %7734 = vmatpush3.bf16.msra.mxu0 %v8052_v46 }
 0x8bf   :  { %7684 = vmatmul.mubr.msk.bf16.gmra.mxu1 %vm3193_vm2, %v5118_v63  ;;  %7704 = vmatmul.mubr.msk.bf16.gmra.mxu0 %vm3193_vm2, %v5118_v63 }
 0x8c0   :  { %7715 = vmatprep.mubr.msk.bf16.mxu1 %vm8323_vm1, %v8322_v0  ;;  %7735 = vmatprep.mubr.msk.bf16.mxu0 %vm8323_vm1, %v8322_v0 }
 0x8c7   :  { %7716 = vmatmul.mubr.msk.bf16.vlgmr.msra.gmra.mxu1 %vm3193_vm2, %v5317_v28  ;;  %7736 = vmatmul.mubr.msk.bf16.vlgmr.msra.gmra.mxu0 %vm3193_vm2, %v11517_v48 }
 0x8c8   :  { %7748 = vmatpush3.bf16.msra.mxu1 %v8053_v51  ;;  %7719 = vmatprep.mubr.msk.bf16.mxu1 %vm8323_vm1, %v8322_v0 }
 0x8c9   :  { %7749 = vmatprep.subr.bf16.mxu1 %v8322_v0  ;;  %7739 = vmatprep.mubr.msk.bf16.mxu0 %vm8323_vm1, %v8322_v0 }
 0x8cc   :  { %7750 = vmatpush3.bf16.msra.mxu1 %v8054_v22 }
 0x8cd   :  { %7751 = vmatprep.subr.bf16.mxu1 %v8322_v0 }
 0x8cf   :  { %7720 = vmatmul.mubr.msk.bf16.gmra.mxu1 %vm3193_vm2, %v5318_v56  ;;  %7740 = vmatmul.mubr.msk.bf16.gmra.mxu0 %vm3193_vm2, %v11541_v31 }
 0x8d0   :  { %7752 = vmatpush3.bf16.msra.mxu1 %v8055_v33  ;;  %7723 = vmatprep.mubr.msk.bf16.mxu1 %vm8323_vm1, %v8322_v0 }
 0x8d1   :  { %7743 = vmatprep.mubr.msk.bf16.mxu0 %vm8323_vm1, %v8322_v0  ;;  %7753 = vmatprep.subr.bf16.mxu1 %v8322_v0 }
 0x8d4   :  { %7754 = vmatpush3.bf16.msra.mxu1 %v8056_v19 }
 0x8d7   :  { %7724 = vmatmul.mubr.msk.bf16.gmra.mxu1 %vm3193_vm2, %v5319_v26  ;;  %7744 = vmatmul.mubr.msk.bf16.gmra.mxu0 %vm3193_vm2, %v11564_v18 }
 0x8d8   :  { %7755 = vmatprep.mubr.msk.bf16.mxu1 %vm8323_vm1, %v8322_v0 }
 0x8df   :  { %7756 = vmatmul.mubr.msk.bf16.vlgmr.msra.gmra.mxu1 %vm3193_vm2, %v11454_v47  ;;  %v11676_v47 = vld [vmem:[#allocation3 + $0x70] sm:$0xff] }
 0x8e0   :  { %7759 = vmatprep.mubr.msk.bf16.mxu1 %vm8323_vm1, %v8322_v0  ;;  %v6490_v62 = vmul.f32 %v11684_v40, %v11676_v47 }
 0x8e7   :  { %7760 = vmatmul.mubr.msk.bf16.gmra.mxu1 %vm3193_vm2, %v11479_v3  ;;  %v6491_v3 = vmul.f32 %v11684_v40, %v11674_v2 }
 0x8e8   :  { %7763 = vmatprep.mubr.msk.bf16.mxu1 %vm8323_vm1, %v8322_v0  ;;  %v6426_v0 = vld [vmem:[#allocation3 + $0x72] sm:$0xff] }
 0x8e9   :  { %v6444_v6 = vmul.f32 %v11680_v24, %v6426_v0  ;;  %v11694_v41 = vadd.f32 %v6491_v3, %v6445_v15 }
 0x8eb   :  { %v11692_v17 = vadd.f32 %v6490_v62, %v6444_v6 }
 0x8ef   :  { %7764 = vmatmul.mubr.msk.bf16.gmra.mxu1 %vm3193_vm2, %v11502_v50 }
 0x93f   :  { %v4879_v29 = vpop.f32.mrf.mxu1  ;;  %v4990_v32 = vpop.f32.mrf.mxu0 }
 0x940   :  { %v4880_v61 = vadd.f32 %v11699_v36, %v4879_v29 }
 0x941   :  { %v7597_v50 = vpop.f32.mrf.mxu1  ;;  %v7617_v13 = vpop.f32.mrf.mxu0 }
 0x942   :  { %v4901_v57 = vmax.f32 %v4880_v61, 0.0  ;;  %v11741_v13 = vrot.slane %v11672_v59, %v13131_v1 }
 0x943   :  { %v4882_v11 = vpop.f32.mrf.mxu1  ;;  %v4993_v48 = vpop.f32.mrf.mxu0 }
 0x944   :  { %5714 = vst.msk [vmem:[#allocation3] sm:$0x3] %vm5713_vm4, %v4901_v57  ;;  %v4883_v5 = vadd.f32 %v11699_v36, %v4882_v11 }
 0x945   :  { %5716 = vst.msk [vmem:[#allocation3 + $0x2] sm:$0xc] %vm5715_vm5, %v4901_v57  ;;  %v7598_v38 = vpop.f32.mrf.mxu1  ;;  %v7618_v49 = vpop.f32.mrf.mxu0 }
 0x946   :  { %5718 = vst.msk [vmem:[#allocation3 + $0x4] sm:$0x30] %vm5717_vm6, %v4901_v57  ;;  %v4902_v8 = vmax.f32 %v4883_v5, 0.0  ;;  %v11751_v5 = vrot.slane %v11672_v59, %v13133_v58 }
 0x947   :  { %5720 = vst.msk [vmem:[#allocation3 + $0x6] sm:$0xc0] %vm5719_vm7, %v4901_v57  ;;  %v4887_v37 = vpop.f32.mrf.mxu1  ;;  %v4998_v9 = vpop.f32.mrf.mxu0  ;;  %v11745_v57 = vrot.slane %v11672_v59, %v13130_v7  ;;  %v11759_v7 = vrot.slane %v11672_v59, %v13132_v52 }
 0x948   :  { %5721 = vst.msk [vmem:[#allocation3 + $0x1e] sm:$0xc] %vm5715_vm5, %v4902_v8  ;;  %v4888_v31 = vadd.f32 %v11699_v36, %v4887_v37 }
 0x949   :  { %5722 = vst.msk [vmem:[#allocation3 + $0x20] sm:$0x30] %vm5717_vm6, %v4902_v8  ;;  %v7601_v60 = vpop.f32.mrf.mxu1  ;;  %v7621_v55 = vpop.f32.mrf.mxu0 }
 0x94a   :  { %5723 = vst.msk [vmem:[#allocation3 + $0x22] sm:$0xc0] %vm5719_vm7, %v4902_v8  ;;  %v4903_v10 = vmax.f32 %v4888_v31, 0.0 }
 0x94b   :  { %v4890_v54 = vpop.f32.mrf.mxu1  ;;  %v5001_v18 = vpop.f32.mrf.mxu0 }
 0x94c   :  { %5724 = vst.msk [vmem:[#allocation3 + $0x2c] sm:$0x3] %vm5713_vm4, %v4903_v10  ;;  %v4891_v35 = vadd.f32 %v11699_v36, %v4890_v54  ;;  %v11772_v54 = vld [vmem:[%s12491_s13 + $0x8] ss:$0 sm:$0xff] }
 0x94d   :  { %5725 = vst.msk [vmem:[#allocation3 + $0x3c] sm:$0x30] %vm5717_vm6, %v4903_v10  ;;  %v7602_v21 = vpop.f32.mrf.mxu1  ;;  %v7622_v25 = vpop.f32.mrf.mxu0 }
 0x94e   :  { %5726 = vst.msk [vmem:[#allocation3 + $0x3e] sm:$0xc0] %vm5719_vm7, %v4903_v10  ;;  %v4904_v45 = vmax.f32 %v4891_v35, 0.0 }
 0x94f   :  { %v4895_v43 = vpop.f32.mrf.mxu1  ;;  %v11715_v27 = vpop.f32.mrf.mxu0 }
 0x950   :  { %5727 = vst.msk [vmem:[#allocation3 + $0x48] sm:$0x3] %vm5713_vm4, %v4904_v45  ;;  %v4896_v12 = vadd.f32 %v11699_v36, %v4895_v43 }
 0x951   :  { %5728 = vst.msk [vmem:[#allocation3 + $0x4a] sm:$0xc] %vm5715_vm5, %v4904_v45  ;;  %v7605_v4 = vpop.f32.mrf.mxu1  ;;  %v7625_v20 = vpop.f32.mrf.mxu0 }
 0x952   :  { %5729 = vst.msk [vmem:[#allocation3 + $0x5a] sm:$0xc0] %vm5719_vm7, %v4904_v45  ;;  %v4905_v30 = vmax.f32 %v4896_v12, 0.0 }
 0x953   :  { %v4898_v46 = vpop.f32.mrf.mxu1  ;;  %v5009_v63 = vpop.f32.mrf.mxu0 }
 0x954   :  { %5730 = vst.msk [vmem:[#allocation3 + $0x64] sm:$0x3] %vm5713_vm4, %v4905_v30 }
 0x955   :  { %5731 = vst.msk [vmem:[#allocation3 + $0x66] sm:$0xc] %vm5715_vm5, %v4905_v30  ;;  %v7606_v16 = vpop.f32.mrf.mxu1  ;;  %v7626_v14 = vpop.f32.mrf.mxu0 }
 0x956   :  { %5732 = vst.msk [vmem:[#allocation3 + $0x68] sm:$0x30] %vm5717_vm6, %v4905_v30 }
 0x957   :  { %v5079_v51 = vpop.f32.mrf.mxu1  ;;  %v11724_v28 = vpop.f32.mrf.mxu0 }
 0x958   :  { %v5080_v22 = vadd.f32 %v5079_v51, %v4990_v32 }
 0x959   :  { %v7637_v34 = vpop.f32.mrf.mxu1  ;;  %v7657_v42 = vpop.f32.mrf.mxu0 }
 0x95a   :  { %v5101_v33 = vadd.f32 %v11699_v36, %v5080_v22 }
 0x95b   :  { %v5082_v56 = vpop.f32.mrf.mxu1  ;;  %v11727_v53 = vpop.f32.mrf.mxu0 }
 0x95c   :  { %v5106_v19 = vmax.f32 %v5101_v33, 0.0  ;;  %v5083_v26 = vadd.f32 %v5082_v56, %v4993_v48 }
 0x95d   :  { %v7638_v0 = vpop.f32.mrf.mxu1  ;;  %v7658_v44 = vpop.f32.mrf.mxu0 }
 0x95e   :  { %5733 = vst.msk [vmem:[#allocation3 + $0x2] sm:$0x3] %vm5713_vm4, %v5106_v19  ;;  %v5102_v6 = vadd.f32 %v11699_v36, %v5083_v26 }
 0x95f   :  { %5734 = vst.msk [vmem:[#allocation3 + $0x4] sm:$0xc] %vm5715_vm5, %v5106_v19  ;;  %v5087_v62 = vpop.f32.mrf.mxu1  ;;  %v11733_v15 = vpop.f32.mrf.mxu0 }
 0x960   :  { %5735 = vst.msk [vmem:[#allocation3 + $0x6] sm:$0x30] %vm5717_vm6, %v5106_v19  ;;  %v5107_v3 = vmax.f32 %v5102_v6, 0.0  ;;  %v5088_v29 = vadd.f32 %v5087_v62, %v4998_v9 }
 0x961   :  { %v7641_v32 = vpop.f32.mrf.mxu1  ;;  %v7661_v61 = vpop.f32.mrf.mxu0 }
 0x962   :  { %5736 = vst.msk [vmem:[#allocation3 + $0x20] sm:$0xc] %vm5715_vm5, %v5107_v3  ;;  %v5103_v50 = vadd.f32 %v11699_v36, %v5088_v29 }
 0x963   :  { %5737 = vst.msk [vmem:[#allocation3 + $0x22] sm:$0x30] %vm5717_vm6, %v5107_v3  ;;  %v5090_v11 = vpop.f32.mrf.mxu1  ;;  %v11747_v48 = vpop.f32.mrf.mxu0 }
 0x964   :  { %5738 = vst.msk [vmem:[#allocation3 + $0x24] sm:$0xc0] %vm5719_vm7, %v5107_v3  ;;  %v5108_v38 = vmax.f32 %v5103_v50, 0.0  ;;  %v5091_v49 = vadd.f32 %v5090_v11, %v5001_v18 }
 0x965   :  { %v7642_v8 = vpop.f32.mrf.mxu1  ;;  %v7662_v37 = vpop.f32.mrf.mxu0 }
 0x966   :  { %v11755_v31 = vld [vmem:[#allocation3] sm:$0xff]  ;;  %5739 = vst.msk [vmem:[#allocation3 + $0x3e] sm:$0x30] %vm5717_vm6, %v5108_v38  ;;  %v5104_v58 = vadd.f32 %v11699_v36, %v5091_v49  ;;  %v11826_v37 = vrot.slane %v11672_v59, %v13129_v23 }
 0x967   :  { %v11753_v9 = vld [vmem:[#allocation3 + $0x8] sm:$0xff]  ;;  %5740 = vst.msk [vmem:[#allocation3 + $0x40] sm:$0xc0] %vm5719_vm7, %v5108_v38  ;;  %v5787_v55 = vmul.f32 %v11741_v13, %v11755_v31  ;;  %v5095_v52 = vpop.f32.mrf.mxu1  ;;  %v5211_v18 = vpop.f32.mrf.mxu0  ;;  %v6026_v35 = vmul.f32 %v11751_v5, %v11755_v31 }
 0x968   :  { %v5962_v1 = vld [vmem:[#allocation3 + $0x2] sm:$0xff]  ;;  %v5788_v60 = vmul.f32 %v11741_v13, %v11753_v9  ;;  %v5109_v21 = vmax.f32 %v5104_v58, 0.0  ;;  %v5096_v25 = vadd.f32 %v5095_v52, %v11715_v27  ;;  %v11787_v16 = vmul.f32 %v11772_v54, %v11753_v9 }
 0x969   :  { %v5980_v10 = vmul.f32 %v11745_v57, %v5962_v1  ;;  %v5815_v43 = vsel %vm2465_vm0, %v5787_v55, 0.0  ;;  %v7665_v12 = vpop.f32.mrf.mxu0  ;;  %v7645_v4 = vpop.f32.mrf.mxu1  ;;  %v11790_v27 = vmul.f32 %v11759_v7, %v5962_v1 }
 0x96a   :  { %v5818_v45 = vsel %vm2465_vm0, %v5788_v60, 0.0  ;;  %5816 = vadd.xlane.f32.xlu1 %v5815_v43  ;;  %v11781_v46 = vld [vmem:[#allocation3 + $0x20] sm:$0xff]  ;;  %5741 = vst.msk [vmem:[#allocation3 + $0x4a] sm:$0x3] %vm5713_vm4, %v5109_v21  ;;  %v5105_v14 = vadd.f32 %v11699_v36, %v5096_v25  ;;  %v11854_v43 = vrot.slane %v11672_v59, %v13134_v39 }
 0x96b   :  { %5819 = vadd.xlane.f32.xlu0 %v5818_v45  ;;  %v6040_v20 = vadd.f32 %v6026_v35, %v5980_v10  ;;  %v11779_v30 = vld [vmem:[#allocation3 + $0x28] sm:$0xff]  ;;  %5742 = vst.msk [vmem:[#allocation3 + $0x5c] sm:$0xc0] %vm5719_vm7, %v5109_v21  ;;  %v5098_v22 = vpop.f32.mrf.mxu1  ;;  %v5213_v34 = vpop.f32.mrf.mxu0  ;;  %v5791_v42 = vmul.f32 %v11741_v13, %v11781_v46  ;;  %v6030_v56 = vmul.f32 %v11751_v5, %v11781_v46 }
 0x96c   :  { %v11783_v63 = vld [vmem:[#allocation3 + $0x22] sm:$0xff]  ;;  %v5792_v51 = vmul.f32 %v11741_v13, %v11779_v30  ;;  %v5110_v19 = vmax.f32 %v5105_v14, 0.0  ;;  %v11811_v29 = vmul.f32 %v11684_v40, %v11779_v30  ;;  %v6480_v61 = vmul.f32 %v11684_v40, %v11781_v46 }
 0x96d   :  { %v5984_v33 = vmul.f32 %v11745_v57, %v11783_v63  ;;  %v6054_v26 = vsel %vm2465_vm0, %v6040_v20, 0.0  ;;  %v7666_v44 = vpop.f32.mrf.mxu0  ;;  %v7646_v6 = vpop.f32.mrf.mxu1  ;;  %v6434_v32 = vmul.f32 %v11680_v24, %v11783_v63  ;;  %v5827_v38 = vsel %vm2465_vm0, %v5791_v42, 0.0 }
 0x96e   :  { %v5830_v0 = vsel %vm2465_vm0, %v5792_v51, 0.0  ;;  %v11805_v62 = vld [vmem:[#allocation3 + $0x40] sm:$0xff]  ;;  %5743 = vst.msk [vmem:[#allocation3 + $0x66] sm:$0x3] %vm5713_vm4, %v5110_v19  ;;  %v11839_v35 = vmul.f32 %v11772_v54, %v11755_v31  ;;  %v11843_v23 = vmul.f32 %v11772_v54, %v11779_v30  ;;  %v6225_v14 = vmul.f32 %v11826_v37, %v11674_v2 }
 0x96f   :  { %6055 = vadd.xlane.f32.xlu0 %v6054_v26  ;;  %5831 = vadd.xlane.f32.xlu1 %v5830_v0  ;;  %v11807_v3 = vld [vmem:[#allocation3 + $0x42] sm:$0xff]  ;;  %5744 = vst.msk [vmem:[#allocation3 + $0x68] sm:$0xc] %vm5715_vm5, %v5110_v19  ;;  %v5283_v50 = vpop.f32.mrf.mxu1  ;;  %v11819_v11 = vpop.f32.mrf.mxu0  ;;  %v6044_v49 = vadd.f32 %v6030_v56, %v5984_v33  ;;  %v5795_v8 = vmul.f32 %v11741_v13, %v11805_v62  ;;  %v22_v6 = vstv %s12493_s14 }
 0x970   :  { %v5284_v1 = vadd.f32 %v5283_v50, %v11724_v28  ;;  %v5988_v58 = vmul.f32 %v11745_v57, %v11807_v3  ;;  %v6034_v60 = vmul.f32 %v11751_v5, %v11805_v62  ;;  %v11833_v55 = vadd.f32 %v6480_v61, %v6434_v32  ;;  %23 = vst [vmem:[#allocation4] sm:$0x1] %v22_v6 }
 0x971   :  { %v7697_v10 = vpop.f32.mrf.mxu0  ;;  %v7677_v52 = vpop.f32.mrf.mxu1  ;;  %v11835_v18 = vld [vmem:[#allocation3 + $0x48] sm:$0xff]  ;;  %v6438_v28 = vmul.f32 %v11680_v24, %v11807_v3  ;;  %v6484_v21 = vmul.f32 %v11684_v40, %v11805_v62  ;;  %v6066_v20 = vsel %vm2465_vm0, %v6044_v49, 0.0  ;;  %v5839_v59 = vsel %vm2465_vm0, %v5795_v8, 0.0 }
 0x972   :  { %v5304_v25 = vadd.f32 %v11699_v36, %v5284_v1  ;;  %v5796_v45 = vmul.f32 %v11741_v13, %v11835_v18  ;;  %v11863_v51 = vmul.f32 %v11684_v40, %v11835_v18  ;;  %v6048_v2 = vadd.f32 %v6034_v60, %v5988_v58 }
 0x973   :  { %5828 = vadd.xlane.f32.xlu0 %v5827_v38  ;;  %v5286_v12 = vpop.f32.mrf.mxu1  ;;  %v11856_v4 = vpop.f32.mrf.mxu0  ;;  %v11865_v22 = vadd.f32 %v6484_v21, %v6438_v28  ;;  %v11878_v44 = vmul.f32 %v11759_v7, %v11783_v63 }
 0x974   :  { %v5308_v34 = vmax.f32 %v5304_v25, 0.0  ;;  %v5287_v42 = vadd.f32 %v5286_v12, %v11727_v53  ;;  %v5842_v39 = vsel %vm2465_vm0, %v5796_v45, 0.0  ;;  %v11882_v53 = vmul.f32 %v11772_v54, %v11781_v46 }
 0x975   :  { %v7698_v33 = vpop.f32.mrf.mxu0  ;;  %5843 = vadd.xlane.f32.xlu1 %v5842_v39  ;;  %v7678_v56 = vpop.f32.mrf.mxu1  ;;  %v11874_v0 = vld [vmem:[#allocation3 + $0x60] sm:$0xff] }
 0x976   :  { %v11870_v19 = vld [vmem:[#allocation3 + $0x68] sm:$0xff]  ;;  %5745 = vst.msk [vmem:[#allocation3 + $0x10] sm:$0x3] %vm5713_vm4, %v5308_v34  ;;  %v5305_v32 = vadd.f32 %v11699_v36, %v5287_v42  ;;  %v5799_v58 = vmul.f32 %v11741_v13, %v11874_v0  ;;  %v6038_v10 = vmul.f32 %v11751_v5, %v11874_v0  ;;  %v6258_v6 = vmul.f32 %v11854_v43, %v11874_v0 }
 0x977   :  { %6067 = vadd.xlane.f32.xlu0 %v6066_v20  ;;  %13135 = vst [vmem:[#allocation38_spill] sm:$0xff] %v11870_v19  ;;  %v11872_v26 = vld [vmem:[#allocation3 + $0x6a] sm:$0xff]  ;;  %5746 = vst.msk [vmem:[#allocation3 + $0x12] sm:$0xc] %vm5715_vm5, %v5308_v34  ;;  %v5800_v63 = vmul.f32 %v11741_v13, %v11870_v19  ;;  %v6039_v50 = vmul.f32 %v11751_v5, %v11870_v19  ;;  %v5974_v38 = vld [vmem:[#allocation3 + $0x62] sm:$0xff]  ;;  %v5291_v49 = vpop.f32.mrf.mxu1  ;;  %v11898_v8 = vpop.f32.mrf.mxu0  ;;  %v6259_v1 = vmul.f32 %v11854_v43, %v11870_v19 }
 0x978   :  { %5747 = vst.msk [vmem:[#allocation3 + $0x14] sm:$0x30] %vm5717_vm6, %v5308_v34  ;;  %v5993_v61 = vmul.f32 %v11745_v57, %v11872_v26  ;;  %v5992_v60 = vmul.f32 %v11745_v57, %v5974_v38  ;;  %v5309_v52 = vmax.f32 %v5305_v32, 0.0  ;;  %v5292_v28 = vadd.f32 %v5291_v49, %v11733_v15 }
 0x979   :  { %5748 = vst.msk [vmem:[#allocation3 + $0x16] sm:$0xc0] %vm5719_vm7, %v5308_v34  ;;  %v5854_v21 = vsel %vm2465_vm0, %v5800_v63, 0.0  ;;  %v7701_v45 = vpop.f32.mrf.mxu0  ;;  %v7681_v12 = vpop.f32.mrf.mxu1  ;;  %v6273_v20 = vadd.f32 %v6259_v1, %v6225_v14  ;;  %v6224_v34 = vmul.f32 %v11826_v37, %v11676_v47  ;;  %v6078_v15 = vsel %vm2465_vm0, %v6048_v2, 0.0 }
 0x97a   :  { %v6053_v25 = vadd.f32 %v6039_v50, %v5993_v61  ;;  %5855 = vadd.xlane.f32.xlu1 %v5854_v21  ;;  %5749 = vst.msk [vmem:[#allocation3 + $0x2e] sm:$0xc] %vm5715_vm5, %v5309_v52  ;;  %v5306_v42 = vadd.f32 %v11699_v36, %v5292_v28  ;;  %v5851_v39 = vsel %vm2465_vm0, %v5799_v58, 0.0  ;;  %v6052_v56 = vadd.f32 %v6038_v10, %v5992_v60 }
 0x97b   :  { %5840 = vadd.xlane.f32.xlu0 %v5839_v59  ;;  %5750 = vst.msk [vmem:[#allocation3 + $0x30] sm:$0x30] %vm5717_vm6, %v5309_v52  ;;  %v6027_v59 = vmul.f32 %v11751_v5, %v11753_v9  ;;  %v5294_v33 = vpop.f32.mrf.mxu1  ;;  %v11919_v14 = vpop.f32.mrf.mxu0  ;;  %v6442_v32 = vmul.f32 %v11680_v24, %v5974_v38  ;;  %v6488_v2 = vmul.f32 %v11684_v40, %v11874_v0  ;;  %v6313_v58 = vsel %vm2465_vm0, %v6273_v20, 0.0 }
 0x97c   :  { %5751 = vst.msk [vmem:[#allocation3 + $0x32] sm:$0xc0] %vm5719_vm7, %v5309_v52  ;;  %v6093_v47 = vsel %vm2465_vm0, %v6053_v25, 0.0  ;;  %v5310_v63 = vmax.f32 %v5306_v42, 0.0  ;;  %v5295_v61 = vadd.f32 %v5294_v33, %v11747_v48  ;;  %v6443_v50 = vmul.f32 %v11680_v24, %v11872_v26 }
 0x97d   :  { %v7702_v49 = vpop.f32.mrf.mxu0  ;;  %v7682_v1 = vpop.f32.mrf.mxu1  ;;  %v5963_v60 = vld [vmem:[#allocation3 + $0xa] sm:$0xff]  ;;  %v6489_v10 = vmul.f32 %v11684_v40, %v11870_v19  ;;  %v11935_v52 = vmul.f32 %v11759_v7, %v11807_v3  ;;  %v11939_v48 = vmul.f32 %v11772_v54, %v11805_v62  ;;  %v11949_v45 = vadd.f32 %v6488_v2, %v6442_v32 }
 0x97e   :  { %6094 = vadd.xlane.f32.xlu1 %v6093_v47  ;;  %5752 = vst.msk [vmem:[#allocation3 + $0x3c] sm:$0x3] %vm5713_vm4, %v5310_v63  ;;  %v5307_v28 = vadd.f32 %v11699_v36, %v5295_v61  ;;  %v5981_v21 = vmul.f32 %v11745_v57, %v5963_v60  ;;  %v11947_v25 = vmul.f32 %v11759_v7, %v5963_v60 }
 0x97f   :  { %6079 = vadd.xlane.f32.xlu0 %v6078_v15  ;;  %5753 = vst.msk [vmem:[#allocation3 + $0x4c] sm:$0x30] %vm5717_vm6, %v5310_v63  ;;  %v5299_v3 = vpop.f32.mrf.mxu1  ;;  %v5411_v12 = vpop.f32.mrf.mxu0  ;;  %v11951_v20 = vadd.f32 %v6489_v10, %v6443_v50  ;;  %v11955_v42 = vmul.f32 %v11772_v54, %v11835_v18  ;;  %v6524_v15 = vmul.f32 %v11759_v7, %v5974_v38  ;;  %v6090_v10 = vsel %vm2465_vm0, %v6052_v56, 0.0 }
 0x980   :  { %5754 = vst.msk [vmem:[#allocation3 + $0x4e] sm:$0xc0] %vm5719_vm7, %v5310_v63  ;;  %v6558_v33 = vmul.f32 %v11772_v54, %v11874_v0  ;;  %v5311_v47 = vmax.f32 %v5307_v28, 0.0  ;;  %v6041_v63 = vadd.f32 %v6027_v59, %v5981_v21  ;;  %v6525_v61 = vmul.f32 %v11759_v7, %v11872_v26 }
 0x981   :  { %v6559_v32 = vmul.f32 %v11772_v54, %v11870_v19  ;;  %v7705_v2 = vpop.f32.mrf.mxu0  ;;  %v7685_v50 = vpop.f32.mrf.mxu1  ;;  %v5967_v49 = vld [vmem:[#allocation3 + $0x2a] sm:$0xff]  ;;  %v6538_v1 = vadd.f32 %v6524_v15, %v11692_v17  ;;  %v6031_v59 = vmul.f32 %v11751_v5, %v11779_v30  ;;  %v6272_v3 = vadd.f32 %v6258_v6, %v6224_v34 }
 0x982   :  { %6314 = vadd.xlane.f32.xlu1 %v6313_v58  ;;  %5755 = vst.msk [vmem:[#allocation3 + $0x58] sm:$0x3] %vm5713_vm4, %v5311_v47  ;;  %v5985_v38 = vmul.f32 %v11745_v57, %v5967_v49  ;;  %v6435_v26 = vmul.f32 %v11680_v24, %v5967_v49  ;;  %v11972_v60 = vmul.f32 %v11759_v7, %v5967_v49  ;;  %v6057_v21 = vsel %vm2465_vm0, %v6041_v63, 0.0 }
 0x983   :  { %5852 = vadd.xlane.f32.xlu0 %v5851_v39  ;;  %5756 = vst.msk [vmem:[#allocation3 + $0x5a] sm:$0xc] %vm5715_vm5, %v5311_v47  ;;  %v5301_v58 = vpop.f32.mrf.mxu1  ;;  %v5413_v39 = vpop.f32.mrf.mxu0  ;;  %v11975_v28 = vadd.f32 %v6558_v33, %v6538_v1  ;;  %v6539_v17 = vadd.f32 %v6525_v61, %v11694_v41  ;;  %v6035_v33 = vmul.f32 %v11751_v5, %v11835_v18  ;;  %v6310_v63 = vsel %vm2465_vm0, %v6272_v3, 0.0 }
 0x984   :  { %v6045_v12 = vadd.f32 %v6031_v59, %v5985_v38  ;;  %v11980_v15 = vadd.f32 %v11811_v29, %v6435_v26 }
 0x985   :  { %13136 = vst [vmem:[#allocation126_spill] sm:$0xff] %v11975_v28  ;;  %v7706_v47 = vpop.f32.mrf.mxu0  ;;  %v7686_v2 = vpop.f32.mrf.mxu1  ;;  %v11982_v49 = vadd.f32 %v6559_v32, %v6539_v17 }
 0x986   :  { %6058 = vadd.xlane.f32.xlu1 %v6057_v21  ;;  %v5971_v50 = vld [vmem:[#allocation3 + $0x4a] sm:$0xff]  ;;  %v6069_v61 = vsel %vm2465_vm0, %v6045_v12, 0.0 }
 0x987   :  { %6091 = vadd.xlane.f32.xlu0 %v6090_v10  ;;  %13137 = vst [vmem:[#allocation158_spill] sm:$0xff] %v11982_v49  ;;  %v5989_v56 = vmul.f32 %v11745_v57, %v5971_v50  ;;  %v6439_v41 = vmul.f32 %v11680_v24, %v5971_v50  ;;  %v11989_v34 = vmul.f32 %v11759_v7, %v5971_v50  ;;  %v5483_v6 = vpop.f32.mrf.mxu1  ;;  %v5571_v29 = vpop.f32.mrf.mxu0 }
 0x989   :  { %v6049_v1 = vadd.f32 %v6035_v33, %v5989_v56  ;;  %v11994_v32 = vadd.f32 %v11863_v51, %v6439_v41  ;;  %v7737_v38 = vpop.f32.mrf.mxu0  ;;  %v7717_v59 = vpop.f32.mrf.mxu1 }
 0x98a   :  { %6070 = vadd.xlane.f32.xlu1 %v6069_v61  ;;  %v5484_v38 = vadd.f32 %v5483_v6, %v11819_v11 }
 0x98b   :  { %6311 = vadd.xlane.f32.xlu0 %v6310_v63  ;;  %v5486_v26 = vpop.f32.mrf.mxu1  ;;  %v5574_v58 = vpop.f32.mrf.mxu0  ;;  %v6081_v39 = vsel %vm2465_vm0, %v6049_v1, 0.0 }
 0x98d   :  { %v7738_v10 = vpop.f32.mrf.mxu0  ;;  %v7718_v17 = vpop.f32.mrf.mxu1 }
 0x98e   :  { %6082 = vadd.xlane.f32.xlu1 %v6081_v39  ;;  %v5592_v39 = vadd.f32 %v5571_v29, %v5484_v38  ;;  %v5487_v17 = vadd.f32 %v5486_v26, %v11856_v4 }
 0x98f   :  { %v5491_v21 = vpop.f32.mrf.mxu1  ;;  %v5579_v47 = vpop.f32.mrf.mxu0 }
 0x990   :  { %v5593_v19 = vadd.f32 %v5574_v58, %v5487_v17 }
 0x991   :  { %v7721_v3 = vpop.f32.mrf.mxu1  ;;  %v7741_v2 = vpop.f32.mrf.mxu0 }
 0x993   :  { %v5494_v12 = vpop.f32.mrf.mxu1  ;;  %v5582_v50 = vpop.f32.mrf.mxu0 }
 0x995   :  { %v7722_v56 = vpop.f32.mrf.mxu1  ;;  %v7742_v51 = vpop.f32.mrf.mxu0 }
 0x996   :  { %v5492_v56 = vadd.f32 %v5491_v21, %v11898_v8 }
 0x997   :  { %v5499_v33 = vpop.f32.mrf.mxu1  ;;  %v5587_v41 = vpop.f32.mrf.mxu0 }
 0x998   :  { %v5594_v11 = vadd.f32 %v5579_v47, %v5492_v56 }
 0x999   :  { %v7725_v63 = vpop.f32.mrf.mxu1  ;;  %v7745_v61 = vpop.f32.mrf.mxu0 }
 0x99b   :  { %v5501_v59 = vpop.f32.mrf.mxu1  ;;  %v5589_v49 = vpop.f32.mrf.mxu0 }
 0x99c   :  { %v5495_v49 = vadd.f32 %v5494_v12, %v11919_v14 }
 0x99d   :  { %v7726_v1 = vpop.f32.mrf.mxu1  ;;  %v7746_v10 = vpop.f32.mrf.mxu0 }
 0x99e   :  { %v5595_v26 = vadd.f32 %v5582_v50, %v5495_v49  ;;  %v6247_v1 = vmul.f32 %v11854_v43, %v11753_v9 }
 0x99f   :  { %v5663_v28 = vpop.f32.mrf.mxu1 }
 0x9a0   :  { %v5684_v3 = vadd.f32 %v5663_v28, %v5592_v39 }
 0x9a1   :  { %v7757_v2 = vpop.f32.mrf.mxu1 }
 0x9a2   :  { %v5688_v51 = vadd.f32 %v11699_v36, %v5684_v3 }
 0x9a3   :  { %v5666_v33 = vpop.f32.mrf.mxu1 }
 0x9a4   :  { %v5692_v41 = vmax.f32 %v5688_v51, 0.0  ;;  %v5685_v63 = vadd.f32 %v5666_v33, %v5593_v19 }
 0x9a5   :  { %v7758_v61 = vpop.f32.mrf.mxu1 }
 0x9a6   :  { %5757 = vst.msk [vmem:[#allocation3 + $0x12] sm:$0x3] %vm5713_vm4, %v5692_v41  ;;  %v5689_v4 = vadd.f32 %v11699_v36, %v5685_v63 }
 0x9a7   :  { %5758 = vst.msk [vmem:[#allocation3 + $0x14] sm:$0xc] %vm5715_vm5, %v5692_v41  ;;  %v5671_v28 = vpop.f32.mrf.mxu1 }
 0x9a8   :  { %5759 = vst.msk [vmem:[#allocation3 + $0x16] sm:$0x30] %vm5717_vm6, %v5692_v41  ;;  %v5693_v6 = vmax.f32 %v5689_v4, 0.0  ;;  %v5686_v8 = vadd.f32 %v5671_v28, %v5594_v11  ;;  %v6246_v28 = vmul.f32 %v11854_v43, %v11755_v31  ;;  %v6215_v31 = vmul.f32 %v11826_v37, %v11779_v30 }
 0x9a9   :  { %v7761_v29 = vpop.f32.mrf.mxu1 }
 0x9aa   :  { %5760 = vst.msk [vmem:[#allocation3 + $0x30] sm:$0xc] %vm5715_vm5, %v5693_v6  ;;  %v5690_v19 = vadd.f32 %v11699_v36, %v5686_v8 }
 0x9ab   :  { %5761 = vst.msk [vmem:[#allocation3 + $0x32] sm:$0x30] %vm5717_vm6, %v5693_v6  ;;  %v5674_v14 = vpop.f32.mrf.mxu1 }
 0x9ac   :  { %5762 = vst.msk [vmem:[#allocation3 + $0x34] sm:$0xc0] %vm5719_vm7, %v5693_v6  ;;  %v5694_v58 = vmax.f32 %v5690_v19, 0.0  ;;  %v5687_v21 = vadd.f32 %v5674_v14, %v5595_v26 }
 0x9ad   :  { %v7762_v47 = vpop.f32.mrf.mxu1 }
 0x9ae   :  { %v5771_v38 = vld [vmem:[#allocation3 + $0x10] sm:$0xff]  ;;  %5763 = vst.msk [vmem:[#allocation3 + $0x4e] sm:$0x30] %vm5717_vm6, %v5694_v58  ;;  %v5691_v50 = vadd.f32 %v11699_v36, %v5687_v21 }
 0x9af   :  { %v5772_v12 = vld [vmem:[#allocation3 + $0x18] sm:$0xff]  ;;  %5764 = vst.msk [vmem:[#allocation3 + $0x50] sm:$0xc0] %vm5719_vm7, %v5694_v58  ;;  %v5789_v39 = vmul.f32 %v11741_v13, %v5771_v38  ;;  %v5679_v2 = vpop.f32.mrf.mxu1  ;;  %v6028_v9 = vmul.f32 %v11751_v5, %v5771_v38  ;;  %v6212_v61 = vmul.f32 %v11826_v37, %v5771_v38  ;;  %v6248_v58 = vmul.f32 %v11854_v43, %v5771_v38 }
 0x9b0   :  { %v12010_v59 = vld [vmem:[#allocation3 + $0x1a] sm:$0xff]  ;;  %v5790_v10 = vmul.f32 %v11741_v13, %v5772_v12  ;;  %v5964_v3 = vld [vmem:[#allocation3 + $0x12] sm:$0xff]  ;;  %v6029_v56 = vmul.f32 %v11751_v5, %v5772_v12  ;;  %v6213_v33 = vmul.f32 %v11826_v37, %v5772_v12  ;;  %v5695_v41 = vmax.f32 %v5691_v50, 0.0 }
 0x9b1   :  { %v5983_v17 = vmul.f32 %v11745_v57, %v12010_v59  ;;  %v5982_v51 = vmul.f32 %v11745_v57, %v5964_v3  ;;  %v5821_v63 = vsel %vm2465_vm0, %v5789_v39, 0.0  ;;  %v7765_v11 = vpop.f32.mrf.mxu1  ;;  %v6260_v29 = vadd.f32 %v6246_v28, %v6212_v61 }
 0x9b2   :  { %v5824_v36 = vsel %vm2465_vm0, %v5790_v10, 0.0  ;;  %5822 = vadd.xlane.f32.xlu0 %v5821_v63  ;;  %5765 = vst.msk [vmem:[#allocation3 + $0x5a] sm:$0x3] %vm5713_vm4, %v5695_v41  ;;  %v6261_v8 = vadd.f32 %v6247_v1, %v6213_v33  ;;  %v6249_v14 = vmul.f32 %v11854_v43, %v5772_v12  ;;  %v6515_v47 = vmul.f32 %v11759_v7, %v12010_v59  ;;  %v12046_v2 = vld [vmem:[#allocation3 + $0x30] sm:$0xff] }
 0x9b3   :  { %5825 = vadd.xlane.f32.xlu1 %v5824_v36  ;;  %v6043_v49 = vadd.f32 %v6029_v56, %v5983_v17  ;;  %v6042_v4 = vadd.f32 %v6028_v9, %v5982_v51  ;;  %v5681_v6 = vpop.f32.mrf.mxu1  ;;  %v6214_v1 = vmul.f32 %v11826_v37, %v11781_v46  ;;  %v12041_v50 = vld [vmem:[#allocation3 + $0x38] sm:$0xff]  ;;  %v6514_v10 = vmul.f32 %v11759_v7, %v5964_v3 }
 0x9b4   :  { %v6277_v39 = vsel %vm2465_vm0, %v6261_v8, 0.0  ;;  %v6274_v17 = vsel %vm2465_vm0, %v6260_v29, 0.0  ;;  %v6529_v56 = vadd.f32 %v6515_v47, %v11980_v15  ;;  %v6549_v51 = vmul.f32 %v11772_v54, %v5772_v12  ;;  %v5969_v11 = vld [vmem:[#allocation3 + $0x3a] sm:$0xff]  ;;  %v5968_v6 = vld [vmem:[#allocation3 + $0x32] sm:$0xff] }
 0x9b5   :  { %v6063_v26 = vsel %vm2465_vm0, %v6043_v49, 0.0  ;;  %v6060_v19 = vsel %vm2465_vm0, %v6042_v4, 0.0  ;;  %v7766_v21 = vpop.f32.mrf.mxu1  ;;  %v6263_v9 = vadd.f32 %v6249_v14, %v6215_v31  ;;  %v6262_v33 = vadd.f32 %v6248_v58, %v6214_v1 }
 0x9b6   :  { %6061 = vadd.xlane.f32.xlu0 %v6060_v19  ;;  %v6528_v41 = vadd.f32 %v6514_v10, %v11833_v55  ;;  %v6548_v36 = vmul.f32 %v11772_v54, %v5771_v38  ;;  %v5794_v63 = vmul.f32 %v11741_v13, %v12041_v50  ;;  %v6563_v61 = vadd.f32 %v6549_v51, %v6529_v56 }
 0x9b7   :  { %6064 = vadd.xlane.f32.xlu1 %v6063_v26  ;;  %v5793_v49 = vmul.f32 %v11741_v13, %v12046_v2  ;;  %v6479_v15 = vmul.f32 %v11684_v40, %v5772_v12  ;;  %v6478_v28 = vmul.f32 %v11684_v40, %v5771_v38  ;;  %v6283_v55 = vsel %vm2465_vm0, %v6263_v9, 0.0 }
 0x9b8   :  { %v6562_v4 = vadd.f32 %v6548_v36, %v6528_v41  ;;  %v6280_v8 = vsel %vm2465_vm0, %v6262_v33, 0.0  ;;  %v5987_v29 = vmul.f32 %v11745_v57, %v5969_v11  ;;  %v6251_v26 = vmul.f32 %v11854_v43, %v11779_v30 }
 0x9b9   :  { %v5836_v19 = vsel %vm2465_vm0, %v5794_v63, 0.0  ;;  %v6033_v14 = vmul.f32 %v11751_v5, %v12041_v50  ;;  %v6433_v12 = vmul.f32 %v11680_v24, %v12010_v59  ;;  %v6432_v38 = vmul.f32 %v11680_v24, %v5964_v3 }
 0x9ba   :  { %6275 = vadd.xlane.f32.xlu0 %v6274_v17  ;;  %v5833_v58 = vsel %vm2465_vm0, %v5793_v49, 0.0  ;;  %v5986_v21 = vmul.f32 %v11745_v57, %v5968_v6  ;;  %v6483_v47 = vmul.f32 %v11684_v40, %v12041_v50  ;;  %v6519_v30 = vmul.f32 %v11759_v7, %v5969_v11 }
 0x9bb   :  { %6278 = vadd.xlane.f32.xlu1 %v6277_v39  ;;  %v6032_v31 = vmul.f32 %v11751_v5, %v12046_v2  ;;  %v6217_v1 = vmul.f32 %v11826_v37, %v12041_v50  ;;  %v6493_v10 = vadd.f32 %v6479_v15, %v6433_v12  ;;  %v6492_v39 = vadd.f32 %v6478_v28, %v6432_v38  ;;  %v12110_v38 = vld [vmem:[#allocation3 + $0x50] sm:$0xff] }
 0x9bc   :  { %v6533_v59 = vadd.f32 %v6519_v30, %v11994_v32  ;;  %v6553_v3 = vmul.f32 %v11772_v54, %v12041_v50  ;;  %v6437_v17 = vmul.f32 %v11680_v24, %v5969_v11  ;;  %v6518_v56 = vmul.f32 %v11759_v7, %v5968_v6 }
 0x9bd   :  { %v6047_v51 = vadd.f32 %v6033_v14, %v5987_v29  ;;  %v6527_v9 = vadd.f32 %v11947_v25, %v6493_v10  ;;  %v6526_v33 = vadd.f32 %v11790_v27, %v6492_v39  ;;  %v6552_v32 = vmul.f32 %v11772_v54, %v12046_v2 }
 0x9be   :  { %6281 = vadd.xlane.f32.xlu0 %v6280_v8  ;;  %v12085_v41 = vadd.f32 %v6553_v3, %v6533_v59  ;;  %v6497_v36 = vadd.f32 %v6483_v47, %v6437_v17  ;;  %v6532_v63 = vadd.f32 %v6518_v56, %v11865_v22  ;;  %v6046_v49 = vadd.f32 %v6032_v31, %v5986_v21 }
 0x9bf   :  { %6284 = vadd.xlane.f32.xlu1 %v6283_v55  ;;  %v6216_v11 = vmul.f32 %v11826_v37, %v12046_v2  ;;  %v6561_v15 = vadd.f32 %v11787_v16, %v6527_v9  ;;  %v6560_v28 = vadd.f32 %v11839_v35, %v6526_v33  ;;  %v6583_v25 = vsel %vm2465_vm0, %v6563_v61, 0.0 }
 0x9c0   :  { %v6580_v27 = vsel %vm2465_vm0, %v6562_v4, 0.0  ;;  %v6531_v55 = vadd.f32 %v11972_v60, %v6497_v36  ;;  %v12097_v8 = vadd.f32 %v6552_v32, %v6532_v63  ;;  %v6250_v22 = vmul.f32 %v11854_v43, %v11781_v46  ;;  %v5972_v4 = vld [vmem:[#allocation3 + $0x52] sm:$0xff] }
 0x9c1   :  { %v6265_v29 = vadd.f32 %v6251_v26, %v6217_v1  ;;  %v6482_v16 = vmul.f32 %v11684_v40, %v12046_v2  ;;  %v6253_v61 = vmul.f32 %v11854_v43, %v12041_v50  ;;  %v6252_v60 = vmul.f32 %v11854_v43, %v12046_v2  ;;  %v12117_v26 = vld [vmem:[#allocation3 + $0x58] sm:$0xff] }
 0x9c2   :  { %5834 = vadd.xlane.f32.xlu0 %v5833_v58  ;;  %v6264_v35 = vadd.f32 %v6250_v22, %v6216_v11  ;;  %v6075_v14 = vsel %vm2465_vm0, %v6047_v51, 0.0  ;;  %v6072_v12 = vsel %vm2465_vm0, %v6046_v49, 0.0  ;;  %v6436_v46 = vmul.f32 %v11680_v24, %v5968_v6  ;;  %v5973_v58 = vld [vmem:[#allocation3 + $0x5a] sm:$0xff] }
 0x9c3   :  { %5837 = vadd.xlane.f32.xlu1 %v5836_v19  ;;  %v6565_v19 = vadd.f32 %v11843_v23, %v6531_v55  ;;  %v6219_v23 = vmul.f32 %v11826_v37, %v11835_v18  ;;  %v6218_v50 = vmul.f32 %v11826_v37, %v11805_v62  ;;  %v6289_v2 = vsel %vm2465_vm0, %v6265_v29, 0.0 }
 0x9c4   :  { %v6496_v21 = vadd.f32 %v6482_v16, %v6436_v46  ;;  %v6522_v47 = vmul.f32 %v11759_v7, %v5972_v4  ;;  %v6286_v30 = vsel %vm2465_vm0, %v6264_v35, 0.0  ;;  %v6486_v1 = vmul.f32 %v11684_v40, %v12110_v38  ;;  %v13138_v46 = vld [vmem:[#allocation38_spill] sm:$0xff] }
 0x9c5   :  { %v6267_v31 = vadd.f32 %v6253_v61, %v6219_v23  ;;  %v6266_v6 = vadd.f32 %v6252_v60, %v6218_v50  ;;  %v6556_v59 = vmul.f32 %v11772_v54, %v12110_v38  ;;  %v6487_v3 = vmul.f32 %v11684_v40, %v12117_v26 }
 0x9c6   :  { %6581 = vadd.xlane.f32.xlu0 %v6580_v27  ;;  %v6530_v10 = vadd.f32 %v11878_v44, %v6496_v21  ;;  %v6536_v39 = vadd.f32 %v6522_v47, %v11949_v45  ;;  %v6523_v17 = vmul.f32 %v11759_v7, %v5973_v58  ;;  %v6440_v56 = vmul.f32 %v11680_v24, %v5972_v4  ;;  %v12190_v21 = vld [vmem:[#allocation4] ss:$0 sm:$0xff] }
 0x9c7   :  { %6584 = vadd.xlane.f32.xlu1 %v6583_v25  ;;  %v6441_v44 = vmul.f32 %v11680_v24, %v5973_v58  ;;  %v6557_v33 = vmul.f32 %v11772_v54, %v12117_v26  ;;  %v6295_v40 = vsel %vm2465_vm0, %v6267_v31, 0.0  ;;  %v6292_v63 = vsel %vm2465_vm0, %v6266_v6, 0.0 }
 0x9c8   :  { %v6564_v51 = vadd.f32 %v11882_v53, %v6530_v10  ;;  %v12133_v9 = vadd.f32 %v6556_v59, %v6536_v39  ;;  %v6537_v45 = vadd.f32 %v6523_v17, %v11951_v20  ;;  %v6500_v36 = vadd.f32 %v6486_v1, %v6440_v56 }
 0x9c9   :  { %v6501_v32 = vadd.f32 %v6487_v3, %v6441_v44  ;;  %v6577_v20 = vsel %vm2465_vm0, %v6561_v15, 0.0  ;;  %v6574_v11 = vsel %vm2465_vm0, %v6560_v28, 0.0  ;;  %v5797_v54 = vmul.f32 %v11741_v13, %v12110_v38  ;;  %v13139_v44 = vld [vmem:[#allocation126_spill] sm:$0xff] }
 0x9ca   :  { %6073 = vadd.xlane.f32.xlu0 %v6072_v12  ;;  %v6571_v7 = vadd.f32 %v6557_v33, %v6537_v45  ;;  %v6534_v53 = vadd.f32 %v11935_v52, %v6500_v36  ;;  %v5990_v27 = vmul.f32 %v11745_v57, %v5972_v4  ;;  %v6036_v52 = vmul.f32 %v11751_v5, %v12110_v38  ;;  %v13140_v33 = vld [vmem:[#allocation158_spill] sm:$0xff] }
 0x9cb   :  { %6076 = vadd.xlane.f32.xlu1 %v6075_v14  ;;  %v6535_v49 = vadd.f32 %v11989_v34, %v6501_v32  ;;  %v6595_v34 = vsel %vm2465_vm0, %v12085_v41, 0.0  ;;  %v5798_v28 = vmul.f32 %v11741_v13, %v12117_v26  ;;  %v6589_v55 = vsel %vm2465_vm0, %v6565_v19, 0.0 }
 0x9cc   :  { %v6568_v24 = vadd.f32 %v11939_v48, %v6534_v53  ;;  %v5845_v48 = vsel %vm2465_vm0, %v5797_v54, 0.0  ;;  %v6050_v15 = vadd.f32 %v6036_v52, %v5990_v27  ;;  %v6592_v22 = vsel %vm2465_vm0, %v12097_v8, 0.0 }
 0x9cd   :  { %v6569_v25 = vadd.f32 %v11955_v42, %v6535_v49  ;;  %v6220_v42 = vmul.f32 %v11826_v37, %v12110_v38  ;;  %v5991_v29 = vmul.f32 %v11745_v57, %v5973_v58  ;;  %v6037_v41 = vmul.f32 %v11751_v5, %v12117_v26 }
 0x9ce   :  { %6287 = vadd.xlane.f32.xlu0 %v6286_v30  ;;  %v6254_v16 = vmul.f32 %v11854_v43, %v11805_v62  ;;  %v5848_v13 = vsel %vm2465_vm0, %v5798_v28, 0.0  ;;  %v6084_v61 = vsel %vm2465_vm0, %v6050_v15, 0.0  ;;  %v6256_v19 = vmul.f32 %v11854_v43, %v12110_v38 }
 0x9cf   :  { %6290 = vadd.xlane.f32.xlu1 %v6289_v2  ;;  %v6051_v60 = vadd.f32 %v6037_v41, %v5991_v29  ;;  %v6221_v57 = vmul.f32 %v11826_v37, %v12117_v26  ;;  %v6222_v5 = vmul.f32 %v11826_v37, %v11874_v0  ;;  %v6255_v62 = vmul.f32 %v11854_v43, %v11835_v18 }
 0x9d0   :  { %v6268_v35 = vadd.f32 %v6254_v16, %v6220_v42  ;;  %v6257_v38 = vmul.f32 %v11854_v43, %v12117_v26  ;;  %v6223_v23 = vmul.f32 %v11826_v37, %v13138_v46  ;;  %v6586_v18 = vsel %vm2465_vm0, %v6564_v51, 0.0 }
 0x9d1   :  { %v6087_v4 = vsel %vm2465_vm0, %v6051_v60, 0.0  ;;  %v6270_v14 = vadd.f32 %v6256_v19, %v6222_v5  ;;  %v6269_v12 = vadd.f32 %v6255_v62, %v6221_v57  ;;  %v6604_v43 = vsel %vm2465_vm0, %v12133_v9, 0.0 }
 0x9d2   :  { %6293 = vadd.xlane.f32.xlu0 %v6292_v63  ;;  %v6298_v8 = vsel %vm2465_vm0, %v6268_v35, 0.0  ;;  %v6271_v2 = vadd.f32 %v6257_v38, %v6223_v23  ;;  %v6607_v26 = vsel %vm2465_vm0, %v6571_v7, 0.0  ;;  %v6598_v6 = vsel %vm2465_vm0, %v6568_v24, 0.0 }
 0x9d3   :  { %6296 = vadd.xlane.f32.xlu1 %v6295_v40  ;;  %v6304_v50 = vsel %vm2465_vm0, %v6270_v14, 0.0  ;;  %v6301_v0 = vsel %vm2465_vm0, %v6269_v12, 0.0  ;;  %v6601_v1 = vsel %vm2465_vm0, %v6569_v25, 0.0  ;;  %v6610_v45 = vsel %vm2465_vm0, %v13139_v44, 0.0 }
 0x9d4   :  { %v6307_v58 = vsel %vm2465_vm0, %v6271_v2, 0.0  ;;  %v6613_v36 = vsel %vm2465_vm0, %v13140_v33, 0.0 }
 0x9d6   :  { %6575 = vadd.xlane.f32.xlu0 %v6574_v11 }
 0x9d7   :  { %6578 = vadd.xlane.f32.xlu1 %v6577_v20 }
 0x9da   :  { %5846 = vadd.xlane.f32.xlu0 %v5845_v48 }
 0x9db   :  { %6596 = vadd.xlane.f32.xlu1 %v6595_v34 }
 0x9de   :  { %6593 = vadd.xlane.f32.xlu0 %v6592_v22 }
 0x9df   :  { %6590 = vadd.xlane.f32.xlu1 %v6589_v55 }
 0x9e2   :  { %6085 = vadd.xlane.f32.xlu0 %v6084_v61 }
 0x9e3   :  { %5849 = vadd.xlane.f32.xlu1 %v5848_v13 }
 0x9e6   :  { %6299 = vadd.xlane.f32.xlu0 %v6298_v8 }
 0x9e7   :  { %6088 = vadd.xlane.f32.xlu1 %v6087_v4 }
 0x9ea   :  { %6305 = vadd.xlane.f32.xlu0 %v6304_v50 }
 0x9eb   :  { %6302 = vadd.xlane.f32.xlu1 %v6301_v0 }
 0x9ee   :  { %6587 = vadd.xlane.f32.xlu0 %v6586_v18 }
 0x9ef   :  { %6308 = vadd.xlane.f32.xlu1 %v6307_v58 }
 0x9f2   :  { %6605 = vadd.xlane.f32.xlu0 %v6604_v43 }
 0x9f3   :  { %6608 = vadd.xlane.f32.xlu1 %v6607_v26  ;;  %v5817_v47 = vpop.xlane.xlu1 %5816 }
 0x9f4   :  { %v5820_v37 = vpop.xlane.xlu0 %5819  ;;  %v5863_v31 = vadd.f32 %v12190_v21, %v5817_v47 }
 0x9f5   :  { %v5864_v30 = vadd.f32 %v12190_v21, %v5820_v37 }
 0x9f6   :  { %v5877_v39 = vsub.f32 0.0, %v5863_v31  ;;  %6599 = vadd.xlane.f32.xlu0 %v6598_v6 }
 0x9f7   :  { %v5878_v10 = vsub.f32 0.0, %v5864_v30  ;;  %6602 = vadd.xlane.f32.xlu1 %v6601_v1 }
 0x9f8   :  { %v6056_v59 = vpop.xlane.xlu0 %6055  ;;  %v5832_v3 = vpop.xlane.xlu1 %5831  ;;  %v5891_v56 = vmul.f32 1.442695, %v5877_v39 }
 0x9f9   :  { %v5893_v17 = vmul.f32 1.442695, %v5878_v10  ;;  %v6096_v51 = vadd.f32 %v12190_v21, %v6056_v59  ;;  %v5868_v9 = vadd.f32 %v12190_v21, %v5832_v3 }
 0x9fa   :  { %6611 = vadd.xlane.f32.xlu0 %v6610_v45 }
 0x9fb   :  { %8059 = vpow2.f32 %v5893_v17  ;;  %v6110_v40 = vsub.f32 0.0, %v6096_v51  ;;  %v5882_v63 = vsub.f32 0.0, %v5868_v9  ;;  %6614 = vadd.xlane.f32.xlu1 %v6613_v36 }
 0x9fc   :  { %8061 = vpow2.f32 %v5891_v56  ;;  %v5829_v32 = vpop.xlane.xlu0 %5828 }
 0x9fd   :  { %v6124_v7 = vmul.f32 1.442695, %v6110_v40  ;;  %v5901_v53 = vmul.f32 1.442695, %v5882_v63  ;;  %v5867_v49 = vadd.f32 %v12190_v21, %v5829_v32 }
 0x9fe   :  { %v5844_v11 = vpop.xlane.xlu1 %5843 }
 0x9ff   :  { %8063 = vpow2.f32 %v6124_v7  ;;  %v5881_v24 = vsub.f32 0.0, %v5867_v49  ;;  %v5872_v27 = vadd.f32 %v12190_v21, %v5844_v11 }
 0xa00   :  { %8065 = vpow2.f32 %v5901_v53  ;;  %v6068_v20 = vpop.xlane.xlu0 %6067 }
 0xa01   :  { %v5899_v54 = vmul.f32 1.442695, %v5881_v24  ;;  %v6100_v25 = vadd.f32 %v12190_v21, %v6068_v20  ;;  %v5886_v34 = vsub.f32 0.0, %v5872_v27 }
 0xa03   :  { %8067 = vpow2.f32 %v5899_v54  ;;  %v6114_v52 = vsub.f32 0.0, %v6100_v25  ;;  %v5856_v15 = vpop.xlane.xlu1 %5855  ;;  %v5909_v42 = vmul.f32 1.442695, %v5886_v34 }
 0xa04   :  { %v5841_v48 = vpop.xlane.xlu0 %5840  ;;  %v5876_v22 = vadd.f32 %v12190_v21, %v5856_v15 }
 0xa05   :  { %v6132_v28 = vmul.f32 1.442695, %v6114_v52  ;;  %v5871_v55 = vadd.f32 %v12190_v21, %v5841_v48 }
 0xa06   :  { %v5890_v41 = vsub.f32 0.0, %v5876_v22 }
 0xa07   :  { %8069 = vpow2.f32 %v6132_v28  ;;  %v5885_v29 = vsub.f32 0.0, %v5871_v55  ;;  %v6095_v35 = vpop.xlane.xlu1 %6094 }
 0xa08   :  { %v8060_v16 = vpop.eup %8059  ;;  %8071 = vpow2.f32 %v5909_v42  ;;  %v6080_v13 = vpop.xlane.xlu0 %6079  ;;  %v5917_v62 = vmul.f32 1.442695, %v5890_v41  ;;  %v6109_v8 = vadd.f32 %v12190_v21, %v6095_v35 }
 0xa09   :  { %v8062_v61 = vpop.eup %8061  ;;  %v5920_v60 = vadd.f32 1.0, %v8060_v16  ;;  %v5907_v19 = vmul.f32 1.442695, %v5885_v29  ;;  %v6104_v57 = vadd.f32 %v12190_v21, %v6080_v13 }
 0xa0a   :  { %v5919_v5 = vadd.f32 1.0, %v8062_v61  ;;  %v6123_v12 = vsub.f32 0.0, %v6109_v8 }
 0xa0b   :  { %8073 = vrcp.f32 %v5920_v60  ;;  %v6118_v4 = vsub.f32 0.0, %v6104_v57  ;;  %v6315_v38 = vpop.xlane.xlu1 %6314 }
 0xa0c   :  { %v8064_v14 = vpop.eup %8063  ;;  %8075 = vrcp.f32 %v5919_v5  ;;  %v5853_v46 = vpop.xlane.xlu0 %5852  ;;  %v6329_v2 = vadd.f32 %v12190_v21, %v6315_v38  ;;  %v6150_v58 = vmul.f32 1.442695, %v6123_v12 }
 0xa0d   :  { %v8066_v23 = vpop.eup %8065  ;;  %v6152_v50 = vadd.f32 1.0, %v8064_v14  ;;  %8077 = vpow2.f32 %v5907_v19  ;;  %v6140_v0 = vmul.f32 1.442695, %v6118_v4  ;;  %v5875_v43 = vadd.f32 %v12190_v21, %v5853_v46 }
 0xa0e   :  { %v5924_v18 = vadd.f32 1.0, %v8066_v23  ;;  %8079 = vpow2.f32 %v5917_v62  ;;  %v6343_v26 = vsub.f32 0.0, %v6329_v2 }
 0xa0f   :  { %8081 = vrcp.f32 %v6152_v50  ;;  %v5889_v47 = vsub.f32 0.0, %v5875_v43  ;;  %v6059_v31 = vpop.xlane.xlu1 %6058 }
 0xa10   :  { %v8068_v37 = vpop.eup %8067  ;;  %8083 = vrcp.f32 %v5924_v18  ;;  %v6092_v30 = vpop.xlane.xlu0 %6091  ;;  %v6370_v1 = vmul.f32 1.442695, %v6343_v26  ;;  %v6097_v59 = vadd.f32 %v12190_v21, %v6059_v31 }
 0xa11   :  { %v5923_v6 = vadd.f32 1.0, %v8068_v37  ;;  %8085 = vpow2.f32 %v6140_v0  ;;  %v6108_v10 = vadd.f32 %v12190_v21, %v6092_v30  ;;  %v5915_v39 = vmul.f32 1.442695, %v5889_v47 }
 0xa12   :  { %8087 = vpow2.f32 %v6150_v58  ;;  %v6111_v56 = vsub.f32 0.0, %v6097_v59 }
 0xa13   :  { %8089 = vrcp.f32 %v5923_v6  ;;  %v6122_v3 = vsub.f32 0.0, %v6108_v10  ;;  %v6071_v9 = vpop.xlane.xlu1 %6070 }
 0xa14   :  { %v8070_v17 = vpop.eup %8069  ;;  %8091 = vpow2.f32 %v6370_v1  ;;  %v6312_v51 = vpop.xlane.xlu0 %6311  ;;  %v6126_v63 = vmul.f32 1.442695, %v6111_v56  ;;  %v6101_v32 = vadd.f32 %v12190_v21, %v6071_v9 }
 0xa15   :  { %v8072_v44 = vpop.eup %8071  ;;  %v6156_v45 = vadd.f32 1.0, %v8070_v17  ;;  %8093 = vpow2.f32 %v5915_v39  ;;  %v6148_v33 = vmul.f32 1.442695, %v6122_v3  ;;  %v6328_v36 = vadd.f32 %v12190_v21, %v6312_v51 }
 0xa16   :  { %v5928_v40 = vadd.f32 1.0, %v8072_v44  ;;  %v6115_v49 = vsub.f32 0.0, %v6101_v32 }
 0xa17   :  { %8095 = vrcp.f32 %v6156_v45  ;;  %v6342_v7 = vsub.f32 0.0, %v6328_v36  ;;  %v6083_v24 = vpop.xlane.xlu1 %6082 }
 0xa18   :  { %v8074_v53 = vpop.eup %8073  ;;  %8097 = vrcp.f32 %v5928_v40  ;;  %v6105_v54 = vadd.f32 %v12190_v21, %v6083_v24  ;;  %v6134_v27 = vmul.f32 1.442695, %v6115_v49 }
 0xa19   :  { %v8076_v20 = vpop.eup %8075  ;;  %5949 = vst.msk [vmem:[%s12494_s16 + $0x8] sm:$0xff] %vm5947_vm8, %v8074_v53  ;;  %8099 = vpow2.f32 %v6148_v33  ;;  %v6368_v11 = vmul.f32 1.442695, %v6342_v7 }
 0xa1a   :  { %v8078_v25 = vpop.eup %8077  ;;  %5948 = vst.msk [vmem:[%s12494_s16] sm:$0xff] %vm5947_vm8, %v8076_v20  ;;  %8101 = vpow2.f32 %v6126_v63  ;;  %v6119_v48 = vsub.f32 0.0, %v6105_v54 }
 0xa1b   :  { %v8080_v52 = vpop.eup %8079  ;;  %v5927_v34 = vadd.f32 1.0, %v8078_v25  ;;  %8103 = vpow2.f32 %v6368_v11 }
 0xa1c   :  { %v8082_v15 = vpop.eup %8081  ;;  %v5932_v28 = vadd.f32 1.0, %v8080_v52  ;;  %8105 = vpow2.f32 %v6134_v27  ;;  %v6142_v55 = vmul.f32 1.442695, %v6119_v48 }
 0xa1d   :  { %v8084_v42 = vpop.eup %8083  ;;  %6180 = vst.msk [vmem:[%s12494_s16 + $0x70] sm:$0xff] %vm5947_vm8, %v8082_v15  ;;  %8107 = vrcp.f32 %v5927_v34 }
 0xa1e   :  { %v8086_v22 = vpop.eup %8085  ;;  %5953 = vst.msk [vmem:[%s12494_s16 + $0x28] sm:$0xff] %vm5947_vm8, %v8084_v42  ;;  %8109 = vrcp.f32 %v5932_v28 }
 0xa1f   :  { %v8088_v29 = vpop.eup %8087  ;;  %v6160_v41 = vadd.f32 1.0, %v8086_v22  ;;  %8111 = vpow2.f32 %v6142_v55 }
 0xa20   :  { %v8090_v16 = vpop.eup %8089  ;;  %v6165_v13 = vadd.f32 1.0, %v8088_v29 }
 0xa21   :  { %v8092_v35 = vpop.eup %8091  ;;  %5952 = vst.msk [vmem:[%s12494_s16 + $0x20] sm:$0xff] %vm5947_vm8, %v8090_v16  ;;  %8113 = vrcp.f32 %v6160_v41 }
 0xa22   :  { %v8094_v61 = vpop.eup %8093  ;;  %8115 = vrcp.f32 %v6165_v13  ;;  %v6385_v60 = vadd.f32 1.0, %v8092_v35 }
 0xa23   :  { %v5931_v19 = vadd.f32 1.0, %v8094_v61 }
 0xa24   :  { %v8096_v57 = vpop.eup %8095  ;;  %8117 = vrcp.f32 %v6385_v60 }
 0xa25   :  { %v8098_v5 = vpop.eup %8097  ;;  %6184 = vst.msk [vmem:[%s12494_s16 + $0x90] sm:$0xff] %vm5947_vm8, %v8096_v57  ;;  %8119 = vrcp.f32 %v5931_v19 }
 0xa26   :  { %v8100_v62 = vpop.eup %8099  ;;  %5957 = vst.msk [vmem:[%s12494_s16 + $0x48] sm:$0xff] %vm5947_vm8, %v8098_v5 }
 0xa27   :  { %v8102_v8 = vpop.eup %8101  ;;  %v6164_v4 = vadd.f32 1.0, %v8100_v62 }
 0xa28   :  { %v8104_v14 = vpop.eup %8103  ;;  %v6153_v12 = vadd.f32 1.0, %v8102_v8 }
 0xa29   :  { %v8106_v38 = vpop.eup %8105  ;;  %8121 = vrcp.f32 %v6164_v4  ;;  %v6384_v46 = vadd.f32 1.0, %v8104_v14 }
 0xa2a   :  { %v8108_v23 = vpop.eup %8107  ;;  %8123 = vrcp.f32 %v6153_v12  ;;  %v6157_v50 = vadd.f32 1.0, %v8106_v38 }
 0xa2b   :  { %v8110_v0 = vpop.eup %8109  ;;  %5956 = vst.msk [vmem:[%s12494_s16 + $0x40] sm:$0xff] %vm5947_vm8, %v8108_v23  ;;  %8125 = vrcp.f32 %v6384_v46 }
 0xa2c   :  { %v8112_v2 = vpop.eup %8111  ;;  %5961 = vst.msk [vmem:[%s12494_s16 + $0x68] sm:$0xff] %vm5947_vm8, %v8110_v0  ;;  %8127 = vrcp.f32 %v6157_v50 }
 0xa2d   :  { %v6161_v18 = vadd.f32 1.0, %v8112_v2 }
 0xa2e   :  { %v8114_v58 = vpop.eup %8113 }
 0xa2f   :  { %v8116_v43 = vpop.eup %8115  ;;  %6188 = vst.msk [vmem:[%s12494_s16 + $0xb0] sm:$0xff] %vm5947_vm8, %v8114_v58  ;;  %8129 = vrcp.f32 %v6161_v18 }
 0xa30   :  { %6193 = vst.msk [vmem:[%s12494_s16 + $0xd8] sm:$0xff] %vm5947_vm8, %v8116_v43 }
 0xa31   :  { %v8118_v26 = vpop.eup %8117 }
 0xa32   :  { %v8120_v37 = vpop.eup %8119  ;;  %6413 = vst.msk [vmem:[%s12494_s16 + $0x148] sm:$0xff] %vm5947_vm8, %v8118_v26 }
 0xa33   :  { %5960 = vst.msk [vmem:[%s12494_s16 + $0x60] sm:$0xff] %vm5947_vm8, %v8120_v37 }
 0xa36   :  { %v8122_v47 = vpop.eup %8121 }
 0xa37   :  { %v8124_v30 = vpop.eup %8123  ;;  %6192 = vst.msk [vmem:[%s12494_s16 + $0xd0] sm:$0xff] %vm5947_vm8, %v8122_v47 }
 0xa38   :  { %v8126_v31 = vpop.eup %8125  ;;  %6181 = vst.msk [vmem:[%s12494_s16 + $0x78] sm:$0xff] %vm5947_vm8, %v8124_v30 }
 0xa39   :  { %v8128_v6 = vpop.eup %8127  ;;  %6412 = vst.msk [vmem:[%s12494_s16 + $0x140] sm:$0xff] %vm5947_vm8, %v8126_v31 }
 0xa3a   :  { %6185 = vst.msk [vmem:[%s12494_s16 + $0x98] sm:$0xff] %vm5947_vm8, %v8128_v6 }
 0xa3b   :  { %v5823_v39 = vpop.xlane.xlu0 %5822 }
 0xa3c   :  { %v8130_v1 = vpop.eup %8129  ;;  %v5826_v10 = vpop.xlane.xlu1 %5825  ;;  %v5865_v3 = vadd.f32 %v12190_v21, %v5823_v39 }
 0xa3d   :  { %6189 = vst.msk [vmem:[%s12494_s16 + $0xb8] sm:$0xff] %vm5947_vm8, %v8130_v1  ;;  %v5866_v59 = vadd.f32 %v12190_v21, %v5826_v10 }
 0xa3e   :  { %v5879_v56 = vsub.f32 0.0, %v5865_v3 }
 0xa3f   :  { %v5880_v17 = vsub.f32 0.0, %v5866_v59  ;;  %v6062_v9 = vpop.xlane.xlu0 %6061 }
 0xa40   :  { %v6065_v51 = vpop.xlane.xlu1 %6064  ;;  %v5895_v45 = vmul.f32 1.442695, %v5879_v56  ;;  %v6098_v36 = vadd.f32 %v12190_v21, %v6062_v9 }
 0xa41   :  { %v5897_v44 = vmul.f32 1.442695, %v5880_v17  ;;  %v6099_v33 = vadd.f32 %v12190_v21, %v6065_v51 }
 0xa42   :  { %v6112_v63 = vsub.f32 0.0, %v6098_v36 }
 0xa43   :  { %8131 = vpow2.f32 %v5897_v44  ;;  %v6113_v40 = vsub.f32 0.0, %v6099_v33  ;;  %v6276_v7 = vpop.xlane.xlu0 %6275 }
 0xa44   :  { %8133 = vpow2.f32 %v5895_v45  ;;  %v6279_v32 = vpop.xlane.xlu1 %6278  ;;  %v6128_v49 = vmul.f32 1.442695, %v6112_v63  ;;  %v6316_v20 = vadd.f32 %v12190_v21, %v6276_v7 }
 0xa45   :  { %v6130_v53 = vmul.f32 1.442695, %v6113_v40  ;;  %v6317_v24 = vadd.f32 %v12190_v21, %v6279_v32 }
 0xa46   :  { %v6330_v54 = vsub.f32 0.0, %v6316_v20 }
 0xa47   :  { %8135 = vpow2.f32 %v6130_v53  ;;  %v6331_v11 = vsub.f32 0.0, %v6317_v24  ;;  %v6282_v27 = vpop.xlane.xlu0 %6281 }
 0xa48   :  { %8137 = vpow2.f32 %v6128_v49  ;;  %v6285_v25 = vpop.xlane.xlu1 %6284  ;;  %v6344_v34 = vmul.f32 1.442695, %v6330_v54  ;;  %v6318_v15 = vadd.f32 %v12190_v21, %v6282_v27 }
 0xa49   :  { %v6346_v52 = vmul.f32 1.442695, %v6331_v11  ;;  %v6319_v48 = vadd.f32 %v12190_v21, %v6285_v25 }
 0xa4a   :  { %v6332_v42 = vsub.f32 0.0, %v6318_v15 }
 0xa4b   :  { %8139 = vpow2.f32 %v6346_v52  ;;  %v6333_v28 = vsub.f32 0.0, %v6319_v48  ;;  %v5835_v22 = vpop.xlane.xlu0 %5834 }
 0xa4c   :  { %8141 = vpow2.f32 %v6344_v34  ;;  %v5838_v55 = vpop.xlane.xlu1 %5837  ;;  %v6348_v41 = vmul.f32 1.442695, %v6332_v42  ;;  %v5869_v13 = vadd.f32 %v12190_v21, %v5835_v22 }
 0xa4d   :  { %v6350_v29 = vmul.f32 1.442695, %v6333_v28  ;;  %v5870_v16 = vadd.f32 %v12190_v21, %v5838_v55 }
 0xa4e   :  { %v5883_v61 = vsub.f32 0.0, %v5869_v13 }
 0xa4f   :  { %8143 = vpow2.f32 %v6350_v29  ;;  %v5884_v35 = vsub.f32 0.0, %v5870_v16  ;;  %v6582_v57 = vpop.xlane.xlu0 %6581 }
 0xa50   :  { %v8132_v60 = vpop.eup %8131  ;;  %8145 = vpow2.f32 %v6348_v41  ;;  %v6585_v19 = vpop.xlane.xlu1 %6584  ;;  %v5903_v12 = vmul.f32 1.442695, %v5883_v61  ;;  %v6618_v38 = vadd.f32 %v12190_v21, %v6582_v57 }
 0xa51   :  { %v8134_v5 = vpop.eup %8133  ;;  %v5922_v62 = vadd.f32 1.0, %v8132_v60  ;;  %v5905_v8 = vmul.f32 1.442695, %v5884_v35  ;;  %v6619_v4 = vadd.f32 %v12190_v21, %v6585_v19 }
 0xa52   :  { %v5921_v14 = vadd.f32 1.0, %v8134_v5  ;;  %v6632_v50 = vsub.f32 0.0, %v6618_v38 }
 0xa53   :  { %8147 = vrcp.f32 %v5922_v62  ;;  %v6633_v46 = vsub.f32 0.0, %v6619_v4  ;;  %v6074_v2 = vpop.xlane.xlu0 %6073 }
 0xa54   :  { %v8136_v23 = vpop.eup %8135  ;;  %8149 = vrcp.f32 %v5921_v14  ;;  %v6077_v0 = vpop.xlane.xlu1 %6076  ;;  %v6648_v47 = vmul.f32 1.442695, %v6632_v50  ;;  %v6102_v30 = vadd.f32 %v12190_v21, %v6074_v2 }
 0xa55   :  { %v8138_v18 = vpop.eup %8137  ;;  %v6155_v58 = vadd.f32 1.0, %v8136_v23  ;;  %8151 = vpow2.f32 %v5905_v8  ;;  %v6650_v43 = vmul.f32 1.442695, %v6633_v46  ;;  %v6103_v26 = vadd.f32 %v12190_v21, %v6077_v0 }
 0xa56   :  { %v6154_v37 = vadd.f32 1.0, %v8138_v18  ;;  %8153 = vpow2.f32 %v5903_v12  ;;  %v6116_v1 = vsub.f32 0.0, %v6102_v30 }
 0xa57   :  { %8155 = vrcp.f32 %v6155_v58  ;;  %v6117_v31 = vsub.f32 0.0, %v6103_v26  ;;  %v6288_v39 = vpop.xlane.xlu0 %6287 }
 0xa58   :  { %v8140_v6 = vpop.eup %8139  ;;  %8157 = vrcp.f32 %v6154_v37  ;;  %v6291_v10 = vpop.xlane.xlu1 %6290  ;;  %v6136_v9 = vmul.f32 1.442695, %v6116_v1  ;;  %v6320_v44 = vadd.f32 %v12190_v21, %v6288_v39 }
 0xa59   :  { %v8142_v59 = vpop.eup %8141  ;;  %v6373_v3 = vadd.f32 1.0, %v8140_v6  ;;  %8159 = vpow2.f32 %v6650_v43  ;;  %v6138_v17 = vmul.f32 1.442695, %v6117_v31  ;;  %v6321_v56 = vadd.f32 %v12190_v21, %v6291_v10 }
 0xa5a   :  { %v6372_v51 = vadd.f32 1.0, %v8142_v59  ;;  %8161 = vpow2.f32 %v6648_v47  ;;  %v6334_v36 = vsub.f32 0.0, %v6320_v44 }
 0xa5b   :  { %8163 = vrcp.f32 %v6373_v3  ;;  %v6335_v45 = vsub.f32 0.0, %v6321_v56  ;;  %v6294_v63 = vpop.xlane.xlu0 %6293 }
 0xa5c   :  { %v8144_v33 = vpop.eup %8143  ;;  %8165 = vrcp.f32 %v6372_v51  ;;  %v6297_v40 = vpop.xlane.xlu1 %6296  ;;  %v6352_v20 = vmul.f32 1.442695, %v6334_v36  ;;  %v6322_v11 = vadd.f32 %v12190_v21, %v6294_v63 }
 0xa5d   :  { %v8146_v32 = vpop.eup %8145  ;;  %v6375_v7 = vadd.f32 1.0, %v8144_v33  ;;  %8167 = vpow2.f32 %v6138_v17  ;;  %v6354_v53 = vmul.f32 1.442695, %v6335_v45  ;;  %v6323_v49 = vadd.f32 %v12190_v21, %v6297_v40 }
 0xa5e   :  { %v6374_v24 = vadd.f32 1.0, %v8146_v32  ;;  %8169 = vpow2.f32 %v6136_v9  ;;  %v6336_v27 = vsub.f32 0.0, %v6322_v11 }
 0xa5f   :  { %8171 = vrcp.f32 %v6375_v7  ;;  %v6337_v54 = vsub.f32 0.0, %v6323_v49  ;;  %v6576_v34 = vpop.xlane.xlu0 %6575 }
 0xa60   :  { %v8148_v25 = vpop.eup %8147  ;;  %8173 = vrcp.f32 %v6374_v24  ;;  %v6579_v52 = vpop.xlane.xlu1 %6578  ;;  %v6616_v42 = vadd.f32 %v12190_v21, %v6576_v34  ;;  %v6356_v22 = vmul.f32 1.442695, %v6336_v27 }
 0xa61   :  { %v8150_v48 = vpop.eup %8149  ;;  %5951 = vst.msk [vmem:[%s12494_s16 + $0x18] sm:$0xff] %vm5947_vm8, %v8148_v25  ;;  %8175 = vpow2.f32 %v6354_v53  ;;  %v6358_v15 = vmul.f32 1.442695, %v6337_v54  ;;  %v6617_v28 = vadd.f32 %v12190_v21, %v6579_v52 }
 0xa62   :  { %v8152_v55 = vpop.eup %8151  ;;  %5950 = vst.msk [vmem:[%s12494_s16 + $0x10] sm:$0xff] %vm5947_vm8, %v8150_v48  ;;  %8177 = vpow2.f32 %v6352_v20  ;;  %v6630_v13 = vsub.f32 0.0, %v6616_v42 }
 0xa63   :  { %v8154_v29 = vpop.eup %8153  ;;  %v5926_v41 = vadd.f32 1.0, %v8152_v55  ;;  %8179 = vpow2.f32 %v6358_v15  ;;  %v6631_v16 = vsub.f32 0.0, %v6617_v28  ;;  %v5847_v19 = vpop.xlane.xlu0 %5846 }
 0xa64   :  { %v8156_v35 = vpop.eup %8155  ;;  %v5925_v61 = vadd.f32 1.0, %v8154_v29  ;;  %8181 = vpow2.f32 %v6356_v22  ;;  %v6597_v60 = vpop.xlane.xlu1 %6596  ;;  %v6644_v62 = vmul.f32 1.442695, %v6630_v13  ;;  %v5873_v14 = vadd.f32 %v12190_v21, %v5847_v19 }
 0xa65   :  { %v8158_v57 = vpop.eup %8157  ;;  %6183 = vst.msk [vmem:[%s12494_s16 + $0x88] sm:$0xff] %vm5947_vm8, %v8156_v35  ;;  %8183 = vrcp.f32 %v5926_v41  ;;  %v6646_v5 = vmul.f32 1.442695, %v6631_v16  ;;  %v6623_v8 = vadd.f32 %v12190_v21, %v6597_v60 }
 0xa66   :  { %v8160_v4 = vpop.eup %8159  ;;  %6182 = vst.msk [vmem:[%s12494_s16 + $0x80] sm:$0xff] %vm5947_vm8, %v8158_v57  ;;  %8185 = vrcp.f32 %v5925_v61  ;;  %v5887_v0 = vsub.f32 0.0, %v5873_v14 }
 0xa67   :  { %v8162_v12 = vpop.eup %8161  ;;  %v6675_v38 = vadd.f32 1.0, %v8160_v4  ;;  %8187 = vpow2.f32 %v6646_v5  ;;  %v6637_v46 = vsub.f32 0.0, %v6623_v8  ;;  %v6594_v18 = vpop.xlane.xlu0 %6593 }
 0xa68   :  { %v8164_v23 = vpop.eup %8163  ;;  %v6674_v50 = vadd.f32 1.0, %v8162_v12  ;;  %8189 = vpow2.f32 %v6644_v62  ;;  %v6591_v2 = vpop.xlane.xlu1 %6590  ;;  %v6622_v37 = vadd.f32 %v12190_v21, %v6594_v18  ;;  %v5911_v30 = vmul.f32 1.442695, %v5887_v0 }
 0xa69   :  { %v8166_v58 = vpop.eup %8165  ;;  %6401 = vst.msk [vmem:[%s12494_s16 + $0xe8] sm:$0xff] %vm5947_vm8, %v8164_v23  ;;  %8191 = vrcp.f32 %v6675_v38  ;;  %v6658_v43 = vmul.f32 1.442695, %v6637_v46  ;;  %v6621_v26 = vadd.f32 %v12190_v21, %v6591_v2 }
 0xa6a   :  { %v8168_v47 = vpop.eup %8167  ;;  %6400 = vst.msk [vmem:[%s12494_s16 + $0xe0] sm:$0xff] %vm5947_vm8, %v8166_v58  ;;  %8193 = vrcp.f32 %v6674_v50  ;;  %v6636_v10 = vsub.f32 0.0, %v6622_v37 }
 0xa6b   :  { %v8170_v31 = vpop.eup %8169  ;;  %v6159_v6 = vadd.f32 1.0, %v8168_v47  ;;  %8195 = vpow2.f32 %v6658_v43  ;;  %v6635_v1 = vsub.f32 0.0, %v6621_v26  ;;  %v6086_v3 = vpop.xlane.xlu0 %6085 }
 0xa6c   :  { %v8172_v39 = vpop.eup %8171  ;;  %v6158_v59 = vadd.f32 1.0, %v8170_v31  ;;  %8197 = vpow2.f32 %v5911_v30  ;;  %v5850_v17 = vpop.xlane.xlu1 %5849  ;;  %v6656_v9 = vmul.f32 1.442695, %v6636_v10  ;;  %v6106_v44 = vadd.f32 %v12190_v21, %v6086_v3 }
 0xa6d   :  { %v8174_v56 = vpop.eup %8173  ;;  %6403 = vst.msk [vmem:[%s12494_s16 + $0xf8] sm:$0xff] %vm5947_vm8, %v8172_v39  ;;  %8199 = vrcp.f32 %v6159_v6  ;;  %v6654_v51 = vmul.f32 1.442695, %v6635_v1  ;;  %v5874_v33 = vadd.f32 %v12190_v21, %v5850_v17 }
 0xa6e   :  { %v8176_v45 = vpop.eup %8175  ;;  %6402 = vst.msk [vmem:[%s12494_s16 + $0xf0] sm:$0xff] %vm5947_vm8, %v8174_v56  ;;  %8201 = vrcp.f32 %v6158_v59  ;;  %v6120_v63 = vsub.f32 0.0, %v6106_v44 }
 0xa6f   :  { %v8178_v36 = vpop.eup %8177  ;;  %v6377_v40 = vadd.f32 1.0, %v8176_v45  ;;  %8203 = vpow2.f32 %v6654_v51  ;;  %v5888_v53 = vsub.f32 0.0, %v5874_v33  ;;  %v6300_v49 = vpop.xlane.xlu0 %6299 }
 0xa70   :  { %v8180_v32 = vpop.eup %8179  ;;  %v6376_v7 = vadd.f32 1.0, %v8178_v36  ;;  %8205 = vpow2.f32 %v6656_v9  ;;  %v6089_v24 = vpop.xlane.xlu1 %6088  ;;  %v6144_v54 = vmul.f32 1.442695, %v6120_v63  ;;  %v6324_v25 = vadd.f32 %v12190_v21, %v6300_v49 }
 0xa71   :  { %v8182_v20 = vpop.eup %8181  ;;  %8207 = vrcp.f32 %v6377_v40  ;;  %v6379_v11 = vadd.f32 1.0, %v8180_v32  ;;  %v5913_v34 = vmul.f32 1.442695, %v5888_v53  ;;  %v6107_v48 = vadd.f32 %v12190_v21, %v6089_v24 }
 0xa72   :  { %v8184_v27 = vpop.eup %8183  ;;  %8209 = vrcp.f32 %v6376_v7  ;;  %v6378_v52 = vadd.f32 1.0, %v8182_v20  ;;  %v6338_v28 = vsub.f32 0.0, %v6324_v25 }
 0xa73   :  { %v8186_v15 = vpop.eup %8185  ;;  %5955 = vst.msk [vmem:[%s12494_s16 + $0x38] sm:$0xff] %vm5947_vm8, %v8184_v27  ;;  %8211 = vrcp.f32 %v6379_v11  ;;  %v6121_v55 = vsub.f32 0.0, %v6107_v48  ;;  %v6306_v22 = vpop.xlane.xlu0 %6305 }
 0xa74   :  { %v8188_v42 = vpop.eup %8187  ;;  %5954 = vst.msk [vmem:[%s12494_s16 + $0x30] sm:$0xff] %vm5947_vm8, %v8186_v15  ;;  %8213 = vrcp.f32 %v6378_v52  ;;  %v6303_v29 = vpop.xlane.xlu1 %6302  ;;  %v6360_v13 = vmul.f32 1.442695, %v6338_v28  ;;  %v6326_v35 = vadd.f32 %v12190_v21, %v6306_v22 }
 0xa75   :  { %v8190_v41 = vpop.eup %8189  ;;  %v6673_v16 = vadd.f32 1.0, %v8188_v42  ;;  %8215 = vpow2.f32 %v6144_v54  ;;  %v6146_v19 = vmul.f32 1.442695, %v6121_v55  ;;  %v6325_v57 = vadd.f32 %v12190_v21, %v6303_v29 }
 0xa76   :  { %v8192_v61 = vpop.eup %8191  ;;  %v6672_v60 = vadd.f32 1.0, %v8190_v41  ;;  %8217 = vpow2.f32 %v5913_v34  ;;  %v6340_v62 = vsub.f32 0.0, %v6326_v35 }
 0xa77   :  { %v8194_v5 = vpop.eup %8193  ;;  %6703 = vst.msk [vmem:[%s12494_s16 + $0x168] sm:$0xff] %vm5947_vm8, %v8192_v61  ;;  %8219 = vrcp.f32 %v6673_v16  ;;  %v6339_v4 = vsub.f32 0.0, %v6325_v57  ;;  %v6588_v14 = vpop.xlane.xlu0 %6587 }
 0xa78   :  { %v8196_v8 = vpop.eup %8195  ;;  %6702 = vst.msk [vmem:[%s12494_s16 + $0x160] sm:$0xff] %vm5947_vm8, %v8194_v5  ;;  %8221 = vrcp.f32 %v6672_v60  ;;  %v6309_v12 = vpop.xlane.xlu1 %6308  ;;  %v6364_v23 = vmul.f32 1.442695, %v6340_v62  ;;  %v6620_v50 = vadd.f32 %v12190_v21, %v6588_v14 }
 0xa79   :  { %v8198_v38 = vpop.eup %8197  ;;  %v6679_v46 = vadd.f32 1.0, %v8196_v8  ;;  %8223 = vpow2.f32 %v6360_v13  ;;  %v6362_v18 = vmul.f32 1.442695, %v6339_v4  ;;  %v6327_v58 = vadd.f32 %v12190_v21, %v6309_v12 }
 0xa7a   :  { %v8200_v0 = vpop.eup %8199  ;;  %v5929_v2 = vadd.f32 1.0, %v8198_v38  ;;  %8225 = vpow2.f32 %v6146_v19  ;;  %v6634_v26 = vsub.f32 0.0, %v6620_v50 }
 0xa7b   :  { %v8202_v43 = vpop.eup %8201  ;;  %6187 = vst.msk [vmem:[%s12494_s16 + $0xa8] sm:$0xff] %vm5947_vm8, %v8200_v0  ;;  %8227 = vrcp.f32 %v6679_v46  ;;  %v6341_v47 = vsub.f32 0.0, %v6327_v58  ;;  %v6606_v30 = vpop.xlane.xlu0 %6605 }
 0xa7c   :  { %v8204_v37 = vpop.eup %8203  ;;  %6186 = vst.msk [vmem:[%s12494_s16 + $0xa0] sm:$0xff] %vm5947_vm8, %v8202_v43  ;;  %8229 = vrcp.f32 %v5929_v2  ;;  %v6609_v31 = vpop.xlane.xlu1 %6608  ;;  %v6652_v10 = vmul.f32 1.442695, %v6634_v26  ;;  %v6626_v39 = vadd.f32 %v12190_v21, %v6606_v30 }
 0xa7d   :  { %v8206_v6 = vpop.eup %8205  ;;  %v6677_v1 = vadd.f32 1.0, %v8204_v37  ;;  %8231 = vpow2.f32 %v6364_v23  ;;  %v6366_v17 = vmul.f32 1.442695, %v6341_v47  ;;  %v6627_v56 = vadd.f32 %v12190_v21, %v6609_v31 }
 0xa7e   :  { %v8208_v59 = vpop.eup %8207  ;;  %v6678_v3 = vadd.f32 1.0, %v8206_v6  ;;  %8233 = vpow2.f32 %v6362_v18  ;;  %v6640_v9 = vsub.f32 0.0, %v6626_v39 }
 0xa7f   :  { %v8210_v51 = vpop.eup %8209  ;;  %6405 = vst.msk [vmem:[%s12494_s16 + $0x108] sm:$0xff] %vm5947_vm8, %v8208_v59  ;;  %8235 = vrcp.f32 %v6677_v1  ;;  %v6641_v45 = vsub.f32 0.0, %v6627_v56  ;;  %v6600_v33 = vpop.xlane.xlu0 %6599 }
 0xa80   :  { %v8212_v44 = vpop.eup %8211  ;;  %6404 = vst.msk [vmem:[%s12494_s16 + $0x100] sm:$0xff] %vm5947_vm8, %v8210_v51  ;;  %8237 = vrcp.f32 %v6678_v3  ;;  %v6603_v36 = vpop.xlane.xlu1 %6602  ;;  %v6664_v63 = vmul.f32 1.442695, %v6640_v9  ;;  %v6624_v32 = vadd.f32 %v12190_v21, %v6600_v33 }
 0xa81   :  { %v8214_v40 = vpop.eup %8213  ;;  %6407 = vst.msk [vmem:[%s12494_s16 + $0x118] sm:$0xff] %vm5947_vm8, %v8212_v44  ;;  %8239 = vpow2.f32 %v6652_v10  ;;  %v6625_v7 = vadd.f32 %v12190_v21, %v6603_v36  ;;  %v6666_v49 = vmul.f32 1.442695, %v6641_v45 }
 0xa82   :  { %v8216_v53 = vpop.eup %8215  ;;  %6406 = vst.msk [vmem:[%s12494_s16 + $0x110] sm:$0xff] %vm5947_vm8, %v8214_v40  ;;  %8241 = vpow2.f32 %v6366_v17  ;;  %v6638_v11 = vsub.f32 0.0, %v6624_v32 }
 0xa83   :  { %v8218_v24 = vpop.eup %8217  ;;  %v6162_v20 = vadd.f32 1.0, %v8216_v53  ;;  %8243 = vpow2.f32 %v6664_v63  ;;  %v6639_v54 = vsub.f32 0.0, %v6625_v7  ;;  %v6612_v52 = vpop.xlane.xlu0 %6611 }
 0xa84   :  { %v8220_v25 = vpop.eup %8219  ;;  %v5930_v27 = vadd.f32 1.0, %v8218_v24  ;;  %8245 = vpow2.f32 %v6666_v49  ;;  %v6615_v34 = vpop.xlane.xlu1 %6614  ;;  %v6660_v15 = vmul.f32 1.442695, %v6638_v11  ;;  %v6628_v42 = vadd.f32 %v12190_v21, %v6612_v52 }
 0xa85   :  { %v8222_v48 = vpop.eup %8221  ;;  %6701 = vst.msk [vmem:[%s12494_s16 + $0x158] sm:$0xff] %vm5947_vm8, %v8220_v25  ;;  %8247 = vrcp.f32 %v6162_v20  ;;  %v6662_v28 = vmul.f32 1.442695, %v6639_v54  ;;  %v6629_v22 = vadd.f32 %v12190_v21, %v6615_v34 }
 0xa86   :  { %v8224_v55 = vpop.eup %8223  ;;  %6700 = vst.msk [vmem:[%s12494_s16 + $0x150] sm:$0xff] %vm5947_vm8, %v8222_v48  ;;  %8249 = vrcp.f32 %v5930_v27  ;;  %v6642_v16 = vsub.f32 0.0, %v6628_v42 }
 0xa87   :  { %v8226_v29 = vpop.eup %8225  ;;  %v6380_v41 = vadd.f32 1.0, %v8224_v55  ;;  %8251 = vpow2.f32 %v6660_v15  ;;  %v6643_v61 = vsub.f32 0.0, %v6629_v22 }
 0xa88   :  { %v8228_v13 = vpop.eup %8227  ;;  %v6163_v35 = vadd.f32 1.0, %v8226_v29  ;;  %8253 = vpow2.f32 %v6662_v28  ;;  %v6668_v19 = vmul.f32 1.442695, %v6642_v16 }
 0xa89   :  { %v8230_v60 = vpop.eup %8229  ;;  %6707 = vst.msk [vmem:[%s12494_s16 + $0x188] sm:$0xff] %vm5947_vm8, %v8228_v13  ;;  %8255 = vrcp.f32 %v6380_v41  ;;  %v6670_v21 = vmul.f32 1.442695, %v6643_v61 }
 0xa8a   :  { %v8232_v57 = vpop.eup %8231  ;;  %5958 = vst.msk [vmem:[%s12494_s16 + $0x50] sm:$0xff] %vm5947_vm8, %v8230_v60  ;;  %8257 = vrcp.f32 %v6163_v35 }
 0xa8b   :  { %v8234_v5 = vpop.eup %8233  ;;  %v6382_v62 = vadd.f32 1.0, %v8232_v57  ;;  %8259 = vpow2.f32 %v6668_v19 }
 0xa8c   :  { %v8236_v8 = vpop.eup %8235  ;;  %v6381_v4 = vadd.f32 1.0, %v8234_v5  ;;  %8261 = vpow2.f32 %v6670_v21 }
 0xa8d   :  { %v8238_v14 = vpop.eup %8237  ;;  %6705 = vst.msk [vmem:[%s12494_s16 + $0x178] sm:$0xff] %vm5947_vm8, %v8236_v8  ;;  %8263 = vrcp.f32 %v6382_v62 }
 0xa8e   :  { %v8240_v12 = vpop.eup %8239  ;;  %6706 = vst.msk [vmem:[%s12494_s16 + $0x180] sm:$0xff] %vm5947_vm8, %v8238_v14  ;;  %8265 = vrcp.f32 %v6381_v4 }
 0xa8f   :  { %v8242_v38 = vpop.eup %8241  ;;  %v6676_v46 = vadd.f32 1.0, %v8240_v12 }
 0xa90   :  { %v8244_v23 = vpop.eup %8243  ;;  %v6383_v50 = vadd.f32 1.0, %v8242_v38 }
 0xa91   :  { %v8246_v0 = vpop.eup %8245  ;;  %8267 = vrcp.f32 %v6676_v46  ;;  %v6682_v2 = vadd.f32 1.0, %v8244_v23 }
 0xa92   :  { %v8248_v18 = vpop.eup %8247  ;;  %8269 = vrcp.f32 %v6383_v50  ;;  %v6683_v58 = vadd.f32 1.0, %v8246_v0 }
 0xa93   :  { %v8250_v43 = vpop.eup %8249  ;;  %6190 = vst.msk [vmem:[%s12494_s16 + $0xc0] sm:$0xff] %vm5947_vm8, %v8248_v18  ;;  %8271 = vrcp.f32 %v6682_v2 }
 0xa94   :  { %v8252_v26 = vpop.eup %8251  ;;  %5959 = vst.msk [vmem:[%s12494_s16 + $0x58] sm:$0xff] %vm5947_vm8, %v8250_v43  ;;  %8273 = vrcp.f32 %v6683_v58 }
 0xa95   :  { %v8254_v37 = vpop.eup %8253  ;;  %v6680_v47 = vadd.f32 1.0, %v8252_v26 }
 0xa96   :  { %v8256_v30 = vpop.eup %8255  ;;  %v6681_v31 = vadd.f32 1.0, %v8254_v37 }
 0xa97   :  { %v8258_v6 = vpop.eup %8257  ;;  %6408 = vst.msk [vmem:[%s12494_s16 + $0x120] sm:$0xff] %vm5947_vm8, %v8256_v30  ;;  %8275 = vrcp.f32 %v6680_v47 }
 0xa98   :  { %v8260_v1 = vpop.eup %8259  ;;  %6191 = vst.msk [vmem:[%s12494_s16 + $0xc8] sm:$0xff] %vm5947_vm8, %v8258_v6  ;;  %8277 = vrcp.f32 %v6681_v31 }
 0xa99   :  { %v8262_v10 = vpop.eup %8261  ;;  %v6684_v39 = vadd.f32 1.0, %v8260_v1 }
 0xa9a   :  { %v8264_v59 = vpop.eup %8263  ;;  %v6685_v3 = vadd.f32 1.0, %v8262_v10 }
 0xa9b   :  { %v8266_v17 = vpop.eup %8265  ;;  %6410 = vst.msk [vmem:[%s12494_s16 + $0x130] sm:$0xff] %vm5947_vm8, %v8264_v59  ;;  %8279 = vrcp.f32 %v6684_v39 }
 0xa9c   :  { %6409 = vst.msk [vmem:[%s12494_s16 + $0x128] sm:$0xff] %vm5947_vm8, %v8266_v17  ;;  %8281 = vrcp.f32 %v6685_v3 }
 0xa9e   :  { %v8268_v56 = vpop.eup %8267 }
 0xa9f   :  { %v8270_v51 = vpop.eup %8269  ;;  %6704 = vst.msk [vmem:[%s12494_s16 + $0x170] sm:$0xff] %vm5947_vm8, %v8268_v56 }
 0xaa0   :  { %v8272_v9 = vpop.eup %8271  ;;  %6411 = vst.msk [vmem:[%s12494_s16 + $0x138] sm:$0xff] %vm5947_vm8, %v8270_v51 }
 0xaa1   :  { %v8274_v44 = vpop.eup %8273  ;;  %6710 = vst.msk [vmem:[%s12494_s16 + $0x1a0] sm:$0xff] %vm5947_vm8, %v8272_v9 }
 0xaa2   :  { %6711 = vst.msk [vmem:[%s12494_s16 + $0x1a8] sm:$0xff] %vm5947_vm8, %v8274_v44 }
 0xaa4   :  { %v8276_v45 = vpop.eup %8275 }
 0xaa5   :  { %v8278_v33 = vpop.eup %8277  ;;  %6708 = vst.msk [vmem:[%s12494_s16 + $0x190] sm:$0xff] %vm5947_vm8, %v8276_v45 }
 0xaa6   :  { %6709 = vst.msk [vmem:[%s12494_s16 + $0x198] sm:$0xff] %vm5947_vm8, %v8278_v33 }
 0xaa8   :  { %v8280_v36 = vpop.eup %8279 }
 0xaa9   :  { %v8282_v40 = vpop.eup %8281  ;;  %6712 = vst.msk [vmem:[%s12494_s16 + $0x1b0] sm:$0xff] %vm5947_vm8, %v8280_v36 }
 0xaaa   :  { %6713 = vst.msk [vmem:[%s12494_s16 + $0x1b8] sm:$0xff] %vm5947_vm8, %v8282_v40 }

</bundles_post_ra>
